<compile_context>
chip_gen: v7x
topology: tpu7x:2x2x1
jax: 0.10.0
libtpu: 0.0.40
codegen_flags: <defaults>
</compile_context>

<pallas_src>
import numpy as np
import jax
import jax.numpy as jnp
from jax.experimental import pallas as pl
from jax.experimental.pallas import tpu as pltpu

EPS = 1e-5
NEG_SLOPE = 0.2


# ----------------------------- kernel helpers ------------------------------

def _leaky_relu(y):
    return jnp.where(y > 0, y, NEG_SLOPE * y)


def _conv_bn_lrelu(act_f32, w_ref, s_ref, g_ref, b_ref):
    """One ConvolutionBlock: 4x4/s2/p1 conv (no bias) + BatchNorm (training-mode
    batch stats, biased variance) + LeakyReLU(0.2), entirely in VMEM.

    act_f32: (M_in, Cin)        f32 activation rows ordered (n, h, w)
    w_ref:   (16, Cin, Cout)    bf16 per-tap weights W_k
    s_ref:   (16*M_out, M_in)   bf16 fused 0/1 gather matrix (tap-major row blocks)
    g_ref/b_ref: (1, Cout)      f32 BN gamma/beta
    """
    m_out = s_ref.shape[0] // 16
    act = act_f32.astype(jnp.bfloat16)
    # ONE gather matmul per layer (activation pushed as MXU RHS once, not 16x),
    # then ONE downcast (replaces 16 per-tap casts; 0/1 selection is exact).
    gathered = jnp.dot(s_ref[...], act,
                       preferred_element_type=jnp.float32).astype(jnp.bfloat16)
    acc = None
    for k in range(16):  # static unroll; per-tap weight matmul on a static row slice
        g_k = gathered[k * m_out:(k + 1) * m_out, :]
        part = jnp.dot(g_k, w_ref[k], preferred_element_type=jnp.float32)
        acc = part if acc is None else acc + part
    # BatchNorm over all rows (= N*OH*OW), biased variance, training mode.
    mean = jnp.mean(acc, axis=0, keepdims=True)
    var = jnp.mean((acc - mean) ** 2, axis=0, keepdims=True)
    y = (acc - mean) * jax.lax.rsqrt(var + EPS) * g_ref[...] + b_ref[...]
    return _leaky_relu(y)


def discriminator_kernel(cols1_ref, w1_ref,
                         w2_ref, s2_ref, g2_ref, b2_ref,
                         w3_hbm_ref, s3_ref, g3_ref, b3_ref,
                         w4_hbm_ref, s4_ref, g4_ref, b4_ref,
                         wp_ref, bp_ref,
                         out_ref,
                         w3_vmem, w4_vmem, dma_sems):
    # Prefetch the two big weights from HBM (w3 first: it is needed first).
    # w3's DMA hides behind layer-1/2 compute, w4's behind layer-1..3 compute.
    # TODO(synk): on v5e, if w4_copy.wait() still shows a stall, split w4 into
    # two halves with per-half waits interleaved with the layer-4 tap loop.
    w3_copy = pltpu.make_async_copy(w3_hbm_ref, w3_vmem, dma_sems.at[0])
    w3_copy.start()
    w4_copy = pltpu.make_async_copy(w4_hbm_ref, w4_vmem, dma_sems.at[1])
    w4_copy.start()

    # Layer 1: conv as matmul on pre-built bf16 im2col columns + LeakyReLU, no BN.
    a1 = _leaky_relu(jnp.dot(cols1_ref[...], w1_ref[...],
                             preferred_element_type=jnp.float32))
    a2 = _conv_bn_lrelu(a1, w2_ref, s2_ref, g2_ref, b2_ref)

    w3_copy.wait()
    a3 = _conv_bn_lrelu(a2, w3_vmem, s3_ref, g3_ref, b3_ref)

    w4_copy.wait()
    a4 = _conv_bn_lrelu(a3, w4_vmem, s4_ref, g4_ref, b4_ref)

    # Patch head: 1x1 conv 512->1 (with bias) as VPU multiply + lane reduction
    # (avoids a degenerate (M,512)x(512,1) MXU matmul), then stable sigmoid.
    # (M,1) store is fine at toy M; make it lane-dense (1,M) when scaled up.
    y = jnp.sum(a4 * wp_ref[...], axis=1, keepdims=True) + bp_ref[...]
    z = jnp.exp(-jnp.abs(y))
    out_ref[...] = jnp.where(y >= 0, 1.0 / (1.0 + z), z / (1.0 + z))


# ------------------------------ JAX wrapper --------------------------------

def _im2col(x_nhwc):
    """4x4 / stride-2 / pad-1 patch extraction -> (N*OH*OW, 16*C). Layer 1 only."""
    N, H, W, C = x_nhwc.shape
    OH, OW = H // 2, W // 2
    xp = jnp.pad(x_nhwc, ((0, 0), (1, 1), (1, 1), (0, 0)))
    cols = []
    for kh in range(4):
        for kw in range(4):
            cols.append(xp[:, kh:kh + 2 * OH:2, kw:kw + 2 * OW:2, :])
    p = jnp.stack(cols, axis=3)                      # (N, OH, OW, 16, C)
    return p.reshape(N * OH * OW, 16 * C)


def _selection_matrix(N, H, W):
    """Fused 0/1 gather matrix S of shape (16*M_out, M_in), tap-major row blocks:
    (S @ act)[k*M_out + m, :] = tap-k input pixel of output row m
    (zeros where the 4x4/s2/p1 window hits padding)."""
    OH, OW = H // 2, W // 2
    m_out, m_in = N * OH * OW, N * H * W
    s = np.zeros((16, m_out, m_in), np.float32)
    for kh in range(4):
        for kw in range(4):
            k = kh * 4 + kw
            for n in range(N):
                for oh in range(OH):
                    for ow in range(OW):
                        h, w = 2 * oh + kh - 1, 2 * ow + kw - 1
                        if 0 <= h < H and 0 <= w < W:
                            s[k, (n * OH + oh) * OW + ow,
                              (n * H + h) * W + w] = 1.0
    return jnp.asarray(s.reshape(16 * m_out, m_in), jnp.bfloat16)


def prepare_params(params, N, H, W):
    """One-time relayout of PyTorch-style params into kernel operands (outside
    the traced forward): weights -> bf16 matmul layout, BN params stay f32."""
    prep = {}
    w1 = np.asarray(params["w1"])
    co1, ci1 = w1.shape[0], w1.shape[1]
    # (O,I,KH,KW) -> (KH,KW,I,O) -> (16*I, O): matches _im2col column order.
    prep["w1"] = jnp.asarray(
        w1.transpose(2, 3, 1, 0).reshape(16 * ci1, co1), jnp.bfloat16)

    h, w = H // 2, W // 2            # spatial size of each layer's *input*
    for i in (2, 3, 4):
        wi = np.asarray(params[f"w{i}"])
        co, ci = wi.shape[0], wi.shape[1]
        prep[f"w{i}"] = jnp.asarray(
            wi.transpose(2, 3, 1, 0).reshape(16, ci, co), jnp.bfloat16)
        prep[f"s{i}"] = _selection_matrix(N, h, w)
        prep[f"g{i}"] = jnp.asarray(params[f"g{i}"], jnp.float32).reshape(1, co)
        prep[f"b{i}"] = jnp.asarray(params[f"b{i}"], jnp.float32).reshape(1, co)
        h, w = h // 2, w // 2
    prep["wp"] = jnp.asarray(params["wp"], jnp.float32).reshape(1, -1)
    prep["bp"] = jnp.asarray(params["bp"], jnp.float32).reshape(1, 1)
    return prep


def _nbytes(a):
    return int(np.prod(a.shape)) * jnp.dtype(a.dtype).itemsize


def discriminator_forward(x_nchw, prep):
    x = jnp.transpose(x_nchw, (0, 2, 3, 1)).astype(jnp.float32)   # NHWC
    N, H, W, _ = x.shape
    oh4, ow4 = H // 16, W // 16          # spatial size after 4 stride-2 convs
    # Layer-1 im2col of the tiny raw image, pre-cast to bf16 (halves its DMA).
    cols1 = _im2col(x).astype(jnp.bfloat16)

    vmem = pl.BlockSpec(memory_space=pltpu.MemorySpace.VMEM)
    hbm = pl.BlockSpec(memory_space=pl.ANY)      # stays in HBM, manual DMA in-kernel
    in_specs = [
        vmem, vmem,                                   # cols1, w1
        vmem, vmem, vmem, vmem,                       # w2, s2, g2, b2
        hbm, vmem, vmem, vmem,                        # w3 (HBM), s3, g3, b3
        hbm, vmem, vmem, vmem,                        # w4 (HBM), s4, g4, b4
        vmem, vmem,                                   # wp, bp
    ]

    # Explicit VMEM budget: auto-staged operands + w3/w4 scratch + output,
    # with 2x slack for in-kernel temporaries (gathered / f32 accumulators).
    working = sum(_nbytes(prep[k]) for k in
                  ("w1", "w2", "s2", "g2", "b2", "s3", "g3", "b3",
                   "s4", "g4", "b4", "wp", "bp"))
    working += _nbytes(cols1) + _nbytes(prep["w3"]) + _nbytes(prep["w4"])
    working += N * oh4 * ow4 * 4
    vmem_limit = int(2 * working) + (8 << 20)

    out = pl.pallas_call(
        discriminator_kernel,
        out_shape=jax.ShapeDtypeStruct((N * oh4 * ow4, 1), jnp.float32),
        in_specs=in_specs,
        out_specs=vmem,
        scratch_shapes=[
            pltpu.VMEM(prep["w3"].shape, jnp.bfloat16),   # layer-3 weight buffer
            pltpu.VMEM(prep["w4"].shape, jnp.bfloat16),   # layer-4 weight buffer
            pltpu.SemaphoreType.DMA((2,)),                # w3 / w4 DMA semaphores
        ],
        compiler_params=pltpu.CompilerParams(vmem_limit_bytes=vmem_limit),
    )(cols1, prep["w1"],
      prep["w2"], prep["s2"], prep["g2"], prep["b2"],
      prep["w3"], prep["s3"], prep["g3"], prep["b3"],
      prep["w4"], prep["s4"], prep["g4"], prep["b4"],
      prep["wp"], prep["bp"])

    return jnp.transpose(out.reshape(N, oh4, ow4, 1), (0, 3, 1, 2))   # NCHW


def init_params(key, in_ch):
    """Deterministic synthetic init (PyTorch-like uniform(-1/sqrt(fan_in)))."""
    chans = [(in_ch, 64), (64, 128), (128, 256), (256, 512)]
    keys = jax.random.split(key, 6)
    params = {}
    for i, (ci, co) in enumerate(chans, start=1):
        bound = 1.0 / ((ci * 16) ** 0.5)
        params[f"w{i}"] = jax.random.uniform(
            keys[i - 1], (co, ci, 4, 4), jnp.float32, -bound, bound)
        if i > 1:  # layers 2-4 have batchnorm
            params[f"g{i}"] = jnp.ones((co,), jnp.float32)
            params[f"b{i}"] = jnp.zeros((co,), jnp.float32)
    bound = 1.0 / (512 ** 0.5)
    params["wp"] = jax.random.uniform(keys[4], (1, 512, 1, 1),
                                      jnp.float32, -bound, bound)
    params["bp"] = jax.random.uniform(keys[5], (1,),
                                      jnp.float32, -bound, bound)
    return params


if __name__ == "__main__":
    key = jax.random.PRNGKey(0)
    k_param, k_x = jax.random.split(key)
    in_ch, N, H, W = 4, 2, 16, 16
    x = jax.random.normal(k_x, (N, in_ch, H, W), jnp.float32)     # NCHW input
    params = init_params(k_param, in_ch)
    prep = prepare_params(params, N, H, W)                        # one-time relayout

    fwd = jax.jit(discriminator_forward)
    out = jax.block_until_ready(fwd(x, prep))

    assert out.shape == (N, 1, 1, 1), out.shape
    assert bool(jnp.all((out >= 0.0) & (out <= 1.0)))
    assert bool(jnp.all(jnp.isfinite(out)))
    print("KERNEL_OK")
</pallas_src>

<mosaic_0001>
module attributes {stable_mosaic.version = 11 : i64} {
  func.func @discriminator_kernel(%arg0: memref<128x64xbf16, #tpu.memory_space<vmem>>, %arg1: memref<64x64xbf16, #tpu.memory_space<vmem>>, %arg2: memref<16x64x128xbf16, #tpu.memory_space<vmem>>, %arg3: memref<512x128xbf16, #tpu.memory_space<vmem>>, %arg4: memref<1x128xf32, #tpu.memory_space<vmem>>, %arg5: memref<1x128xf32, #tpu.memory_space<vmem>>, %arg6: memref<16x128x256xbf16, #tpu.memory_space<any>>, %arg7: memref<128x32xbf16, #tpu.memory_space<vmem>>, %arg8: memref<1x256xf32, #tpu.memory_space<vmem>>, %arg9: memref<1x256xf32, #tpu.memory_space<vmem>>, %arg10: memref<16x256x512xbf16, #tpu.memory_space<any>>, %arg11: memref<32x8xbf16, #tpu.memory_space<vmem>>, %arg12: memref<1x512xf32, #tpu.memory_space<vmem>>, %arg13: memref<1x512xf32, #tpu.memory_space<vmem>>, %arg14: memref<1x512xf32, #tpu.memory_space<vmem>>, %arg15: memref<1x1xf32, #tpu.memory_space<vmem>>, %arg16: memref<2x1xf32, #tpu.memory_space<vmem>>, %arg17: memref<16x128x256xbf16, #tpu.memory_space<vmem>>, %arg18: memref<16x256x512xbf16, #tpu.memory_space<vmem>>, %arg19: memref<2x!tpu.dma_semaphore, #tpu.memory_space<semaphore_mem>>) attributes {dimension_semantics = [], scalar_prefetch = 0 : i64, scratch_operands = 3 : i64, tpu.core_type = #tpu.core_type<tc>} {
    %c0_i32 = arith.constant 0 : i32
    %0 = tpu.memref_slice %arg19[%c0_i32] : memref<2x!tpu.dma_semaphore, #tpu.memory_space<semaphore_mem>> -> memref<1x!tpu.dma_semaphore, #tpu.memory_space<semaphore_mem>>
    %1 = tpu.memref_squeeze %0 : memref<1x!tpu.dma_semaphore, #tpu.memory_space<semaphore_mem>> -> memref<!tpu.dma_semaphore, #tpu.memory_space<semaphore_mem>>
    tpu.enqueue_dma source(%arg6 : memref<16x128x256xbf16, #tpu.memory_space<any>>) target(%arg17 : memref<16x128x256xbf16, #tpu.memory_space<vmem>>) target_semaphore(%1 : memref<!tpu.dma_semaphore, #tpu.memory_space<semaphore_mem>>)
    %c1_i32 = arith.constant 1 : i32
    %2 = tpu.memref_slice %arg19[%c1_i32] : memref<2x!tpu.dma_semaphore, #tpu.memory_space<semaphore_mem>> -> memref<1x!tpu.dma_semaphore, #tpu.memory_space<semaphore_mem>>
    %3 = tpu.memref_squeeze %2 : memref<1x!tpu.dma_semaphore, #tpu.memory_space<semaphore_mem>> -> memref<!tpu.dma_semaphore, #tpu.memory_space<semaphore_mem>>
    tpu.enqueue_dma source(%arg10 : memref<16x256x512xbf16, #tpu.memory_space<any>>) target(%arg18 : memref<16x256x512xbf16, #tpu.memory_space<vmem>>) target_semaphore(%3 : memref<!tpu.dma_semaphore, #tpu.memory_space<semaphore_mem>>)
    %c0 = arith.constant 0 : index
    %c0_0 = arith.constant 0 : index
    %4 = vector.load %arg0[%c0, %c0_0] : memref<128x64xbf16, #tpu.memory_space<vmem>>, vector<128x64xbf16>
    %c0_1 = arith.constant 0 : index
    %c0_2 = arith.constant 0 : index
    %5 = vector.load %arg1[%c0_1, %c0_2] : memref<64x64xbf16, #tpu.memory_space<vmem>>, vector<64x64xbf16>
    %cst = arith.constant dense<0.000000e+00> : vector<128x64xf32>
    %6 = tpu.matmul %4, %5, %cst {dimension_numbers = #tpu.dot_dimension_numbers<[1], [0], [0], [1], [0, 0, 1, 1], [], []>} : vector<128x64xbf16>, vector<64x64xbf16>, vector<128x64xf32> -> vector<128x64xf32>
    %cst_3 = arith.constant 0.000000e+00 : f32
    %7 = vector.broadcast %cst_3 : f32 to vector<128x64xf32>
    %8 = arith.cmpf ogt, %6, %7 : vector<128x64xf32>
    %cst_4 = arith.constant 2.000000e-01 : f32
    %9 = vector.broadcast %cst_4 : f32 to vector<128x64xf32>
    %10 = arith.mulf %9, %6 : vector<128x64xf32>
    %11 = arith.select %8, %6, %10 : vector<128x64xi1>, vector<128x64xf32>
    %12 = arith.truncf %11 : vector<128x64xf32> to vector<128x64xbf16>
    %c0_5 = arith.constant 0 : index
    %c0_6 = arith.constant 0 : index
    %13 = vector.load %arg3[%c0_5, %c0_6] : memref<512x128xbf16, #tpu.memory_space<vmem>>, vector<512x128xbf16>
    %cst_7 = arith.constant dense<0.000000e+00> : vector<512x64xf32>
    %14 = tpu.matmul %13, %12, %cst_7 {dimension_numbers = #tpu.dot_dimension_numbers<[1], [0], [0], [1], [0, 0, 1, 1], [], []>} : vector<512x128xbf16>, vector<128x64xbf16>, vector<512x64xf32> -> vector<512x64xf32>
    %15 = arith.truncf %14 : vector<512x64xf32> to vector<512x64xbf16>
    %16 = vector.extract_strided_slice %15 {offsets = [0, 0], sizes = [32, 64], strides = [1, 1]} : vector<512x64xbf16> to vector<32x64xbf16>
    %c0_8 = arith.constant 0 : index
    %c0_9 = arith.constant 0 : index
    %c0_10 = arith.constant 0 : index
    %17 = vector.load %arg2[%c0_8, %c0_9, %c0_10] : memref<16x64x128xbf16, #tpu.memory_space<vmem>>, vector<1x64x128xbf16>
    %18 = vector.shape_cast %17 : vector<1x64x128xbf16> to vector<64x128xbf16>
    %cst_11 = arith.constant dense<0.000000e+00> : vector<32x128xf32>
    %19 = tpu.matmul %16, %18, %cst_11 {dimension_numbers = #tpu.dot_dimension_numbers<[1], [0], [0], [1], [0, 0, 1, 1], [], []>} : vector<32x64xbf16>, vector<64x128xbf16>, vector<32x128xf32> -> vector<32x128xf32>
    %20 = vector.extract_strided_slice %15 {offsets = [32, 0], sizes = [32, 64], strides = [1, 1]} : vector<512x64xbf16> to vector<32x64xbf16>
    %c1 = arith.constant 1 : index
    %c0_12 = arith.constant 0 : index
    %c0_13 = arith.constant 0 : index
    %21 = vector.load %arg2[%c1, %c0_12, %c0_13] : memref<16x64x128xbf16, #tpu.memory_space<vmem>>, vector<1x64x128xbf16>
    %22 = vector.shape_cast %21 : vector<1x64x128xbf16> to vector<64x128xbf16>
    %cst_14 = arith.constant dense<0.000000e+00> : vector<32x128xf32>
    %23 = tpu.matmul %20, %22, %cst_14 {dimension_numbers = #tpu.dot_dimension_numbers<[1], [0], [0], [1], [0, 0, 1, 1], [], []>} : vector<32x64xbf16>, vector<64x128xbf16>, vector<32x128xf32> -> vector<32x128xf32>
    %24 = arith.addf %19, %23 : vector<32x128xf32>
    %25 = vector.extract_strided_slice %15 {offsets = [64, 0], sizes = [32, 64], strides = [1, 1]} : vector<512x64xbf16> to vector<32x64xbf16>
    %c2 = arith.constant 2 : index
    %c0_15 = arith.constant 0 : index
    %c0_16 = arith.constant 0 : index
    %26 = vector.load %arg2[%c2, %c0_15, %c0_16] : memref<16x64x128xbf16, #tpu.memory_space<vmem>>, vector<1x64x128xbf16>
    %27 = vector.shape_cast %26 : vector<1x64x128xbf16> to vector<64x128xbf16>
    %cst_17 = arith.constant dense<0.000000e+00> : vector<32x128xf32>
    %28 = tpu.matmul %25, %27, %cst_17 {dimension_numbers = #tpu.dot_dimension_numbers<[1], [0], [0], [1], [0, 0, 1, 1], [], []>} : vector<32x64xbf16>, vector<64x128xbf16>, vector<32x128xf32> -> vector<32x128xf32>
    %29 = arith.addf %24, %28 : vector<32x128xf32>
    %30 = vector.extract_strided_slice %15 {offsets = [96, 0], sizes = [32, 64], strides = [1, 1]} : vector<512x64xbf16> to vector<32x64xbf16>
    %c3 = arith.constant 3 : index
    %c0_18 = arith.constant 0 : index
    %c0_19 = arith.constant 0 : index
    %31 = vector.load %arg2[%c3, %c0_18, %c0_19] : memref<16x64x128xbf16, #tpu.memory_space<vmem>>, vector<1x64x128xbf16>
    %32 = vector.shape_cast %31 : vector<1x64x128xbf16> to vector<64x128xbf16>
    %cst_20 = arith.constant dense<0.000000e+00> : vector<32x128xf32>
    %33 = tpu.matmul %30, %32, %cst_20 {dimension_numbers = #tpu.dot_dimension_numbers<[1], [0], [0], [1], [0, 0, 1, 1], [], []>} : vector<32x64xbf16>, vector<64x128xbf16>, vector<32x128xf32> -> vector<32x128xf32>
    %34 = arith.addf %29, %33 : vector<32x128xf32>
    %35 = vector.extract_strided_slice %15 {offsets = [128, 0], sizes = [32, 64], strides = [1, 1]} : vector<512x64xbf16> to vector<32x64xbf16>
    %c4 = arith.constant 4 : index
    %c0_21 = arith.constant 0 : index
    %c0_22 = arith.constant 0 : index
    %36 = vector.load %arg2[%c4, %c0_21, %c0_22] : memref<16x64x128xbf16, #tpu.memory_space<vmem>>, vector<1x64x128xbf16>
    %37 = vector.shape_cast %36 : vector<1x64x128xbf16> to vector<64x128xbf16>
    %cst_23 = arith.constant dense<0.000000e+00> : vector<32x128xf32>
    %38 = tpu.matmul %35, %37, %cst_23 {dimension_numbers = #tpu.dot_dimension_numbers<[1], [0], [0], [1], [0, 0, 1, 1], [], []>} : vector<32x64xbf16>, vector<64x128xbf16>, vector<32x128xf32> -> vector<32x128xf32>
    %39 = arith.addf %34, %38 : vector<32x128xf32>
    %40 = vector.extract_strided_slice %15 {offsets = [160, 0], sizes = [32, 64], strides = [1, 1]} : vector<512x64xbf16> to vector<32x64xbf16>
    %c5 = arith.constant 5 : index
    %c0_24 = arith.constant 0 : index
    %c0_25 = arith.constant 0 : index
    %41 = vector.load %arg2[%c5, %c0_24, %c0_25] : memref<16x64x128xbf16, #tpu.memory_space<vmem>>, vector<1x64x128xbf16>
    %42 = vector.shape_cast %41 : vector<1x64x128xbf16> to vector<64x128xbf16>
    %cst_26 = arith.constant dense<0.000000e+00> : vector<32x128xf32>
    %43 = tpu.matmul %40, %42, %cst_26 {dimension_numbers = #tpu.dot_dimension_numbers<[1], [0], [0], [1], [0, 0, 1, 1], [], []>} : vector<32x64xbf16>, vector<64x128xbf16>, vector<32x128xf32> -> vector<32x128xf32>
    %44 = arith.addf %39, %43 : vector<32x128xf32>
    %45 = vector.extract_strided_slice %15 {offsets = [192, 0], sizes = [32, 64], strides = [1, 1]} : vector<512x64xbf16> to vector<32x64xbf16>
    %c6 = arith.constant 6 : index
    %c0_27 = arith.constant 0 : index
    %c0_28 = arith.constant 0 : index
    %46 = vector.load %arg2[%c6, %c0_27, %c0_28] : memref<16x64x128xbf16, #tpu.memory_space<vmem>>, vector<1x64x128xbf16>
    %47 = vector.shape_cast %46 : vector<1x64x128xbf16> to vector<64x128xbf16>
    %cst_29 = arith.constant dense<0.000000e+00> : vector<32x128xf32>
    %48 = tpu.matmul %45, %47, %cst_29 {dimension_numbers = #tpu.dot_dimension_numbers<[1], [0], [0], [1], [0, 0, 1, 1], [], []>} : vector<32x64xbf16>, vector<64x128xbf16>, vector<32x128xf32> -> vector<32x128xf32>
    %49 = arith.addf %44, %48 : vector<32x128xf32>
    %50 = vector.extract_strided_slice %15 {offsets = [224, 0], sizes = [32, 64], strides = [1, 1]} : vector<512x64xbf16> to vector<32x64xbf16>
    %c7 = arith.constant 7 : index
    %c0_30 = arith.constant 0 : index
    %c0_31 = arith.constant 0 : index
    %51 = vector.load %arg2[%c7, %c0_30, %c0_31] : memref<16x64x128xbf16, #tpu.memory_space<vmem>>, vector<1x64x128xbf16>
    %52 = vector.shape_cast %51 : vector<1x64x128xbf16> to vector<64x128xbf16>
    %cst_32 = arith.constant dense<0.000000e+00> : vector<32x128xf32>
    %53 = tpu.matmul %50, %52, %cst_32 {dimension_numbers = #tpu.dot_dimension_numbers<[1], [0], [0], [1], [0, 0, 1, 1], [], []>} : vector<32x64xbf16>, vector<64x128xbf16>, vector<32x128xf32> -> vector<32x128xf32>
    %54 = arith.addf %49, %53 : vector<32x128xf32>
    %55 = vector.extract_strided_slice %15 {offsets = [256, 0], sizes = [32, 64], strides = [1, 1]} : vector<512x64xbf16> to vector<32x64xbf16>
    %c8 = arith.constant 8 : index
    %c0_33 = arith.constant 0 : index
    %c0_34 = arith.constant 0 : index
    %56 = vector.load %arg2[%c8, %c0_33, %c0_34] : memref<16x64x128xbf16, #tpu.memory_space<vmem>>, vector<1x64x128xbf16>
    %57 = vector.shape_cast %56 : vector<1x64x128xbf16> to vector<64x128xbf16>
    %cst_35 = arith.constant dense<0.000000e+00> : vector<32x128xf32>
    %58 = tpu.matmul %55, %57, %cst_35 {dimension_numbers = #tpu.dot_dimension_numbers<[1], [0], [0], [1], [0, 0, 1, 1], [], []>} : vector<32x64xbf16>, vector<64x128xbf16>, vector<32x128xf32> -> vector<32x128xf32>
    %59 = arith.addf %54, %58 : vector<32x128xf32>
    %60 = vector.extract_strided_slice %15 {offsets = [288, 0], sizes = [32, 64], strides = [1, 1]} : vector<512x64xbf16> to vector<32x64xbf16>
    %c9 = arith.constant 9 : index
    %c0_36 = arith.constant 0 : index
    %c0_37 = arith.constant 0 : index
    %61 = vector.load %arg2[%c9, %c0_36, %c0_37] : memref<16x64x128xbf16, #tpu.memory_space<vmem>>, vector<1x64x128xbf16>
    %62 = vector.shape_cast %61 : vector<1x64x128xbf16> to vector<64x128xbf16>
    %cst_38 = arith.constant dense<0.000000e+00> : vector<32x128xf32>
    %63 = tpu.matmul %60, %62, %cst_38 {dimension_numbers = #tpu.dot_dimension_numbers<[1], [0], [0], [1], [0, 0, 1, 1], [], []>} : vector<32x64xbf16>, vector<64x128xbf16>, vector<32x128xf32> -> vector<32x128xf32>
    %64 = arith.addf %59, %63 : vector<32x128xf32>
    %65 = vector.extract_strided_slice %15 {offsets = [320, 0], sizes = [32, 64], strides = [1, 1]} : vector<512x64xbf16> to vector<32x64xbf16>
    %c10 = arith.constant 10 : index
    %c0_39 = arith.constant 0 : index
    %c0_40 = arith.constant 0 : index
    %66 = vector.load %arg2[%c10, %c0_39, %c0_40] : memref<16x64x128xbf16, #tpu.memory_space<vmem>>, vector<1x64x128xbf16>
    %67 = vector.shape_cast %66 : vector<1x64x128xbf16> to vector<64x128xbf16>
    %cst_41 = arith.constant dense<0.000000e+00> : vector<32x128xf32>
    %68 = tpu.matmul %65, %67, %cst_41 {dimension_numbers = #tpu.dot_dimension_numbers<[1], [0], [0], [1], [0, 0, 1, 1], [], []>} : vector<32x64xbf16>, vector<64x128xbf16>, vector<32x128xf32> -> vector<32x128xf32>
    %69 = arith.addf %64, %68 : vector<32x128xf32>
    %70 = vector.extract_strided_slice %15 {offsets = [352, 0], sizes = [32, 64], strides = [1, 1]} : vector<512x64xbf16> to vector<32x64xbf16>
    %c11 = arith.constant 11 : index
    %c0_42 = arith.constant 0 : index
    %c0_43 = arith.constant 0 : index
    %71 = vector.load %arg2[%c11, %c0_42, %c0_43] : memref<16x64x128xbf16, #tpu.memory_space<vmem>>, vector<1x64x128xbf16>
    %72 = vector.shape_cast %71 : vector<1x64x128xbf16> to vector<64x128xbf16>
    %cst_44 = arith.constant dense<0.000000e+00> : vector<32x128xf32>
    %73 = tpu.matmul %70, %72, %cst_44 {dimension_numbers = #tpu.dot_dimension_numbers<[1], [0], [0], [1], [0, 0, 1, 1], [], []>} : vector<32x64xbf16>, vector<64x128xbf16>, vector<32x128xf32> -> vector<32x128xf32>
    %74 = arith.addf %69, %73 : vector<32x128xf32>
    %75 = vector.extract_strided_slice %15 {offsets = [384, 0], sizes = [32, 64], strides = [1, 1]} : vector<512x64xbf16> to vector<32x64xbf16>
    %c12 = arith.constant 12 : index
    %c0_45 = arith.constant 0 : index
    %c0_46 = arith.constant 0 : index
    %76 = vector.load %arg2[%c12, %c0_45, %c0_46] : memref<16x64x128xbf16, #tpu.memory_space<vmem>>, vector<1x64x128xbf16>
    %77 = vector.shape_cast %76 : vector<1x64x128xbf16> to vector<64x128xbf16>
    %cst_47 = arith.constant dense<0.000000e+00> : vector<32x128xf32>
    %78 = tpu.matmul %75, %77, %cst_47 {dimension_numbers = #tpu.dot_dimension_numbers<[1], [0], [0], [1], [0, 0, 1, 1], [], []>} : vector<32x64xbf16>, vector<64x128xbf16>, vector<32x128xf32> -> vector<32x128xf32>
    %79 = arith.addf %74, %78 : vector<32x128xf32>
    %80 = vector.extract_strided_slice %15 {offsets = [416, 0], sizes = [32, 64], strides = [1, 1]} : vector<512x64xbf16> to vector<32x64xbf16>
    %c13 = arith.constant 13 : index
    %c0_48 = arith.constant 0 : index
    %c0_49 = arith.constant 0 : index
    %81 = vector.load %arg2[%c13, %c0_48, %c0_49] : memref<16x64x128xbf16, #tpu.memory_space<vmem>>, vector<1x64x128xbf16>
    %82 = vector.shape_cast %81 : vector<1x64x128xbf16> to vector<64x128xbf16>
    %cst_50 = arith.constant dense<0.000000e+00> : vector<32x128xf32>
    %83 = tpu.matmul %80, %82, %cst_50 {dimension_numbers = #tpu.dot_dimension_numbers<[1], [0], [0], [1], [0, 0, 1, 1], [], []>} : vector<32x64xbf16>, vector<64x128xbf16>, vector<32x128xf32> -> vector<32x128xf32>
    %84 = arith.addf %79, %83 : vector<32x128xf32>
    %85 = vector.extract_strided_slice %15 {offsets = [448, 0], sizes = [32, 64], strides = [1, 1]} : vector<512x64xbf16> to vector<32x64xbf16>
    %c14 = arith.constant 14 : index
    %c0_51 = arith.constant 0 : index
    %c0_52 = arith.constant 0 : index
    %86 = vector.load %arg2[%c14, %c0_51, %c0_52] : memref<16x64x128xbf16, #tpu.memory_space<vmem>>, vector<1x64x128xbf16>
    %87 = vector.shape_cast %86 : vector<1x64x128xbf16> to vector<64x128xbf16>
    %cst_53 = arith.constant dense<0.000000e+00> : vector<32x128xf32>
    %88 = tpu.matmul %85, %87, %cst_53 {dimension_numbers = #tpu.dot_dimension_numbers<[1], [0], [0], [1], [0, 0, 1, 1], [], []>} : vector<32x64xbf16>, vector<64x128xbf16>, vector<32x128xf32> -> vector<32x128xf32>
    %89 = arith.addf %84, %88 : vector<32x128xf32>
    %90 = vector.extract_strided_slice %15 {offsets = [480, 0], sizes = [32, 64], strides = [1, 1]} : vector<512x64xbf16> to vector<32x64xbf16>
    %c15 = arith.constant 15 : index
    %c0_54 = arith.constant 0 : index
    %c0_55 = arith.constant 0 : index
    %91 = vector.load %arg2[%c15, %c0_54, %c0_55] : memref<16x64x128xbf16, #tpu.memory_space<vmem>>, vector<1x64x128xbf16>
    %92 = vector.shape_cast %91 : vector<1x64x128xbf16> to vector<64x128xbf16>
    %cst_56 = arith.constant dense<0.000000e+00> : vector<32x128xf32>
    %93 = tpu.matmul %90, %92, %cst_56 {dimension_numbers = #tpu.dot_dimension_numbers<[1], [0], [0], [1], [0, 0, 1, 1], [], []>} : vector<32x64xbf16>, vector<64x128xbf16>, vector<32x128xf32> -> vector<32x128xf32>
    %94 = arith.addf %89, %93 : vector<32x128xf32>
    %cst_57 = arith.constant dense<0.000000e+00> : vector<128xf32>
    %95 = vector.multi_reduction <add>, %94, %cst_57 [0] : vector<32x128xf32> to vector<128xf32>
    %96 = vector.shape_cast %95 : vector<128xf32> to vector<1x128xf32>
    %cst_58 = arith.constant 3.200000e+01 : f32
    %97 = vector.broadcast %cst_58 : f32 to vector<1x128xf32>
    %98 = arith.divf %96, %97 : vector<1x128xf32>
    %99 = vector.broadcast %98 : vector<1x128xf32> to vector<32x128xf32>
    %100 = arith.subf %94, %99 : vector<32x128xf32>
    %101 = arith.mulf %100, %100 : vector<32x128xf32>
    %cst_59 = arith.constant dense<0.000000e+00> : vector<128xf32>
    %102 = vector.multi_reduction <add>, %101, %cst_59 [0] : vector<32x128xf32> to vector<128xf32>
    %103 = vector.shape_cast %102 : vector<128xf32> to vector<1x128xf32>
    %cst_60 = arith.constant 3.200000e+01 : f32
    %104 = vector.broadcast %cst_60 : f32 to vector<1x128xf32>
    %105 = arith.divf %103, %104 : vector<1x128xf32>
    %106 = vector.broadcast %98 : vector<1x128xf32> to vector<32x128xf32>
    %107 = arith.subf %94, %106 : vector<32x128xf32>
    %cst_61 = arith.constant 9.99999974E-6 : f32
    %108 = vector.broadcast %cst_61 : f32 to vector<1x128xf32>
    %109 = arith.addf %105, %108 : vector<1x128xf32>
    %110 = math.rsqrt %109 : vector<1x128xf32>
    %111 = vector.broadcast %110 : vector<1x128xf32> to vector<32x128xf32>
    %112 = arith.mulf %107, %111 : vector<32x128xf32>
    %c0_62 = arith.constant 0 : index
    %c0_63 = arith.constant 0 : index
    %113 = vector.load %arg4[%c0_62, %c0_63] : memref<1x128xf32, #tpu.memory_space<vmem>>, vector<1x128xf32>
    %114 = vector.broadcast %113 : vector<1x128xf32> to vector<32x128xf32>
    %115 = arith.mulf %112, %114 : vector<32x128xf32>
    %c0_64 = arith.constant 0 : index
    %c0_65 = arith.constant 0 : index
    %116 = vector.load %arg5[%c0_64, %c0_65] : memref<1x128xf32, #tpu.memory_space<vmem>>, vector<1x128xf32>
    %117 = vector.broadcast %116 : vector<1x128xf32> to vector<32x128xf32>
    %118 = arith.addf %115, %117 : vector<32x128xf32>
    %cst_66 = arith.constant 0.000000e+00 : f32
    %119 = vector.broadcast %cst_66 : f32 to vector<32x128xf32>
    %120 = arith.cmpf ogt, %118, %119 : vector<32x128xf32>
    %cst_67 = arith.constant 2.000000e-01 : f32
    %121 = vector.broadcast %cst_67 : f32 to vector<32x128xf32>
    %122 = arith.mulf %121, %118 : vector<32x128xf32>
    %123 = arith.select %120, %118, %122 : vector<32x128xi1>, vector<32x128xf32>
    %c0_i32_68 = arith.constant 0 : i32
    %124 = tpu.memref_slice %arg19[%c0_i32_68] : memref<2x!tpu.dma_semaphore, #tpu.memory_space<semaphore_mem>> -> memref<1x!tpu.dma_semaphore, #tpu.memory_space<semaphore_mem>>
    %125 = tpu.memref_squeeze %124 : memref<1x!tpu.dma_semaphore, #tpu.memory_space<semaphore_mem>> -> memref<!tpu.dma_semaphore, #tpu.memory_space<semaphore_mem>>
    tpu.wait_dma2 semaphore(%125 : memref<!tpu.dma_semaphore, #tpu.memory_space<semaphore_mem>>) src(%arg6 : memref<16x128x256xbf16, #tpu.memory_space<any>>) dst(%arg17 : memref<16x128x256xbf16, #tpu.memory_space<vmem>>)
    %126 = arith.truncf %123 : vector<32x128xf32> to vector<32x128xbf16>
    %c0_69 = arith.constant 0 : index
    %c0_70 = arith.constant 0 : index
    %127 = vector.load %arg7[%c0_69, %c0_70] : memref<128x32xbf16, #tpu.memory_space<vmem>>, vector<128x32xbf16>
    %cst_71 = arith.constant dense<0.000000e+00> : vector<128x128xf32>
    %128 = tpu.matmul %127, %126, %cst_71 {dimension_numbers = #tpu.dot_dimension_numbers<[1], [0], [0], [1], [0, 0, 1, 1], [], []>} : vector<128x32xbf16>, vector<32x128xbf16>, vector<128x128xf32> -> vector<128x128xf32>
    %129 = arith.truncf %128 : vector<128x128xf32> to vector<128x128xbf16>
    %130 = vector.extract_strided_slice %129 {offsets = [0, 0], sizes = [8, 128], strides = [1, 1]} : vector<128x128xbf16> to vector<8x128xbf16>
    %c0_72 = arith.constant 0 : index
    %c0_73 = arith.constant 0 : index
    %c0_74 = arith.constant 0 : index
    %131 = vector.load %arg17[%c0_72, %c0_73, %c0_74] : memref<16x128x256xbf16, #tpu.memory_space<vmem>>, vector<1x128x256xbf16>
    %132 = vector.shape_cast %131 : vector<1x128x256xbf16> to vector<128x256xbf16>
    %cst_75 = arith.constant dense<0.000000e+00> : vector<8x256xf32>
    %133 = tpu.matmul %130, %132, %cst_75 {dimension_numbers = #tpu.dot_dimension_numbers<[1], [0], [0], [1], [0, 0, 1, 1], [], []>} : vector<8x128xbf16>, vector<128x256xbf16>, vector<8x256xf32> -> vector<8x256xf32>
    %134 = vector.extract_strided_slice %129 {offsets = [8, 0], sizes = [8, 128], strides = [1, 1]} : vector<128x128xbf16> to vector<8x128xbf16>
    %c1_76 = arith.constant 1 : index
    %c0_77 = arith.constant 0 : index
    %c0_78 = arith.constant 0 : index
    %135 = vector.load %arg17[%c1_76, %c0_77, %c0_78] : memref<16x128x256xbf16, #tpu.memory_space<vmem>>, vector<1x128x256xbf16>
    %136 = vector.shape_cast %135 : vector<1x128x256xbf16> to vector<128x256xbf16>
    %cst_79 = arith.constant dense<0.000000e+00> : vector<8x256xf32>
    %137 = tpu.matmul %134, %136, %cst_79 {dimension_numbers = #tpu.dot_dimension_numbers<[1], [0], [0], [1], [0, 0, 1, 1], [], []>} : vector<8x128xbf16>, vector<128x256xbf16>, vector<8x256xf32> -> vector<8x256xf32>
    %138 = arith.addf %133, %137 : vector<8x256xf32>
    %139 = vector.extract_strided_slice %129 {offsets = [16, 0], sizes = [8, 128], strides = [1, 1]} : vector<128x128xbf16> to vector<8x128xbf16>
    %c2_80 = arith.constant 2 : index
    %c0_81 = arith.constant 0 : index
    %c0_82 = arith.constant 0 : index
    %140 = vector.load %arg17[%c2_80, %c0_81, %c0_82] : memref<16x128x256xbf16, #tpu.memory_space<vmem>>, vector<1x128x256xbf16>
    %141 = vector.shape_cast %140 : vector<1x128x256xbf16> to vector<128x256xbf16>
    %cst_83 = arith.constant dense<0.000000e+00> : vector<8x256xf32>
    %142 = tpu.matmul %139, %141, %cst_83 {dimension_numbers = #tpu.dot_dimension_numbers<[1], [0], [0], [1], [0, 0, 1, 1], [], []>} : vector<8x128xbf16>, vector<128x256xbf16>, vector<8x256xf32> -> vector<8x256xf32>
    %143 = arith.addf %138, %142 : vector<8x256xf32>
    %144 = vector.extract_strided_slice %129 {offsets = [24, 0], sizes = [8, 128], strides = [1, 1]} : vector<128x128xbf16> to vector<8x128xbf16>
    %c3_84 = arith.constant 3 : index
    %c0_85 = arith.constant 0 : index
    %c0_86 = arith.constant 0 : index
    %145 = vector.load %arg17[%c3_84, %c0_85, %c0_86] : memref<16x128x256xbf16, #tpu.memory_space<vmem>>, vector<1x128x256xbf16>
    %146 = vector.shape_cast %145 : vector<1x128x256xbf16> to vector<128x256xbf16>
    %cst_87 = arith.constant dense<0.000000e+00> : vector<8x256xf32>
    %147 = tpu.matmul %144, %146, %cst_87 {dimension_numbers = #tpu.dot_dimension_numbers<[1], [0], [0], [1], [0, 0, 1, 1], [], []>} : vector<8x128xbf16>, vector<128x256xbf16>, vector<8x256xf32> -> vector<8x256xf32>
    %148 = arith.addf %143, %147 : vector<8x256xf32>
    %149 = vector.extract_strided_slice %129 {offsets = [32, 0], sizes = [8, 128], strides = [1, 1]} : vector<128x128xbf16> to vector<8x128xbf16>
    %c4_88 = arith.constant 4 : index
    %c0_89 = arith.constant 0 : index
    %c0_90 = arith.constant 0 : index
    %150 = vector.load %arg17[%c4_88, %c0_89, %c0_90] : memref<16x128x256xbf16, #tpu.memory_space<vmem>>, vector<1x128x256xbf16>
    %151 = vector.shape_cast %150 : vector<1x128x256xbf16> to vector<128x256xbf16>
    %cst_91 = arith.constant dense<0.000000e+00> : vector<8x256xf32>
    %152 = tpu.matmul %149, %151, %cst_91 {dimension_numbers = #tpu.dot_dimension_numbers<[1], [0], [0], [1], [0, 0, 1, 1], [], []>} : vector<8x128xbf16>, vector<128x256xbf16>, vector<8x256xf32> -> vector<8x256xf32>
    %153 = arith.addf %148, %152 : vector<8x256xf32>
    %154 = vector.extract_strided_slice %129 {offsets = [40, 0], sizes = [8, 128], strides = [1, 1]} : vector<128x128xbf16> to vector<8x128xbf16>
    %c5_92 = arith.constant 5 : index
    %c0_93 = arith.constant 0 : index
    %c0_94 = arith.constant 0 : index
    %155 = vector.load %arg17[%c5_92, %c0_93, %c0_94] : memref<16x128x256xbf16, #tpu.memory_space<vmem>>, vector<1x128x256xbf16>
    %156 = vector.shape_cast %155 : vector<1x128x256xbf16> to vector<128x256xbf16>
    %cst_95 = arith.constant dense<0.000000e+00> : vector<8x256xf32>
    %157 = tpu.matmul %154, %156, %cst_95 {dimension_numbers = #tpu.dot_dimension_numbers<[1], [0], [0], [1], [0, 0, 1, 1], [], []>} : vector<8x128xbf16>, vector<128x256xbf16>, vector<8x256xf32> -> vector<8x256xf32>
    %158 = arith.addf %153, %157 : vector<8x256xf32>
    %159 = vector.extract_strided_slice %129 {offsets = [48, 0], sizes = [8, 128], strides = [1, 1]} : vector<128x128xbf16> to vector<8x128xbf16>
    %c6_96 = arith.constant 6 : index
    %c0_97 = arith.constant 0 : index
    %c0_98 = arith.constant 0 : index
    %160 = vector.load %arg17[%c6_96, %c0_97, %c0_98] : memref<16x128x256xbf16, #tpu.memory_space<vmem>>, vector<1x128x256xbf16>
    %161 = vector.shape_cast %160 : vector<1x128x256xbf16> to vector<128x256xbf16>
    %cst_99 = arith.constant dense<0.000000e+00> : vector<8x256xf32>
    %162 = tpu.matmul %159, %161, %cst_99 {dimension_numbers = #tpu.dot_dimension_numbers<[1], [0], [0], [1], [0, 0, 1, 1], [], []>} : vector<8x128xbf16>, vector<128x256xbf16>, vector<8x256xf32> -> vector<8x256xf32>
    %163 = arith.addf %158, %162 : vector<8x256xf32>
    %164 = vector.extract_strided_slice %129 {offsets = [56, 0], sizes = [8, 128], strides = [1, 1]} : vector<128x128xbf16> to vector<8x128xbf16>
    %c7_100 = arith.constant 7 : index
    %c0_101 = arith.constant 0 : index
    %c0_102 = arith.constant 0 : index
    %165 = vector.load %arg17[%c7_100, %c0_101, %c0_102] : memref<16x128x256xbf16, #tpu.memory_space<vmem>>, vector<1x128x256xbf16>
    %166 = vector.shape_cast %165 : vector<1x128x256xbf16> to vector<128x256xbf16>
    %cst_103 = arith.constant dense<0.000000e+00> : vector<8x256xf32>
    %167 = tpu.matmul %164, %166, %cst_103 {dimension_numbers = #tpu.dot_dimension_numbers<[1], [0], [0], [1], [0, 0, 1, 1], [], []>} : vector<8x128xbf16>, vector<128x256xbf16>, vector<8x256xf32> -> vector<8x256xf32>
    %168 = arith.addf %163, %167 : vector<8x256xf32>
    %169 = vector.extract_strided_slice %129 {offsets = [64, 0], sizes = [8, 128], strides = [1, 1]} : vector<128x128xbf16> to vector<8x128xbf16>
    %c8_104 = arith.constant 8 : index
    %c0_105 = arith.constant 0 : index
    %c0_106 = arith.constant 0 : index
    %170 = vector.load %arg17[%c8_104, %c0_105, %c0_106] : memref<16x128x256xbf16, #tpu.memory_space<vmem>>, vector<1x128x256xbf16>
    %171 = vector.shape_cast %170 : vector<1x128x256xbf16> to vector<128x256xbf16>
    %cst_107 = arith.constant dense<0.000000e+00> : vector<8x256xf32>
    %172 = tpu.matmul %169, %171, %cst_107 {dimension_numbers = #tpu.dot_dimension_numbers<[1], [0], [0], [1], [0, 0, 1, 1], [], []>} : vector<8x128xbf16>, vector<128x256xbf16>, vector<8x256xf32> -> vector<8x256xf32>
    %173 = arith.addf %168, %172 : vector<8x256xf32>
    %174 = vector.extract_strided_slice %129 {offsets = [72, 0], sizes = [8, 128], strides = [1, 1]} : vector<128x128xbf16> to vector<8x128xbf16>
    %c9_108 = arith.constant 9 : index
    %c0_109 = arith.constant 0 : index
    %c0_110 = arith.constant 0 : index
    %175 = vector.load %arg17[%c9_108, %c0_109, %c0_110] : memref<16x128x256xbf16, #tpu.memory_space<vmem>>, vector<1x128x256xbf16>
    %176 = vector.shape_cast %175 : vector<1x128x256xbf16> to vector<128x256xbf16>
    %cst_111 = arith.constant dense<0.000000e+00> : vector<8x256xf32>
    %177 = tpu.matmul %174, %176, %cst_111 {dimension_numbers = #tpu.dot_dimension_numbers<[1], [0], [0], [1], [0, 0, 1, 1], [], []>} : vector<8x128xbf16>, vector<128x256xbf16>, vector<8x256xf32> -> vector<8x256xf32>
    %178 = arith.addf %173, %177 : vector<8x256xf32>
    %179 = vector.extract_strided_slice %129 {offsets = [80, 0], sizes = [8, 128], strides = [1, 1]} : vector<128x128xbf16> to vector<8x128xbf16>
    %c10_112 = arith.constant 10 : index
    %c0_113 = arith.constant 0 : index
    %c0_114 = arith.constant 0 : index
    %180 = vector.load %arg17[%c10_112, %c0_113, %c0_114] : memref<16x128x256xbf16, #tpu.memory_space<vmem>>, vector<1x128x256xbf16>
    %181 = vector.shape_cast %180 : vector<1x128x256xbf16> to vector<128x256xbf16>
    %cst_115 = arith.constant dense<0.000000e+00> : vector<8x256xf32>
    %182 = tpu.matmul %179, %181, %cst_115 {dimension_numbers = #tpu.dot_dimension_numbers<[1], [0], [0], [1], [0, 0, 1, 1], [], []>} : vector<8x128xbf16>, vector<128x256xbf16>, vector<8x256xf32> -> vector<8x256xf32>
    %183 = arith.addf %178, %182 : vector<8x256xf32>
    %184 = vector.extract_strided_slice %129 {offsets = [88, 0], sizes = [8, 128], strides = [1, 1]} : vector<128x128xbf16> to vector<8x128xbf16>
    %c11_116 = arith.constant 11 : index
    %c0_117 = arith.constant 0 : index
    %c0_118 = arith.constant 0 : index
    %185 = vector.load %arg17[%c11_116, %c0_117, %c0_118] : memref<16x128x256xbf16, #tpu.memory_space<vmem>>, vector<1x128x256xbf16>
    %186 = vector.shape_cast %185 : vector<1x128x256xbf16> to vector<128x256xbf16>
    %cst_119 = arith.constant dense<0.000000e+00> : vector<8x256xf32>
    %187 = tpu.matmul %184, %186, %cst_119 {dimension_numbers = #tpu.dot_dimension_numbers<[1], [0], [0], [1], [0, 0, 1, 1], [], []>} : vector<8x128xbf16>, vector<128x256xbf16>, vector<8x256xf32> -> vector<8x256xf32>
    %188 = arith.addf %183, %187 : vector<8x256xf32>
    %189 = vector.extract_strided_slice %129 {offsets = [96, 0], sizes = [8, 128], strides = [1, 1]} : vector<128x128xbf16> to vector<8x128xbf16>
    %c12_120 = arith.constant 12 : index
    %c0_121 = arith.constant 0 : index
    %c0_122 = arith.constant 0 : index
    %190 = vector.load %arg17[%c12_120, %c0_121, %c0_122] : memref<16x128x256xbf16, #tpu.memory_space<vmem>>, vector<1x128x256xbf16>
    %191 = vector.shape_cast %190 : vector<1x128x256xbf16> to vector<128x256xbf16>
    %cst_123 = arith.constant dense<0.000000e+00> : vector<8x256xf32>
    %192 = tpu.matmul %189, %191, %cst_123 {dimension_numbers = #tpu.dot_dimension_numbers<[1], [0], [0], [1], [0, 0, 1, 1], [], []>} : vector<8x128xbf16>, vector<128x256xbf16>, vector<8x256xf32> -> vector<8x256xf32>
    %193 = arith.addf %188, %192 : vector<8x256xf32>
    %194 = vector.extract_strided_slice %129 {offsets = [104, 0], sizes = [8, 128], strides = [1, 1]} : vector<128x128xbf16> to vector<8x128xbf16>
    %c13_124 = arith.constant 13 : index
    %c0_125 = arith.constant 0 : index
    %c0_126 = arith.constant 0 : index
    %195 = vector.load %arg17[%c13_124, %c0_125, %c0_126] : memref<16x128x256xbf16, #tpu.memory_space<vmem>>, vector<1x128x256xbf16>
    %196 = vector.shape_cast %195 : vector<1x128x256xbf16> to vector<128x256xbf16>
    %cst_127 = arith.constant dense<0.000000e+00> : vector<8x256xf32>
    %197 = tpu.matmul %194, %196, %cst_127 {dimension_numbers = #tpu.dot_dimension_numbers<[1], [0], [0], [1], [0, 0, 1, 1], [], []>} : vector<8x128xbf16>, vector<128x256xbf16>, vector<8x256xf32> -> vector<8x256xf32>
    %198 = arith.addf %193, %197 : vector<8x256xf32>
    %199 = vector.extract_strided_slice %129 {offsets = [112, 0], sizes = [8, 128], strides = [1, 1]} : vector<128x128xbf16> to vector<8x128xbf16>
    %c14_128 = arith.constant 14 : index
    %c0_129 = arith.constant 0 : index
    %c0_130 = arith.constant 0 : index
    %200 = vector.load %arg17[%c14_128, %c0_129, %c0_130] : memref<16x128x256xbf16, #tpu.memory_space<vmem>>, vector<1x128x256xbf16>
    %201 = vector.shape_cast %200 : vector<1x128x256xbf16> to vector<128x256xbf16>
    %cst_131 = arith.constant dense<0.000000e+00> : vector<8x256xf32>
    %202 = tpu.matmul %199, %201, %cst_131 {dimension_numbers = #tpu.dot_dimension_numbers<[1], [0], [0], [1], [0, 0, 1, 1], [], []>} : vector<8x128xbf16>, vector<128x256xbf16>, vector<8x256xf32> -> vector<8x256xf32>
    %203 = arith.addf %198, %202 : vector<8x256xf32>
    %204 = vector.extract_strided_slice %129 {offsets = [120, 0], sizes = [8, 128], strides = [1, 1]} : vector<128x128xbf16> to vector<8x128xbf16>
    %c15_132 = arith.constant 15 : index
    %c0_133 = arith.constant 0 : index
    %c0_134 = arith.constant 0 : index
    %205 = vector.load %arg17[%c15_132, %c0_133, %c0_134] : memref<16x128x256xbf16, #tpu.memory_space<vmem>>, vector<1x128x256xbf16>
    %206 = vector.shape_cast %205 : vector<1x128x256xbf16> to vector<128x256xbf16>
    %cst_135 = arith.constant dense<0.000000e+00> : vector<8x256xf32>
    %207 = tpu.matmul %204, %206, %cst_135 {dimension_numbers = #tpu.dot_dimension_numbers<[1], [0], [0], [1], [0, 0, 1, 1], [], []>} : vector<8x128xbf16>, vector<128x256xbf16>, vector<8x256xf32> -> vector<8x256xf32>
    %208 = arith.addf %203, %207 : vector<8x256xf32>
    %cst_136 = arith.constant dense<0.000000e+00> : vector<256xf32>
    %209 = vector.multi_reduction <add>, %208, %cst_136 [0] : vector<8x256xf32> to vector<256xf32>
    %210 = vector.shape_cast %209 : vector<256xf32> to vector<1x256xf32>
    %cst_137 = arith.constant 8.000000e+00 : f32
    %211 = vector.broadcast %cst_137 : f32 to vector<1x256xf32>
    %212 = arith.divf %210, %211 : vector<1x256xf32>
    %213 = vector.broadcast %212 : vector<1x256xf32> to vector<8x256xf32>
    %214 = arith.subf %208, %213 : vector<8x256xf32>
    %215 = arith.mulf %214, %214 : vector<8x256xf32>
    %cst_138 = arith.constant dense<0.000000e+00> : vector<256xf32>
    %216 = vector.multi_reduction <add>, %215, %cst_138 [0] : vector<8x256xf32> to vector<256xf32>
    %217 = vector.shape_cast %216 : vector<256xf32> to vector<1x256xf32>
    %cst_139 = arith.constant 8.000000e+00 : f32
    %218 = vector.broadcast %cst_139 : f32 to vector<1x256xf32>
    %219 = arith.divf %217, %218 : vector<1x256xf32>
    %220 = vector.broadcast %212 : vector<1x256xf32> to vector<8x256xf32>
    %221 = arith.subf %208, %220 : vector<8x256xf32>
    %cst_140 = arith.constant 9.99999974E-6 : f32
    %222 = vector.broadcast %cst_140 : f32 to vector<1x256xf32>
    %223 = arith.addf %219, %222 : vector<1x256xf32>
    %224 = math.rsqrt %223 : vector<1x256xf32>
    %225 = vector.broadcast %224 : vector<1x256xf32> to vector<8x256xf32>
    %226 = arith.mulf %221, %225 : vector<8x256xf32>
    %c0_141 = arith.constant 0 : index
    %c0_142 = arith.constant 0 : index
    %227 = vector.load %arg8[%c0_141, %c0_142] : memref<1x256xf32, #tpu.memory_space<vmem>>, vector<1x256xf32>
    %228 = vector.broadcast %227 : vector<1x256xf32> to vector<8x256xf32>
    %229 = arith.mulf %226, %228 : vector<8x256xf32>
    %c0_143 = arith.constant 0 : index
    %c0_144 = arith.constant 0 : index
    %230 = vector.load %arg9[%c0_143, %c0_144] : memref<1x256xf32, #tpu.memory_space<vmem>>, vector<1x256xf32>
    %231 = vector.broadcast %230 : vector<1x256xf32> to vector<8x256xf32>
    %232 = arith.addf %229, %231 : vector<8x256xf32>
    %cst_145 = arith.constant 0.000000e+00 : f32
    %233 = vector.broadcast %cst_145 : f32 to vector<8x256xf32>
    %234 = arith.cmpf ogt, %232, %233 : vector<8x256xf32>
    %cst_146 = arith.constant 2.000000e-01 : f32
    %235 = vector.broadcast %cst_146 : f32 to vector<8x256xf32>
    %236 = arith.mulf %235, %232 : vector<8x256xf32>
    %237 = arith.select %234, %232, %236 : vector<8x256xi1>, vector<8x256xf32>
    %c1_i32_147 = arith.constant 1 : i32
    %238 = tpu.memref_slice %arg19[%c1_i32_147] : memref<2x!tpu.dma_semaphore, #tpu.memory_space<semaphore_mem>> -> memref<1x!tpu.dma_semaphore, #tpu.memory_space<semaphore_mem>>
    %239 = tpu.memref_squeeze %238 : memref<1x!tpu.dma_semaphore, #tpu.memory_space<semaphore_mem>> -> memref<!tpu.dma_semaphore, #tpu.memory_space<semaphore_mem>>
    tpu.wait_dma2 semaphore(%239 : memref<!tpu.dma_semaphore, #tpu.memory_space<semaphore_mem>>) src(%arg10 : memref<16x256x512xbf16, #tpu.memory_space<any>>) dst(%arg18 : memref<16x256x512xbf16, #tpu.memory_space<vmem>>)
    %240 = arith.truncf %237 : vector<8x256xf32> to vector<8x256xbf16>
    %c0_148 = arith.constant 0 : index
    %c0_149 = arith.constant 0 : index
    %241 = vector.load %arg11[%c0_148, %c0_149] : memref<32x8xbf16, #tpu.memory_space<vmem>>, vector<32x8xbf16>
    %cst_150 = arith.constant dense<0.000000e+00> : vector<32x256xf32>
    %242 = tpu.matmul %241, %240, %cst_150 {dimension_numbers = #tpu.dot_dimension_numbers<[1], [0], [0], [1], [0, 0, 1, 1], [], []>} : vector<32x8xbf16>, vector<8x256xbf16>, vector<32x256xf32> -> vector<32x256xf32>
    %243 = arith.truncf %242 : vector<32x256xf32> to vector<32x256xbf16>
    %244 = vector.extract_strided_slice %243 {offsets = [0, 0], sizes = [2, 256], strides = [1, 1]} : vector<32x256xbf16> to vector<2x256xbf16>
    %c0_151 = arith.constant 0 : index
    %c0_152 = arith.constant 0 : index
    %c0_153 = arith.constant 0 : index
    %245 = vector.load %arg18[%c0_151, %c0_152, %c0_153] : memref<16x256x512xbf16, #tpu.memory_space<vmem>>, vector<1x256x512xbf16>
    %246 = vector.shape_cast %245 : vector<1x256x512xbf16> to vector<256x512xbf16>
    %cst_154 = arith.constant dense<0.000000e+00> : vector<2x512xf32>
    %247 = tpu.matmul %244, %246, %cst_154 {dimension_numbers = #tpu.dot_dimension_numbers<[1], [0], [0], [1], [0, 0, 1, 1], [], []>} : vector<2x256xbf16>, vector<256x512xbf16>, vector<2x512xf32> -> vector<2x512xf32>
    %248 = vector.extract_strided_slice %243 {offsets = [2, 0], sizes = [2, 256], strides = [1, 1]} : vector<32x256xbf16> to vector<2x256xbf16>
    %c1_155 = arith.constant 1 : index
    %c0_156 = arith.constant 0 : index
    %c0_157 = arith.constant 0 : index
    %249 = vector.load %arg18[%c1_155, %c0_156, %c0_157] : memref<16x256x512xbf16, #tpu.memory_space<vmem>>, vector<1x256x512xbf16>
    %250 = vector.shape_cast %249 : vector<1x256x512xbf16> to vector<256x512xbf16>
    %cst_158 = arith.constant dense<0.000000e+00> : vector<2x512xf32>
    %251 = tpu.matmul %248, %250, %cst_158 {dimension_numbers = #tpu.dot_dimension_numbers<[1], [0], [0], [1], [0, 0, 1, 1], [], []>} : vector<2x256xbf16>, vector<256x512xbf16>, vector<2x512xf32> -> vector<2x512xf32>
    %252 = arith.addf %247, %251 : vector<2x512xf32>
    %253 = vector.extract_strided_slice %243 {offsets = [4, 0], sizes = [2, 256], strides = [1, 1]} : vector<32x256xbf16> to vector<2x256xbf16>
    %c2_159 = arith.constant 2 : index
    %c0_160 = arith.constant 0 : index
    %c0_161 = arith.constant 0 : index
    %254 = vector.load %arg18[%c2_159, %c0_160, %c0_161] : memref<16x256x512xbf16, #tpu.memory_space<vmem>>, vector<1x256x512xbf16>
    %255 = vector.shape_cast %254 : vector<1x256x512xbf16> to vector<256x512xbf16>
    %cst_162 = arith.constant dense<0.000000e+00> : vector<2x512xf32>
    %256 = tpu.matmul %253, %255, %cst_162 {dimension_numbers = #tpu.dot_dimension_numbers<[1], [0], [0], [1], [0, 0, 1, 1], [], []>} : vector<2x256xbf16>, vector<256x512xbf16>, vector<2x512xf32> -> vector<2x512xf32>
    %257 = arith.addf %252, %256 : vector<2x512xf32>
    %258 = vector.extract_strided_slice %243 {offsets = [6, 0], sizes = [2, 256], strides = [1, 1]} : vector<32x256xbf16> to vector<2x256xbf16>
    %c3_163 = arith.constant 3 : index
    %c0_164 = arith.constant 0 : index
    %c0_165 = arith.constant 0 : index
    %259 = vector.load %arg18[%c3_163, %c0_164, %c0_165] : memref<16x256x512xbf16, #tpu.memory_space<vmem>>, vector<1x256x512xbf16>
    %260 = vector.shape_cast %259 : vector<1x256x512xbf16> to vector<256x512xbf16>
    %cst_166 = arith.constant dense<0.000000e+00> : vector<2x512xf32>
    %261 = tpu.matmul %258, %260, %cst_166 {dimension_numbers = #tpu.dot_dimension_numbers<[1], [0], [0], [1], [0, 0, 1, 1], [], []>} : vector<2x256xbf16>, vector<256x512xbf16>, vector<2x512xf32> -> vector<2x512xf32>
    %262 = arith.addf %257, %261 : vector<2x512xf32>
    %263 = vector.extract_strided_slice %243 {offsets = [8, 0], sizes = [2, 256], strides = [1, 1]} : vector<32x256xbf16> to vector<2x256xbf16>
    %c4_167 = arith.constant 4 : index
    %c0_168 = arith.constant 0 : index
    %c0_169 = arith.constant 0 : index
    %264 = vector.load %arg18[%c4_167, %c0_168, %c0_169] : memref<16x256x512xbf16, #tpu.memory_space<vmem>>, vector<1x256x512xbf16>
    %265 = vector.shape_cast %264 : vector<1x256x512xbf16> to vector<256x512xbf16>
    %cst_170 = arith.constant dense<0.000000e+00> : vector<2x512xf32>
    %266 = tpu.matmul %263, %265, %cst_170 {dimension_numbers = #tpu.dot_dimension_numbers<[1], [0], [0], [1], [0, 0, 1, 1], [], []>} : vector<2x256xbf16>, vector<256x512xbf16>, vector<2x512xf32> -> vector<2x512xf32>
    %267 = arith.addf %262, %266 : vector<2x512xf32>
    %268 = vector.extract_strided_slice %243 {offsets = [10, 0], sizes = [2, 256], strides = [1, 1]} : vector<32x256xbf16> to vector<2x256xbf16>
    %c5_171 = arith.constant 5 : index
    %c0_172 = arith.constant 0 : index
    %c0_173 = arith.constant 0 : index
    %269 = vector.load %arg18[%c5_171, %c0_172, %c0_173] : memref<16x256x512xbf16, #tpu.memory_space<vmem>>, vector<1x256x512xbf16>
    %270 = vector.shape_cast %269 : vector<1x256x512xbf16> to vector<256x512xbf16>
    %cst_174 = arith.constant dense<0.000000e+00> : vector<2x512xf32>
    %271 = tpu.matmul %268, %270, %cst_174 {dimension_numbers = #tpu.dot_dimension_numbers<[1], [0], [0], [1], [0, 0, 1, 1], [], []>} : vector<2x256xbf16>, vector<256x512xbf16>, vector<2x512xf32> -> vector<2x512xf32>
    %272 = arith.addf %267, %271 : vector<2x512xf32>
    %273 = vector.extract_strided_slice %243 {offsets = [12, 0], sizes = [2, 256], strides = [1, 1]} : vector<32x256xbf16> to vector<2x256xbf16>
    %c6_175 = arith.constant 6 : index
    %c0_176 = arith.constant 0 : index
    %c0_177 = arith.constant 0 : index
    %274 = vector.load %arg18[%c6_175, %c0_176, %c0_177] : memref<16x256x512xbf16, #tpu.memory_space<vmem>>, vector<1x256x512xbf16>
    %275 = vector.shape_cast %274 : vector<1x256x512xbf16> to vector<256x512xbf16>
    %cst_178 = arith.constant dense<0.000000e+00> : vector<2x512xf32>
    %276 = tpu.matmul %273, %275, %cst_178 {dimension_numbers = #tpu.dot_dimension_numbers<[1], [0], [0], [1], [0, 0, 1, 1], [], []>} : vector<2x256xbf16>, vector<256x512xbf16>, vector<2x512xf32> -> vector<2x512xf32>
    %277 = arith.addf %272, %276 : vector<2x512xf32>
    %278 = vector.extract_strided_slice %243 {offsets = [14, 0], sizes = [2, 256], strides = [1, 1]} : vector<32x256xbf16> to vector<2x256xbf16>
    %c7_179 = arith.constant 7 : index
    %c0_180 = arith.constant 0 : index
    %c0_181 = arith.constant 0 : index
    %279 = vector.load %arg18[%c7_179, %c0_180, %c0_181] : memref<16x256x512xbf16, #tpu.memory_space<vmem>>, vector<1x256x512xbf16>
    %280 = vector.shape_cast %279 : vector<1x256x512xbf16> to vector<256x512xbf16>
    %cst_182 = arith.constant dense<0.000000e+00> : vector<2x512xf32>
    %281 = tpu.matmul %278, %280, %cst_182 {dimension_numbers = #tpu.dot_dimension_numbers<[1], [0], [0], [1], [0, 0, 1, 1], [], []>} : vector<2x256xbf16>, vector<256x512xbf16>, vector<2x512xf32> -> vector<2x512xf32>
    %282 = arith.addf %277, %281 : vector<2x512xf32>
    %283 = vector.extract_strided_slice %243 {offsets = [16, 0], sizes = [2, 256], strides = [1, 1]} : vector<32x256xbf16> to vector<2x256xbf16>
    %c8_183 = arith.constant 8 : index
    %c0_184 = arith.constant 0 : index
    %c0_185 = arith.constant 0 : index
    %284 = vector.load %arg18[%c8_183, %c0_184, %c0_185] : memref<16x256x512xbf16, #tpu.memory_space<vmem>>, vector<1x256x512xbf16>
    %285 = vector.shape_cast %284 : vector<1x256x512xbf16> to vector<256x512xbf16>
    %cst_186 = arith.constant dense<0.000000e+00> : vector<2x512xf32>
    %286 = tpu.matmul %283, %285, %cst_186 {dimension_numbers = #tpu.dot_dimension_numbers<[1], [0], [0], [1], [0, 0, 1, 1], [], []>} : vector<2x256xbf16>, vector<256x512xbf16>, vector<2x512xf32> -> vector<2x512xf32>
    %287 = arith.addf %282, %286 : vector<2x512xf32>
    %288 = vector.extract_strided_slice %243 {offsets = [18, 0], sizes = [2, 256], strides = [1, 1]} : vector<32x256xbf16> to vector<2x256xbf16>
    %c9_187 = arith.constant 9 : index
    %c0_188 = arith.constant 0 : index
    %c0_189 = arith.constant 0 : index
    %289 = vector.load %arg18[%c9_187, %c0_188, %c0_189] : memref<16x256x512xbf16, #tpu.memory_space<vmem>>, vector<1x256x512xbf16>
    %290 = vector.shape_cast %289 : vector<1x256x512xbf16> to vector<256x512xbf16>
    %cst_190 = arith.constant dense<0.000000e+00> : vector<2x512xf32>
    %291 = tpu.matmul %288, %290, %cst_190 {dimension_numbers = #tpu.dot_dimension_numbers<[1], [0], [0], [1], [0, 0, 1, 1], [], []>} : vector<2x256xbf16>, vector<256x512xbf16>, vector<2x512xf32> -> vector<2x512xf32>
    %292 = arith.addf %287, %291 : vector<2x512xf32>
    %293 = vector.extract_strided_slice %243 {offsets = [20, 0], sizes = [2, 256], strides = [1, 1]} : vector<32x256xbf16> to vector<2x256xbf16>
    %c10_191 = arith.constant 10 : index
    %c0_192 = arith.constant 0 : index
    %c0_193 = arith.constant 0 : index
    %294 = vector.load %arg18[%c10_191, %c0_192, %c0_193] : memref<16x256x512xbf16, #tpu.memory_space<vmem>>, vector<1x256x512xbf16>
    %295 = vector.shape_cast %294 : vector<1x256x512xbf16> to vector<256x512xbf16>
    %cst_194 = arith.constant dense<0.000000e+00> : vector<2x512xf32>
    %296 = tpu.matmul %293, %295, %cst_194 {dimension_numbers = #tpu.dot_dimension_numbers<[1], [0], [0], [1], [0, 0, 1, 1], [], []>} : vector<2x256xbf16>, vector<256x512xbf16>, vector<2x512xf32> -> vector<2x512xf32>
    %297 = arith.addf %292, %296 : vector<2x512xf32>
    %298 = vector.extract_strided_slice %243 {offsets = [22, 0], sizes = [2, 256], strides = [1, 1]} : vector<32x256xbf16> to vector<2x256xbf16>
    %c11_195 = arith.constant 11 : index
    %c0_196 = arith.constant 0 : index
    %c0_197 = arith.constant 0 : index
    %299 = vector.load %arg18[%c11_195, %c0_196, %c0_197] : memref<16x256x512xbf16, #tpu.memory_space<vmem>>, vector<1x256x512xbf16>
    %300 = vector.shape_cast %299 : vector<1x256x512xbf16> to vector<256x512xbf16>
    %cst_198 = arith.constant dense<0.000000e+00> : vector<2x512xf32>
    %301 = tpu.matmul %298, %300, %cst_198 {dimension_numbers = #tpu.dot_dimension_numbers<[1], [0], [0], [1], [0, 0, 1, 1], [], []>} : vector<2x256xbf16>, vector<256x512xbf16>, vector<2x512xf32> -> vector<2x512xf32>
    %302 = arith.addf %297, %301 : vector<2x512xf32>
    %303 = vector.extract_strided_slice %243 {offsets = [24, 0], sizes = [2, 256], strides = [1, 1]} : vector<32x256xbf16> to vector<2x256xbf16>
    %c12_199 = arith.constant 12 : index
    %c0_200 = arith.constant 0 : index
    %c0_201 = arith.constant 0 : index
    %304 = vector.load %arg18[%c12_199, %c0_200, %c0_201] : memref<16x256x512xbf16, #tpu.memory_space<vmem>>, vector<1x256x512xbf16>
    %305 = vector.shape_cast %304 : vector<1x256x512xbf16> to vector<256x512xbf16>
    %cst_202 = arith.constant dense<0.000000e+00> : vector<2x512xf32>
    %306 = tpu.matmul %303, %305, %cst_202 {dimension_numbers = #tpu.dot_dimension_numbers<[1], [0], [0], [1], [0, 0, 1, 1], [], []>} : vector<2x256xbf16>, vector<256x512xbf16>, vector<2x512xf32> -> vector<2x512xf32>
    %307 = arith.addf %302, %306 : vector<2x512xf32>
    %308 = vector.extract_strided_slice %243 {offsets = [26, 0], sizes = [2, 256], strides = [1, 1]} : vector<32x256xbf16> to vector<2x256xbf16>
    %c13_203 = arith.constant 13 : index
    %c0_204 = arith.constant 0 : index
    %c0_205 = arith.constant 0 : index
    %309 = vector.load %arg18[%c13_203, %c0_204, %c0_205] : memref<16x256x512xbf16, #tpu.memory_space<vmem>>, vector<1x256x512xbf16>
    %310 = vector.shape_cast %309 : vector<1x256x512xbf16> to vector<256x512xbf16>
    %cst_206 = arith.constant dense<0.000000e+00> : vector<2x512xf32>
    %311 = tpu.matmul %308, %310, %cst_206 {dimension_numbers = #tpu.dot_dimension_numbers<[1], [0], [0], [1], [0, 0, 1, 1], [], []>} : vector<2x256xbf16>, vector<256x512xbf16>, vector<2x512xf32> -> vector<2x512xf32>
    %312 = arith.addf %307, %311 : vector<2x512xf32>
    %313 = vector.extract_strided_slice %243 {offsets = [28, 0], sizes = [2, 256], strides = [1, 1]} : vector<32x256xbf16> to vector<2x256xbf16>
    %c14_207 = arith.constant 14 : index
    %c0_208 = arith.constant 0 : index
    %c0_209 = arith.constant 0 : index
    %314 = vector.load %arg18[%c14_207, %c0_208, %c0_209] : memref<16x256x512xbf16, #tpu.memory_space<vmem>>, vector<1x256x512xbf16>
    %315 = vector.shape_cast %314 : vector<1x256x512xbf16> to vector<256x512xbf16>
    %cst_210 = arith.constant dense<0.000000e+00> : vector<2x512xf32>
    %316 = tpu.matmul %313, %315, %cst_210 {dimension_numbers = #tpu.dot_dimension_numbers<[1], [0], [0], [1], [0, 0, 1, 1], [], []>} : vector<2x256xbf16>, vector<256x512xbf16>, vector<2x512xf32> -> vector<2x512xf32>
    %317 = arith.addf %312, %316 : vector<2x512xf32>
    %318 = vector.extract_strided_slice %243 {offsets = [30, 0], sizes = [2, 256], strides = [1, 1]} : vector<32x256xbf16> to vector<2x256xbf16>
    %c15_211 = arith.constant 15 : index
    %c0_212 = arith.constant 0 : index
    %c0_213 = arith.constant 0 : index
    %319 = vector.load %arg18[%c15_211, %c0_212, %c0_213] : memref<16x256x512xbf16, #tpu.memory_space<vmem>>, vector<1x256x512xbf16>
    %320 = vector.shape_cast %319 : vector<1x256x512xbf16> to vector<256x512xbf16>
    %cst_214 = arith.constant dense<0.000000e+00> : vector<2x512xf32>
    %321 = tpu.matmul %318, %320, %cst_214 {dimension_numbers = #tpu.dot_dimension_numbers<[1], [0], [0], [1], [0, 0, 1, 1], [], []>} : vector<2x256xbf16>, vector<256x512xbf16>, vector<2x512xf32> -> vector<2x512xf32>
    %322 = arith.addf %317, %321 : vector<2x512xf32>
    %cst_215 = arith.constant dense<0.000000e+00> : vector<512xf32>
    %323 = vector.multi_reduction <add>, %322, %cst_215 [0] : vector<2x512xf32> to vector<512xf32>
    %324 = vector.shape_cast %323 : vector<512xf32> to vector<1x512xf32>
    %cst_216 = arith.constant 2.000000e+00 : f32
    %325 = vector.broadcast %cst_216 : f32 to vector<1x512xf32>
    %326 = arith.divf %324, %325 : vector<1x512xf32>
    %327 = vector.broadcast %326 : vector<1x512xf32> to vector<2x512xf32>
    %328 = arith.subf %322, %327 : vector<2x512xf32>
    %329 = arith.mulf %328, %328 : vector<2x512xf32>
    %cst_217 = arith.constant dense<0.000000e+00> : vector<512xf32>
    %330 = vector.multi_reduction <add>, %329, %cst_217 [0] : vector<2x512xf32> to vector<512xf32>
    %331 = vector.shape_cast %330 : vector<512xf32> to vector<1x512xf32>
    %cst_218 = arith.constant 2.000000e+00 : f32
    %332 = vector.broadcast %cst_218 : f32 to vector<1x512xf32>
    %333 = arith.divf %331, %332 : vector<1x512xf32>
    %334 = vector.broadcast %326 : vector<1x512xf32> to vector<2x512xf32>
    %335 = arith.subf %322, %334 : vector<2x512xf32>
    %cst_219 = arith.constant 9.99999974E-6 : f32
    %336 = vector.broadcast %cst_219 : f32 to vector<1x512xf32>
    %337 = arith.addf %333, %336 : vector<1x512xf32>
    %338 = math.rsqrt %337 : vector<1x512xf32>
    %339 = vector.broadcast %338 : vector<1x512xf32> to vector<2x512xf32>
    %340 = arith.mulf %335, %339 : vector<2x512xf32>
    %c0_220 = arith.constant 0 : index
    %c0_221 = arith.constant 0 : index
    %341 = vector.load %arg12[%c0_220, %c0_221] : memref<1x512xf32, #tpu.memory_space<vmem>>, vector<1x512xf32>
    %342 = vector.broadcast %341 : vector<1x512xf32> to vector<2x512xf32>
    %343 = arith.mulf %340, %342 : vector<2x512xf32>
    %c0_222 = arith.constant 0 : index
    %c0_223 = arith.constant 0 : index
    %344 = vector.load %arg13[%c0_222, %c0_223] : memref<1x512xf32, #tpu.memory_space<vmem>>, vector<1x512xf32>
    %345 = vector.broadcast %344 : vector<1x512xf32> to vector<2x512xf32>
    %346 = arith.addf %343, %345 : vector<2x512xf32>
    %cst_224 = arith.constant 0.000000e+00 : f32
    %347 = vector.broadcast %cst_224 : f32 to vector<2x512xf32>
    %348 = arith.cmpf ogt, %346, %347 : vector<2x512xf32>
    %cst_225 = arith.constant 2.000000e-01 : f32
    %349 = vector.broadcast %cst_225 : f32 to vector<2x512xf32>
    %350 = arith.mulf %349, %346 : vector<2x512xf32>
    %351 = arith.select %348, %346, %350 : vector<2x512xi1>, vector<2x512xf32>
    %c0_226 = arith.constant 0 : index
    %c0_227 = arith.constant 0 : index
    %352 = vector.load %arg14[%c0_226, %c0_227] : memref<1x512xf32, #tpu.memory_space<vmem>>, vector<1x512xf32>
    %353 = vector.broadcast %352 : vector<1x512xf32> to vector<2x512xf32>
    %354 = arith.mulf %351, %353 : vector<2x512xf32>
    %cst_228 = arith.constant dense<0.000000e+00> : vector<2xf32>
    %355 = vector.multi_reduction <add>, %354, %cst_228 [1] : vector<2x512xf32> to vector<2xf32>
    %356 = vector.shape_cast %355 : vector<2xf32> to vector<2x1xf32>
    %c0_229 = arith.constant 0 : index
    %c0_230 = arith.constant 0 : index
    %357 = vector.load %arg15[%c0_229, %c0_230] : memref<1x1xf32, #tpu.memory_space<vmem>>, vector<1x1xf32>
    %358 = vector.broadcast %357 : vector<1x1xf32> to vector<2x1xf32>
    %359 = arith.addf %356, %358 : vector<2x1xf32>
    %360 = math.absf %359 : vector<2x1xf32>
    %cst_231 = arith.constant 0.000000e+00 : f32
    %361 = vector.broadcast %cst_231 : f32 to vector<2x1xf32>
    %362 = arith.subf %361, %360 : vector<2x1xf32>
    %363 = math.exp %362 : vector<2x1xf32>
    %cst_232 = arith.constant 0.000000e+00 : f32
    %364 = vector.broadcast %cst_232 : f32 to vector<2x1xf32>
    %365 = arith.cmpf oge, %359, %364 : vector<2x1xf32>
    %cst_233 = arith.constant 1.000000e+00 : f32
    %366 = vector.broadcast %cst_233 : f32 to vector<2x1xf32>
    %367 = arith.addf %366, %363 : vector<2x1xf32>
    %cst_234 = arith.constant 1.000000e+00 : f32
    %368 = vector.broadcast %cst_234 : f32 to vector<2x1xf32>
    %369 = arith.divf %368, %367 : vector<2x1xf32>
    %cst_235 = arith.constant 1.000000e+00 : f32
    %370 = vector.broadcast %cst_235 : f32 to vector<2x1xf32>
    %371 = arith.addf %370, %363 : vector<2x1xf32>
    %372 = arith.divf %363, %371 : vector<2x1xf32>
    %373 = arith.select %365, %369, %372 : vector<2x1xi1>, vector<2x1xf32>
    %c0_236 = arith.constant 0 : index
    %c0_237 = arith.constant 0 : index
    %374 = vector.load %arg16[%c0_236, %c0_237] : memref<2x1xf32, #tpu.memory_space<vmem>>, vector<2x1xf32>
    tpu.vector_store %arg16[%c0_236, %c0_237], %373 {strides = array<i32>} : memref<2x1xf32, #tpu.memory_space<vmem>>, vector<2x1xf32>,
    return
  }
}

</mosaic_0001>

<bundles_post_ra>
// kernel: discriminator_forward.1
= control target key start
LH: loop header
LB: loop body
LE: loop exit
PB: predicated region body
PF: predicated region fallthrough
CT: control target
= control target key end

     0   :  { %s8775_s0 = inlined_call_operand.vmem [shape: bf16[128,64], index: 0, kind: input, shape index: {}]   ;;  %s8776_s1 = inlined_call_operand.hbm [shape: bf16[64,64], index: 1, kind: input, shape index: {}]   ;;  %s8777_s2 = inlined_call_operand.hbm [shape: bf16[16,64,128], index: 2, kind: input, shape index: {}]   ;;  %s8778_s3 = inlined_call_operand.hbm [shape: bf16[512,128], index: 3, kind: input, shape index: {}]   ;;  %s8779_s4 = inlined_call_operand.hbm [shape: f32[1,128], index: 4, kind: input, shape index: {}]   ;;  %s8780_s5 = inlined_call_operand.hbm [shape: f32[1,128], index: 5, kind: input, shape index: {}]   ;;  %s8781_s6 = inlined_call_operand.hbm [shape: bf16[16,128,256], index: 6, kind: input, shape index: {}]   ;;  %s8782_s7 = inlined_call_operand.vmem [shape: bf16[128,32], index: 7, kind: input, shape index: {}]   ;;  %s8783_s8 = inlined_call_operand.hbm [shape: f32[1,256], index: 8, kind: input, shape index: {}]   ;;  %s8784_s9 = inlined_call_operand.hbm [shape: f32[1,256], index: 9, kind: input, shape index: {}]   ;;  %s8785_s10 = inlined_call_operand.hbm [shape: bf16[16,256,512], index: 10, kind: input, shape index: {}]   ;;  %s8786_s11 = inlined_call_operand.vmem [shape: bf16[32,8], index: 11, kind: input, shape index: {}]   ;;  %s8787_s12 = inlined_call_operand.hbm [shape: f32[1,512], index: 12, kind: input, shape index: {}]   ;;  %s8788_s13 = inlined_call_operand.hbm [shape: f32[1,512], index: 13, kind: input, shape index: {}]   ;;  %s8789_s14 = inlined_call_operand.hbm [shape: f32[1,512], index: 14, kind: input, shape index: {}]   ;;  %s8790_s15 = inlined_call_operand.<no memory space> [shape: f32[1,1], index: 15, kind: input, shape index: {}]   ;;  %s8791_s16 = inlined_call_operand.vmem [shape: f32[2,1], index: 16, kind: output, shape index: {}]  }
   0x1   :  { %8793 = sst [smem:[#allocation34_spill]] %s8775_s0  ;;  %v21_v0 = vstv %s8790_s15 }
   0x2   :  { %22 = vst [vmem:[#allocation5] sm:$0x1] %v21_v0 }
   0x3   :  { %23 = vsyncpa [#allocation7], 0 }
   0x4   :  { %24 = vsyncpa [#allocation9], 0 }
   0x5   :  { %25 = vsyncpa [#allocation12], 0 }
   0x6   :  { %26 = vsyncpa [#allocation15], 0 }
   0x7   :  { %27 = vsyncpa [#allocation18], 0 }
   0x8   :  { %28 = vsyncpa [#allocation21], 0  ;;  %s7933_s23 = smov [#allocation8]   ;;  %s7934_s25 = smov [#allocation11]  }
   0x9   :  { %s48_s24 = sshll.u32 %s7933_s23, 4  ;;  %s73_s26 = sshll.u32 %s7934_s25, 4  ;;  %s49_s24 = int_to_ptr.vmem [resolvable:$true] %s48_s24  ;;  %s8044_s26 = int_to_ptr.vmem [resolvable:$true] %s73_s26 }
   0xa   :  { %s7697_s29 = scalar_lea.hbm %s8777_s2, 8192 }
   0xb   :  { %p7698_p0 = scmp.ne.s32.totalorder %s8777_s2, %s7697_s29  ;;  %p7701_p1 = scmp.lt.u32.totalorder %s7697_s29, %s8777_s2 }
   0xd   :  { %p7703_p2 = pnand %p7701_p1, %p7698_p0 }
   0xf   :  { %7706 = shalt.err (!%p7703_p2)
}
  0x10   :  { %s7707_s18 = scalar_lea.vmem %s49_s24, 8192  ;;  %p7712_p4 = scmp.lt.s32.totalorder %s49_s24, %s49_s24 }
  0x11   :  { %p7708_p3 = scmp.ne.s32.totalorder %s49_s24, %s7707_s18  ;;  %p7713_p5 = scmp.lt.s32.totalorder %s7707_s18, %s7707_s18 }
  0x13   :  { %p7714_p6 = por %p7713_p5, %p7712_p4 }
  0x15   :  { %p7715_p7 = pnand %p7714_p6, %p7708_p3 }
  0x17   :  { %7718 = shalt.err (!%p7715_p7)
}
  0x18   :  { %s7935_s19 = smov 64   ;;  %s7936_s20 = smov 4  }
  0x19   :  { %54 = dma.hbm_to_vmem [thread:$0]  %s8777_s2, 8192, %s49_s24, [#allocation9], %s7935_s19, %s7935_s19, %s7936_s20  }
  0x1a   :  { %s7719_s27 = scalar_lea.hbm %s8779_s4, 16 }
  0x1b   :  { %p7720_p8 = scmp.ne.s32.totalorder %s8779_s4, %s7719_s27  ;;  %p7723_p9 = scmp.lt.u32.totalorder %s7719_s27, %s8779_s4 }
  0x1d   :  { %p7725_p10 = pnand %p7723_p9, %p7720_p8 }
  0x1f   :  { %7728 = shalt.err (!%p7725_p10)
}
  0x20   :  { %s7729_s0 = scalar_lea.vmem %s8044_s26, 16  ;;  %s7733_s2 = scalar_lea.vmem %s8044_s26, 32 }
  0x21   :  { %p7730_p11 = scmp.ne.s32.totalorder %s8044_s26, %s7729_s0  ;;  %p7734_p12 = scmp.lt.s32.totalorder %s8044_s26, %s8044_s26 }
  0x22   :  { %p7735_p13 = scmp.lt.s32.totalorder %s7733_s2, %s7729_s0 }
  0x24   :  { %p7736_p0 = por %p7735_p13, %p7734_p12 }
  0x26   :  { %p7737_p1 = pnand %p7736_p0, %p7730_p11 }
  0x28   :  { %7740 = shalt.err (!%p7737_p1)
}
  0x29   :  { %76 = dma.hbm_to_vmem [thread:$0]  %s8779_s4, 16, %s8044_s26, [#allocation12]  }
  0x2a   :  { %s7937_s18 = smov [#allocation14]   ;;  %s7938_s22 = smov [#allocation17]  }
  0x2b   :  { %s95_s21 = sshll.u32 %s7937_s18, 4  ;;  %s117_s23 = sshll.u32 %s7938_s22, 4  ;;  %s96_s21 = int_to_ptr.vmem [resolvable:$true] %s95_s21  ;;  %s118_s23 = int_to_ptr.vmem [resolvable:$true] %s117_s23 }
  0x2c   :  { %s7741_s28 = scalar_lea.hbm %s8783_s8, 32 }
  0x2d   :  { %p7742_p2 = scmp.ne.s32.totalorder %s8783_s8, %s7741_s28  ;;  %p7745_p3 = scmp.lt.u32.totalorder %s7741_s28, %s8783_s8 }
  0x2f   :  { %p7747_p4 = pnand %p7745_p3, %p7742_p2 }
  0x31   :  { %7750 = shalt.err (!%p7747_p4)
}
  0x32   :  { %s7751_s4 = scalar_lea.vmem %s96_s21, 32  ;;  %p7756_p6 = scmp.lt.s32.totalorder %s96_s21, %s96_s21 }
  0x33   :  { %p7752_p5 = scmp.ne.s32.totalorder %s96_s21, %s7751_s4  ;;  %p7757_p7 = scmp.lt.s32.totalorder %s7751_s4, %s7751_s4 }
  0x35   :  { %p7758_p8 = por %p7757_p7, %p7756_p6 }
  0x37   :  { %p7759_p9 = pnand %p7758_p8, %p7752_p5 }
  0x39   :  { %7762 = shalt.err (!%p7759_p9)
}
  0x3a   :  { %98 = dma.hbm_to_vmem [thread:$0]  %s8783_s8, 32, %s96_s21, [#allocation15]  }
  0x3b   :  { %s7763_s18 = scalar_lea.hbm %s8787_s12, 64 }
  0x3c   :  { %p7764_p10 = scmp.ne.s32.totalorder %s8787_s12, %s7763_s18  ;;  %p7767_p11 = scmp.lt.u32.totalorder %s7763_s18, %s8787_s12 }
  0x3e   :  { %p7769_p12 = pnand %p7767_p11, %p7764_p10 }
  0x40   :  { %7772 = shalt.err (!%p7769_p12)
}
  0x41   :  { %s7773_s29 = scalar_lea.vmem %s118_s23, 64  ;;  %p7778_p0 = scmp.lt.s32.totalorder %s118_s23, %s118_s23 }
  0x42   :  { %p7774_p13 = scmp.ne.s32.totalorder %s118_s23, %s7773_s29  ;;  %p7779_p1 = scmp.lt.s32.totalorder %s7773_s29, %s7773_s29 }
  0x44   :  { %p7780_p2 = por %p7779_p1, %p7778_p0 }
  0x46   :  { %p7781_p3 = pnand %p7780_p2, %p7774_p13 }
  0x48   :  { %7784 = shalt.err (!%p7781_p3)
}
  0x49   :  { %120 = dma.hbm_to_vmem [thread:$0]  %s8787_s12, 64, %s118_s23, [#allocation18]  }
  0x4a   :  { %s7939_s30 = smov [#allocation6]   ;;  %s7940_s0 = smov [#allocation10]  }
  0x4b   :  { %s36_s15 = sshll.u32 %s7939_s30, 4  ;;  %s60_s4 = sshll.u32 %s7940_s0, 4  ;;  %s37_s15 = int_to_ptr.vmem [resolvable:$true] %s36_s15  ;;  %s8103_s4 = int_to_ptr.vmem [resolvable:$true] %s60_s4 }
  0x4c   :  { %s7785_s24 = scalar_lea.hbm %s8776_s1, 512 }
  0x4d   :  { %p7786_p4 = scmp.ne.s32.totalorder %s8776_s1, %s7785_s24  ;;  %p7789_p5 = scmp.lt.u32.totalorder %s7785_s24, %s8776_s1 }
  0x4f   :  { %p7791_p6 = pnand %p7789_p5, %p7786_p4 }
  0x51   :  { %7794 = shalt.err (!%p7791_p6)
}
  0x52   :  { %s7795_s12 = scalar_lea.vmem %s37_s15, 512  ;;  %p7800_p8 = scmp.lt.s32.totalorder %s37_s15, %s37_s15 }
  0x53   :  { %p7796_p7 = scmp.ne.s32.totalorder %s37_s15, %s7795_s12  ;;  %p7801_p9 = scmp.lt.s32.totalorder %s7795_s12, %s7795_s12 }
  0x55   :  { %p7802_p10 = por %p7801_p9, %p7800_p8 }
  0x57   :  { %p7803_p11 = pnand %p7802_p10, %p7796_p7 }
  0x59   :  { %7806 = shalt.err (!%p7803_p11)
}
  0x5a   :  { %42 = dma.hbm_to_vmem [thread:$0]  %s8776_s1, 512, %s37_s15, [#allocation7], %s7935_s19, %s7935_s19, %s7936_s20  }
  0x5b   :  { %s7807_s8 = scalar_lea.hbm %s8778_s3, 4096 }
  0x5c   :  { %p7808_p12 = scmp.ne.s32.totalorder %s8778_s3, %s7807_s8  ;;  %p7811_p13 = scmp.lt.u32.totalorder %s7807_s8, %s8778_s3 }
  0x5e   :  { %p7813_p0 = pnand %p7811_p13, %p7808_p12 }
  0x60   :  { %7816 = shalt.err (!%p7813_p0)
}
  0x61   :  { %s7817_s2 = scalar_lea.vmem %s8103_s4, 4096  ;;  %p7822_p2 = scmp.lt.s32.totalorder %s8103_s4, %s8103_s4 }
  0x62   :  { %p7818_p1 = scmp.ne.s32.totalorder %s8103_s4, %s7817_s2  ;;  %p7823_p3 = scmp.lt.s32.totalorder %s7817_s2, %s7817_s2 }
  0x64   :  { %p7824_p4 = por %p7823_p3, %p7822_p2 }
  0x66   :  { %p7825_p5 = pnand %p7824_p4, %p7818_p1 }
  0x68   :  { %7828 = shalt.err (!%p7825_p5)
}
  0x69   :  { %66 = dma.hbm_to_vmem [thread:$0]  %s8778_s3, 4096, %s8103_s4, [#allocation9], %s7935_s19, %s7935_s19, %s7936_s20  }
  0x6a   :  { %s7941_s24 = smov [#allocation13]   ;;  %s7942_s18 = smov [#allocation16]  }
  0x6b   :  { %s83_s17 = sshll.u32 %s7941_s24, 4  ;;  %s105_s22 = sshll.u32 %s7942_s18, 4  ;;  %s84_s17 = int_to_ptr.vmem [resolvable:$true] %s83_s17  ;;  %s106_s22 = int_to_ptr.vmem [resolvable:$true] %s105_s22 }
  0x6c   :  { %s7829_s23 = scalar_lea.hbm %s8780_s5, 16 }
  0x6d   :  { %p7830_p6 = scmp.ne.s32.totalorder %s8780_s5, %s7829_s23  ;;  %p7833_p7 = scmp.lt.u32.totalorder %s7829_s23, %s8780_s5 }
  0x6f   :  { %p7835_p8 = pnand %p7833_p7, %p7830_p6 }
  0x71   :  { %7838 = shalt.err (!%p7835_p8)
}
  0x72   :  { %s7839_s3 = scalar_lea.vmem %s84_s17, 16  ;;  %s7843_s4 = scalar_lea.vmem %s84_s17, 32 }
  0x73   :  { %p7840_p9 = scmp.ne.s32.totalorder %s84_s17, %s7839_s3  ;;  %p7844_p10 = scmp.lt.s32.totalorder %s84_s17, %s84_s17 }
  0x74   :  { %p7845_p11 = scmp.lt.s32.totalorder %s7843_s4, %s7839_s3 }
  0x76   :  { %p7846_p12 = por %p7845_p11, %p7844_p10 }
  0x78   :  { %p7847_p13 = pnand %p7846_p12, %p7840_p9 }
  0x7a   :  { %7850 = shalt.err (!%p7847_p13)
}
  0x7b   :  { %86 = dma.hbm_to_vmem [thread:$0]  %s8780_s5, 16, %s84_s17, [#allocation12]  }
  0x7c   :  { %s7851_s2 = scalar_lea.hbm %s8784_s9, 32 }
  0x7d   :  { %p7852_p0 = scmp.ne.s32.totalorder %s8784_s9, %s7851_s2  ;;  %p7855_p1 = scmp.lt.u32.totalorder %s7851_s2, %s8784_s9 }
  0x7f   :  { %p7857_p2 = pnand %p7855_p1, %p7852_p0 }
  0x81   :  { %7860 = shalt.err (!%p7857_p2)
}
  0x82   :  { %s7861_s25 = scalar_lea.vmem %s106_s22, 32  ;;  %p7866_p4 = scmp.lt.s32.totalorder %s106_s22, %s106_s22 }
  0x83   :  { %p7862_p3 = scmp.ne.s32.totalorder %s106_s22, %s7861_s25  ;;  %p7867_p5 = scmp.lt.s32.totalorder %s7861_s25, %s7861_s25 }
  0x85   :  { %p7868_p6 = por %p7867_p5, %p7866_p4 }
  0x87   :  { %p7869_p7 = pnand %p7868_p6, %p7862_p3 }
  0x89   :  { %7872 = shalt.err (!%p7869_p7)
}
  0x8a   :  { %108 = dma.hbm_to_vmem [thread:$0]  %s8784_s9, 32, %s106_s22, [#allocation15]  }
  0x8b   :  { %s7943_s12 = smov [#allocation19]   ;;  %s7944_s27 = smov [#allocation20]  }
  0x8c   :  { %s127_s23 = sshll.u32 %s7943_s12, 4  ;;  %s137_s28 = sshll.u32 %s7944_s27, 4  ;;  %s128_s23 = int_to_ptr.vmem [resolvable:$true] %s127_s23  ;;  %s138_s28 = int_to_ptr.vmem [resolvable:$true] %s137_s28 }
  0x8d   :  { %s7873_s3 = scalar_lea.hbm %s8788_s13, 64 }
  0x8e   :  { %p7874_p8 = scmp.ne.s32.totalorder %s8788_s13, %s7873_s3  ;;  %p7877_p9 = scmp.lt.u32.totalorder %s7873_s3, %s8788_s13 }
  0x90   :  { %p7879_p10 = pnand %p7877_p9, %p7874_p8 }
  0x92   :  { %7882 = shalt.err (!%p7879_p10)
}
  0x93   :  { %s7883_s9 = scalar_lea.vmem %s128_s23, 64  ;;  %p7888_p12 = scmp.lt.s32.totalorder %s128_s23, %s128_s23 }
  0x94   :  { %p7884_p11 = scmp.ne.s32.totalorder %s128_s23, %s7883_s9  ;;  %p7889_p13 = scmp.lt.s32.totalorder %s7883_s9, %s7883_s9 }
  0x96   :  { %p7890_p0 = por %p7889_p13, %p7888_p12 }
  0x98   :  { %p7891_p1 = pnand %p7890_p0, %p7884_p11 }
  0x9a   :  { %7894 = shalt.err (!%p7891_p1)
}
  0x9b   :  { %130 = dma.hbm_to_vmem [thread:$0]  %s8788_s13, 64, %s128_s23, [#allocation18]  }
  0x9c   :  { %s7895_s15 = scalar_lea.hbm %s8789_s14, 64 }
  0x9d   :  { %p7896_p2 = scmp.ne.s32.totalorder %s8789_s14, %s7895_s15  ;;  %p7899_p3 = scmp.lt.u32.totalorder %s7895_s15, %s8789_s14 }
  0x9f   :  { %p7901_p4 = pnand %p7899_p3, %p7896_p2 }
  0xa1   :  { %7904 = shalt.err (!%p7901_p4)
}
  0xa2   :  { %s7905_s17 = scalar_lea.vmem %s138_s28, 64  ;;  %p7910_p6 = scmp.lt.s32.totalorder %s138_s28, %s138_s28 }
  0xa3   :  { %p7906_p5 = scmp.ne.s32.totalorder %s138_s28, %s7905_s17  ;;  %p7911_p7 = scmp.lt.s32.totalorder %s7905_s17, %s7905_s17 }
  0xa5   :  { %p7912_p8 = por %p7911_p7, %p7910_p6 }
  0xa7   :  { %p7913_p9 = pnand %p7912_p8, %p7906_p5 }
  0xa9   :  { %7916 = shalt.err (!%p7913_p9)
}
  0xaa   :  { %140 = dma.hbm_to_vmem [thread:$0]  %s8789_s14, 64, %s138_s28, [#allocation21]  }
  0xab   :  { %7917 = dma.done.wait [#allocation7], 512  }
  0xac   :  { %7918 = vsyncadd [#allocation7], 4294966784 }
  0xad   :  { %7919 = dma.done.wait [#allocation9], 12288  }
  0xae   :  { %7920 = vsyncadd [#allocation9], 4294955008 }
  0xaf   :  { %7921 = dma.done.wait [#allocation12], 32  }
  0xb0   :  { %7922 = vsyncadd [#allocation12], 4294967264 }
  0xb1   :  { %7923 = dma.done.wait [#allocation15], 64  }
  0xb2   :  { %7924 = vsyncadd [#allocation15], 4294967232 }
  0xb3   :  { %7925 = dma.done.wait [#allocation18], 128  }
  0xb4   :  { %7926 = vsyncadd [#allocation18], 4294967168 }
  0xb5   :  { %7927 = dma.done.wait [#allocation21], 64  }
  0xb6   :  { %7928 = vsyncadd [#allocation21], 4294967232  ;;  %s178_s23 = sld [smem:[#allocation0]]   ;;  %196 = sst [smem:[#allocation23 + $0x3]] %s7935_s19  ;;  %vm332_vm0 = vcmask 523264  }
  0xb7   :  { %204 = sst [smem:[#allocation23 + $0x7]] %s7935_s19  ;;  %s7945_s27 = smov [#allocation2]  }
  0xb8   :  { %s186_s29 = sshll.u32 %s7945_s27, 4  ;;  %206 = sst [smem:[#allocation23 + $0x8]] %s7936_s20  ;;  %s187_s29 = int_to_ptr.vmem [resolvable:$true] %s186_s29 }
  0xb9   :  { %s7946_s14 = smov 256   ;;  %s7947_s28 = smov 2  }
  0xba   :  { %190 = sst [smem:[#allocation23]] %s7946_s14  ;;  %s7948_s3 = smov 128  }
  0xbb   :  { %192 = sst [smem:[#allocation23 + $0x1]] %s7946_s14  ;;  %s7949_s21 = smov [#allocation4]  }
  0xbc   :  { %194 = sst [smem:[#allocation23 + $0x2]] %s7947_s28  ;;  %s6650_s8 = sshll.u32 %s178_s23, 26 }
  0xbd   :  { %198 = sst [smem:[#allocation23 + $0x4]] %s7948_s3  ;;  %s6651_s4 = sadd.s32 134217728, %s6650_s8 }
  0xbe   :  { %200 = sst [smem:[#allocation23 + $0x5]] %s7947_s28  ;;  %s7950_s30 = smov [#allocation22]  }
  0xbf   :  { %202 = sst [smem:[#allocation23 + $0x6]] %s7948_s3  ;;  %s7951_s22 = smov 512  }
  0xc0   :  { %208 = dma.general %s8781_s6, 32768, %s187_s29, %s7949_s21, %s7950_s30, [#allocation23], %s6651_s4, 0  }
  0xc1   :  { %229 = sst [smem:[#allocation25 + $0x2]] %s7936_s20  ;;  %s7952_s26 = smov [#allocation3]  }
  0xc2   :  { %225 = sst [smem:[#allocation25]] %s7951_s22  ;;  %s221_s2 = sshll.u32 %s7952_s26, 4  ;;  %s222_s2 = int_to_ptr.vmem [resolvable:$true] %s221_s2 }
  0xc3   :  { %227 = sst [smem:[#allocation25 + $0x1]] %s7951_s22  ;;  %s7953_s1 = smov [#allocation4 + $0x1]  }
  0xc4   :  { %231 = sst [smem:[#allocation25 + $0x3]] %s7935_s19  ;;  %s7954_s15 = smov [#allocation24]  }
  0xc5   :  { %233 = sst [smem:[#allocation25 + $0x4]] %s7948_s3 }
  0xc6   :  { %235 = sst [smem:[#allocation25 + $0x5]] %s7947_s28 }
  0xc7   :  { %237 = sst [smem:[#allocation25 + $0x6]] %s7946_s14 }
  0xc8   :  { %239 = sst [smem:[#allocation25 + $0x7]] %s7935_s19 }
  0xc9   :  { %241 = sst [smem:[#allocation25 + $0x8]] %s7936_s20 }
  0xca   :  { %243 = dma.general %s8785_s10, 131072, %s222_s2, %s7953_s1, %s7954_s15, [#allocation25], %s6651_s4, 0  }
  0xcb   :  { %v7561_v1 = vld [vmem:[#allocation6] sm:$0xff]   ;;  %v7562_v2 = vld [vmem:[#allocation6 + $0x8] sm:$0xff]   ;;  %v7563_v3 = vld [vmem:[#allocation6 + $0x10] sm:$0xff]   ;;  %s8794_s5 = sld [smem:[#allocation34_spill]] }
  0xcc   :  { %6986 = vmatprep.subr.bf16.mxu0 %v7561_v1  ;;  %v7564_v5 = vld [vmem:[#allocation6 + $0x18] sm:$0xff]   ;;  %v7573_v13 = vld [vmem:[#allocation10] sm:$0xff]   ;;  %v7600_v32 = vld [vmem:[#allocation8 + $0x28] sm:$0xff]  }
  0xcd   :  { %6987 = vmatpush3.bf16.msra.mxu0 %v7561_v1  ;;  %7026 = vmatprep.mubr.bf16.mxu1 %v7573_v13  ;;  %v7597_v17 = vld [vmem:[#allocation8 + $0x20] sm:$0xff]   ;;  %v7601_v33 = vld [vmem:[#allocation8 + $0x30] sm:$0xff]   ;;  %v7578_v13 = vld [vmem:[#allocation10 + $0x28] sm:$0xff]  }
  0xce   :  { %6988 = vmatprep.subr.bf16.mxu0 %v7562_v2 }
  0xd1   :  { %v7565_v4 = vld [vmem:[%s8794_s5] sm:$0xff]   ;;  %6989 = vmatpush3.bf16.msra.mxu0 %v7562_v2  ;;  %v7566_v6 = vld [vmem:[%s8794_s5 + $0x8] sm:$0xff]   ;;  %v7567_v7 = vld [vmem:[%s8794_s5 + $0x10] sm:$0xff]  }
  0xd2   :  { %6994 = vmatprep.mubr.msk.bf16.mxu0 %vm332_vm0, %v7565_v4  ;;  %6990 = vmatprep.subr.bf16.mxu0 %v7563_v3  ;;  %v7568_v8 = vld [vmem:[%s8794_s5 + $0x18] sm:$0xff]   ;;  %v7569_v9 = vld [vmem:[%s8794_s5 + $0x20] sm:$0xff]   ;;  %v7570_v10 = vld [vmem:[%s8794_s5 + $0x28] sm:$0xff]  }
  0xd3   :  { %v7571_v11 = vld [vmem:[%s8794_s5 + $0x30] sm:$0xff]   ;;  %v7572_v12 = vld [vmem:[%s8794_s5 + $0x38] sm:$0xff]  }
  0xd5   :  { %6991 = vmatpush3.bf16.msra.mxu0 %v7563_v3 }
  0xd6   :  { %6992 = vmatprep.subr.bf16.mxu0 %v7564_v5 }
  0xd9   :  { %6993 = vmatpush3.bf16.msra.mxu0 %v7564_v5 }
  0xda   :  { %7090 = vmatprep.subr.bf16.mxu0 %v7597_v17 }
  0xdc   :  { %6995 = vmatmul.mubr.msk.bf16.vlgmr.msra.gmra.mrb[0].mxu0 %vm332_vm0, %v7566_v6 }
  0xdd   :  { %6998 = vmatprep.mubr.msk.bf16.mxu0 %vm332_vm0, %v7567_v7  ;;  %7091 = vmatpush3.bf16.msra.mxu0 %v7597_v17  ;;  %v7582_v17 = vld [vmem:[#allocation10 + $0x48] sm:$0xff]  }
  0xde   :  { %7092 = vmatprep.subr.bf16.mxu0 %v7600_v32 }
  0xe1   :  { %7093 = vmatpush3.bf16.msra.mxu0 %v7600_v32  ;;  %v7598_v32 = vld [vmem:[#allocation10 + $0xc0] sm:$0xff]  }
  0xe2   :  { %7094 = vmatprep.subr.bf16.mxu0 %v7601_v33 }
  0xe4   :  { %6999 = vmatmul.mubr.msk.bf16.gmra.mrb[4].mxu0 %vm332_vm0, %v7568_v8 }
  0xe5   :  { %7002 = vmatprep.mubr.msk.bf16.mxu0 %vm332_vm0, %v7569_v9  ;;  %7095 = vmatpush3.bf16.msra.mxu0 %v7601_v33  ;;  %v7574_v9 = vld [vmem:[#allocation10 + $0x8] sm:$0xff]   ;;  %v7604_v33 = vld [vmem:[#allocation8 + $0x38] sm:$0xff]  }
  0xe6   :  { %7096 = vmatprep.subr.bf16.mxu0 %v7604_v33 }
  0xe9   :  { %7097 = vmatpush3.bf16.msra.mxu0 %v7604_v33 }
  0xec   :  { %7003 = vmatmul.mubr.msk.bf16.gmra.mrb[8].mxu0 %vm332_vm0, %v7570_v10  ;;  %v7575_v10 = vld [vmem:[#allocation10 + $0x10] sm:$0xff]  }
  0xed   :  { %7006 = vmatprep.mubr.msk.bf16.mxu0 %vm332_vm0, %v7571_v11  ;;  %v7576_v11 = vld [vmem:[#allocation10 + $0x18] sm:$0xff]  }
  0xf4   :  { %7007 = vmatmul.mubr.msk.bf16.gmra.mrb[12].mxu0 %vm332_vm0, %v7572_v12  ;;  %v7577_v12 = vld [vmem:[#allocation10 + $0x20] sm:$0xff]  }
 0x1af   :  { %v6996_v14 = vpop.f32.mrb[0].mxu0 }
 0x1b0   :  { %v472_v15 = vmul.f32 0.2, %v6996_v14  ;;  %v391_v16 = vpop.f32.mrb[1].mxu0  ;;  %vm456_vm1 = vcmp.gt.f32.partialorder %v6996_v14, 0.0 }
 0x1b1   :  { %v470_v18 = vmul.f32 0.2, %v391_v16  ;;  %v6997_v19 = vpop.f32.mrb[2].mxu0  ;;  %vm454_vm2 = vcmp.gt.f32.partialorder %v391_v16, 0.0 }
 0x1b2   :  { %vm457_vm3 = vcmp.gt.f32.partialorder %v6997_v19, 0.0  ;;  %v473_v20 = vmul.f32 0.2, %v6997_v19  ;;  %v394_v21 = vpop.f32.mrb[3].mxu0  ;;  %v488_v23 = vsel %vm456_vm1, %v6996_v14, %v472_v15  ;;  %v7579_v14 = vld [vmem:[#allocation10 + $0x30] sm:$0xff]   ;;  %v7580_v15 = vld [vmem:[#allocation10 + $0x38] sm:$0xff]  }
 0x1b3   :  { %vm455_vm4 = vcmp.gt.f32.partialorder %v394_v21, 0.0  ;;  %v471_v22 = vmul.f32 0.2, %v394_v21  ;;  %v486_v25 = vsel %vm454_vm2, %v391_v16, %v470_v18  ;;  %v7581_v16 = vld [vmem:[#allocation10 + $0x40] sm:$0xff]   ;;  %v7583_v18 = vld [vmem:[#allocation10 + $0x50] sm:$0xff]  }
 0x1b4   :  { %v489_v24 = vsel %vm457_vm3, %v6997_v19, %v473_v20  ;;  %v7584_v19 = vld [vmem:[#allocation10 + $0x58] sm:$0xff]   ;;  %v7585_v20 = vld [vmem:[#allocation10 + $0x60] sm:$0xff]  }
 0x1b5   :  { %v487_v26 = vsel %vm455_vm4, %v394_v21, %v471_v22  ;;  %v503_v27 = vpack.c.bf16 %v489_v24, %v488_v23  ;;  %v7586_v21 = vld [vmem:[#allocation10 + $0x68] sm:$0xff]   ;;  %v7587_v22 = vld [vmem:[#allocation10 + $0x70] sm:$0xff]   ;;  %v7588_v23 = vld [vmem:[#allocation10 + $0x78] sm:$0xff]  }
 0x1b6   :  { %v502_v28 = vpack.c.bf16 %v487_v26, %v486_v25  ;;  %v7589_v24 = vld [vmem:[#allocation10 + $0x80] sm:$0xff]   ;;  %v7590_v25 = vld [vmem:[#allocation10 + $0x88] sm:$0xff]   ;;  %v7591_v26 = vld [vmem:[#allocation10 + $0x90] sm:$0xff]  }
 0x1b7   :  { %v7000_v29 = vpop.f32.mrb[4].mxu0 }
 0x1b8   :  { %v476_v30 = vmul.f32 0.2, %v7000_v29  ;;  %v407_v31 = vpop.f32.mrb[5].mxu0  ;;  %7010 = vmatprep.subr.bf16.mxu1 %v502_v28  ;;  %vm460_vm5 = vcmp.gt.f32.partialorder %v7000_v29, 0.0 }
 0x1b9   :  { %v474_v34 = vmul.f32 0.2, %v407_v31  ;;  %v7001_v35 = vpop.f32.mrb[6].mxu0  ;;  %7011 = vmatpush3.bf16.msra.mxu1 %v502_v28  ;;  %vm458_vm6 = vcmp.gt.f32.partialorder %v407_v31, 0.0  ;;  %v7593_v28 = vld [vmem:[#allocation10 + $0xa0] sm:$0xff]  }
 0x1ba   :  { %vm461_vm7 = vcmp.gt.f32.partialorder %v7001_v35, 0.0  ;;  %v477_v36 = vmul.f32 0.2, %v7001_v35  ;;  %v410_v37 = vpop.f32.mrb[7].mxu0  ;;  %7012 = vmatprep.subr.bf16.mxu1 %v503_v27  ;;  %v492_v39 = vsel %vm460_vm5, %v7000_v29, %v476_v30  ;;  %v7594_v29 = vld [vmem:[#allocation10 + $0xa8] sm:$0xff]   ;;  %v7595_v30 = vld [vmem:[#allocation10 + $0xb0] sm:$0xff]  }
 0x1bb   :  { %vm459_vm8 = vcmp.gt.f32.partialorder %v410_v37, 0.0  ;;  %v475_v38 = vmul.f32 0.2, %v410_v37  ;;  %v490_v41 = vsel %vm458_vm6, %v407_v31, %v474_v34  ;;  %v7596_v31 = vld [vmem:[#allocation10 + $0xb8] sm:$0xff]   ;;  %v7599_v34 = vld [vmem:[#allocation10 + $0xc8] sm:$0xff]  }
 0x1bc   :  { %v493_v40 = vsel %vm461_vm7, %v7001_v35, %v477_v36  ;;  %v7602_v35 = vld [vmem:[#allocation10 + $0xd0] sm:$0xff]   ;;  %v7605_v36 = vld [vmem:[#allocation8] sm:$0xff]  }
 0x1bd   :  { %v491_v42 = vsel %vm459_vm8, %v410_v37, %v475_v38  ;;  %7013 = vmatpush3.bf16.msra.mxu1 %v503_v27  ;;  %v505_v43 = vpack.c.bf16 %v493_v40, %v492_v39  ;;  %v7592_v27 = vld [vmem:[#allocation10 + $0x98] sm:$0xff]   ;;  %7102 = vmatprep.subr.bf16.mxu0 %v7605_v36  ;;  %v7606_v38 = vld [vmem:[#allocation10 + $0xe0] sm:$0xff]   ;;  %v7607_v39 = vld [vmem:[#allocation10 + $0xe8] sm:$0xff]  }
 0x1be   :  { %v504_v44 = vpack.c.bf16 %v491_v42, %v490_v41  ;;  %v7603_v37 = vld [vmem:[#allocation10 + $0xd8] sm:$0xff]   ;;  %v7612_v40 = vld [vmem:[#allocation10 + $0xf0] sm:$0xff]  }
 0x1bf   :  { %v7004_v45 = vpop.f32.mrb[8].mxu0  ;;  %v7613_v41 = vld [vmem:[#allocation10 + $0xf8] sm:$0xff]  }
 0x1c0   :  { %v480_v46 = vmul.f32 0.2, %v7004_v45  ;;  %v423_v47 = vpop.f32.mrb[9].mxu0  ;;  %7014 = vmatprep.subr.bf16.mxu1 %v504_v44  ;;  %vm464_vm9 = vcmp.gt.f32.partialorder %v7004_v45, 0.0 }
 0x1c1   :  { %v478_v48 = vmul.f32 0.2, %v423_v47  ;;  %v7005_v49 = vpop.f32.mrb[10].mxu0  ;;  %7015 = vmatpush3.bf16.msra.mxu1 %v504_v44  ;;  %vm462_vm10 = vcmp.gt.f32.partialorder %v423_v47, 0.0 }
 0x1c2   :  { %vm465_vm11 = vcmp.gt.f32.partialorder %v7005_v49, 0.0  ;;  %v481_v50 = vmul.f32 0.2, %v7005_v49  ;;  %v426_v51 = vpop.f32.mrb[11].mxu0  ;;  %7016 = vmatprep.subr.bf16.mxu1 %v505_v43  ;;  %v496_v53 = vsel %vm464_vm9, %v7004_v45, %v480_v46 }
 0x1c3   :  { %vm463_vm12 = vcmp.gt.f32.partialorder %v426_v51, 0.0  ;;  %v479_v52 = vmul.f32 0.2, %v426_v51  ;;  %v494_v55 = vsel %vm462_vm10, %v423_v47, %v478_v48 }
 0x1c4   :  { %v497_v54 = vsel %vm465_vm11, %v7005_v49, %v481_v50 }
 0x1c5   :  { %v495_v56 = vsel %vm463_vm12, %v426_v51, %v479_v52  ;;  %7017 = vmatpush3.bf16.msra.mxu1 %v505_v43  ;;  %v507_v57 = vpack.c.bf16 %v497_v54, %v496_v53  ;;  %v7608_v54 = vld [vmem:[#allocation8 + $0x8] sm:$0xff]  }
 0x1c6   :  { %v506_v58 = vpack.c.bf16 %v495_v56, %v494_v55  ;;  %v7609_v56 = vld [vmem:[#allocation8 + $0x10] sm:$0xff]  }
 0x1c7   :  { %v7008_v59 = vpop.f32.mrb[12].mxu0 }
 0x1c8   :  { %v484_v60 = vmul.f32 0.2, %v7008_v59  ;;  %v439_v61 = vpop.f32.mrb[13].mxu0  ;;  %7018 = vmatprep.subr.bf16.mxu1 %v506_v58  ;;  %vm468_vm13 = vcmp.gt.f32.partialorder %v7008_v59, 0.0 }
 0x1c9   :  { %v482_v62 = vmul.f32 0.2, %v439_v61  ;;  %v7009_v63 = vpop.f32.mrb[14].mxu0  ;;  %7019 = vmatpush3.bf16.msra.mxu1 %v506_v58  ;;  %vm466_vm14 = vcmp.gt.f32.partialorder %v439_v61, 0.0 }
 0x1ca   :  { %vm469_vm15 = vcmp.gt.f32.partialorder %v7009_v63, 0.0  ;;  %v485_v0 = vmul.f32 0.2, %v7009_v63  ;;  %v442_v1 = vpop.f32.mrb[15].mxu0  ;;  %7020 = vmatprep.subr.bf16.mxu1 %v507_v57  ;;  %v500_v3 = vsel %vm468_vm13, %v7008_v59, %v484_v60 }
 0x1cb   :  { %vm467_vm1 = vcmp.gt.f32.partialorder %v442_v1, 0.0  ;;  %v483_v2 = vmul.f32 0.2, %v442_v1  ;;  %v498_v5 = vsel %vm466_vm14, %v439_v61, %v482_v62  ;;  %v7610_v62 = vld [vmem:[#allocation8 + $0x18] sm:$0xff]  }
 0x1cc   :  { %v501_v4 = vsel %vm469_vm15, %v7009_v63, %v485_v0  ;;  %v7611_v0 = vld [vmem:[#allocation8 + $0x40] sm:$0xff]  }
 0x1cd   :  { %v499_v6 = vsel %vm467_vm1, %v442_v1, %v483_v2  ;;  %7021 = vmatpush3.bf16.msra.mxu1 %v507_v57  ;;  %v509_v7 = vpack.c.bf16 %v501_v4, %v500_v3 }
 0x1ce   :  { %v508_v8 = vpack.c.bf16 %v499_v6, %v498_v5  ;;  %v7614_v6 = vld [vmem:[#allocation8 + $0x48] sm:$0xff]  }
 0x1d0   :  { %7022 = vmatprep.subr.bf16.mxu1 %v508_v8 }
 0x1d1   :  { %7023 = vmatpush3.bf16.msra.mxu1 %v508_v8  ;;  %v7615_v8 = vld [vmem:[#allocation8 + $0x50] sm:$0xff]  }
 0x1d2   :  { %7024 = vmatprep.subr.bf16.mxu1 %v509_v7 }
 0x1d5   :  { %7025 = vmatpush3.bf16.msra.mxu1 %v509_v7 }
 0x1d8   :  { %7027 = vmatmul.mubr.bf16.vlgmr.msra.gmra.mrb[0].mxu1 %v7574_v9 }
 0x1d9   :  { %7030 = vmatprep.mubr.bf16.mxu1 %v7575_v10 }
 0x1e0   :  { %7031 = vmatmul.mubr.bf16.gmra.mrb[4].mxu1 %v7576_v11 }
 0x1e1   :  { %7034 = vmatprep.mubr.bf16.mxu1 %v7577_v12 }
 0x1e8   :  { %7035 = vmatmul.mubr.bf16.gmra.mrb[8].mxu1 %v7578_v13 }
 0x1e9   :  { %7038 = vmatprep.mubr.bf16.mxu1 %v7579_v14  ;;  %v7616_v14 = vld [vmem:[#allocation8 + $0x58] sm:$0xff]  }
 0x1f0   :  { %7039 = vmatmul.mubr.bf16.gmra.mrb[12].mxu1 %v7580_v15 }
 0x1f1   :  { %7042 = vmatprep.mubr.bf16.mxu1 %v7581_v16  ;;  %v7617_v16 = vld [vmem:[#allocation8 + $0x60] sm:$0xff]  }
 0x1f8   :  { %7043 = vmatmul.mubr.bf16.gmra.mrb[16].mxu1 %v7582_v17 }
 0x1f9   :  { %7046 = vmatprep.mubr.bf16.mxu1 %v7583_v18 }
 0x200   :  { %7047 = vmatmul.mubr.bf16.gmra.mrb[20].mxu1 %v7584_v19 }
 0x201   :  { %7050 = vmatprep.mubr.bf16.mxu1 %v7585_v20 }
 0x208   :  { %7051 = vmatmul.mubr.bf16.gmra.mrb[24].mxu1 %v7586_v21 }
 0x209   :  { %7054 = vmatprep.mubr.bf16.mxu1 %v7587_v22  ;;  %v7618_v22 = vld [vmem:[#allocation8 + $0x68] sm:$0xff]  }
 0x210   :  { %7055 = vmatmul.mubr.bf16.gmra.mrb[28].mxu1 %v7588_v23 }
 0x211   :  { %7058 = vmatprep.mubr.bf16.mxu1 %v7589_v24  ;;  %v7619_v24 = vld [vmem:[#allocation8 + $0x70] sm:$0xff]  }
 0x218   :  { %7059 = vmatmul.mubr.bf16.gmra.mrb[32].mxu1 %v7590_v25 }
 0x219   :  { %7062 = vmatprep.mubr.bf16.mxu1 %v7591_v26 }
 0x220   :  { %7063 = vmatmul.mubr.bf16.gmra.mrb[36].mxu1 %v7592_v27 }
 0x221   :  { %7066 = vmatprep.mubr.bf16.mxu1 %v7593_v28 }
 0x228   :  { %7067 = vmatmul.mubr.bf16.gmra.mrb[40].mxu1 %v7594_v29 }
 0x229   :  { %7070 = vmatprep.mubr.bf16.mxu1 %v7595_v30  ;;  %v7620_v30 = vld [vmem:[#allocation8 + $0x78] sm:$0xff]  }
 0x230   :  { %7071 = vmatmul.mubr.bf16.gmra.mrb[44].mxu1 %v7596_v31 }
 0x231   :  { %7074 = vmatprep.mubr.bf16.mxu1 %v7598_v32  ;;  %v7621_v32 = vld [vmem:[#allocation8 + $0x80] sm:$0xff]  }
 0x238   :  { %7075 = vmatmul.mubr.bf16.gmra.mrb[48].mxu1 %v7599_v34 }
 0x239   :  { %7078 = vmatprep.mubr.bf16.mxu1 %v7602_v35 }
 0x240   :  { %7079 = vmatmul.mubr.bf16.gmra.mrb[52].mxu1 %v7603_v37 }
 0x241   :  { %7082 = vmatprep.mubr.bf16.mxu1 %v7606_v38  ;;  %v7622_v38 = vld [vmem:[#allocation8 + $0x88] sm:$0xff]  }
 0x248   :  { %7083 = vmatmul.mubr.bf16.gmra.mrb[56].mxu1 %v7607_v39 }
 0x249   :  { %7086 = vmatprep.mubr.bf16.mxu1 %v7612_v40  ;;  %v7623_v40 = vld [vmem:[#allocation8 + $0x90] sm:$0xff]  }
 0x250   :  { %7087 = vmatmul.mubr.bf16.gmra.mrb[60].mxu1 %v7613_v41 }
 0x2ab   :  { %v7028_v42 = vpop.f32.mrb[0].mxu1 }
 0x2ac   :  { %v800_v43 = vpop.f32.mrb[1].mxu1 }
 0x2ad   :  { %v7029_v44 = vpop.f32.mrb[2].mxu1 }
 0x2ae   :  { %v1056_v45 = vpack.c.bf16 %v7029_v44, %v7028_v42  ;;  %v803_v46 = vpop.f32.mrb[3].mxu1 }
 0x2af   :  { %v1055_v47 = vpack.c.bf16 %v803_v46, %v800_v43  ;;  %v7624_v46 = vld [vmem:[#allocation8 + $0x98] sm:$0xff]  }
 0x2b3   :  { %v7032_v48 = vpop.f32.mrb[4].mxu1 }
 0x2b4   :  { %v816_v49 = vpop.f32.mrb[5].mxu1 }
 0x2b5   :  { %v7033_v50 = vpop.f32.mrb[6].mxu1 }
 0x2b6   :  { %v1058_v51 = vpack.c.bf16 %v7033_v50, %v7032_v48  ;;  %v819_v52 = vpop.f32.mrb[7].mxu1  ;;  %v7625_v48 = vld [vmem:[#allocation8 + $0xa0] sm:$0xff]  }
 0x2b7   :  { %v1057_v53 = vpack.c.bf16 %v819_v52, %v816_v49 }
 0x2b9   :  { %7098 = vmatprep.mubr.msk.bf16.mxu0 %vm332_vm0, %v1057_v53 }
 0x2ba   :  { %7099 = vmatmul.mubr.msk.bf16.vlgmr.msra.gmra.mrb[16].mxu0 %vm332_vm0, %v1058_v51 }
 0x2bb   :  { %7103 = vmatpush3.bf16.msra.mxu0 %v7605_v36  ;;  %7110 = vmatprep.mubr.msk.bf16.mxu0 %vm332_vm0, %v1055_v47  ;;  %v7036_v55 = vpop.f32.mrb[8].mxu1 }
 0x2bc   :  { %7104 = vmatprep.subr.bf16.mxu0 %v7608_v54  ;;  %v832_v57 = vpop.f32.mrb[9].mxu1 }
 0x2bd   :  { %v7037_v58 = vpop.f32.mrb[10].mxu1 }
 0x2be   :  { %v1060_v59 = vpack.c.bf16 %v7037_v58, %v7036_v55  ;;  %v835_v60 = vpop.f32.mrb[11].mxu1 }
 0x2bf   :  { %7105 = vmatpush3.bf16.msra.mxu0 %v7608_v54  ;;  %v1059_v61 = vpack.c.bf16 %v835_v60, %v832_v57  ;;  %v7626_v54 = vld [vmem:[#allocation8 + $0xa8] sm:$0xff]  }
 0x2c0   :  { %7106 = vmatprep.subr.bf16.mxu0 %v7609_v56 }
 0x2c3   :  { %7107 = vmatpush3.bf16.msra.mxu0 %v7609_v56  ;;  %v8236_v63 = vpop.f32.mrb[12].mxu1  ;;  %v7627_v56 = vld [vmem:[#allocation8 + $0xb0] sm:$0xff]  }
 0x2c4   :  { %7108 = vmatprep.subr.bf16.mxu0 %v7610_v62  ;;  %v848_v1 = vpop.f32.mrb[13].mxu1 }
 0x2c5   :  { %v7041_v2 = vpop.f32.mrb[14].mxu1 }
 0x2c6   :  { %v1062_v3 = vpack.c.bf16 %v7041_v2, %v8236_v63  ;;  %v851_v4 = vpop.f32.mrb[15].mxu1 }
 0x2c7   :  { %7109 = vmatpush3.bf16.msra.mxu0 %v7610_v62  ;;  %v1061_v5 = vpack.c.bf16 %v851_v4, %v848_v1  ;;  %v7628_v62 = vld [vmem:[#allocation8 + $0xb8] sm:$0xff]  }
 0x2c8   :  { %7114 = vmatprep.subr.bf16.mxu0 %v7611_v0 }
 0x2ca   :  { %7111 = vmatmul.mubr.msk.bf16.vlgmr.msra.gmra.mrb[16].mxu0 %vm332_vm0, %v1056_v45 }
 0x2cb   :  { %7115 = vmatpush3.bf16.msra.mxu0 %v7611_v0  ;;  %7122 = vmatprep.mubr.msk.bf16.mxu0 %vm332_vm0, %v1059_v61  ;;  %v8241_v7 = vpop.f32.mrb[16].mxu1  ;;  %v7629_v0 = vld [vmem:[#allocation8 + $0xc0] sm:$0xff]  }
 0x2cc   :  { %7116 = vmatprep.subr.bf16.mxu0 %v7614_v6  ;;  %v864_v9 = vpop.f32.mrb[17].mxu1 }
 0x2cd   :  { %v8243_v10 = vpop.f32.mrb[18].mxu1 }
 0x2ce   :  { %v1064_v11 = vpack.c.bf16 %v8243_v10, %v8241_v7  ;;  %v867_v12 = vpop.f32.mrb[19].mxu1 }
 0x2cf   :  { %7117 = vmatpush3.bf16.msra.mxu0 %v7614_v6  ;;  %v1063_v13 = vpack.c.bf16 %v867_v12, %v864_v9  ;;  %v7630_v6 = vld [vmem:[#allocation8 + $0xc8] sm:$0xff]  }
 0x2d0   :  { %7118 = vmatprep.subr.bf16.mxu0 %v7615_v8 }
 0x2d3   :  { %7119 = vmatpush3.bf16.msra.mxu0 %v7615_v8  ;;  %v8247_v15 = vpop.f32.mrb[20].mxu1  ;;  %v7631_v8 = vld [vmem:[#allocation8 + $0xd0] sm:$0xff]  }
 0x2d4   :  { %7120 = vmatprep.subr.bf16.mxu0 %v7616_v14  ;;  %v8249_v17 = vpop.f32.mrb[21].mxu1 }
 0x2d5   :  { %v8251_v18 = vpop.f32.mrb[22].mxu1 }
 0x2d6   :  { %v1066_v19 = vpack.c.bf16 %v8251_v18, %v8247_v15  ;;  %v883_v20 = vpop.f32.mrb[23].mxu1 }
 0x2d7   :  { %7121 = vmatpush3.bf16.msra.mxu0 %v7616_v14  ;;  %v1065_v21 = vpack.c.bf16 %v883_v20, %v8249_v17  ;;  %v7632_v14 = vld [vmem:[#allocation8 + $0xd8] sm:$0xff]  }
 0x2d8   :  { %7126 = vmatprep.subr.bf16.mxu0 %v7617_v16 }
 0x2da   :  { %7123 = vmatmul.mubr.msk.bf16.vlgmr.msra.gmra.mrb[16].mxu0 %vm332_vm0, %v1060_v59 }
 0x2db   :  { %7127 = vmatpush3.bf16.msra.mxu0 %v7617_v16  ;;  %7134 = vmatprep.mubr.msk.bf16.mxu0 %vm332_vm0, %v1061_v5  ;;  %v8258_v23 = vpop.f32.mrb[24].mxu1  ;;  %v7633_v16 = vld [vmem:[#allocation8 + $0xe0] sm:$0xff]  }
 0x2dc   :  { %7128 = vmatprep.subr.bf16.mxu0 %v7618_v22  ;;  %v8260_v25 = vpop.f32.mrb[25].mxu1 }
 0x2dd   :  { %v8262_v26 = vpop.f32.mrb[26].mxu1 }
 0x2de   :  { %v1068_v27 = vpack.c.bf16 %v8262_v26, %v8258_v23  ;;  %v8266_v28 = vpop.f32.mrb[27].mxu1 }
 0x2df   :  { %7129 = vmatpush3.bf16.msra.mxu0 %v7618_v22  ;;  %v1067_v29 = vpack.c.bf16 %v8266_v28, %v8260_v25  ;;  %v7634_v22 = vld [vmem:[#allocation8 + $0xe8] sm:$0xff]   ;;  %v7635_v25 = vld [vmem:[#allocation8 + $0xf0] sm:$0xff]  }
 0x2e0   :  { %7130 = vmatprep.subr.bf16.mxu0 %v7619_v24 }
 0x2e3   :  { %7131 = vmatpush3.bf16.msra.mxu0 %v7619_v24  ;;  %v8270_v31 = vpop.f32.mrb[28].mxu1 }
 0x2e4   :  { %7132 = vmatprep.subr.bf16.mxu0 %v7620_v30  ;;  %v8272_v33 = vpop.f32.mrb[29].mxu1 }
 0x2e5   :  { %v8274_v34 = vpop.f32.mrb[30].mxu1 }
 0x2e6   :  { %v1070_v35 = vpack.c.bf16 %v8274_v34, %v8270_v31  ;;  %v8278_v36 = vpop.f32.mrb[31].mxu1  ;;  %v7643_v31 = vld [vmem:[#allocation8 + $0x130] sm:$0xff]   ;;  %v7644_v34 = vld [vmem:[#allocation8 + $0x138] sm:$0xff]  }
 0x2e7   :  { %7133 = vmatpush3.bf16.msra.mxu0 %v7620_v30  ;;  %v1069_v37 = vpack.c.bf16 %v8278_v36, %v8272_v33  ;;  %v7637_v33 = vld [vmem:[#allocation8 + $0x100] sm:$0xff]  }
 0x2e8   :  { %7138 = vmatprep.subr.bf16.mxu0 %v7621_v32 }
 0x2ea   :  { %7135 = vmatmul.mubr.msk.bf16.vlgmr.msra.gmra.mrb[16].mxu0 %vm332_vm0, %v1062_v3 }
 0x2eb   :  { %7139 = vmatpush3.bf16.msra.mxu0 %v7621_v32  ;;  %7146 = vmatprep.mubr.msk.bf16.mxu0 %vm332_vm0, %v1063_v13  ;;  %v8284_v39 = vpop.f32.mrb[32].mxu1 }
 0x2ec   :  { %7140 = vmatprep.subr.bf16.mxu0 %v7622_v38  ;;  %v8286_v41 = vpop.f32.mrb[33].mxu1 }
 0x2ed   :  { %v8288_v42 = vpop.f32.mrb[34].mxu1 }
 0x2ee   :  { %v1072_v43 = vpack.c.bf16 %v8288_v42, %v8284_v39  ;;  %v8292_v44 = vpop.f32.mrb[35].mxu1  ;;  %v7647_v39 = vld [vmem:[#allocation8 + $0x150] sm:$0xff]   ;;  %v7648_v42 = vld [vmem:[#allocation8 + $0x158] sm:$0xff]  }
 0x2ef   :  { %7141 = vmatpush3.bf16.msra.mxu0 %v7622_v38  ;;  %v1071_v45 = vpack.c.bf16 %v8292_v44, %v8286_v41  ;;  %v7646_v41 = vld [vmem:[#allocation8 + $0x148] sm:$0xff]  }
 0x2f0   :  { %7142 = vmatprep.subr.bf16.mxu0 %v7623_v40  ;;  %v7650_v44 = vld [vmem:[#allocation8 + $0x168] sm:$0xff]  }
 0x2f3   :  { %7143 = vmatpush3.bf16.msra.mxu0 %v7623_v40  ;;  %v8296_v47 = vpop.f32.mrb[36].mxu1 }
 0x2f4   :  { %7144 = vmatprep.subr.bf16.mxu0 %v7624_v46  ;;  %v8298_v49 = vpop.f32.mrb[37].mxu1 }
 0x2f5   :  { %v8300_v50 = vpop.f32.mrb[38].mxu1 }
 0x2f6   :  { %v1074_v51 = vpack.c.bf16 %v8300_v50, %v8296_v47  ;;  %v8304_v52 = vpop.f32.mrb[39].mxu1  ;;  %v7652_v47 = vld [vmem:[#allocation8 + $0x178] sm:$0xff]   ;;  %v7654_v50 = vld [vmem:[#allocation8 + $0x188] sm:$0xff]  }
 0x2f7   :  { %7145 = vmatpush3.bf16.msra.mxu0 %v7624_v46  ;;  %v1073_v53 = vpack.c.bf16 %v8304_v52, %v8298_v49  ;;  %v7653_v49 = vld [vmem:[#allocation8 + $0x180] sm:$0xff]   ;;  %v7656_v52 = vld [vmem:[#allocation8 + $0x198] sm:$0xff]  }
 0x2f8   :  { %7150 = vmatprep.subr.bf16.mxu0 %v7625_v48 }
 0x2fa   :  { %7147 = vmatmul.mubr.msk.bf16.vlgmr.msra.gmra.mrb[16].mxu0 %vm332_vm0, %v1064_v11 }
 0x2fb   :  { %7151 = vmatpush3.bf16.msra.mxu0 %v7625_v48  ;;  %7158 = vmatprep.mubr.msk.bf16.mxu0 %vm332_vm0, %v1065_v21  ;;  %v8313_v55 = vpop.f32.mrb[40].mxu1  ;;  %v7638_v48 = vld [vmem:[#allocation8 + $0x108] sm:$0xff]  }
 0x2fc   :  { %7152 = vmatprep.subr.bf16.mxu0 %v7626_v54  ;;  %v8315_v57 = vpop.f32.mrb[41].mxu1 }
 0x2fd   :  { %v8317_v58 = vpop.f32.mrb[42].mxu1 }
 0x2fe   :  { %v1076_v59 = vpack.c.bf16 %v8317_v58, %v8313_v55  ;;  %v8321_v60 = vpop.f32.mrb[43].mxu1  ;;  %v7658_v55 = vld [vmem:[#allocation8 + $0x1a8] sm:$0xff]   ;;  %v7660_v58 = vld [vmem:[#allocation8 + $0x1b8] sm:$0xff]  }
 0x2ff   :  { %7153 = vmatpush3.bf16.msra.mxu0 %v7626_v54  ;;  %v1075_v61 = vpack.c.bf16 %v8321_v60, %v8315_v57  ;;  %v7639_v54 = vld [vmem:[#allocation8 + $0x110] sm:$0xff]   ;;  %v7662_v60 = vld [vmem:[#allocation8 + $0x1c8] sm:$0xff]  }
 0x300   :  { %7154 = vmatprep.subr.bf16.mxu0 %v7627_v56  ;;  %v7659_v57 = vld [vmem:[#allocation8 + $0x1b0] sm:$0xff]  }
 0x303   :  { %7155 = vmatpush3.bf16.msra.mxu0 %v7627_v56  ;;  %v8325_v63 = vpop.f32.mrb[44].mxu1  ;;  %v7640_v56 = vld [vmem:[#allocation8 + $0x118] sm:$0xff]  }
 0x304   :  { %7156 = vmatprep.subr.bf16.mxu0 %v7628_v62  ;;  %v8327_v1 = vpop.f32.mrb[45].mxu1 }
 0x305   :  { %v8329_v2 = vpop.f32.mrb[46].mxu1 }
 0x306   :  { %v1078_v3 = vpack.c.bf16 %v8329_v2, %v8325_v63  ;;  %v8333_v4 = vpop.f32.mrb[47].mxu1  ;;  %v7664_v63 = vld [vmem:[#allocation8 + $0x1d8] sm:$0xff]   ;;  %v7666_v2 = vld [vmem:[#allocation8 + $0x1e8] sm:$0xff]  }
 0x307   :  { %7157 = vmatpush3.bf16.msra.mxu0 %v7628_v62  ;;  %v1077_v5 = vpack.c.bf16 %v8333_v4, %v8327_v1  ;;  %v7641_v62 = vld [vmem:[#allocation8 + $0x120] sm:$0xff]   ;;  %v7668_v4 = vld [vmem:[#allocation8 + $0x1f8] sm:$0xff]  }
 0x308   :  { %7162 = vmatprep.subr.bf16.mxu0 %v7629_v0  ;;  %v7665_v1 = vld [vmem:[#allocation8 + $0x1e0] sm:$0xff]  }
 0x30a   :  { %7159 = vmatmul.mubr.msk.bf16.vlgmr.msra.gmra.mrb[16].mxu0 %vm332_vm0, %v1066_v19 }
 0x30b   :  { %7163 = vmatpush3.bf16.msra.mxu0 %v7629_v0  ;;  %7170 = vmatprep.mubr.msk.bf16.mxu0 %vm332_vm0, %v1067_v29  ;;  %v8345_v7 = vpop.f32.mrb[48].mxu1  ;;  %v7642_v0 = vld [vmem:[#allocation8 + $0x128] sm:$0xff]  }
 0x30c   :  { %7164 = vmatprep.subr.bf16.mxu0 %v7630_v6  ;;  %v8347_v9 = vpop.f32.mrb[49].mxu1 }
 0x30d   :  { %v8349_v10 = vpop.f32.mrb[50].mxu1 }
 0x30e   :  { %v1080_v11 = vpack.c.bf16 %v8349_v10, %v8345_v7  ;;  %v8353_v12 = vpop.f32.mrb[51].mxu1 }
 0x30f   :  { %7165 = vmatpush3.bf16.msra.mxu0 %v7630_v6  ;;  %v1079_v13 = vpack.c.bf16 %v8353_v12, %v8347_v9 }
 0x310   :  { %7166 = vmatprep.subr.bf16.mxu0 %v7631_v8 }
 0x313   :  { %7167 = vmatpush3.bf16.msra.mxu0 %v7631_v8  ;;  %v8357_v15 = vpop.f32.mrb[52].mxu1 }
 0x314   :  { %7168 = vmatprep.subr.bf16.mxu0 %v7632_v14  ;;  %v8359_v17 = vpop.f32.mrb[53].mxu1 }
 0x315   :  { %v8361_v18 = vpop.f32.mrb[54].mxu1 }
 0x316   :  { %v1082_v19 = vpack.c.bf16 %v8361_v18, %v8357_v15  ;;  %v8365_v20 = vpop.f32.mrb[55].mxu1 }
 0x317   :  { %7169 = vmatpush3.bf16.msra.mxu0 %v7632_v14  ;;  %v1081_v21 = vpack.c.bf16 %v8365_v20, %v8359_v17 }
 0x318   :  { %7174 = vmatprep.subr.bf16.mxu0 %v7633_v16 }
 0x31a   :  { %7171 = vmatmul.mubr.msk.bf16.vlgmr.msra.gmra.mrb[16].mxu0 %vm332_vm0, %v1068_v27  ;;  %v7636_v27 = vld [vmem:[#allocation8 + $0xf8] sm:$0xff]  }
 0x31b   :  { %7175 = vmatpush3.bf16.msra.mxu0 %v7633_v16  ;;  %7182 = vmatprep.mubr.msk.bf16.mxu0 %vm332_vm0, %v1069_v37  ;;  %v8377_v24 = vpop.f32.mrb[56].mxu1 }
 0x31c   :  { %7176 = vmatprep.subr.bf16.mxu0 %v7634_v22  ;;  %v8379_v28 = vpop.f32.mrb[57].mxu1 }
 0x31d   :  { %v8381_v29 = vpop.f32.mrb[58].mxu1 }
 0x31e   :  { %v1084_v30 = vpack.c.bf16 %v8381_v29, %v8377_v24  ;;  %v8385_v23 = vpop.f32.mrb[59].mxu1 }
 0x31f   :  { %7177 = vmatpush3.bf16.msra.mxu0 %v7634_v22  ;;  %v1083_v26 = vpack.c.bf16 %v8385_v23, %v8379_v28 }
 0x320   :  { %7178 = vmatprep.subr.bf16.mxu0 %v7635_v25 }
 0x323   :  { %7179 = vmatpush3.bf16.msra.mxu0 %v7635_v25  ;;  %v8389_v32 = vpop.f32.mrb[60].mxu1 }
 0x324   :  { %7180 = vmatprep.subr.bf16.mxu0 %v7636_v27  ;;  %v8391_v36 = vpop.f32.mrb[61].mxu1 }
 0x325   :  { %v8393_v37 = vpop.f32.mrb[62].mxu1 }
 0x326   :  { %v1086_v38 = vpack.c.bf16 %v8393_v37, %v8389_v32  ;;  %v8397_v40 = vpop.f32.mrb[63].mxu1 }
 0x327   :  { %7181 = vmatpush3.bf16.msra.mxu0 %v7636_v27  ;;  %v1085_v46 = vpack.c.bf16 %v8397_v40, %v8391_v36 }
 0x328   :  { %7186 = vmatprep.subr.bf16.mxu0 %v7637_v33 }
 0x32a   :  { %7183 = vmatmul.mubr.msk.bf16.vlgmr.msra.gmra.mrb[16].mxu0 %vm332_vm0, %v1070_v35  ;;  %v7645_v35 = vld [vmem:[#allocation8 + $0x140] sm:$0xff]  }
 0x32b   :  { %7187 = vmatpush3.bf16.msra.mxu0 %v7637_v33  ;;  %7194 = vmatprep.mubr.msk.bf16.mxu0 %vm332_vm0, %v1071_v45  ;;  %v7651_v45 = vld [vmem:[#allocation8 + $0x170] sm:$0xff]  }
 0x32c   :  { %7188 = vmatprep.subr.bf16.mxu0 %v7638_v48 }
 0x32f   :  { %7189 = vmatpush3.bf16.msra.mxu0 %v7638_v48 }
 0x330   :  { %7190 = vmatprep.subr.bf16.mxu0 %v7639_v54 }
 0x333   :  { %7191 = vmatpush3.bf16.msra.mxu0 %v7639_v54  ;;  %v6802_v54 = vld [vmem:[#allocation11] ss:$0 sm:$0xff] }
 0x334   :  { %7192 = vmatprep.subr.bf16.mxu0 %v7640_v56 }
 0x337   :  { %7193 = vmatpush3.bf16.msra.mxu0 %v7640_v56 }
 0x338   :  { %7198 = vmatprep.subr.bf16.mxu0 %v7641_v62 }
 0x33a   :  { %7195 = vmatmul.mubr.msk.bf16.vlgmr.msra.gmra.mrb[16].mxu0 %vm332_vm0, %v1072_v43  ;;  %v7649_v43 = vld [vmem:[#allocation8 + $0x160] sm:$0xff]  }
 0x33b   :  { %7199 = vmatpush3.bf16.msra.mxu0 %v7641_v62  ;;  %7206 = vmatprep.mubr.msk.bf16.mxu0 %vm332_vm0, %v1073_v53  ;;  %v7657_v53 = vld [vmem:[#allocation8 + $0x1a0] sm:$0xff]  }
 0x33c   :  { %7200 = vmatprep.subr.bf16.mxu0 %v7642_v0 }
 0x33f   :  { %7201 = vmatpush3.bf16.msra.mxu0 %v7642_v0 }
 0x340   :  { %7202 = vmatprep.subr.bf16.mxu0 %v7643_v31 }
 0x343   :  { %7203 = vmatpush3.bf16.msra.mxu0 %v7643_v31 }
 0x344   :  { %7204 = vmatprep.subr.bf16.mxu0 %v7644_v34 }
 0x347   :  { %7205 = vmatpush3.bf16.msra.mxu0 %v7644_v34  ;;  %v6803_v34 = vld [vmem:[#allocation13] ss:$0 sm:$0xff] }
 0x348   :  { %7210 = vmatprep.subr.bf16.mxu0 %v7645_v35 }
 0x34a   :  { %7207 = vmatmul.mubr.msk.bf16.vlgmr.msra.gmra.mrb[16].mxu0 %vm332_vm0, %v1074_v51  ;;  %v7655_v51 = vld [vmem:[#allocation8 + $0x190] sm:$0xff]  }
 0x34b   :  { %7211 = vmatpush3.bf16.msra.mxu0 %v7645_v35  ;;  %7218 = vmatprep.mubr.msk.bf16.mxu0 %vm332_vm0, %v1075_v61  ;;  %v7663_v61 = vld [vmem:[#allocation8 + $0x1d0] sm:$0xff]  }
 0x34c   :  { %7212 = vmatprep.subr.bf16.mxu0 %v7646_v41 }
 0x34f   :  { %7213 = vmatpush3.bf16.msra.mxu0 %v7646_v41 }
 0x350   :  { %7214 = vmatprep.subr.bf16.mxu0 %v7647_v39 }
 0x353   :  { %7215 = vmatpush3.bf16.msra.mxu0 %v7647_v39 }
 0x354   :  { %7216 = vmatprep.subr.bf16.mxu0 %v7648_v42 }
 0x357   :  { %7217 = vmatpush3.bf16.msra.mxu0 %v7648_v42 }
 0x358   :  { %7222 = vmatprep.subr.bf16.mxu0 %v7649_v43 }
 0x35a   :  { %7219 = vmatmul.mubr.msk.bf16.vlgmr.msra.gmra.mrb[16].mxu0 %vm332_vm0, %v1076_v59  ;;  %v7661_v59 = vld [vmem:[#allocation8 + $0x1c0] sm:$0xff]  }
 0x35b   :  { %7223 = vmatpush3.bf16.msra.mxu0 %v7649_v43  ;;  %7230 = vmatprep.mubr.msk.bf16.mxu0 %vm332_vm0, %v1077_v5 }
 0x35c   :  { %7224 = vmatprep.subr.bf16.mxu0 %v7650_v44 }
 0x35f   :  { %7225 = vmatpush3.bf16.msra.mxu0 %v7650_v44 }
 0x360   :  { %7226 = vmatprep.subr.bf16.mxu0 %v7651_v45 }
 0x363   :  { %7227 = vmatpush3.bf16.msra.mxu0 %v7651_v45 }
 0x364   :  { %7228 = vmatprep.subr.bf16.mxu0 %v7652_v47 }
 0x367   :  { %7229 = vmatpush3.bf16.msra.mxu0 %v7652_v47 }
 0x368   :  { %7234 = vmatprep.subr.bf16.mxu0 %v7653_v49 }
 0x36a   :  { %7231 = vmatmul.mubr.msk.bf16.vlgmr.msra.gmra.mrb[16].mxu0 %vm332_vm0, %v1078_v3  ;;  %v7667_v3 = vld [vmem:[#allocation8 + $0x1f0] sm:$0xff]  }
 0x36b   :  { %7235 = vmatpush3.bf16.msra.mxu0 %v7653_v49  ;;  %7242 = vmatprep.mubr.msk.bf16.mxu0 %vm332_vm0, %v1079_v13 }
 0x36c   :  { %7236 = vmatprep.subr.bf16.mxu0 %v7654_v50 }
 0x36f   :  { %7237 = vmatpush3.bf16.msra.mxu0 %v7654_v50 }
 0x370   :  { %7238 = vmatprep.subr.bf16.mxu0 %v7655_v51 }
 0x373   :  { %7239 = vmatpush3.bf16.msra.mxu0 %v7655_v51 }
 0x374   :  { %7240 = vmatprep.subr.bf16.mxu0 %v7656_v52 }
 0x377   :  { %7241 = vmatpush3.bf16.msra.mxu0 %v7656_v52 }
 0x378   :  { %7246 = vmatprep.subr.bf16.mxu0 %v7657_v53 }
 0x37a   :  { %7243 = vmatmul.mubr.msk.bf16.vlgmr.msra.gmra.mrb[16].mxu0 %vm332_vm0, %v1080_v11 }
 0x37b   :  { %7247 = vmatpush3.bf16.msra.mxu0 %v7657_v53  ;;  %7254 = vmatprep.mubr.msk.bf16.mxu0 %vm332_vm0, %v1081_v21 }
 0x37c   :  { %7248 = vmatprep.subr.bf16.mxu0 %v7658_v55 }
 0x37f   :  { %7249 = vmatpush3.bf16.msra.mxu0 %v7658_v55 }
 0x380   :  { %7250 = vmatprep.subr.bf16.mxu0 %v7659_v57 }
 0x383   :  { %7251 = vmatpush3.bf16.msra.mxu0 %v7659_v57 }
 0x384   :  { %7252 = vmatprep.subr.bf16.mxu0 %v7660_v58 }
 0x387   :  { %7253 = vmatpush3.bf16.msra.mxu0 %v7660_v58 }
 0x388   :  { %7258 = vmatprep.subr.bf16.mxu0 %v7661_v59 }
 0x38a   :  { %7255 = vmatmul.mubr.msk.bf16.vlgmr.msra.gmra.mrb[16].mxu0 %vm332_vm0, %v1082_v19 }
 0x38b   :  { %7259 = vmatpush3.bf16.msra.mxu0 %v7661_v59  ;;  %7266 = vmatprep.mubr.msk.bf16.mxu0 %vm332_vm0, %v1083_v26 }
 0x38c   :  { %7260 = vmatprep.subr.bf16.mxu0 %v7662_v60 }
 0x38f   :  { %7261 = vmatpush3.bf16.msra.mxu0 %v7662_v60 }
 0x390   :  { %7262 = vmatprep.subr.bf16.mxu0 %v7663_v61 }
 0x393   :  { %7263 = vmatpush3.bf16.msra.mxu0 %v7663_v61 }
 0x394   :  { %7264 = vmatprep.subr.bf16.mxu0 %v7664_v63 }
 0x397   :  { %7265 = vmatpush3.bf16.msra.mxu0 %v7664_v63 }
 0x398   :  { %7270 = vmatprep.subr.bf16.mxu0 %v7665_v1 }
 0x39a   :  { %7267 = vmatmul.mubr.msk.bf16.vlgmr.msra.gmra.mrb[16].mxu0 %vm332_vm0, %v1084_v30 }
 0x39b   :  { %7271 = vmatpush3.bf16.msra.mxu0 %v7665_v1  ;;  %7278 = vmatprep.mubr.msk.bf16.mxu0 %vm332_vm0, %v1085_v46 }
 0x39c   :  { %7272 = vmatprep.subr.bf16.mxu0 %v7666_v2 }
 0x39f   :  { %7273 = vmatpush3.bf16.msra.mxu0 %v7666_v2 }
 0x3a0   :  { %7274 = vmatprep.subr.bf16.mxu0 %v7667_v3 }
 0x3a3   :  { %7275 = vmatpush3.bf16.msra.mxu0 %v7667_v3 }
 0x3a4   :  { %7276 = vmatprep.subr.bf16.mxu0 %v7668_v4 }
 0x3a7   :  { %7277 = vmatpush3.bf16.msra.mxu0 %v7668_v4 }
 0x3aa   :  { %7279 = vmatmul.mubr.msk.bf16.vlgmr.msra.gmra.mrb[16].mxu0 %vm332_vm0, %v1086_v38 }
 0x47d   :  { %v7280_v5 = vpop.f32.mrb[16].mxu0 }
 0x47e   :  { %v2531_v6 = vpop.f32.mrb[17].mxu0 }
 0x47f   :  { %v7281_v7 = vpop.f32.mrb[18].mxu0 }
 0x480   :  { %v2534_v8 = vpop.f32.mrb[19].mxu0 }
 0x481   :  { %v2550_v9 = vadd.f32 %v2534_v8, %v2531_v6 }
 0x483   :  { %v2551_v10 = vadd.f32 %v7280_v5, %v2550_v9 }
 0x485   :  { %v2552_v11 = vadd.f32 %v7281_v7, %v2551_v10 }
 0x487   :  { %v2553_v12 = vrot.slane %v2552_v11, 4 }
 0x489   :  { %v2554_v13 = vadd.f32 %v2553_v12, %v2552_v11 }
 0x48b   :  { %v2555_v14 = vrot.slane %v2554_v13, 2 }
 0x48d   :  { %v2556_v15 = vadd.f32 %v2555_v14, %v2554_v13 }
 0x48f   :  { %v2557_v16 = vrot.slane %v2556_v15, 1 }
 0x491   :  { %v2558_v17 = vadd.f32 %v2557_v16, %v2556_v15 }
 0x493   :  { %v2560_v18 = vmul.f32 0.03125, %v2558_v17 }
 0x495   :  { %v2561_v19 = vsub.f32 %v2531_v6, %v2560_v18  ;;  %v2562_v20 = vsub.f32 %v2534_v8, %v2560_v18  ;;  %v2563_v21 = vsub.f32 %v7280_v5, %v2560_v18  ;;  %v2564_v22 = vsub.f32 %v7281_v7, %v2560_v18 }
 0x497   :  { %v2565_v24 = vmul.f32 %v2561_v19, %v2561_v19  ;;  %v2566_v25 = vmul.f32 %v2562_v20, %v2562_v20  ;;  %v2567_v28 = vmul.f32 %v2563_v21, %v2563_v21  ;;  %v2568_v30 = vmul.f32 %v2564_v22, %v2564_v22 }
 0x499   :  { %v2569_v29 = vadd.f32 %v2566_v25, %v2565_v24 }
 0x49b   :  { %v2570_v23 = vadd.f32 %v2569_v29, %v2567_v28 }
 0x49d   :  { %v2571_v26 = vadd.f32 %v2570_v23, %v2568_v30 }
 0x49f   :  { %v2572_v27 = vrot.slane %v2571_v26, 4 }
 0x4a1   :  { %v2573_v32 = vadd.f32 %v2572_v27, %v2571_v26 }
 0x4a3   :  { %v2574_v33 = vrot.slane %v2573_v32, 2 }
 0x4a5   :  { %v2575_v36 = vadd.f32 %v2574_v33, %v2573_v32 }
 0x4a7   :  { %v2576_v37 = vrot.slane %v2575_v36, 1 }
 0x4a9   :  { %v2577_v38 = vadd.f32 %v2576_v37, %v2575_v36 }
 0x4ab   :  { %v2578_v40 = vmul.f32 0.03125, %v2577_v38 }
 0x4ad   :  { %v2579_v46 = vadd.f32 1e-05, %v2578_v40 }
 0x4af   :  { %7669 = vrsqrt.f32 %v2579_v46 }
 0x4b9   :  { %v7670_v48 = vpop.eup %7669 }
 0x4ba   :  { %v2581_v56 = vmul.f32 %v7670_v48, %v2561_v19  ;;  %v2582_v62 = vmul.f32 %v7670_v48, %v2562_v20  ;;  %v2583_v0 = vmul.f32 %v7670_v48, %v2563_v21  ;;  %v2584_v31 = vmul.f32 %v7670_v48, %v2564_v22 }
 0x4bc   :  { %v2592_v35 = vmul.f32 %v6802_v54, %v2581_v56  ;;  %v2593_v41 = vmul.f32 %v6802_v54, %v2582_v62  ;;  %v2594_v39 = vmul.f32 %v6802_v54, %v2583_v0  ;;  %v2595_v42 = vmul.f32 %v6802_v54, %v2584_v31 }
 0x4be   :  { %v2603_v43 = vadd.f32 %v6803_v34, %v2592_v35  ;;  %v2604_v44 = vadd.f32 %v6803_v34, %v2593_v41  ;;  %v2605_v45 = vadd.f32 %v6803_v34, %v2594_v39  ;;  %v2606_v47 = vadd.f32 %v6803_v34, %v2595_v42 }
 0x4c0   :  { %vm2607_vm0 = vcmp.gt.f32.partialorder %v2603_v43, 0.0  ;;  %vm2608_vm2 = vcmp.gt.f32.partialorder %v2604_v44, 0.0  ;;  %vm2609_vm3 = vcmp.gt.f32.partialorder %v2605_v45, 0.0  ;;  %vm2610_vm4 = vcmp.gt.f32.partialorder %v2606_v47, 0.0 }
 0x4c1   :  { %v2611_v49 = vmul.f32 0.2, %v2603_v43  ;;  %v2612_v50 = vmul.f32 0.2, %v2604_v44  ;;  %v2613_v51 = vmul.f32 0.2, %v2605_v45 }
 0x4c2   :  { %v2614_v52 = vmul.f32 0.2, %v2606_v47 }
 0x4c3   :  { %v2615_v53 = vsel %vm2607_vm0, %v2603_v43, %v2611_v49  ;;  %v2616_v55 = vsel %vm2608_vm2, %v2604_v44, %v2612_v50  ;;  %v2617_v57 = vsel %vm2609_vm3, %v2605_v45, %v2613_v51 }
 0x4c4   :  { %v2618_v58 = vsel %vm2610_vm4, %v2606_v47, %v2614_v52 }
 0x4c5   :  { %7929 = dma.done.wait [#allocation4], 32768 }
 0x4c6   :  { %7930 = vsyncadd [#allocation4], 4294934528  ;;  %v2624_v59 = vpack.c.bf16 %v2616_v55, %v2615_v53  ;;  %v2625_v60 = vpack.c.bf16 %v2618_v58, %v2617_v57  ;;  %vm2682_vm5 = vcmask 261120   ;;  %v7671_v61 = vld [vmem:[%s8782_s7] sm:$0xff]   ;;  %v7672_v63 = vld [vmem:[%s8782_s7 + $0x8] sm:$0xff]   ;;  %v7955_v25 = vmov 0  }
 0x4c7   :  { %7286 = vmatprep.mubr.msk.bf16.mxu1 %vm2682_vm5, %v7671_v61  ;;  %v7673_v1 = vld [vmem:[%s8782_s7 + $0x10] sm:$0xff]   ;;  %v2830_v2 = vld [vmem:[#allocation2 + $0x88] sm:$0xff]  ;;  %v2829_v3 = vld [vmem:[#allocation2 + $0x80] sm:$0xff] }
 0x4c8   :  { %7282 = vmatprep.subr.bf16.mxu1 %v2624_v59  ;;  %v2832_v4 = vld [vmem:[#allocation2 + $0x98] sm:$0xff]  ;;  %v2831_v6 = vld [vmem:[#allocation2 + $0x90] sm:$0xff]  ;;  %v2834_v7 = vld [vmem:[#allocation2 + $0xa8] sm:$0xff] }
 0x4c9   :  { %7283 = vmatpush3.bf16.msra.mxu1 %v2624_v59  ;;  %v7674_v5 = vld [vmem:[%s8782_s7 + $0x18] sm:$0xff]   ;;  %v7675_v8 = vld [vmem:[%s8782_s7 + $0x20] sm:$0xff]   ;;  %v2835_v11 = vld [vmem:[#allocation2 + $0xb0] sm:$0xff] }
 0x4ca   :  { %7284 = vmatprep.subr.bf16.mxu1 %v2625_v60  ;;  %v2833_v9 = vld [vmem:[#allocation2 + $0xa0] sm:$0xff]  ;;  %v2836_v10 = vld [vmem:[#allocation2 + $0xb8] sm:$0xff]  ;;  %v7676_v12 = vld [vmem:[%s8782_s7 + $0x28] sm:$0xff]  }
 0x4cb   :  { %v2838_v13 = vld [vmem:[#allocation2 + $0xc8] sm:$0xff]  ;;  %v7677_v14 = vld [vmem:[%s8782_s7 + $0x30] sm:$0xff]   ;;  %v2837_v15 = vld [vmem:[#allocation2 + $0xc0] sm:$0xff] }
 0x4cc   :  { %v2840_v16 = vld [vmem:[#allocation2 + $0xd8] sm:$0xff]  ;;  %v2839_v17 = vld [vmem:[#allocation2 + $0xd0] sm:$0xff]  ;;  %v2842_v19 = vld [vmem:[#allocation2 + $0xe8] sm:$0xff] }
 0x4cd   :  { %7285 = vmatpush3.bf16.msra.mxu1 %v2625_v60  ;;  %v7678_v18 = vld [vmem:[%s8782_s7 + $0x38] sm:$0xff]   ;;  %v2841_v20 = vld [vmem:[#allocation2 + $0xe0] sm:$0xff]  ;;  %v2843_v22 = vld [vmem:[#allocation2 + $0xf0] sm:$0xff] }
 0x4ce   :  { %2848 = vmatprep.subr.bf16.mxu1 %v2830_v2  ;;  %v2844_v21 = vld [vmem:[#allocation2 + $0xf8] sm:$0xff]  ;;  %v2813_v24 = vld [vmem:[#allocation2 + $0x8] sm:$0xff]  ;;  %v2812_v33 = vld [vmem:[#allocation2] sm:$0xff] }
 0x4cf   :  { %v2815_v36 = vld [vmem:[#allocation2 + $0x18] sm:$0xff]  ;;  %v2814_v40 = vld [vmem:[#allocation2 + $0x10] sm:$0xff]  ;;  %v2817_v48 = vld [vmem:[#allocation2 + $0x28] sm:$0xff] }
 0x4d0   :  { %7287 = vmatmul.mubr.msk.bf16.vlgmr.msra.gmra.mrb[64].mxu1 %vm2682_vm5, %v7672_v63  ;;  %v2816_v0 = vld [vmem:[#allocation2 + $0x20] sm:$0xff]  ;;  %v2819_v31 = vld [vmem:[#allocation2 + $0x38] sm:$0xff]  ;;  %v2818_v34 = vld [vmem:[#allocation2 + $0x30] sm:$0xff] }
 0x4d1   :  { %7290 = vmatprep.mubr.msk.bf16.mxu1 %vm2682_vm5, %v7673_v1  ;;  %2849 = vmatpush1.bf16.msra.mxu1 %v2829_v3  ;;  %v2821_v35 = vld [vmem:[#allocation2 + $0x48] sm:$0xff]  ;;  %v2820_v41 = vld [vmem:[#allocation2 + $0x40] sm:$0xff]  ;;  %v2823_v39 = vld [vmem:[#allocation2 + $0x58] sm:$0xff] }
 0x4d2   :  { %2850 = vmatprep.subr.bf16.mxu1 %v2832_v4  ;;  %v2822_v42 = vld [vmem:[#allocation2 + $0x50] sm:$0xff]  ;;  %v2825_v43 = vld [vmem:[#allocation2 + $0x68] sm:$0xff]  ;;  %v2824_v44 = vld [vmem:[#allocation2 + $0x60] sm:$0xff] }
 0x4d3   :  { %v2827_v45 = vld [vmem:[#allocation2 + $0x78] sm:$0xff]  ;;  %v2826_v47 = vld [vmem:[#allocation2 + $0x70] sm:$0xff]  ;;  %v2932_v49 = vld [vmem:[#allocation2 + $0x108] sm:$0xff] }
 0x4d4   :  { %v2931_v50 = vld [vmem:[#allocation2 + $0x100] sm:$0xff]  ;;  %v2934_v51 = vld [vmem:[#allocation2 + $0x118] sm:$0xff]  ;;  %v2933_v52 = vld [vmem:[#allocation2 + $0x110] sm:$0xff] }
 0x4d5   :  { %2851 = vmatpush1.bf16.msra.mxu1 %v2831_v6  ;;  %v2936_v53 = vld [vmem:[#allocation2 + $0x128] sm:$0xff]  ;;  %v2935_v55 = vld [vmem:[#allocation2 + $0x120] sm:$0xff]  ;;  %v2938_v57 = vld [vmem:[#allocation2 + $0x138] sm:$0xff] }
 0x4d6   :  { %2852 = vmatprep.subr.bf16.mxu1 %v2834_v7  ;;  %v2937_v58 = vld [vmem:[#allocation2 + $0x130] sm:$0xff]  ;;  %v2940_v59 = vld [vmem:[#allocation2 + $0x148] sm:$0xff]  ;;  %v2939_v60 = vld [vmem:[#allocation2 + $0x140] sm:$0xff] }
 0x4d7   :  { %v2942_v61 = vld [vmem:[#allocation2 + $0x158] sm:$0xff]  ;;  %v2941_v63 = vld [vmem:[#allocation2 + $0x150] sm:$0xff]  ;;  %v2944_v1 = vld [vmem:[#allocation2 + $0x168] sm:$0xff] }
 0x4d8   :  { %7291 = vmatmul.mubr.msk.bf16.gmra.mrb[68].mxu1 %vm2682_vm5, %v7674_v5  ;;  %v2943_v2 = vld [vmem:[#allocation2 + $0x160] sm:$0xff]  ;;  %v2946_v3 = vld [vmem:[#allocation2 + $0x178] sm:$0xff]  ;;  %v2945_v4 = vld [vmem:[#allocation2 + $0x170] sm:$0xff] }
 0x4d9   :  { %7294 = vmatprep.mubr.msk.bf16.mxu1 %vm2682_vm5, %v7675_v8  ;;  %2853 = vmatpush1.bf16.msra.mxu1 %v2833_v9  ;;  %v2992_v5 = vld [vmem:[#allocation2 + $0x188] sm:$0xff]  ;;  %v2991_v6 = vld [vmem:[#allocation2 + $0x180] sm:$0xff]  ;;  %v2994_v7 = vld [vmem:[#allocation2 + $0x198] sm:$0xff] }
 0x4da   :  { %2854 = vmatprep.subr.bf16.mxu1 %v2836_v10  ;;  %v2993_v10 = vld [vmem:[#allocation2 + $0x190] sm:$0xff] }
 0x4dd   :  { %2855 = vmatpush1.bf16.msra.mxu1 %v2835_v11 }
 0x4de   :  { %2856 = vmatprep.subr.bf16.mxu1 %v2838_v13 }
 0x4e0   :  { %7295 = vmatmul.mubr.msk.bf16.gmra.mrb[72].mxu1 %vm2682_vm5, %v7676_v12  ;;  %v2996_v12 = vld [vmem:[#allocation2 + $0x1a8] sm:$0xff] }
 0x4e1   :  { %7298 = vmatprep.mubr.msk.bf16.mxu1 %vm2682_vm5, %v7677_v14  ;;  %2857 = vmatpush1.bf16.msra.mxu1 %v2837_v15 }
 0x4e2   :  { %2858 = vmatprep.subr.bf16.mxu1 %v2840_v16  ;;  %v2995_v16 = vld [vmem:[#allocation2 + $0x1a0] sm:$0xff] }
 0x4e5   :  { %2859 = vmatpush1.bf16.msra.mxu1 %v2839_v17 }
 0x4e6   :  { %2860 = vmatprep.subr.bf16.mxu1 %v2842_v19 }
 0x4e8   :  { %7299 = vmatmul.mubr.msk.bf16.gmra.mrb[76].mxu1 %vm2682_vm5, %v7678_v18  ;;  %v2998_v18 = vld [vmem:[#allocation2 + $0x1b8] sm:$0xff] }
 0x4e9   :  { %2861 = vmatpush1.bf16.msra.mxu1 %v2841_v20  ;;  %2880 = vmatprep.mubr.bf16.mxu1 %v7955_v25  ;;  %v2997_v20 = vld [vmem:[#allocation2 + $0x1b0] sm:$0xff] }
 0x4ea   :  { %2862 = vmatprep.subr.bf16.mxu1 %v2844_v21 }
 0x4ed   :  { %2863 = vmatpush1.bf16.msra.mxu1 %v2843_v22  ;;  %v3000_v22 = vld [vmem:[#allocation2 + $0x1c8] sm:$0xff] }
 0x4ee   :  { %2889 = vmatprep.subr.bf16.mxu1 %v2813_v24 }
 0x5a3   :  { %v7288_v28 = vpop.f32.mrb[64].mxu1 }
 0x5a4   :  { %v2741_v29 = vpop.f32.mrb[65].mxu1 }
 0x5a5   :  { %v7289_v30 = vpop.f32.mrb[66].mxu1 }
 0x5a6   :  { %v8502_v23 = vpack.c.bf16 %v7289_v30, %v7288_v28  ;;  %v2744_v26 = vpop.f32.mrb[67].mxu1  ;;  %v2999_v30 = vld [vmem:[#allocation2 + $0x1c0] sm:$0xff] }
 0x5a7   :  { %v2804_v27 = vpack.c.bf16 %v2744_v26, %v2741_v29  ;;  %v3002_v26 = vld [vmem:[#allocation2 + $0x1d8] sm:$0xff] }
 0x5a9   :  { %v2846_v32 = vrot.slane %v2804_v27, 4 }
 0x5ab   :  { %2881 = vmatmul.mubr.bf16.vlgmr.msra.gmra.mrb[80].mxu1 %v2846_v32  ;;  %v7292_v37 = vpop.f32.mrb[68].mxu1  ;;  %v3004_v32 = vld [vmem:[#allocation2 + $0x1e8] sm:$0xff] }
 0x5ac   :  { %2890 = vmatpush1.bf16.msra.mxu1 %v2812_v33  ;;  %2921 = vmatprep.mubr.bf16.mxu1 %v7955_v25  ;;  %v2757_v38 = vpop.f32.mrb[69].mxu1  ;;  %v3003_v33 = vld [vmem:[#allocation2 + $0x1e0] sm:$0xff] }
 0x5ad   :  { %2891 = vmatprep.subr.bf16.mxu1 %v2815_v36  ;;  %v7293_v46 = vpop.f32.mrb[70].mxu1  ;;  %v3006_v36 = vld [vmem:[#allocation2 + $0x1f8] sm:$0xff] }
 0x5ae   :  { %v8505_v54 = vpack.c.bf16 %v7293_v46, %v7292_v37  ;;  %v2760_v56 = vpop.f32.mrb[71].mxu1  ;;  %v3005_v37 = vld [vmem:[#allocation2 + $0x1f0] sm:$0xff]  ;;  %v3054_v46 = vld [vmem:[#allocation2 + $0x200] sm:$0xff] }
 0x5af   :  { %v8507_v62 = vpack.c.bf16 %v2760_v56, %v2757_v38  ;;  %v3055_v38 = vld [vmem:[#allocation2 + $0x208] sm:$0xff]  ;;  %v3056_v56 = vld [vmem:[#allocation2 + $0x210] sm:$0xff] }
 0x5b0   :  { %2892 = vmatpush1.bf16.msra.mxu1 %v2814_v40  ;;  %v3008_v40 = vrot.slane %v8502_v23, 4 }
 0x5b1   :  { %2893 = vmatprep.subr.bf16.mxu1 %v2817_v48  ;;  %v3057_v48 = vld [vmem:[#allocation2 + $0x218] sm:$0xff] }
 0x5b3   :  { %v7296_v8 = vpop.f32.mrb[72].mxu1 }
 0x5b4   :  { %2894 = vmatpush1.bf16.msra.mxu1 %v2816_v0  ;;  %v2773_v9 = vpop.f32.mrb[73].mxu1  ;;  %v3059_v0 = vld [vmem:[#allocation2 + $0x228] sm:$0xff] }
 0x5b5   :  { %2895 = vmatprep.subr.bf16.mxu1 %v2819_v31  ;;  %v7297_v11 = vpop.f32.mrb[74].mxu1  ;;  %v3058_v31 = vld [vmem:[#allocation2 + $0x220] sm:$0xff] }
 0x5b6   :  { %v8512_v13 = vpack.c.bf16 %v7297_v11, %v7296_v8  ;;  %v2776_v14 = vpop.f32.mrb[75].mxu1  ;;  %v3180_v8 = vld [vmem:[#allocation2 + $0x318] sm:$0xff]  ;;  %v3181_v11 = vld [vmem:[#allocation2 + $0x320] sm:$0xff] }
 0x5b7   :  { %v8514_v15 = vpack.c.bf16 %v2776_v14, %v2773_v9  ;;  %v3179_v9 = vld [vmem:[#allocation2 + $0x310] sm:$0xff] }
 0x5b8   :  { %2896 = vmatpush1.bf16.msra.mxu1 %v2818_v34  ;;  %v3061_v34 = vld [vmem:[#allocation2 + $0x238] sm:$0xff]  ;;  %v3183_v14 = vld [vmem:[#allocation2 + $0x330] sm:$0xff] }
 0x5b9   :  { %2897 = vmatprep.subr.bf16.mxu1 %v2821_v35  ;;  %v3060_v35 = vld [vmem:[#allocation2 + $0x230] sm:$0xff] }
 0x5bb   :  { %v7300_v17 = vpop.f32.mrb[76].mxu1 }
 0x5bc   :  { %2898 = vmatpush1.bf16.msra.mxu1 %v2820_v41  ;;  %v2789_v19 = vpop.f32.mrb[77].mxu1  ;;  %v3063_v41 = vld [vmem:[#allocation2 + $0x248] sm:$0xff] }
 0x5bd   :  { %2899 = vmatprep.subr.bf16.mxu1 %v2823_v39  ;;  %v7301_v21 = vpop.f32.mrb[78].mxu1  ;;  %v3065_v39 = vld [vmem:[#allocation2 + $0x258] sm:$0xff] }
 0x5be   :  { %v8516_v24 = vpack.c.bf16 %v7301_v21, %v7300_v17  ;;  %v2792_v28 = vpop.f32.mrb[79].mxu1  ;;  %v3188_v17 = vld [vmem:[#allocation2 + $0x358] sm:$0xff] }
 0x5bf   :  { %v8518_v29 = vpack.c.bf16 %v2792_v28, %v2789_v19  ;;  %v3190_v19 = vld [vmem:[#allocation2 + $0x368] sm:$0xff]  ;;  %v3192_v21 = vld [vmem:[#allocation2 + $0x378] sm:$0xff] }
 0x5c0   :  { %2900 = vmatpush1.bf16.msra.mxu1 %v2822_v42  ;;  %v3064_v42 = vld [vmem:[#allocation2 + $0x250] sm:$0xff]  ;;  %v3238_v28 = vld [vmem:[#allocation2 + $0x388] sm:$0xff] }
 0x5c1   :  { %2901 = vmatprep.subr.bf16.mxu1 %v2825_v43  ;;  %v3067_v43 = vld [vmem:[#allocation2 + $0x268] sm:$0xff] }
 0x5c4   :  { %2902 = vmatpush1.bf16.msra.mxu1 %v2824_v44  ;;  %v3066_v44 = vld [vmem:[#allocation2 + $0x260] sm:$0xff] }
 0x5c5   :  { %2903 = vmatprep.subr.bf16.mxu1 %v2827_v45  ;;  %v3069_v45 = vld [vmem:[#allocation2 + $0x278] sm:$0xff] }
 0x5c8   :  { %2904 = vmatpush1.bf16.msra.mxu1 %v2826_v47  ;;  %v3068_v47 = vld [vmem:[#allocation2 + $0x270] sm:$0xff] }
 0x5c9   :  { %2947 = vmatprep.subr.bf16.mxu1 %v2932_v49  ;;  %v3115_v49 = vld [vmem:[#allocation2 + $0x288] sm:$0xff] }
 0x5cb   :  { %2922 = vmatmul.mubr.bf16.vlgmr.msra.gmra.mrb[80].mxu1 %v2804_v27  ;;  %v3001_v27 = vld [vmem:[#allocation2 + $0x1d0] sm:$0xff] }
 0x5cc   :  { %2948 = vmatpush1.bf16.msra.mxu1 %v2931_v50  ;;  %2979 = vmatprep.mubr.bf16.mxu1 %v7955_v25  ;;  %v3114_v50 = vld [vmem:[#allocation2 + $0x280] sm:$0xff] }
 0x5cd   :  { %2949 = vmatprep.subr.bf16.mxu1 %v2934_v51  ;;  %v3117_v51 = vld [vmem:[#allocation2 + $0x298] sm:$0xff] }
 0x5d0   :  { %2950 = vmatpush1.bf16.msra.mxu1 %v2933_v52  ;;  %v3116_v52 = vld [vmem:[#allocation2 + $0x290] sm:$0xff] }
 0x5d1   :  { %2951 = vmatprep.subr.bf16.mxu1 %v2936_v53  ;;  %v3119_v53 = vld [vmem:[#allocation2 + $0x2a8] sm:$0xff] }
 0x5d4   :  { %2952 = vmatpush1.bf16.msra.mxu1 %v2935_v55  ;;  %v3118_v55 = vld [vmem:[#allocation2 + $0x2a0] sm:$0xff] }
 0x5d5   :  { %2953 = vmatprep.subr.bf16.mxu1 %v2938_v57  ;;  %v3121_v57 = vld [vmem:[#allocation2 + $0x2b8] sm:$0xff] }
 0x5d8   :  { %2954 = vmatpush1.bf16.msra.mxu1 %v2937_v58  ;;  %v3120_v58 = vld [vmem:[#allocation2 + $0x2b0] sm:$0xff] }
 0x5d9   :  { %2955 = vmatprep.subr.bf16.mxu1 %v2940_v59  ;;  %v3123_v59 = vld [vmem:[#allocation2 + $0x2c8] sm:$0xff] }
 0x5dc   :  { %2956 = vmatpush1.bf16.msra.mxu1 %v2939_v60  ;;  %v3122_v60 = vld [vmem:[#allocation2 + $0x2c0] sm:$0xff] }
 0x5dd   :  { %2957 = vmatprep.subr.bf16.mxu1 %v2942_v61  ;;  %v3125_v61 = vld [vmem:[#allocation2 + $0x2d8] sm:$0xff] }
 0x5e0   :  { %2958 = vmatpush1.bf16.msra.mxu1 %v2941_v63  ;;  %v3124_v63 = vld [vmem:[#allocation2 + $0x2d0] sm:$0xff] }
 0x5e1   :  { %2959 = vmatprep.subr.bf16.mxu1 %v2944_v1  ;;  %v3127_v1 = vld [vmem:[#allocation2 + $0x2e8] sm:$0xff] }
 0x5e4   :  { %2960 = vmatpush1.bf16.msra.mxu1 %v2943_v2  ;;  %v3126_v2 = vld [vmem:[#allocation2 + $0x2e0] sm:$0xff] }
 0x5e5   :  { %2961 = vmatprep.subr.bf16.mxu1 %v2946_v3  ;;  %v3129_v3 = vld [vmem:[#allocation2 + $0x2f8] sm:$0xff] }
 0x5e8   :  { %2962 = vmatpush1.bf16.msra.mxu1 %v2945_v4  ;;  %v3128_v4 = vld [vmem:[#allocation2 + $0x2f0] sm:$0xff] }
 0x5e9   :  { %3010 = vmatprep.subr.bf16.mxu1 %v2992_v5  ;;  %v3178_v5 = vld [vmem:[#allocation2 + $0x308] sm:$0xff] }
 0x5eb   :  { %2980 = vmatmul.mubr.bf16.vlgmr.msra.gmra.mrb[80].mxu1 %v8502_v23  ;;  %v3062_v23 = vld [vmem:[#allocation2 + $0x240] sm:$0xff] }
 0x5ec   :  { %3011 = vmatpush1.bf16.msra.mxu1 %v2991_v6  ;;  %3042 = vmatprep.mubr.bf16.mxu1 %v7955_v25  ;;  %v3131_v6 = vrot.slane %v8507_v62, 4 }
 0x5ed   :  { %3012 = vmatprep.subr.bf16.mxu1 %v2994_v7  ;;  %v3177_v7 = vld [vmem:[#allocation2 + $0x300] sm:$0xff] }
 0x5f0   :  { %3013 = vmatpush1.bf16.msra.mxu1 %v2993_v10  ;;  %v3182_v10 = vld [vmem:[#allocation2 + $0x328] sm:$0xff] }
 0x5f1   :  { %3014 = vmatprep.subr.bf16.mxu1 %v2996_v12  ;;  %v3184_v12 = vld [vmem:[#allocation2 + $0x338] sm:$0xff] }
 0x5f4   :  { %3015 = vmatpush1.bf16.msra.mxu1 %v2995_v16  ;;  %v3186_v16 = vld [vmem:[#allocation2 + $0x348] sm:$0xff] }
 0x5f5   :  { %3016 = vmatprep.subr.bf16.mxu1 %v2998_v18  ;;  %v3187_v18 = vld [vmem:[#allocation2 + $0x350] sm:$0xff] }
 0x5f8   :  { %3017 = vmatpush1.bf16.msra.mxu1 %v2997_v20  ;;  %v3189_v20 = vld [vmem:[#allocation2 + $0x360] sm:$0xff] }
 0x5f9   :  { %3018 = vmatprep.subr.bf16.mxu1 %v3000_v22  ;;  %v3191_v22 = vld [vmem:[#allocation2 + $0x370] sm:$0xff] }
 0x5fc   :  { %3019 = vmatpush1.bf16.msra.mxu1 %v2999_v30  ;;  %v3237_v30 = vld [vmem:[#allocation2 + $0x380] sm:$0xff] }
 0x5fd   :  { %3020 = vmatprep.subr.bf16.mxu1 %v3002_v26  ;;  %v3240_v26 = vld [vmem:[#allocation2 + $0x398] sm:$0xff] }
 0x600   :  { %3021 = vmatpush1.bf16.msra.mxu1 %v3001_v27  ;;  %v3239_v27 = vld [vmem:[#allocation2 + $0x390] sm:$0xff] }
 0x601   :  { %3022 = vmatprep.subr.bf16.mxu1 %v3004_v32  ;;  %v3242_v32 = vld [vmem:[#allocation2 + $0x3a8] sm:$0xff] }
 0x604   :  { %3023 = vmatpush1.bf16.msra.mxu1 %v3003_v33  ;;  %v3241_v33 = vld [vmem:[#allocation2 + $0x3a0] sm:$0xff] }
 0x605   :  { %3024 = vmatprep.subr.bf16.mxu1 %v3006_v36  ;;  %v3244_v36 = vld [vmem:[#allocation2 + $0x3b8] sm:$0xff] }
 0x608   :  { %3025 = vmatpush1.bf16.msra.mxu1 %v3005_v37  ;;  %v3243_v37 = vld [vmem:[#allocation2 + $0x3b0] sm:$0xff] }
 0x609   :  { %3070 = vmatprep.subr.bf16.mxu1 %v3055_v38  ;;  %v3246_v38 = vld [vmem:[#allocation2 + $0x3c8] sm:$0xff] }
 0x60b   :  { %3043 = vmatmul.mubr.bf16.vlgmr.msra.gmra.mrb[80].mxu1 %v3008_v40  ;;  %v3245_v40 = vld [vmem:[#allocation2 + $0x3c0] sm:$0xff] }
 0x60c   :  { %3071 = vmatpush1.bf16.msra.mxu1 %v3054_v46  ;;  %3102 = vmatprep.mubr.bf16.mxu1 %v7955_v25  ;;  %v3248_v46 = vld [vmem:[#allocation2 + $0x3d8] sm:$0xff] }
 0x60d   :  { %3072 = vmatprep.subr.bf16.mxu1 %v3057_v48  ;;  %v3247_v48 = vld [vmem:[#allocation2 + $0x3d0] sm:$0xff] }
 0x610   :  { %3073 = vmatpush1.bf16.msra.mxu1 %v3056_v56  ;;  %v3250_v56 = vld [vmem:[#allocation2 + $0x3e8] sm:$0xff] }
 0x611   :  { %3074 = vmatprep.subr.bf16.mxu1 %v3059_v0  ;;  %v3249_v0 = vld [vmem:[#allocation2 + $0x3e0] sm:$0xff] }
 0x614   :  { %3075 = vmatpush1.bf16.msra.mxu1 %v3058_v31  ;;  %v3252_v31 = vld [vmem:[#allocation2 + $0x3f8] sm:$0xff] }
 0x615   :  { %3076 = vmatprep.subr.bf16.mxu1 %v3061_v34  ;;  %v3251_v34 = vld [vmem:[#allocation2 + $0x3f0] sm:$0xff] }
 0x618   :  { %3077 = vmatpush1.bf16.msra.mxu1 %v3060_v35  ;;  %v3301_v35 = vld [vmem:[#allocation2 + $0x408] sm:$0xff] }
 0x619   :  { %3078 = vmatprep.subr.bf16.mxu1 %v3063_v41  ;;  %v3254_v41 = vrot.slane %v8505_v54, 4 }
 0x61c   :  { %3079 = vmatpush1.bf16.msra.mxu1 %v3062_v23  ;;  %v3300_v23 = vld [vmem:[#allocation2 + $0x400] sm:$0xff] }
 0x61d   :  { %3080 = vmatprep.subr.bf16.mxu1 %v3065_v39  ;;  %v3303_v39 = vld [vmem:[#allocation2 + $0x418] sm:$0xff] }
 0x620   :  { %3081 = vmatpush1.bf16.msra.mxu1 %v3064_v42  ;;  %v3302_v42 = vld [vmem:[#allocation2 + $0x410] sm:$0xff] }
 0x621   :  { %3082 = vmatprep.subr.bf16.mxu1 %v3067_v43  ;;  %v3305_v43 = vld [vmem:[#allocation2 + $0x428] sm:$0xff] }
 0x624   :  { %3083 = vmatpush1.bf16.msra.mxu1 %v3066_v44  ;;  %v3304_v44 = vld [vmem:[#allocation2 + $0x420] sm:$0xff] }
 0x625   :  { %3084 = vmatprep.subr.bf16.mxu1 %v3069_v45  ;;  %v3307_v45 = vld [vmem:[#allocation2 + $0x438] sm:$0xff] }
 0x628   :  { %3085 = vmatpush1.bf16.msra.mxu1 %v3068_v47  ;;  %v3306_v47 = vld [vmem:[#allocation2 + $0x430] sm:$0xff] }
 0x629   :  { %3133 = vmatprep.subr.bf16.mxu1 %v3115_v49  ;;  %v3309_v49 = vld [vmem:[#allocation2 + $0x448] sm:$0xff] }
 0x62b   :  { %3103 = vmatmul.mubr.bf16.vlgmr.msra.gmra.mrb[80].mxu1 %v8507_v62  ;;  %v3185_v62 = vld [vmem:[#allocation2 + $0x340] sm:$0xff] }
 0x62c   :  { %3134 = vmatpush1.bf16.msra.mxu1 %v3114_v50  ;;  %3165 = vmatprep.mubr.bf16.mxu1 %v7955_v25  ;;  %v3311_v50 = vld [vmem:[#allocation2 + $0x458] sm:$0xff] }
 0x62d   :  { %3135 = vmatprep.subr.bf16.mxu1 %v3117_v51  ;;  %v3310_v51 = vld [vmem:[#allocation2 + $0x450] sm:$0xff] }
 0x630   :  { %3136 = vmatpush1.bf16.msra.mxu1 %v3116_v52  ;;  %v3313_v52 = vld [vmem:[#allocation2 + $0x468] sm:$0xff] }
 0x631   :  { %3137 = vmatprep.subr.bf16.mxu1 %v3119_v53  ;;  %v3312_v53 = vld [vmem:[#allocation2 + $0x460] sm:$0xff] }
 0x634   :  { %3138 = vmatpush1.bf16.msra.mxu1 %v3118_v55  ;;  %v3315_v55 = vld [vmem:[#allocation2 + $0x478] sm:$0xff] }
 0x635   :  { %3139 = vmatprep.subr.bf16.mxu1 %v3121_v57  ;;  %v3314_v57 = vld [vmem:[#allocation2 + $0x470] sm:$0xff] }
 0x638   :  { %3140 = vmatpush1.bf16.msra.mxu1 %v3120_v58  ;;  %v3361_v58 = vld [vmem:[#allocation2 + $0x488] sm:$0xff] }
 0x639   :  { %3141 = vmatprep.subr.bf16.mxu1 %v3123_v59  ;;  %v3360_v59 = vld [vmem:[#allocation2 + $0x480] sm:$0xff] }
 0x63c   :  { %3142 = vmatpush1.bf16.msra.mxu1 %v3122_v60  ;;  %v3363_v60 = vld [vmem:[#allocation2 + $0x498] sm:$0xff] }
 0x63d   :  { %3143 = vmatprep.subr.bf16.mxu1 %v3125_v61  ;;  %v3362_v61 = vld [vmem:[#allocation2 + $0x490] sm:$0xff] }
 0x640   :  { %3144 = vmatpush1.bf16.msra.mxu1 %v3124_v63  ;;  %v3365_v63 = vld [vmem:[#allocation2 + $0x4a8] sm:$0xff] }
 0x641   :  { %3145 = vmatprep.subr.bf16.mxu1 %v3127_v1  ;;  %v3364_v1 = vld [vmem:[#allocation2 + $0x4a0] sm:$0xff] }
 0x644   :  { %3146 = vmatpush1.bf16.msra.mxu1 %v3126_v2  ;;  %v3367_v2 = vld [vmem:[#allocation2 + $0x4b8] sm:$0xff] }
 0x645   :  { %3147 = vmatprep.subr.bf16.mxu1 %v3129_v3  ;;  %v3366_v3 = vld [vmem:[#allocation2 + $0x4b0] sm:$0xff] }
 0x648   :  { %3148 = vmatpush1.bf16.msra.mxu1 %v3128_v4  ;;  %v3369_v4 = vld [vmem:[#allocation2 + $0x4c8] sm:$0xff] }
 0x649   :  { %3193 = vmatprep.subr.bf16.mxu1 %v3178_v5  ;;  %v3368_v5 = vld [vmem:[#allocation2 + $0x4c0] sm:$0xff] }
 0x64b   :  { %3166 = vmatmul.mubr.bf16.vlgmr.msra.gmra.mrb[80].mxu1 %v3131_v6  ;;  %v3371_v6 = vld [vmem:[#allocation2 + $0x4d8] sm:$0xff] }
 0x64c   :  { %3194 = vmatpush1.bf16.msra.mxu1 %v3177_v7  ;;  %3225 = vmatprep.mubr.bf16.mxu1 %v7955_v25  ;;  %v3370_v7 = vld [vmem:[#allocation2 + $0x4d0] sm:$0xff] }
 0x64d   :  { %3195 = vmatprep.subr.bf16.mxu1 %v3180_v8  ;;  %v3373_v8 = vld [vmem:[#allocation2 + $0x4e8] sm:$0xff] }
 0x650   :  { %3196 = vmatpush1.bf16.msra.mxu1 %v3179_v9  ;;  %v3372_v9 = vld [vmem:[#allocation2 + $0x4e0] sm:$0xff] }
 0x651   :  { %3197 = vmatprep.subr.bf16.mxu1 %v3182_v10  ;;  %v3375_v10 = vld [vmem:[#allocation2 + $0x4f8] sm:$0xff] }
 0x654   :  { %3198 = vmatpush1.bf16.msra.mxu1 %v3181_v11  ;;  %v3374_v11 = vld [vmem:[#allocation2 + $0x4f0] sm:$0xff] }
 0x655   :  { %3199 = vmatprep.subr.bf16.mxu1 %v3184_v12  ;;  %v3424_v12 = vld [vmem:[#allocation2 + $0x508] sm:$0xff] }
 0x658   :  { %3200 = vmatpush1.bf16.msra.mxu1 %v3183_v14  ;;  %v3377_v14 = vrot.slane %v8514_v15, 4 }
 0x659   :  { %3201 = vmatprep.subr.bf16.mxu1 %v3186_v16  ;;  %v3423_v16 = vld [vmem:[#allocation2 + $0x500] sm:$0xff] }
 0x65c   :  { %3202 = vmatpush1.bf16.msra.mxu1 %v3185_v62  ;;  %v3426_v62 = vld [vmem:[#allocation2 + $0x518] sm:$0xff] }
 0x65d   :  { %3203 = vmatprep.subr.bf16.mxu1 %v3188_v17  ;;  %v3425_v17 = vld [vmem:[#allocation2 + $0x510] sm:$0xff] }
 0x660   :  { %3204 = vmatpush1.bf16.msra.mxu1 %v3187_v18  ;;  %v3428_v18 = vld [vmem:[#allocation2 + $0x528] sm:$0xff] }
 0x661   :  { %3205 = vmatprep.subr.bf16.mxu1 %v3190_v19  ;;  %v3427_v19 = vld [vmem:[#allocation2 + $0x520] sm:$0xff] }
 0x664   :  { %3206 = vmatpush1.bf16.msra.mxu1 %v3189_v20  ;;  %v3430_v20 = vld [vmem:[#allocation2 + $0x538] sm:$0xff] }
 0x665   :  { %3207 = vmatprep.subr.bf16.mxu1 %v3192_v21  ;;  %v3429_v21 = vld [vmem:[#allocation2 + $0x530] sm:$0xff] }
 0x668   :  { %3208 = vmatpush1.bf16.msra.mxu1 %v3191_v22  ;;  %v3432_v22 = vld [vmem:[#allocation2 + $0x548] sm:$0xff] }
 0x669   :  { %3256 = vmatprep.subr.bf16.mxu1 %v3238_v28  ;;  %v3434_v28 = vld [vmem:[#allocation2 + $0x558] sm:$0xff] }
 0x66b   :  { %3226 = vmatmul.mubr.bf16.vlgmr.msra.gmra.mrb[80].mxu1 %v8505_v54  ;;  %v3308_v54 = vld [vmem:[#allocation2 + $0x440] sm:$0xff] }
 0x66c   :  { %3257 = vmatpush1.bf16.msra.mxu1 %v3237_v30  ;;  %3288 = vmatprep.mubr.bf16.mxu1 %v7955_v25  ;;  %v3433_v30 = vld [vmem:[#allocation2 + $0x550] sm:$0xff] }
 0x66d   :  { %3258 = vmatprep.subr.bf16.mxu1 %v3240_v26  ;;  %v3436_v26 = vld [vmem:[#allocation2 + $0x568] sm:$0xff] }
 0x670   :  { %3259 = vmatpush1.bf16.msra.mxu1 %v3239_v27  ;;  %v3435_v27 = vld [vmem:[#allocation2 + $0x560] sm:$0xff] }
 0x671   :  { %3260 = vmatprep.subr.bf16.mxu1 %v3242_v32  ;;  %v3438_v32 = vld [vmem:[#allocation2 + $0x578] sm:$0xff] }
 0x674   :  { %3261 = vmatpush1.bf16.msra.mxu1 %v3241_v33  ;;  %v3437_v33 = vld [vmem:[#allocation2 + $0x570] sm:$0xff] }
 0x675   :  { %3262 = vmatprep.subr.bf16.mxu1 %v3244_v36  ;;  %v3484_v36 = vld [vmem:[#allocation2 + $0x588] sm:$0xff] }
 0x678   :  { %3263 = vmatpush1.bf16.msra.mxu1 %v3243_v37  ;;  %v3483_v37 = vld [vmem:[#allocation2 + $0x580] sm:$0xff] }
 0x679   :  { %3264 = vmatprep.subr.bf16.mxu1 %v3246_v38  ;;  %v3486_v38 = vld [vmem:[#allocation2 + $0x598] sm:$0xff] }
 0x67c   :  { %3265 = vmatpush1.bf16.msra.mxu1 %v3245_v40  ;;  %v3485_v40 = vld [vmem:[#allocation2 + $0x590] sm:$0xff] }
 0x67d   :  { %3266 = vmatprep.subr.bf16.mxu1 %v3248_v46  ;;  %v3488_v46 = vld [vmem:[#allocation2 + $0x5a8] sm:$0xff] }
 0x680   :  { %3267 = vmatpush1.bf16.msra.mxu1 %v3247_v48  ;;  %v3487_v48 = vld [vmem:[#allocation2 + $0x5a0] sm:$0xff] }
 0x681   :  { %3268 = vmatprep.subr.bf16.mxu1 %v3250_v56  ;;  %v3490_v56 = vld [vmem:[#allocation2 + $0x5b8] sm:$0xff] }
 0x684   :  { %3269 = vmatpush1.bf16.msra.mxu1 %v3249_v0  ;;  %v3489_v0 = vld [vmem:[#allocation2 + $0x5b0] sm:$0xff] }
 0x685   :  { %3270 = vmatprep.subr.bf16.mxu1 %v3252_v31  ;;  %v3492_v31 = vld [vmem:[#allocation2 + $0x5c8] sm:$0xff] }
 0x688   :  { %3271 = vmatpush1.bf16.msra.mxu1 %v3251_v34  ;;  %v3491_v34 = vld [vmem:[#allocation2 + $0x5c0] sm:$0xff] }
 0x689   :  { %3316 = vmatprep.subr.bf16.mxu1 %v3301_v35  ;;  %v3494_v35 = vld [vmem:[#allocation2 + $0x5d8] sm:$0xff] }
 0x68b   :  { %3289 = vmatmul.mubr.bf16.vlgmr.msra.gmra.mrb[80].mxu1 %v3254_v41  ;;  %v3493_v41 = vld [vmem:[#allocation2 + $0x5d0] sm:$0xff] }
 0x68c   :  { %3317 = vmatpush1.bf16.msra.mxu1 %v3300_v23  ;;  %3348 = vmatprep.mubr.bf16.mxu1 %v7955_v25  ;;  %v3496_v23 = vld [vmem:[#allocation2 + $0x5e8] sm:$0xff] }
 0x68d   :  { %3318 = vmatprep.subr.bf16.mxu1 %v3303_v39  ;;  %v3495_v39 = vld [vmem:[#allocation2 + $0x5e0] sm:$0xff] }
 0x690   :  { %3319 = vmatpush1.bf16.msra.mxu1 %v3302_v42  ;;  %v3498_v42 = vld [vmem:[#allocation2 + $0x5f8] sm:$0xff] }
 0x691   :  { %3320 = vmatprep.subr.bf16.mxu1 %v3305_v43  ;;  %v3497_v43 = vld [vmem:[#allocation2 + $0x5f0] sm:$0xff] }
 0x694   :  { %3321 = vmatpush1.bf16.msra.mxu1 %v3304_v44  ;;  %v3547_v44 = vld [vmem:[#allocation2 + $0x608] sm:$0xff] }
 0x695   :  { %3322 = vmatprep.subr.bf16.mxu1 %v3307_v45  ;;  %v3500_v45 = vrot.slane %v8512_v13, 4 }
 0x698   :  { %3323 = vmatpush1.bf16.msra.mxu1 %v3306_v47  ;;  %v3546_v47 = vld [vmem:[#allocation2 + $0x600] sm:$0xff] }
 0x699   :  { %3324 = vmatprep.subr.bf16.mxu1 %v3309_v49  ;;  %v3549_v49 = vld [vmem:[#allocation2 + $0x618] sm:$0xff] }
 0x69c   :  { %3325 = vmatpush1.bf16.msra.mxu1 %v3308_v54  ;;  %v3548_v54 = vld [vmem:[#allocation2 + $0x610] sm:$0xff] }
 0x69d   :  { %3326 = vmatprep.subr.bf16.mxu1 %v3311_v50  ;;  %v3551_v50 = vld [vmem:[#allocation2 + $0x628] sm:$0xff] }
 0x6a0   :  { %3327 = vmatpush1.bf16.msra.mxu1 %v3310_v51  ;;  %v3550_v51 = vld [vmem:[#allocation2 + $0x620] sm:$0xff] }
 0x6a1   :  { %3328 = vmatprep.subr.bf16.mxu1 %v3313_v52  ;;  %v3553_v52 = vld [vmem:[#allocation2 + $0x638] sm:$0xff] }
 0x6a4   :  { %3329 = vmatpush1.bf16.msra.mxu1 %v3312_v53  ;;  %v3552_v53 = vld [vmem:[#allocation2 + $0x630] sm:$0xff] }
 0x6a5   :  { %3330 = vmatprep.subr.bf16.mxu1 %v3315_v55  ;;  %v3555_v55 = vld [vmem:[#allocation2 + $0x648] sm:$0xff] }
 0x6a8   :  { %3331 = vmatpush1.bf16.msra.mxu1 %v3314_v57  ;;  %v3557_v57 = vld [vmem:[#allocation2 + $0x658] sm:$0xff] }
 0x6a9   :  { %3379 = vmatprep.subr.bf16.mxu1 %v3361_v58  ;;  %v3556_v58 = vld [vmem:[#allocation2 + $0x650] sm:$0xff] }
 0x6ab   :  { %3349 = vmatmul.mubr.bf16.vlgmr.msra.gmra.mrb[80].mxu1 %v8514_v15  ;;  %v3431_v15 = vld [vmem:[#allocation2 + $0x540] sm:$0xff] }
 0x6ac   :  { %3380 = vmatpush1.bf16.msra.mxu1 %v3360_v59  ;;  %3411 = vmatprep.mubr.bf16.mxu1 %v7955_v25  ;;  %v3559_v59 = vld [vmem:[#allocation2 + $0x668] sm:$0xff] }
 0x6ad   :  { %3381 = vmatprep.subr.bf16.mxu1 %v3363_v60  ;;  %v3558_v60 = vld [vmem:[#allocation2 + $0x660] sm:$0xff] }
 0x6b0   :  { %3382 = vmatpush1.bf16.msra.mxu1 %v3362_v61  ;;  %v3561_v61 = vld [vmem:[#allocation2 + $0x678] sm:$0xff] }
 0x6b1   :  { %3383 = vmatprep.subr.bf16.mxu1 %v3365_v63  ;;  %v3560_v63 = vld [vmem:[#allocation2 + $0x670] sm:$0xff] }
 0x6b4   :  { %3384 = vmatpush1.bf16.msra.mxu1 %v3364_v1  ;;  %v3607_v1 = vld [vmem:[#allocation2 + $0x688] sm:$0xff] }
 0x6b5   :  { %3385 = vmatprep.subr.bf16.mxu1 %v3367_v2  ;;  %v3606_v2 = vld [vmem:[#allocation2 + $0x680] sm:$0xff] }
 0x6b8   :  { %3386 = vmatpush1.bf16.msra.mxu1 %v3366_v3  ;;  %v3609_v3 = vld [vmem:[#allocation2 + $0x698] sm:$0xff] }
 0x6b9   :  { %3387 = vmatprep.subr.bf16.mxu1 %v3369_v4  ;;  %v3608_v4 = vld [vmem:[#allocation2 + $0x690] sm:$0xff] }
 0x6bc   :  { %3388 = vmatpush1.bf16.msra.mxu1 %v3368_v5  ;;  %v3611_v5 = vld [vmem:[#allocation2 + $0x6a8] sm:$0xff] }
 0x6bd   :  { %3389 = vmatprep.subr.bf16.mxu1 %v3371_v6  ;;  %v3610_v6 = vld [vmem:[#allocation2 + $0x6a0] sm:$0xff] }
 0x6c0   :  { %3390 = vmatpush1.bf16.msra.mxu1 %v3370_v7  ;;  %v3613_v7 = vld [vmem:[#allocation2 + $0x6b8] sm:$0xff] }
 0x6c1   :  { %3391 = vmatprep.subr.bf16.mxu1 %v3373_v8  ;;  %v3612_v8 = vld [vmem:[#allocation2 + $0x6b0] sm:$0xff] }
 0x6c4   :  { %3392 = vmatpush1.bf16.msra.mxu1 %v3372_v9  ;;  %v3615_v9 = vld [vmem:[#allocation2 + $0x6c8] sm:$0xff] }
 0x6c5   :  { %3393 = vmatprep.subr.bf16.mxu1 %v3375_v10  ;;  %v3614_v10 = vld [vmem:[#allocation2 + $0x6c0] sm:$0xff] }
 0x6c8   :  { %3394 = vmatpush1.bf16.msra.mxu1 %v3374_v11  ;;  %v3617_v11 = vld [vmem:[#allocation2 + $0x6d8] sm:$0xff] }
 0x6c9   :  { %3439 = vmatprep.subr.bf16.mxu1 %v3424_v12  ;;  %v3616_v12 = vld [vmem:[#allocation2 + $0x6d0] sm:$0xff] }
 0x6cb   :  { %3412 = vmatmul.mubr.bf16.vlgmr.msra.gmra.mrb[80].mxu1 %v3377_v14  ;;  %v3619_v14 = vld [vmem:[#allocation2 + $0x6e8] sm:$0xff] }
 0x6cc   :  { %3440 = vmatpush1.bf16.msra.mxu1 %v3423_v16  ;;  %3471 = vmatprep.mubr.bf16.mxu1 %v7955_v25  ;;  %v3618_v16 = vld [vmem:[#allocation2 + $0x6e0] sm:$0xff] }
 0x6cd   :  { %3441 = vmatprep.subr.bf16.mxu1 %v3426_v62  ;;  %v3621_v62 = vld [vmem:[#allocation2 + $0x6f8] sm:$0xff] }
 0x6d0   :  { %3442 = vmatpush1.bf16.msra.mxu1 %v3425_v17  ;;  %v3620_v17 = vld [vmem:[#allocation2 + $0x6f0] sm:$0xff] }
 0x6d1   :  { %3443 = vmatprep.subr.bf16.mxu1 %v3428_v18  ;;  %v3670_v18 = vld [vmem:[#allocation2 + $0x708] sm:$0xff] }
 0x6d4   :  { %3444 = vmatpush1.bf16.msra.mxu1 %v3427_v19  ;;  %v3623_v19 = vrot.slane %v8518_v29, 4 }
 0x6d5   :  { %3445 = vmatprep.subr.bf16.mxu1 %v3430_v20  ;;  %v3669_v20 = vld [vmem:[#allocation2 + $0x700] sm:$0xff] }
 0x6d8   :  { %3446 = vmatpush1.bf16.msra.mxu1 %v3429_v21  ;;  %v3672_v21 = vld [vmem:[#allocation2 + $0x718] sm:$0xff] }
 0x6d9   :  { %3447 = vmatprep.subr.bf16.mxu1 %v3432_v22  ;;  %v3671_v22 = vld [vmem:[#allocation2 + $0x710] sm:$0xff] }
 0x6dc   :  { %3448 = vmatpush1.bf16.msra.mxu1 %v3431_v15  ;;  %v3674_v15 = vld [vmem:[#allocation2 + $0x728] sm:$0xff] }
 0x6dd   :  { %3449 = vmatprep.subr.bf16.mxu1 %v3434_v28  ;;  %v3673_v28 = vld [vmem:[#allocation2 + $0x720] sm:$0xff] }
 0x6e0   :  { %3450 = vmatpush1.bf16.msra.mxu1 %v3433_v30  ;;  %v3676_v30 = vld [vmem:[#allocation2 + $0x738] sm:$0xff] }
 0x6e1   :  { %3451 = vmatprep.subr.bf16.mxu1 %v3436_v26  ;;  %v3675_v26 = vld [vmem:[#allocation2 + $0x730] sm:$0xff] }
 0x6e4   :  { %3452 = vmatpush1.bf16.msra.mxu1 %v3435_v27  ;;  %v3678_v27 = vld [vmem:[#allocation2 + $0x748] sm:$0xff] }
 0x6e5   :  { %3453 = vmatprep.subr.bf16.mxu1 %v3438_v32  ;;  %v3680_v32 = vld [vmem:[#allocation2 + $0x758] sm:$0xff] }
 0x6e8   :  { %3454 = vmatpush1.bf16.msra.mxu1 %v3437_v33  ;;  %v3679_v33 = vld [vmem:[#allocation2 + $0x750] sm:$0xff] }
 0x6e9   :  { %3502 = vmatprep.subr.bf16.mxu1 %v3484_v36  ;;  %v3682_v36 = vld [vmem:[#allocation2 + $0x768] sm:$0xff] }
 0x6eb   :  { %3472 = vmatmul.mubr.bf16.vlgmr.msra.gmra.mrb[80].mxu1 %v8512_v13  ;;  %v3554_v13 = vld [vmem:[#allocation2 + $0x640] sm:$0xff] }
 0x6ec   :  { %3503 = vmatpush1.bf16.msra.mxu1 %v3483_v37  ;;  %3534 = vmatprep.mubr.bf16.mxu1 %v7955_v25  ;;  %v3681_v37 = vld [vmem:[#allocation2 + $0x760] sm:$0xff] }
 0x6ed   :  { %3504 = vmatprep.subr.bf16.mxu1 %v3486_v38  ;;  %v3684_v38 = vld [vmem:[#allocation2 + $0x778] sm:$0xff] }
 0x6f0   :  { %3505 = vmatpush1.bf16.msra.mxu1 %v3485_v40  ;;  %v3683_v40 = vld [vmem:[#allocation2 + $0x770] sm:$0xff] }
 0x6f1   :  { %3506 = vmatprep.subr.bf16.mxu1 %v3488_v46  ;;  %v3730_v46 = vld [vmem:[#allocation2 + $0x788] sm:$0xff] }
 0x6f4   :  { %3507 = vmatpush1.bf16.msra.mxu1 %v3487_v48  ;;  %v3729_v48 = vld [vmem:[#allocation2 + $0x780] sm:$0xff] }
 0x6f5   :  { %3508 = vmatprep.subr.bf16.mxu1 %v3490_v56  ;;  %v3732_v56 = vld [vmem:[#allocation2 + $0x798] sm:$0xff] }
 0x6f8   :  { %3509 = vmatpush1.bf16.msra.mxu1 %v3489_v0  ;;  %v3731_v0 = vld [vmem:[#allocation2 + $0x790] sm:$0xff] }
 0x6f9   :  { %3510 = vmatprep.subr.bf16.mxu1 %v3492_v31  ;;  %v3734_v31 = vld [vmem:[#allocation2 + $0x7a8] sm:$0xff] }
 0x6fc   :  { %3511 = vmatpush1.bf16.msra.mxu1 %v3491_v34  ;;  %v3733_v34 = vld [vmem:[#allocation2 + $0x7a0] sm:$0xff] }
 0x6fd   :  { %3512 = vmatprep.subr.bf16.mxu1 %v3494_v35  ;;  %v3736_v35 = vld [vmem:[#allocation2 + $0x7b8] sm:$0xff] }
 0x700   :  { %3513 = vmatpush1.bf16.msra.mxu1 %v3493_v41  ;;  %v3735_v41 = vld [vmem:[#allocation2 + $0x7b0] sm:$0xff] }
 0x701   :  { %3514 = vmatprep.subr.bf16.mxu1 %v3496_v23  ;;  %v3738_v23 = vld [vmem:[#allocation2 + $0x7c8] sm:$0xff] }
 0x704   :  { %3515 = vmatpush1.bf16.msra.mxu1 %v3495_v39  ;;  %v3737_v39 = vld [vmem:[#allocation2 + $0x7c0] sm:$0xff] }
 0x705   :  { %3516 = vmatprep.subr.bf16.mxu1 %v3498_v42  ;;  %v3740_v42 = vld [vmem:[#allocation2 + $0x7d8] sm:$0xff] }
 0x708   :  { %3517 = vmatpush1.bf16.msra.mxu1 %v3497_v43  ;;  %v3739_v43 = vld [vmem:[#allocation2 + $0x7d0] sm:$0xff] }
 0x709   :  { %3562 = vmatprep.subr.bf16.mxu1 %v3547_v44  ;;  %v3742_v44 = vld [vmem:[#allocation2 + $0x7e8] sm:$0xff] }
 0x70b   :  { %3535 = vmatmul.mubr.bf16.vlgmr.msra.gmra.mrb[80].mxu1 %v3500_v45  ;;  %v3741_v45 = vld [vmem:[#allocation2 + $0x7e0] sm:$0xff] }
 0x70c   :  { %3563 = vmatpush1.bf16.msra.mxu1 %v3546_v47  ;;  %3594 = vmatprep.mubr.bf16.mxu1 %v7955_v25  ;;  %v3744_v47 = vld [vmem:[#allocation2 + $0x7f8] sm:$0xff] }
 0x70d   :  { %3564 = vmatprep.subr.bf16.mxu1 %v3549_v49  ;;  %v3743_v49 = vld [vmem:[#allocation2 + $0x7f0] sm:$0xff] }
 0x710   :  { %3565 = vmatpush1.bf16.msra.mxu1 %v3548_v54  ;;  %v3746_v54 = vrot.slane %v8516_v24, 4 }
 0x711   :  { %3566 = vmatprep.subr.bf16.mxu1 %v3551_v50 }
 0x714   :  { %3567 = vmatpush1.bf16.msra.mxu1 %v3550_v51 }
 0x715   :  { %3568 = vmatprep.subr.bf16.mxu1 %v3553_v52 }
 0x718   :  { %3569 = vmatpush1.bf16.msra.mxu1 %v3552_v53 }
 0x719   :  { %3570 = vmatprep.subr.bf16.mxu1 %v3555_v55 }
 0x71c   :  { %3571 = vmatpush1.bf16.msra.mxu1 %v3554_v13 }
 0x71d   :  { %3572 = vmatprep.subr.bf16.mxu1 %v3557_v57 }
 0x720   :  { %3573 = vmatpush1.bf16.msra.mxu1 %v3556_v58 }
 0x721   :  { %3574 = vmatprep.subr.bf16.mxu1 %v3559_v59 }
 0x724   :  { %3575 = vmatpush1.bf16.msra.mxu1 %v3558_v60 }
 0x725   :  { %3576 = vmatprep.subr.bf16.mxu1 %v3561_v61 }
 0x728   :  { %3577 = vmatpush1.bf16.msra.mxu1 %v3560_v63 }
 0x729   :  { %3625 = vmatprep.subr.bf16.mxu1 %v3607_v1 }
 0x72b   :  { %3595 = vmatmul.mubr.bf16.vlgmr.msra.gmra.mrb[80].mxu1 %v8518_v29  ;;  %v3677_v29 = vld [vmem:[#allocation2 + $0x740] sm:$0xff] }
 0x72c   :  { %3626 = vmatpush1.bf16.msra.mxu1 %v3606_v2  ;;  %3657 = vmatprep.mubr.bf16.mxu1 %v7955_v25 }
 0x72d   :  { %3627 = vmatprep.subr.bf16.mxu1 %v3609_v3 }
 0x730   :  { %3628 = vmatpush1.bf16.msra.mxu1 %v3608_v4 }
 0x731   :  { %3629 = vmatprep.subr.bf16.mxu1 %v3611_v5 }
 0x734   :  { %3630 = vmatpush1.bf16.msra.mxu1 %v3610_v6 }
 0x735   :  { %3631 = vmatprep.subr.bf16.mxu1 %v3613_v7 }
 0x738   :  { %3632 = vmatpush1.bf16.msra.mxu1 %v3612_v8 }
 0x739   :  { %3633 = vmatprep.subr.bf16.mxu1 %v3615_v9 }
 0x73c   :  { %3634 = vmatpush1.bf16.msra.mxu1 %v3614_v10 }
 0x73d   :  { %3635 = vmatprep.subr.bf16.mxu1 %v3617_v11 }
 0x740   :  { %3636 = vmatpush1.bf16.msra.mxu1 %v3616_v12 }
 0x741   :  { %3637 = vmatprep.subr.bf16.mxu1 %v3619_v14 }
 0x744   :  { %3638 = vmatpush1.bf16.msra.mxu1 %v3618_v16 }
 0x745   :  { %3639 = vmatprep.subr.bf16.mxu1 %v3621_v62 }
 0x748   :  { %3640 = vmatpush1.bf16.msra.mxu1 %v3620_v17 }
 0x749   :  { %3685 = vmatprep.subr.bf16.mxu1 %v3670_v18 }
 0x74b   :  { %3658 = vmatmul.mubr.bf16.vlgmr.msra.gmra.mrb[80].mxu1 %v3623_v19 }
 0x74c   :  { %3686 = vmatpush1.bf16.msra.mxu1 %v3669_v20  ;;  %3717 = vmatprep.mubr.bf16.mxu1 %v7955_v25 }
 0x74d   :  { %3687 = vmatprep.subr.bf16.mxu1 %v3672_v21 }
 0x750   :  { %3688 = vmatpush1.bf16.msra.mxu1 %v3671_v22 }
 0x751   :  { %3689 = vmatprep.subr.bf16.mxu1 %v3674_v15 }
 0x754   :  { %3690 = vmatpush1.bf16.msra.mxu1 %v3673_v28  ;;  %v3832_v28 = vlaneseq }
 0x755   :  { %3691 = vmatprep.subr.bf16.mxu1 %v3676_v30 }
 0x758   :  { %3692 = vmatpush1.bf16.msra.mxu1 %v3675_v26 }
 0x759   :  { %3693 = vmatprep.subr.bf16.mxu1 %v3678_v27 }
 0x75c   :  { %3694 = vmatpush1.bf16.msra.mxu1 %v3677_v29  ;;  %v8545_v29 = vshrl.u32 %v3832_v28, 7 }
 0x75d   :  { %3695 = vmatprep.subr.bf16.mxu1 %v3680_v32 }
 0x75e   :  { %v8548_v32 = vsub.s32 0, %v8545_v29 }
 0x760   :  { %3696 = vmatpush1.bf16.msra.mxu1 %v3679_v33  ;;  %v3830_v33 = vld [vmem:[#allocation14] sm:$0x3] }
 0x761   :  { %3697 = vmatprep.subr.bf16.mxu1 %v3682_v36  ;;  %v8551_v36 = vsub.s32 1, %v8545_v29 }
 0x764   :  { %3698 = vmatpush1.bf16.msra.mxu1 %v3681_v37  ;;  %v3844_v37 = vld [vmem:[#allocation16] sm:$0x3] }
 0x765   :  { %3699 = vmatprep.subr.bf16.mxu1 %v3684_v38  ;;  %v3835_v38 = vrot.slane %v3830_v33, %v8548_v32 }
 0x768   :  { %3700 = vmatpush1.bf16.msra.mxu1 %v3683_v40 }
 0x769   :  { %3748 = vmatprep.subr.bf16.mxu1 %v3730_v46  ;;  %v3839_v46 = vrot.slane %v3830_v33, %v8551_v36 }
 0x76b   :  { %3718 = vmatmul.mubr.bf16.vlgmr.msra.gmra.mrb[80].mxu1 %v8516_v24 }
 0x76c   :  { %3749 = vmatpush1.bf16.msra.mxu1 %v3729_v48  ;;  %3780 = vmatprep.mubr.bf16.mxu1 %v7955_v25 }
 0x76d   :  { %3750 = vmatprep.subr.bf16.mxu1 %v3732_v56 }
 0x770   :  { %3751 = vmatpush1.bf16.msra.mxu1 %v3731_v0  ;;  %v3849_v0 = vrot.slane %v3844_v37, %v8548_v32 }
 0x771   :  { %3752 = vmatprep.subr.bf16.mxu1 %v3734_v31 }
 0x774   :  { %3753 = vmatpush1.bf16.msra.mxu1 %v3733_v34  ;;  %v3853_v34 = vrot.slane %v3844_v37, %v8551_v36 }
 0x775   :  { %3754 = vmatprep.subr.bf16.mxu1 %v3736_v35 }
 0x778   :  { %3755 = vmatpush1.bf16.msra.mxu1 %v3735_v41 }
 0x779   :  { %3756 = vmatprep.subr.bf16.mxu1 %v3738_v23 }
 0x77c   :  { %3757 = vmatpush1.bf16.msra.mxu1 %v3737_v39 }
 0x77d   :  { %3758 = vmatprep.subr.bf16.mxu1 %v3740_v42 }
 0x780   :  { %3759 = vmatpush1.bf16.msra.mxu1 %v3739_v43 }
 0x781   :  { %3760 = vmatprep.subr.bf16.mxu1 %v3742_v44 }
 0x784   :  { %3761 = vmatpush1.bf16.msra.mxu1 %v3741_v45 }
 0x785   :  { %3762 = vmatprep.subr.bf16.mxu1 %v3744_v47 }
 0x788   :  { %3763 = vmatpush1.bf16.msra.mxu1 %v3743_v49 }
 0x78b   :  { %3781 = vmatmul.mubr.bf16.vlgmr.msra.gmra.mrb[80].mxu1 %v3746_v54 }
 0x85e   :  { %v3782_v50 = vpop.f32.mrb[80].mxu1 }
 0x85f   :  { %v3791_v51 = vrot.slane %v3782_v50, 4  ;;  %v3784_v52 = vpop.f32.mrb[81].mxu1 }
 0x860   :  { %v3797_v53 = vrot.slane %v3784_v52, 4  ;;  %v3786_v55 = vpop.f32.mrb[82].mxu1 }
 0x861   :  { %v3792_v13 = vadd.f32 %v3791_v51, %v3782_v50  ;;  %v3787_v57 = vpop.f32.mrb[83].mxu1 }
 0x862   :  { %v3798_v58 = vadd.f32 %v3797_v53, %v3784_v52 }
 0x863   :  { %v3793_v59 = vrot.slane %v3792_v13, 2 }
 0x864   :  { %v3799_v60 = vrot.slane %v3798_v58, 2 }
 0x865   :  { %v3794_v61 = vadd.f32 %v3793_v59, %v3792_v13 }
 0x866   :  { %v3800_v63 = vadd.f32 %v3799_v60, %v3798_v58 }
 0x867   :  { %v3795_v1 = vrot.slane %v3794_v61, 1 }
 0x868   :  { %v3801_v2 = vrot.slane %v3800_v63, 1 }
 0x869   :  { %v3796_v3 = vadd.f32 %v3795_v1, %v3794_v61 }
 0x86a   :  { %v3802_v4 = vadd.f32 %v3801_v2, %v3800_v63 }
 0x86b   :  { %v3804_v5 = vmul.f32 0.125, %v3796_v3 }
 0x86c   :  { %v3805_v6 = vmul.f32 0.125, %v3802_v4 }
 0x86d   :  { %v3806_v24 = vsub.f32 %v3782_v50, %v3804_v5 }
 0x86e   :  { %v3807_v7 = vsub.f32 %v3784_v52, %v3805_v6 }
 0x86f   :  { %v3808_v8 = vmul.f32 %v3806_v24, %v3806_v24 }
 0x870   :  { %v3809_v9 = vmul.f32 %v3807_v7, %v3807_v7 }
 0x871   :  { %v3810_v10 = vrot.slane %v3808_v8, 4 }
 0x872   :  { %v3816_v11 = vrot.slane %v3809_v9, 4 }
 0x873   :  { %v3811_v12 = vadd.f32 %v3810_v10, %v3808_v8 }
 0x874   :  { %v3817_v14 = vadd.f32 %v3816_v11, %v3809_v9 }
 0x875   :  { %v3812_v16 = vrot.slane %v3811_v12, 2 }
 0x876   :  { %v3818_v62 = vrot.slane %v3817_v14, 2 }
 0x877   :  { %v3813_v17 = vadd.f32 %v3812_v16, %v3811_v12 }
 0x878   :  { %v3819_v18 = vadd.f32 %v3818_v62, %v3817_v14 }
 0x879   :  { %v3814_v19 = vrot.slane %v3813_v17, 1 }
 0x87a   :  { %v3820_v20 = vrot.slane %v3819_v18, 1 }
 0x87b   :  { %v3815_v21 = vadd.f32 %v3814_v19, %v3813_v17 }
 0x87c   :  { %v3821_v22 = vadd.f32 %v3820_v20, %v3819_v18 }
 0x87d   :  { %v3822_v15 = vmul.f32 0.125, %v3815_v21 }
 0x87e   :  { %v3823_v30 = vmul.f32 0.125, %v3821_v22 }
 0x87f   :  { %v3824_v26 = vadd.f32 1e-05, %v3822_v15 }
 0x880   :  { %v3825_v27 = vadd.f32 1e-05, %v3823_v30 }
 0x881   :  { %7679 = vrsqrt.f32 %v3824_v26 }
 0x882   :  { %7681 = vrsqrt.f32 %v3825_v27 }
 0x88b   :  { %v7680_v40 = vpop.eup %7679 }
 0x88c   :  { %v7682_v48 = vpop.eup %7681  ;;  %v3828_v56 = vmul.f32 %v7680_v40, %v3806_v24 }
 0x88d   :  { %v3829_v31 = vmul.f32 %v7682_v48, %v3807_v7 }
 0x88e   :  { %v3842_v35 = vmul.f32 %v3835_v38, %v3828_v56 }
 0x88f   :  { %v3843_v41 = vmul.f32 %v3839_v46, %v3829_v31 }
 0x890   :  { %v3856_v23 = vadd.f32 %v3849_v0, %v3842_v35 }
 0x891   :  { %v3857_v39 = vadd.f32 %v3853_v34, %v3843_v41 }
 0x892   :  { %vm3858_vm6 = vcmp.gt.f32.partialorder %v3856_v23, 0.0  ;;  %v3860_v42 = vmul.f32 0.2, %v3856_v23 }
 0x893   :  { %vm3859_vm7 = vcmp.gt.f32.partialorder %v3857_v39, 0.0  ;;  %v3861_v43 = vmul.f32 0.2, %v3857_v39 }
 0x894   :  { %v3862_v44 = vsel %vm3858_vm6, %v3856_v23, %v3860_v42 }
 0x895   :  { %v3863_v45 = vsel %vm3859_vm7, %v3857_v39, %v3861_v43 }
 0x896   :  { %7931 = dma.done.wait [#allocation4 + $0x1], 131072 }
 0x897   :  { %7932 = vsyncadd [#allocation4 + $0x1], 4294836224  ;;  %v3869_v47 = vpack.c.bf16 %v3863_v45, %v3863_v45  ;;  %vm3891_vm8 = vcmask 1043456   ;;  %v3868_v49 = vpack.c.bf16 %v3862_v44, %v3862_v44  ;;  %3930 = vmatprep.mubr.bf16.mxu0 %v7955_v25  ;;  %vm3884_vm9 = vcmask 64512   ;;  %v7683_v50 = vld [vmem:[%s8786_s11] sm:$0xff]   ;;  %v4021_v51 = vld [vmem:[#allocation3 + $0x208] sm:$0xff] }
 0x898   :  { %v4878_v52 = vld [vmem:[#allocation3 + $0xc18] sm:$0xff]  ;;  %v4020_v53 = vld [vmem:[#allocation3 + $0x200] sm:$0xff]  ;;  %4090 = vmatprep.subr.bf16.mxu1 %v4021_v51  ;;  %v4877_v55 = vld [vmem:[#allocation3 + $0xc10] sm:$0xff]  ;;  %vm6422_vm10 = vcmask 1041408   ;;  %vm6625_vm15 = vcmask 1024  }
 0x899   :  { %6822 = vmatprep.subr.msk.bf16.mxu0 %vm3891_vm8, %v3869_v47  ;;  %v3893_v54 = vsel %vm3891_vm8, %v3868_v49, 0  ;;  %v4025_v13 = vld [vmem:[#allocation3 + $0x228] sm:$0xff]  ;;  %v4882_v57 = vld [vmem:[#allocation3 + $0xc38] sm:$0xff]  ;;  %4091 = vmatpush1.bf16.msra.mxu1 %v4020_v53  ;;  %v4024_v58 = vld [vmem:[#allocation3 + $0x220] sm:$0xff] }
 0x89a   :  { %3899 = vmatpush1.bf16.msra.mxu0 %v3893_v54  ;;  %4092 = vmatprep.subr.bf16.mxu1 %v4025_v13  ;;  %v4881_v59 = vld [vmem:[#allocation3 + $0xc30] sm:$0xff]  ;;  %v4029_v60 = vld [vmem:[#allocation3 + $0x248] sm:$0xff]  ;;  %v4886_v61 = vld [vmem:[#allocation3 + $0xc58] sm:$0xff] }
 0x89b   :  { %4984 = vmatprep.subr.bf16.mxu0 %v4878_v52  ;;  %v4028_v63 = vld [vmem:[#allocation3 + $0x240] sm:$0xff]  ;;  %v4885_v1 = vld [vmem:[#allocation3 + $0xc50] sm:$0xff]  ;;  %v4033_v2 = vld [vmem:[#allocation3 + $0x268] sm:$0xff] }
 0x89c   :  { %v4890_v3 = vld [vmem:[#allocation3 + $0xc78] sm:$0xff]  ;;  %v4032_v4 = vld [vmem:[#allocation3 + $0x260] sm:$0xff]  ;;  %v4889_v5 = vld [vmem:[#allocation3 + $0xc70] sm:$0xff] }
 0x89d   :  { %6823 = vmatmul.mubr.msk.bf16.vlgmr.msra.gmra.mrb[20].mxu0 %vm3884_vm9, %v7683_v50  ;;  %4093 = vmatpush1.bf16.msra.mxu1 %v4024_v58  ;;  %v4037_v6 = vld [vmem:[#allocation3 + $0x288] sm:$0xff]  ;;  %v4894_v24 = vld [vmem:[#allocation3 + $0xc98] sm:$0xff]  ;;  %v4036_v7 = vld [vmem:[#allocation3 + $0x280] sm:$0xff] }
 0x89e   :  { %4985 = vmatpush1.bf16.msra.mxu0 %v4877_v55  ;;  %3940 = vmatprep.mubr.bf16.mxu0 %v7955_v25  ;;  %v7684_v25 = vld [vmem:[%s8786_s11 + $0x8] sm:$0xff]   ;;  %v4893_v8 = vld [vmem:[#allocation3 + $0xc90] sm:$0xff]  ;;  %v4898_v10 = vld [vmem:[#allocation3 + $0xcb8] sm:$0xff] }
 0x89f   :  { %4986 = vmatprep.subr.bf16.mxu0 %v4882_v57  ;;  %4094 = vmatprep.subr.bf16.mxu1 %v4029_v60  ;;  %v4041_v9 = vld [vmem:[#allocation3 + $0x2a8] sm:$0xff]  ;;  %v4040_v11 = vld [vmem:[#allocation3 + $0x2a0] sm:$0xff]  ;;  %v4897_v12 = vld [vmem:[#allocation3 + $0xcb0] sm:$0xff] }
 0x8a0   :  { %v4045_v14 = vld [vmem:[#allocation3 + $0x2c8] sm:$0xff]  ;;  %v4902_v16 = vld [vmem:[#allocation3 + $0xcd8] sm:$0xff]  ;;  %v4044_v62 = vld [vmem:[#allocation3 + $0x2c0] sm:$0xff] }
 0x8a1   :  { %4095 = vmatpush1.bf16.msra.mxu1 %v4028_v63  ;;  %v4901_v17 = vld [vmem:[#allocation3 + $0xcd0] sm:$0xff]  ;;  %v4049_v18 = vld [vmem:[#allocation3 + $0x2e8] sm:$0xff]  ;;  %v4906_v19 = vld [vmem:[#allocation3 + $0xcf8] sm:$0xff] }
 0x8a2   :  { %4987 = vmatpush1.bf16.msra.mxu0 %v4881_v59  ;;  %4096 = vmatprep.subr.bf16.mxu1 %v4033_v2  ;;  %v4048_v20 = vld [vmem:[#allocation3 + $0x2e0] sm:$0xff]  ;;  %v4905_v21 = vld [vmem:[#allocation3 + $0xcf0] sm:$0xff]  ;;  %v4053_v22 = vld [vmem:[#allocation3 + $0x308] sm:$0xff] }
 0x8a3   :  { %4988 = vmatprep.subr.bf16.mxu0 %v4886_v61  ;;  %v4910_v15 = vld [vmem:[#allocation3 + $0xd18] sm:$0xff]  ;;  %v4052_v28 = vld [vmem:[#allocation3 + $0x300] sm:$0xff]  ;;  %v4909_v30 = vld [vmem:[#allocation3 + $0xd10] sm:$0xff] }
 0x8a4   :  { %v4057_v26 = vld [vmem:[#allocation3 + $0x328] sm:$0xff]  ;;  %v4914_v27 = vld [vmem:[#allocation3 + $0xd38] sm:$0xff]  ;;  %v4056_v33 = vld [vmem:[#allocation3 + $0x320] sm:$0xff] }
 0x8a5   :  { %4097 = vmatpush1.bf16.msra.mxu1 %v4032_v4  ;;  %6824 = vmatmul.mubr.msk.bf16.gmra.mrb[24].mxu0 %vm3884_vm9, %v7684_v25  ;;  %v4913_v37 = vld [vmem:[#allocation3 + $0xd30] sm:$0xff]  ;;  %v4061_v38 = vld [vmem:[#allocation3 + $0x348] sm:$0xff]  ;;  %v4918_v40 = vld [vmem:[#allocation3 + $0xd58] sm:$0xff] }
 0x8a6   :  { %4989 = vmatpush1.bf16.msra.mxu0 %v4885_v1  ;;  %4098 = vmatprep.subr.bf16.mxu1 %v4037_v6  ;;  %v4060_v46 = vld [vmem:[#allocation3 + $0x340] sm:$0xff]  ;;  %v4917_v48 = vld [vmem:[#allocation3 + $0xd50] sm:$0xff]  ;;  %v4065_v56 = vld [vmem:[#allocation3 + $0x368] sm:$0xff] }
 0x8a7   :  { %4990 = vmatprep.subr.bf16.mxu0 %v4890_v3  ;;  %v4922_v0 = vld [vmem:[#allocation3 + $0xd78] sm:$0xff]  ;;  %v4064_v31 = vld [vmem:[#allocation3 + $0x360] sm:$0xff]  ;;  %v4921_v34 = vld [vmem:[#allocation3 + $0xd70] sm:$0xff] }
 0x8a8   :  { %v4069_v35 = vld [vmem:[#allocation3 + $0x388] sm:$0xff]  ;;  %v4926_v41 = vld [vmem:[#allocation3 + $0xd98] sm:$0xff]  ;;  %v4068_v23 = vld [vmem:[#allocation3 + $0x380] sm:$0xff] }
 0x8a9   :  { %4099 = vmatpush1.bf16.msra.mxu1 %v4036_v7  ;;  %v4925_v39 = vld [vmem:[#allocation3 + $0xd90] sm:$0xff]  ;;  %v4073_v42 = vld [vmem:[#allocation3 + $0x3a8] sm:$0xff]  ;;  %v4930_v43 = vld [vmem:[#allocation3 + $0xdb8] sm:$0xff] }
 0x8aa   :  { %4991 = vmatpush1.bf16.msra.mxu0 %v4889_v5  ;;  %4100 = vmatprep.subr.bf16.mxu1 %v4041_v9  ;;  %v4072_v44 = vld [vmem:[#allocation3 + $0x3a0] sm:$0xff]  ;;  %v4929_v45 = vld [vmem:[#allocation3 + $0xdb0] sm:$0xff]  ;;  %v4077_v47 = vld [vmem:[#allocation3 + $0x3c8] sm:$0xff] }
 0x8ab   :  { %4992 = vmatprep.subr.bf16.mxu0 %v4894_v24  ;;  %v4934_v49 = vld [vmem:[#allocation3 + $0xdd8] sm:$0xff]  ;;  %v4076_v54 = vld [vmem:[#allocation3 + $0x3c0] sm:$0xff]  ;;  %v4933_v50 = vld [vmem:[#allocation3 + $0xdd0] sm:$0xff] }
 0x8ac   :  { %v4081_v51 = vld [vmem:[#allocation3 + $0x3e8] sm:$0xff]  ;;  %v4938_v52 = vld [vmem:[#allocation3 + $0xdf8] sm:$0xff]  ;;  %v4080_v53 = vld [vmem:[#allocation3 + $0x3e0] sm:$0xff] }
 0x8ad   :  { %4101 = vmatpush1.bf16.msra.mxu1 %v4040_v11  ;;  %v4937_v55 = vld [vmem:[#allocation3 + $0xdf0] sm:$0xff]  ;;  %v4023_v13 = vld [vmem:[#allocation3 + $0x218] sm:$0xff]  ;;  %v5031_v57 = vld [vmem:[#allocation3 + $0xe08] sm:$0xff] }
 0x8ae   :  { %4993 = vmatpush1.bf16.msra.mxu0 %v4893_v8  ;;  %4102 = vmatprep.subr.bf16.mxu1 %v4045_v14  ;;  %v4022_v5 = vld [vmem:[#allocation3 + $0x210] sm:$0xff]  ;;  %v5030_v25 = vld [vmem:[#allocation3 + $0xe00] sm:$0xff]  ;;  %v4027_v7 = vld [vmem:[#allocation3 + $0x238] sm:$0xff] }
 0x8af   :  { %4994 = vmatprep.subr.bf16.mxu0 %v4898_v10  ;;  %v5035_v8 = vld [vmem:[#allocation3 + $0xe28] sm:$0xff]  ;;  %v4026_v9 = vld [vmem:[#allocation3 + $0x230] sm:$0xff]  ;;  %v5034_v10 = vld [vmem:[#allocation3 + $0xe20] sm:$0xff] }
 0x8b0   :  { %v4031_v11 = vld [vmem:[#allocation3 + $0x258] sm:$0xff]  ;;  %v4030_v14 = vld [vmem:[#allocation3 + $0x250] sm:$0xff] }
 0x8b1   :  { %4103 = vmatpush1.bf16.msra.mxu1 %v4044_v62  ;;  %v4035_v62 = vld [vmem:[#allocation3 + $0x278] sm:$0xff] }
 0x8b2   :  { %4995 = vmatpush1.bf16.msra.mxu0 %v4897_v12  ;;  %4104 = vmatprep.subr.bf16.mxu1 %v4049_v18  ;;  %v5039_v12 = vld [vmem:[#allocation3 + $0xe48] sm:$0xff]  ;;  %v4034_v18 = vld [vmem:[#allocation3 + $0x270] sm:$0xff] }
 0x8b3   :  { %4996 = vmatprep.subr.bf16.mxu0 %v4902_v16  ;;  %v5038_v16 = vld [vmem:[#allocation3 + $0xe40] sm:$0xff] }
 0x8b5   :  { %4105 = vmatpush1.bf16.msra.mxu1 %v4048_v20  ;;  %v4039_v20 = vld [vmem:[#allocation3 + $0x298] sm:$0xff] }
 0x8b6   :  { %4997 = vmatpush1.bf16.msra.mxu0 %v4901_v17  ;;  %4106 = vmatprep.subr.bf16.mxu1 %v4053_v22  ;;  %v5043_v17 = vld [vmem:[#allocation3 + $0xe68] sm:$0xff]  ;;  %v4038_v22 = vld [vmem:[#allocation3 + $0x290] sm:$0xff] }
 0x8b7   :  { %4998 = vmatprep.subr.bf16.mxu0 %v4906_v19  ;;  %v5042_v19 = vld [vmem:[#allocation3 + $0xe60] sm:$0xff] }
 0x8b9   :  { %4107 = vmatpush1.bf16.msra.mxu1 %v4052_v28  ;;  %v4043_v28 = vld [vmem:[#allocation3 + $0x2b8] sm:$0xff] }
 0x8ba   :  { %4999 = vmatpush1.bf16.msra.mxu0 %v4905_v21  ;;  %4108 = vmatprep.subr.bf16.mxu1 %v4057_v26  ;;  %v5047_v21 = vld [vmem:[#allocation3 + $0xe88] sm:$0xff]  ;;  %v4042_v26 = vld [vmem:[#allocation3 + $0x2b0] sm:$0xff] }
 0x8bb   :  { %5000 = vmatprep.subr.bf16.mxu0 %v4910_v15  ;;  %v5046_v15 = vld [vmem:[#allocation3 + $0xe80] sm:$0xff] }
 0x8bd   :  { %4109 = vmatpush1.bf16.msra.mxu1 %v4056_v33  ;;  %v4047_v33 = vld [vmem:[#allocation3 + $0x2d8] sm:$0xff] }
 0x8be   :  { %5001 = vmatpush1.bf16.msra.mxu0 %v4909_v30  ;;  %4110 = vmatprep.subr.bf16.mxu1 %v4061_v38  ;;  %v5051_v30 = vld [vmem:[#allocation3 + $0xea8] sm:$0xff]  ;;  %v4046_v38 = vld [vmem:[#allocation3 + $0x2d0] sm:$0xff] }
 0x8bf   :  { %5002 = vmatprep.subr.bf16.mxu0 %v4914_v27  ;;  %v5050_v27 = vld [vmem:[#allocation3 + $0xea0] sm:$0xff] }
 0x8c1   :  { %4111 = vmatpush1.bf16.msra.mxu1 %v4060_v46  ;;  %v4051_v46 = vld [vmem:[#allocation3 + $0x2f8] sm:$0xff] }
 0x8c2   :  { %5003 = vmatpush1.bf16.msra.mxu0 %v4913_v37  ;;  %4112 = vmatprep.subr.bf16.mxu1 %v4065_v56  ;;  %v5055_v37 = vld [vmem:[#allocation3 + $0xec8] sm:$0xff]  ;;  %v4050_v56 = vld [vmem:[#allocation3 + $0x2f0] sm:$0xff] }
 0x8c3   :  { %5004 = vmatprep.subr.bf16.mxu0 %v4918_v40  ;;  %v5054_v40 = vld [vmem:[#allocation3 + $0xec0] sm:$0xff] }
 0x8c5   :  { %4113 = vmatpush1.bf16.msra.mxu1 %v4064_v31  ;;  %v4055_v31 = vld [vmem:[#allocation3 + $0x318] sm:$0xff] }
 0x8c6   :  { %5005 = vmatpush1.bf16.msra.mxu0 %v4917_v48  ;;  %4114 = vmatprep.subr.bf16.mxu1 %v4069_v35  ;;  %v5059_v48 = vld [vmem:[#allocation3 + $0xee8] sm:$0xff]  ;;  %v4054_v35 = vld [vmem:[#allocation3 + $0x310] sm:$0xff] }
 0x8c7   :  { %5006 = vmatprep.subr.bf16.mxu0 %v4922_v0  ;;  %v5058_v0 = vld [vmem:[#allocation3 + $0xee0] sm:$0xff] }
 0x8c9   :  { %4115 = vmatpush1.bf16.msra.mxu1 %v4068_v23  ;;  %v4059_v23 = vld [vmem:[#allocation3 + $0x338] sm:$0xff] }
 0x8ca   :  { %5007 = vmatpush1.bf16.msra.mxu0 %v4921_v34  ;;  %4116 = vmatprep.subr.bf16.mxu1 %v4073_v42  ;;  %v5063_v34 = vld [vmem:[#allocation3 + $0xf08] sm:$0xff]  ;;  %v4058_v42 = vld [vmem:[#allocation3 + $0x330] sm:$0xff] }
 0x8cb   :  { %5008 = vmatprep.subr.bf16.mxu0 %v4926_v41  ;;  %v5062_v41 = vld [vmem:[#allocation3 + $0xf00] sm:$0xff] }
 0x8cd   :  { %4117 = vmatpush1.bf16.msra.mxu1 %v4072_v44  ;;  %v4063_v44 = vld [vmem:[#allocation3 + $0x358] sm:$0xff] }
 0x8ce   :  { %5009 = vmatpush1.bf16.msra.mxu0 %v4925_v39  ;;  %4118 = vmatprep.subr.bf16.mxu1 %v4077_v47  ;;  %v5067_v39 = vld [vmem:[#allocation3 + $0xf28] sm:$0xff]  ;;  %v4062_v47 = vld [vmem:[#allocation3 + $0x350] sm:$0xff] }
 0x8cf   :  { %5010 = vmatprep.subr.bf16.mxu0 %v4930_v43  ;;  %v5066_v43 = vld [vmem:[#allocation3 + $0xf20] sm:$0xff] }
 0x8d1   :  { %4119 = vmatpush1.bf16.msra.mxu1 %v4076_v54  ;;  %v4067_v54 = vld [vmem:[#allocation3 + $0x378] sm:$0xff] }
 0x8d2   :  { %5011 = vmatpush1.bf16.msra.mxu0 %v4929_v45  ;;  %4120 = vmatprep.subr.bf16.mxu1 %v4081_v51  ;;  %v5071_v45 = vld [vmem:[#allocation3 + $0xf48] sm:$0xff]  ;;  %v4066_v51 = vld [vmem:[#allocation3 + $0x370] sm:$0xff] }
 0x8d3   :  { %5012 = vmatprep.subr.bf16.mxu0 %v4934_v49  ;;  %v5070_v49 = vld [vmem:[#allocation3 + $0xf40] sm:$0xff] }
 0x8d5   :  { %4121 = vmatpush1.bf16.msra.mxu1 %v4080_v53  ;;  %v4071_v53 = vld [vmem:[#allocation3 + $0x398] sm:$0xff] }
 0x8d6   :  { %5013 = vmatpush1.bf16.msra.mxu0 %v4933_v50  ;;  %4131 = vmatprep.subr.bf16.mxu1 %v4023_v13  ;;  %v5075_v50 = vld [vmem:[#allocation3 + $0xf68] sm:$0xff]  ;;  %v4070_v13 = vld [vmem:[#allocation3 + $0x390] sm:$0xff] }
 0x8d7   :  { %5014 = vmatprep.subr.bf16.mxu0 %v4938_v52  ;;  %v5074_v52 = vld [vmem:[#allocation3 + $0xf60] sm:$0xff] }
 0x8da   :  { %5015 = vmatpush1.bf16.msra.mxu0 %v4937_v55  ;;  %v5079_v55 = vld [vmem:[#allocation3 + $0xf88] sm:$0xff] }
 0x8db   :  { %5098 = vmatprep.subr.bf16.mxu0 %v5031_v57  ;;  %v5078_v57 = vld [vmem:[#allocation3 + $0xf80] sm:$0xff] }
 0x970   :  { %v3932_v58 = vpop.f32.mrb[20].mxu0 }
 0x971   :  { %v3934_v59 = vpop.f32.mrb[21].mxu0 }
 0x972   :  { %v3936_v60 = vpop.f32.mrb[22].mxu0 }
 0x973   :  { %v8567_v61 = vpack.c.bf16 %v3936_v60, %v3932_v58  ;;  %v3938_v63 = vpop.f32.mrb[23].mxu0  ;;  %v4075_v58 = vld [vmem:[#allocation3 + $0x3b8] sm:$0xff]  ;;  %v4074_v60 = vld [vmem:[#allocation3 + $0x3b0] sm:$0xff] }
 0x974   :  { %v8569_v1 = vpack.c.bf16 %v3938_v63, %v3934_v59  ;;  %v5083_v59 = vld [vmem:[#allocation3 + $0xfa8] sm:$0xff]  ;;  %v5082_v63 = vld [vmem:[#allocation3 + $0xfa0] sm:$0xff] }
 0x975   :  { %v4086_v4 = vrot.slane %v8567_v61, 1  ;;  %v4939_v6 = vrot.slane %v8567_v61, 6 }
 0x976   :  { %v4087_v2 = vrot.slane %v8569_v1, 1  ;;  %v4940_v3 = vrot.slane %v8569_v1, 6  ;;  %v5095_v24 = vrot.slane %v8569_v1, 7 }
 0x978   :  { %4122 = vmatprep.mubr.bf16.mxu1 %v4087_v2  ;;  %5016 = vmatprep.mubr.bf16.mxu0 %v4940_v3 }
 0x979   :  { %4123 = vmatmul.mubr.bf16.vlgmr.msra.gmra.mrb[84].mxu1 %v4086_v4  ;;  %5017 = vmatmul.mubr.bf16.vlgmr.msra.gmra.mrb[28].mxu0 %v4939_v6 }
 0x97a   :  { %4132 = vmatpush1.bf16.msra.mxu1 %v4022_v5  ;;  %5099 = vmatpush1.bf16.msra.mxu0 %v5030_v25  ;;  %v5087_v5 = vld [vmem:[#allocation3 + $0xfc8] sm:$0xff]  ;;  %v4078_v25 = vld [vmem:[#allocation3 + $0x3d0] sm:$0xff] }
 0x97b   :  { %4163 = vmatprep.mubr.bf16.mxu1 %v4087_v2  ;;  %5130 = vmatprep.mubr.bf16.mxu0 %v5095_v24  ;;  %v4079_v2 = vld [vmem:[#allocation3 + $0x3d8] sm:$0xff] }
 0x97c   :  { %4133 = vmatprep.subr.bf16.mxu1 %v4027_v7  ;;  %5100 = vmatprep.subr.bf16.mxu0 %v5035_v8  ;;  %v5086_v7 = vld [vmem:[#allocation3 + $0xfc0] sm:$0xff]  ;;  %v3942_v8 = vpop.f32.mrb[24].mxu0 }
 0x97e   :  { %4134 = vmatpush1.bf16.msra.mxu1 %v4026_v9  ;;  %5101 = vmatpush1.bf16.msra.mxu0 %v5034_v10  ;;  %v4083_v9 = vld [vmem:[#allocation3 + $0x3f8] sm:$0xff]  ;;  %v5091_v10 = vld [vmem:[#allocation3 + $0xfe8] sm:$0xff] }
 0x97f   :  { %4135 = vmatprep.subr.bf16.mxu1 %v4031_v11  ;;  %5102 = vmatprep.subr.bf16.mxu0 %v5039_v12  ;;  %v3944_v11 = vpop.f32.mrb[25].mxu0 }
 0x980   :  { %v3946_v12 = vpop.f32.mrb[26].mxu0 }
 0x982   :  { %4136 = vmatpush1.bf16.msra.mxu1 %v4030_v14  ;;  %5103 = vmatpush1.bf16.msra.mxu0 %v5038_v16  ;;  %v8584_v14 = vpack.c.bf16 %v3946_v12, %v3942_v8  ;;  %v4082_v16 = vld [vmem:[#allocation3 + $0x3f0] sm:$0xff]  ;;  %v3999_v8 = vld [vmem:[#allocation3 + $0x160] sm:$0xff] }
 0x983   :  { %4137 = vmatprep.subr.bf16.mxu1 %v4035_v62  ;;  %5104 = vmatprep.subr.bf16.mxu0 %v5043_v17  ;;  %v5090_v62 = vld [vmem:[#allocation3 + $0xfe0] sm:$0xff]  ;;  %v3948_v17 = vpop.f32.mrb[27].mxu0 }
 0x984   :  { %v4003_v12 = vld [vmem:[#allocation3 + $0x180] sm:$0xff] }
 0x986   :  { %4138 = vmatpush1.bf16.msra.mxu1 %v4034_v18  ;;  %5105 = vmatpush1.bf16.msra.mxu0 %v5042_v19  ;;  %v3956_v18 = vld [vmem:[#allocation3 + $0x8] sm:$0xff]  ;;  %v5033_v19 = vld [vmem:[#allocation3 + $0xe18] sm:$0xff] }
 0x987   :  { %4139 = vmatprep.subr.bf16.mxu1 %v4039_v20  ;;  %5106 = vmatprep.subr.bf16.mxu0 %v5047_v21  ;;  %v8586_v20 = vpack.c.bf16 %v3948_v17, %v3944_v11  ;;  %v5094_v21 = vrot.slane %v8567_v61, 7  ;;  %v5081_v11 = vld [vmem:[#allocation3 + $0xf98] sm:$0xff] }
 0x988   :  { %v5085_v17 = vld [vmem:[#allocation3 + $0xfb8] sm:$0xff] }
 0x98a   :  { %4140 = vmatpush1.bf16.msra.mxu1 %v4038_v22  ;;  %5107 = vmatpush1.bf16.msra.mxu0 %v5046_v15  ;;  %v3955_v22 = vld [vmem:[#allocation3] sm:$0xff]  ;;  %v5032_v15 = vld [vmem:[#allocation3 + $0xe10] sm:$0xff] }
 0x98b   :  { %4141 = vmatprep.subr.bf16.mxu1 %v4043_v28  ;;  %5108 = vmatprep.subr.bf16.mxu0 %v5051_v30  ;;  %v3960_v28 = vld [vmem:[#allocation3 + $0x28] sm:$0xff]  ;;  %v5037_v30 = vld [vmem:[#allocation3 + $0xe38] sm:$0xff] }
 0x98e   :  { %4142 = vmatpush1.bf16.msra.mxu1 %v4042_v26  ;;  %5109 = vmatpush1.bf16.msra.mxu0 %v5050_v27  ;;  %v3959_v26 = vld [vmem:[#allocation3 + $0x20] sm:$0xff]  ;;  %v5036_v27 = vld [vmem:[#allocation3 + $0xe30] sm:$0xff] }
 0x98f   :  { %4143 = vmatprep.subr.bf16.mxu1 %v4047_v33  ;;  %5110 = vmatprep.subr.bf16.mxu0 %v5055_v37  ;;  %v3964_v33 = vld [vmem:[#allocation3 + $0x48] sm:$0xff]  ;;  %v5041_v37 = vld [vmem:[#allocation3 + $0xe58] sm:$0xff] }
 0x992   :  { %4144 = vmatpush1.bf16.msra.mxu1 %v4046_v38  ;;  %5111 = vmatpush1.bf16.msra.mxu0 %v5054_v40  ;;  %v5040_v38 = vld [vmem:[#allocation3 + $0xe50] sm:$0xff]  ;;  %v3968_v40 = vld [vmem:[#allocation3 + $0x68] sm:$0xff] }
 0x993   :  { %4145 = vmatprep.subr.bf16.mxu1 %v4051_v46  ;;  %5112 = vmatprep.subr.bf16.mxu0 %v5059_v48  ;;  %v5045_v46 = vld [vmem:[#allocation3 + $0xe78] sm:$0xff]  ;;  %v3967_v48 = vld [vmem:[#allocation3 + $0x60] sm:$0xff] }
 0x996   :  { %4146 = vmatpush1.bf16.msra.mxu1 %v4050_v56  ;;  %5113 = vmatpush1.bf16.msra.mxu0 %v5058_v0  ;;  %v3972_v56 = vld [vmem:[#allocation3 + $0x88] sm:$0xff]  ;;  %v5049_v0 = vld [vmem:[#allocation3 + $0xe98] sm:$0xff] }
 0x997   :  { %4147 = vmatprep.subr.bf16.mxu1 %v4055_v31  ;;  %5114 = vmatprep.subr.bf16.mxu0 %v5063_v34  ;;  %v3971_v31 = vld [vmem:[#allocation3 + $0x80] sm:$0xff]  ;;  %v5048_v34 = vld [vmem:[#allocation3 + $0xe90] sm:$0xff] }
 0x99a   :  { %4148 = vmatpush1.bf16.msra.mxu1 %v4054_v35  ;;  %5115 = vmatpush1.bf16.msra.mxu0 %v5062_v41  ;;  %v3976_v35 = vld [vmem:[#allocation3 + $0xa8] sm:$0xff]  ;;  %v5053_v41 = vld [vmem:[#allocation3 + $0xeb8] sm:$0xff] }
 0x99b   :  { %4149 = vmatprep.subr.bf16.mxu1 %v4059_v23  ;;  %5116 = vmatprep.subr.bf16.mxu0 %v5067_v39  ;;  %v3975_v23 = vld [vmem:[#allocation3 + $0xa0] sm:$0xff]  ;;  %v5052_v39 = vld [vmem:[#allocation3 + $0xeb0] sm:$0xff] }
 0x99e   :  { %4150 = vmatpush1.bf16.msra.mxu1 %v4058_v42  ;;  %5117 = vmatpush1.bf16.msra.mxu0 %v5066_v43  ;;  %v3980_v42 = vld [vmem:[#allocation3 + $0xc8] sm:$0xff]  ;;  %v5057_v43 = vld [vmem:[#allocation3 + $0xed8] sm:$0xff] }
 0x99f   :  { %4151 = vmatprep.subr.bf16.mxu1 %v4063_v44  ;;  %5118 = vmatprep.subr.bf16.mxu0 %v5071_v45  ;;  %v3979_v44 = vld [vmem:[#allocation3 + $0xc0] sm:$0xff]  ;;  %v5056_v45 = vld [vmem:[#allocation3 + $0xed0] sm:$0xff] }
 0x9a2   :  { %4152 = vmatpush1.bf16.msra.mxu1 %v4062_v47  ;;  %5119 = vmatpush1.bf16.msra.mxu0 %v5070_v49  ;;  %v3984_v47 = vld [vmem:[#allocation3 + $0xe8] sm:$0xff]  ;;  %v5061_v49 = vld [vmem:[#allocation3 + $0xef8] sm:$0xff] }
 0x9a3   :  { %4153 = vmatprep.subr.bf16.mxu1 %v4067_v54  ;;  %5120 = vmatprep.subr.bf16.mxu0 %v5075_v50  ;;  %v3983_v54 = vld [vmem:[#allocation3 + $0xe0] sm:$0xff]  ;;  %v5060_v50 = vld [vmem:[#allocation3 + $0xef0] sm:$0xff] }
 0x9a6   :  { %4154 = vmatpush1.bf16.msra.mxu1 %v4066_v51  ;;  %5121 = vmatpush1.bf16.msra.mxu0 %v5074_v52  ;;  %v3988_v51 = vld [vmem:[#allocation3 + $0x108] sm:$0xff]  ;;  %v5065_v52 = vld [vmem:[#allocation3 + $0xf18] sm:$0xff] }
 0x9a7   :  { %4155 = vmatprep.subr.bf16.mxu1 %v4071_v53  ;;  %5122 = vmatprep.subr.bf16.mxu0 %v5079_v55  ;;  %v3987_v53 = vld [vmem:[#allocation3 + $0x100] sm:$0xff]  ;;  %v5064_v55 = vld [vmem:[#allocation3 + $0xf10] sm:$0xff] }
 0x9aa   :  { %4156 = vmatpush1.bf16.msra.mxu1 %v4070_v13  ;;  %5123 = vmatpush1.bf16.msra.mxu0 %v5078_v57  ;;  %v3992_v13 = vld [vmem:[#allocation3 + $0x128] sm:$0xff]  ;;  %v5069_v57 = vld [vmem:[#allocation3 + $0xf38] sm:$0xff] }
 0x9ab   :  { %4157 = vmatprep.subr.bf16.mxu1 %v4075_v58  ;;  %5124 = vmatprep.subr.bf16.mxu0 %v5083_v59  ;;  %v3991_v58 = vld [vmem:[#allocation3 + $0x120] sm:$0xff]  ;;  %v5068_v59 = vld [vmem:[#allocation3 + $0xf30] sm:$0xff] }
 0x9ae   :  { %4158 = vmatpush1.bf16.msra.mxu1 %v4074_v60  ;;  %5125 = vmatpush1.bf16.msra.mxu0 %v5082_v63  ;;  %v3996_v60 = vld [vmem:[#allocation3 + $0x148] sm:$0xff]  ;;  %v5073_v63 = vld [vmem:[#allocation3 + $0xf58] sm:$0xff] }
 0x9af   :  { %4159 = vmatprep.subr.bf16.mxu1 %v4079_v2  ;;  %5126 = vmatprep.subr.bf16.mxu0 %v5087_v5  ;;  %v3995_v2 = vld [vmem:[#allocation3 + $0x140] sm:$0xff]  ;;  %v5072_v5 = vld [vmem:[#allocation3 + $0xf50] sm:$0xff] }
 0x9b2   :  { %4160 = vmatpush1.bf16.msra.mxu1 %v4078_v25  ;;  %5127 = vmatpush1.bf16.msra.mxu0 %v5086_v7  ;;  %v4000_v25 = vld [vmem:[#allocation3 + $0x168] sm:$0xff]  ;;  %v5077_v7 = vld [vmem:[#allocation3 + $0xf78] sm:$0xff] }
 0x9b3   :  { %4161 = vmatprep.subr.bf16.mxu1 %v4083_v9  ;;  %5128 = vmatprep.subr.bf16.mxu0 %v5091_v10  ;;  %v5076_v9 = vld [vmem:[#allocation3 + $0xf70] sm:$0xff]  ;;  %v4004_v10 = vld [vmem:[#allocation3 + $0x188] sm:$0xff] }
 0x9b6   :  { %4162 = vmatpush1.bf16.msra.mxu1 %v4082_v16  ;;  %5129 = vmatpush1.bf16.msra.mxu0 %v5090_v62  ;;  %v5080_v16 = vld [vmem:[#allocation3 + $0xf90] sm:$0xff]  ;;  %v4008_v62 = vld [vmem:[#allocation3 + $0x1a8] sm:$0xff] }
 0x9b7   :  { %4172 = vmatprep.subr.bf16.mxu1 %v3956_v18  ;;  %5139 = vmatprep.subr.bf16.mxu0 %v5033_v19  ;;  %v4007_v18 = vld [vmem:[#allocation3 + $0x1a0] sm:$0xff]  ;;  %v5084_v19 = vld [vmem:[#allocation3 + $0xfb0] sm:$0xff] }
 0x9b9   :  { %4164 = vmatmul.mubr.bf16.vlgmr.msra.gmra.mrb[88].mxu1 %v4086_v4  ;;  %5131 = vmatmul.mubr.bf16.vlgmr.msra.gmra.mrb[32].mxu0 %v5094_v21  ;;  %v3963_v4 = vld [vmem:[#allocation3 + $0x40] sm:$0xff] }
 0x9ba   :  { %4173 = vmatpush1.bf16.msra.mxu1 %v3955_v22  ;;  %4204 = vmatprep.mubr.bf16.mxu1 %v8569_v1  ;;  %v4012_v22 = vld [vmem:[#allocation3 + $0x1c8] sm:$0xff] }
 0x9bb   :  { %5140 = vmatpush1.bf16.msra.mxu0 %v5032_v15  ;;  %5171 = vmatprep.mubr.bf16.mxu0 %v5095_v24  ;;  %v5044_v24 = vld [vmem:[#allocation3 + $0xe70] sm:$0xff]  ;;  %v5089_v15 = vld [vmem:[#allocation3 + $0xfd8] sm:$0xff] }
 0x9bc   :  { %4174 = vmatprep.subr.bf16.mxu1 %v3960_v28  ;;  %5141 = vmatprep.subr.bf16.mxu0 %v5037_v30  ;;  %v4011_v28 = vld [vmem:[#allocation3 + $0x1c0] sm:$0xff]  ;;  %v5088_v30 = vld [vmem:[#allocation3 + $0xfd0] sm:$0xff] }
 0x9be   :  { %4175 = vmatpush1.bf16.msra.mxu1 %v3959_v26  ;;  %v4016_v26 = vld [vmem:[#allocation3 + $0x1e8] sm:$0xff] }
 0x9bf   :  { %5142 = vmatpush1.bf16.msra.mxu0 %v5036_v27  ;;  %4176 = vmatprep.subr.bf16.mxu1 %v3964_v33  ;;  %v5093_v27 = vld [vmem:[#allocation3 + $0xff8] sm:$0xff]  ;;  %v4015_v33 = vld [vmem:[#allocation3 + $0x1e0] sm:$0xff] }
 0x9c0   :  { %5143 = vmatprep.subr.bf16.mxu0 %v5041_v37  ;;  %v5092_v37 = vld [vmem:[#allocation3 + $0xff0] sm:$0xff] }
 0x9c2   :  { %4177 = vmatpush1.bf16.msra.mxu1 %v3963_v4  ;;  %v3958_v4 = vld [vmem:[#allocation3 + $0x18] sm:$0xff] }
 0x9c3   :  { %5144 = vmatpush1.bf16.msra.mxu0 %v5040_v38  ;;  %4178 = vmatprep.subr.bf16.mxu1 %v3968_v40  ;;  %v5186_v38 = vld [vmem:[#allocation3 + $0x1008] sm:$0xff]  ;;  %v3957_v40 = vld [vmem:[#allocation3 + $0x10] sm:$0xff] }
 0x9c4   :  { %5145 = vmatprep.subr.bf16.mxu0 %v5045_v46  ;;  %v5185_v46 = vld [vmem:[#allocation3 + $0x1000] sm:$0xff] }
 0x9c6   :  { %4179 = vmatpush1.bf16.msra.mxu1 %v3967_v48  ;;  %v3962_v48 = vld [vmem:[#allocation3 + $0x38] sm:$0xff] }
 0x9c7   :  { %5146 = vmatpush1.bf16.msra.mxu0 %v5044_v24  ;;  %4180 = vmatprep.subr.bf16.mxu1 %v3972_v56  ;;  %v5190_v24 = vld [vmem:[#allocation3 + $0x1028] sm:$0xff]  ;;  %v3961_v56 = vld [vmem:[#allocation3 + $0x30] sm:$0xff] }
 0x9c8   :  { %5147 = vmatprep.subr.bf16.mxu0 %v5049_v0  ;;  %v5189_v0 = vld [vmem:[#allocation3 + $0x1020] sm:$0xff] }
 0x9ca   :  { %4181 = vmatpush1.bf16.msra.mxu1 %v3971_v31  ;;  %v3966_v31 = vld [vmem:[#allocation3 + $0x58] sm:$0xff] }
 0x9cb   :  { %5148 = vmatpush1.bf16.msra.mxu0 %v5048_v34  ;;  %4182 = vmatprep.subr.bf16.mxu1 %v3976_v35  ;;  %v5194_v34 = vld [vmem:[#allocation3 + $0x1048] sm:$0xff]  ;;  %v3965_v35 = vld [vmem:[#allocation3 + $0x50] sm:$0xff] }
 0x9cc   :  { %5149 = vmatprep.subr.bf16.mxu0 %v5053_v41  ;;  %v5193_v41 = vld [vmem:[#allocation3 + $0x1040] sm:$0xff] }
 0x9ce   :  { %4183 = vmatpush1.bf16.msra.mxu1 %v3975_v23  ;;  %v3970_v23 = vld [vmem:[#allocation3 + $0x78] sm:$0xff] }
 0x9cf   :  { %5150 = vmatpush1.bf16.msra.mxu0 %v5052_v39  ;;  %4184 = vmatprep.subr.bf16.mxu1 %v3980_v42  ;;  %v3969_v39 = vld [vmem:[#allocation3 + $0x70] sm:$0xff]  ;;  %v5197_v42 = vld [vmem:[#allocation3 + $0x1060] sm:$0xff] }
 0x9d0   :  { %5151 = vmatprep.subr.bf16.mxu0 %v5057_v43  ;;  %v3974_v43 = vld [vmem:[#allocation3 + $0x98] sm:$0xff] }
 0x9d2   :  { %4185 = vmatpush1.bf16.msra.mxu1 %v3979_v44  ;;  %v5202_v44 = vld [vmem:[#allocation3 + $0x1088] sm:$0xff] }
 0x9d3   :  { %5152 = vmatpush1.bf16.msra.mxu0 %v5056_v45  ;;  %4186 = vmatprep.subr.bf16.mxu1 %v3984_v47  ;;  %v3973_v45 = vld [vmem:[#allocation3 + $0x90] sm:$0xff]  ;;  %v5201_v47 = vld [vmem:[#allocation3 + $0x1080] sm:$0xff] }
 0x9d4   :  { %5153 = vmatprep.subr.bf16.mxu0 %v5061_v49  ;;  %v3978_v49 = vld [vmem:[#allocation3 + $0xb8] sm:$0xff] }
 0x9d6   :  { %4187 = vmatpush1.bf16.msra.mxu1 %v3983_v54  ;;  %v5206_v54 = vld [vmem:[#allocation3 + $0x10a8] sm:$0xff] }
 0x9d7   :  { %5154 = vmatpush1.bf16.msra.mxu0 %v5060_v50  ;;  %4188 = vmatprep.subr.bf16.mxu1 %v3988_v51  ;;  %v3977_v50 = vld [vmem:[#allocation3 + $0xb0] sm:$0xff]  ;;  %v5205_v51 = vld [vmem:[#allocation3 + $0x10a0] sm:$0xff] }
 0x9d8   :  { %5155 = vmatprep.subr.bf16.mxu0 %v5065_v52  ;;  %v3982_v52 = vld [vmem:[#allocation3 + $0xd8] sm:$0xff] }
 0x9da   :  { %4189 = vmatpush1.bf16.msra.mxu1 %v3987_v53  ;;  %v5210_v53 = vld [vmem:[#allocation3 + $0x10c8] sm:$0xff] }
 0x9db   :  { %5156 = vmatpush1.bf16.msra.mxu0 %v5064_v55  ;;  %4190 = vmatprep.subr.bf16.mxu1 %v3992_v13  ;;  %v3981_v55 = vld [vmem:[#allocation3 + $0xd0] sm:$0xff]  ;;  %v5209_v13 = vld [vmem:[#allocation3 + $0x10c0] sm:$0xff] }
 0x9dc   :  { %5157 = vmatprep.subr.bf16.mxu0 %v5069_v57  ;;  %v3986_v57 = vld [vmem:[#allocation3 + $0xf8] sm:$0xff] }
 0x9de   :  { %4191 = vmatpush1.bf16.msra.mxu1 %v3991_v58  ;;  %v5214_v58 = vld [vmem:[#allocation3 + $0x10e8] sm:$0xff] }
 0x9df   :  { %5158 = vmatpush1.bf16.msra.mxu0 %v5068_v59  ;;  %4192 = vmatprep.subr.bf16.mxu1 %v3996_v60  ;;  %v3985_v59 = vld [vmem:[#allocation3 + $0xf0] sm:$0xff]  ;;  %v5213_v60 = vld [vmem:[#allocation3 + $0x10e0] sm:$0xff] }
 0x9e0   :  { %5159 = vmatprep.subr.bf16.mxu0 %v5073_v63  ;;  %v3990_v63 = vld [vmem:[#allocation3 + $0x118] sm:$0xff] }
 0x9e2   :  { %4193 = vmatpush1.bf16.msra.mxu1 %v3995_v2  ;;  %v5218_v2 = vld [vmem:[#allocation3 + $0x1108] sm:$0xff] }
 0x9e3   :  { %5160 = vmatpush1.bf16.msra.mxu0 %v5072_v5  ;;  %4194 = vmatprep.subr.bf16.mxu1 %v4000_v25  ;;  %v3989_v5 = vld [vmem:[#allocation3 + $0x110] sm:$0xff]  ;;  %v5217_v25 = vld [vmem:[#allocation3 + $0x1100] sm:$0xff] }
 0x9e4   :  { %5161 = vmatprep.subr.bf16.mxu0 %v5077_v7  ;;  %v3994_v7 = vld [vmem:[#allocation3 + $0x138] sm:$0xff] }
 0x9e6   :  { %4195 = vmatpush1.bf16.msra.mxu1 %v3999_v8  ;;  %v5222_v8 = vld [vmem:[#allocation3 + $0x1128] sm:$0xff] }
 0x9e7   :  { %5162 = vmatpush1.bf16.msra.mxu0 %v5076_v9  ;;  %4196 = vmatprep.subr.bf16.mxu1 %v4004_v10  ;;  %v3993_v9 = vld [vmem:[#allocation3 + $0x130] sm:$0xff]  ;;  %v5221_v10 = vld [vmem:[#allocation3 + $0x1120] sm:$0xff] }
 0x9e8   :  { %5163 = vmatprep.subr.bf16.mxu0 %v5081_v11  ;;  %v3998_v11 = vld [vmem:[#allocation3 + $0x158] sm:$0xff] }
 0x9ea   :  { %4197 = vmatpush1.bf16.msra.mxu1 %v4003_v12  ;;  %v5226_v12 = vld [vmem:[#allocation3 + $0x1148] sm:$0xff] }
 0x9eb   :  { %5164 = vmatpush1.bf16.msra.mxu0 %v5080_v16  ;;  %4198 = vmatprep.subr.bf16.mxu1 %v4008_v62  ;;  %v3997_v16 = vld [vmem:[#allocation3 + $0x150] sm:$0xff]  ;;  %v5225_v62 = vld [vmem:[#allocation3 + $0x1140] sm:$0xff] }
 0x9ec   :  { %5165 = vmatprep.subr.bf16.mxu0 %v5085_v17  ;;  %v4002_v17 = vld [vmem:[#allocation3 + $0x178] sm:$0xff] }
 0x9ee   :  { %4199 = vmatpush1.bf16.msra.mxu1 %v4007_v18  ;;  %v5230_v18 = vld [vmem:[#allocation3 + $0x1168] sm:$0xff] }
 0x9ef   :  { %5166 = vmatpush1.bf16.msra.mxu0 %v5084_v19  ;;  %4200 = vmatprep.subr.bf16.mxu1 %v4012_v22  ;;  %v4001_v19 = vld [vmem:[#allocation3 + $0x170] sm:$0xff]  ;;  %v5229_v22 = vld [vmem:[#allocation3 + $0x1160] sm:$0xff] }
 0x9f0   :  { %5167 = vmatprep.subr.bf16.mxu0 %v5089_v15  ;;  %v4006_v15 = vld [vmem:[#allocation3 + $0x198] sm:$0xff] }
 0x9f2   :  { %4201 = vmatpush1.bf16.msra.mxu1 %v4011_v28  ;;  %v5234_v28 = vld [vmem:[#allocation3 + $0x1188] sm:$0xff] }
 0x9f3   :  { %5168 = vmatpush1.bf16.msra.mxu0 %v5088_v30  ;;  %4202 = vmatprep.subr.bf16.mxu1 %v4016_v26  ;;  %v4005_v30 = vld [vmem:[#allocation3 + $0x190] sm:$0xff]  ;;  %v5233_v26 = vld [vmem:[#allocation3 + $0x1180] sm:$0xff] }
 0x9f4   :  { %5169 = vmatprep.subr.bf16.mxu0 %v5093_v27  ;;  %v4010_v27 = vld [vmem:[#allocation3 + $0x1b8] sm:$0xff] }
 0x9f6   :  { %4203 = vmatpush1.bf16.msra.mxu1 %v4015_v33  ;;  %v5238_v33 = vld [vmem:[#allocation3 + $0x11a8] sm:$0xff] }
 0x9f7   :  { %5170 = vmatpush1.bf16.msra.mxu0 %v5092_v37  ;;  %4213 = vmatprep.subr.bf16.mxu1 %v3958_v4  ;;  %v4009_v37 = vld [vmem:[#allocation3 + $0x1b0] sm:$0xff]  ;;  %v5237_v4 = vld [vmem:[#allocation3 + $0x11a0] sm:$0xff] }
 0x9f8   :  { %5249 = vmatprep.subr.bf16.mxu0 %v5186_v38  ;;  %v4014_v38 = vld [vmem:[#allocation3 + $0x1d8] sm:$0xff] }
 0x9f9   :  { %4205 = vmatmul.mubr.bf16.vlgmr.msra.gmra.mrb[84].mxu1 %v8567_v61 }
 0x9fa   :  { %5172 = vmatmul.mubr.bf16.vlgmr.msra.gmra.mrb[28].mxu0 %v5094_v21  ;;  %4214 = vmatpush1.bf16.msra.mxu1 %v3957_v40  ;;  %v5198_v21 = vld [vmem:[#allocation3 + $0x1068] sm:$0xff] }
 0x9fb   :  { %4245 = vmatprep.mubr.bf16.mxu1 %v8569_v1  ;;  %5250 = vmatpush1.bf16.msra.mxu0 %v5185_v46  ;;  %v5242_v40 = vld [vmem:[#allocation3 + $0x11c8] sm:$0xff]  ;;  %v4013_v46 = vld [vmem:[#allocation3 + $0x1d0] sm:$0xff] }
 0x9fc   :  { %4215 = vmatprep.subr.bf16.mxu1 %v3962_v48  ;;  %5251 = vmatprep.subr.bf16.mxu0 %v5190_v24  ;;  %v5241_v48 = vld [vmem:[#allocation3 + $0x11c0] sm:$0xff]  ;;  %v4018_v24 = vld [vmem:[#allocation3 + $0x1f8] sm:$0xff] }
 0x9fd   :  { %5281 = vmatprep.mubr.bf16.mxu0 %v8586_v20 }
 0x9fe   :  { %4216 = vmatpush1.bf16.msra.mxu1 %v3961_v56  ;;  %v5246_v56 = vld [vmem:[#allocation3 + $0x11e8] sm:$0xff] }
 0x9ff   :  { %5252 = vmatpush1.bf16.msra.mxu0 %v5189_v0  ;;  %4217 = vmatprep.subr.bf16.mxu1 %v3966_v31  ;;  %v4017_v0 = vld [vmem:[#allocation3 + $0x1f0] sm:$0xff]  ;;  %v5245_v31 = vld [vmem:[#allocation3 + $0x11e0] sm:$0xff] }
 0xa00   :  { %5253 = vmatprep.subr.bf16.mxu0 %v5194_v34  ;;  %v4256_v34 = vld [vmem:[#allocation3 + $0x408] sm:$0xff] }
 0xa02   :  { %4218 = vmatpush1.bf16.msra.mxu1 %v3965_v35  ;;  %v5188_v35 = vld [vmem:[#allocation3 + $0x1018] sm:$0xff] }
 0xa03   :  { %5254 = vmatpush1.bf16.msra.mxu0 %v5193_v41  ;;  %4219 = vmatprep.subr.bf16.mxu1 %v3970_v23  ;;  %v4255_v41 = vld [vmem:[#allocation3 + $0x400] sm:$0xff]  ;;  %v5187_v23 = vld [vmem:[#allocation3 + $0x1010] sm:$0xff] }
 0xa04   :  { %5255 = vmatprep.subr.bf16.mxu0 %v5198_v21  ;;  %v4320_v21 = vrot.slane %v8569_v1, 2 }
 0xa06   :  { %4220 = vmatpush1.bf16.msra.mxu1 %v3969_v39  ;;  %v4260_v39 = vld [vmem:[#allocation3 + $0x428] sm:$0xff] }
 0xa07   :  { %5256 = vmatpush1.bf16.msra.mxu0 %v5197_v42  ;;  %4221 = vmatprep.subr.bf16.mxu1 %v3974_v43  ;;  %v5192_v42 = vld [vmem:[#allocation3 + $0x1038] sm:$0xff]  ;;  %v4259_v43 = vld [vmem:[#allocation3 + $0x420] sm:$0xff] }
 0xa08   :  { %5257 = vmatprep.subr.bf16.mxu0 %v5202_v44  ;;  %v5191_v44 = vld [vmem:[#allocation3 + $0x1030] sm:$0xff] }
 0xa0a   :  { %4222 = vmatpush1.bf16.msra.mxu1 %v3973_v45  ;;  %v4264_v45 = vld [vmem:[#allocation3 + $0x448] sm:$0xff] }
 0xa0b   :  { %5258 = vmatpush1.bf16.msra.mxu0 %v5201_v47  ;;  %4223 = vmatprep.subr.bf16.mxu1 %v3978_v49  ;;  %v5196_v47 = vld [vmem:[#allocation3 + $0x1058] sm:$0xff]  ;;  %v4263_v49 = vld [vmem:[#allocation3 + $0x440] sm:$0xff] }
 0xa0c   :  { %5259 = vmatprep.subr.bf16.mxu0 %v5206_v54  ;;  %v5195_v54 = vld [vmem:[#allocation3 + $0x1050] sm:$0xff] }
 0xa0e   :  { %4224 = vmatpush1.bf16.msra.mxu1 %v3977_v50  ;;  %v4268_v50 = vld [vmem:[#allocation3 + $0x468] sm:$0xff] }
 0xa0f   :  { %5260 = vmatpush1.bf16.msra.mxu0 %v5205_v51  ;;  %4225 = vmatprep.subr.bf16.mxu1 %v3982_v52  ;;  %v5200_v51 = vld [vmem:[#allocation3 + $0x1078] sm:$0xff]  ;;  %v4267_v52 = vld [vmem:[#allocation3 + $0x460] sm:$0xff] }
 0xa10   :  { %5261 = vmatprep.subr.bf16.mxu0 %v5210_v53  ;;  %v5199_v53 = vld [vmem:[#allocation3 + $0x1070] sm:$0xff] }
 0xa12   :  { %4226 = vmatpush1.bf16.msra.mxu1 %v3981_v55  ;;  %v4272_v55 = vld [vmem:[#allocation3 + $0x488] sm:$0xff] }
 0xa13   :  { %5262 = vmatpush1.bf16.msra.mxu0 %v5209_v13  ;;  %4227 = vmatprep.subr.bf16.mxu1 %v3986_v57  ;;  %v5204_v13 = vld [vmem:[#allocation3 + $0x1098] sm:$0xff]  ;;  %v4271_v57 = vld [vmem:[#allocation3 + $0x480] sm:$0xff] }
 0xa14   :  { %5263 = vmatprep.subr.bf16.mxu0 %v5214_v58  ;;  %v5203_v58 = vld [vmem:[#allocation3 + $0x1090] sm:$0xff] }
 0xa16   :  { %4228 = vmatpush1.bf16.msra.mxu1 %v3985_v59  ;;  %v4276_v59 = vld [vmem:[#allocation3 + $0x4a8] sm:$0xff] }
 0xa17   :  { %5264 = vmatpush1.bf16.msra.mxu0 %v5213_v60  ;;  %4229 = vmatprep.subr.bf16.mxu1 %v3990_v63  ;;  %v5208_v60 = vld [vmem:[#allocation3 + $0x10b8] sm:$0xff]  ;;  %v4275_v63 = vld [vmem:[#allocation3 + $0x4a0] sm:$0xff] }
 0xa18   :  { %5265 = vmatprep.subr.bf16.mxu0 %v5218_v2  ;;  %v5207_v2 = vld [vmem:[#allocation3 + $0x10b0] sm:$0xff] }
 0xa1a   :  { %4230 = vmatpush1.bf16.msra.mxu1 %v3989_v5  ;;  %v4280_v5 = vld [vmem:[#allocation3 + $0x4c8] sm:$0xff] }
 0xa1b   :  { %5266 = vmatpush1.bf16.msra.mxu0 %v5217_v25  ;;  %4231 = vmatprep.subr.bf16.mxu1 %v3994_v7  ;;  %v5212_v25 = vld [vmem:[#allocation3 + $0x10d8] sm:$0xff]  ;;  %v4279_v7 = vld [vmem:[#allocation3 + $0x4c0] sm:$0xff] }
 0xa1c   :  { %5267 = vmatprep.subr.bf16.mxu0 %v5222_v8  ;;  %v5211_v8 = vld [vmem:[#allocation3 + $0x10d0] sm:$0xff] }
 0xa1e   :  { %4232 = vmatpush1.bf16.msra.mxu1 %v3993_v9  ;;  %v4284_v9 = vld [vmem:[#allocation3 + $0x4e8] sm:$0xff] }
 0xa1f   :  { %5268 = vmatpush1.bf16.msra.mxu0 %v5221_v10  ;;  %4233 = vmatprep.subr.bf16.mxu1 %v3998_v11  ;;  %v5216_v10 = vld [vmem:[#allocation3 + $0x10f8] sm:$0xff]  ;;  %v4283_v11 = vld [vmem:[#allocation3 + $0x4e0] sm:$0xff] }
 0xa20   :  { %5269 = vmatprep.subr.bf16.mxu0 %v5226_v12  ;;  %v5215_v12 = vld [vmem:[#allocation3 + $0x10f0] sm:$0xff] }
 0xa22   :  { %4234 = vmatpush1.bf16.msra.mxu1 %v3997_v16  ;;  %v4288_v16 = vld [vmem:[#allocation3 + $0x508] sm:$0xff] }
 0xa23   :  { %5270 = vmatpush1.bf16.msra.mxu0 %v5225_v62  ;;  %4235 = vmatprep.subr.bf16.mxu1 %v4002_v17  ;;  %v5220_v62 = vld [vmem:[#allocation3 + $0x1118] sm:$0xff]  ;;  %v4287_v17 = vld [vmem:[#allocation3 + $0x500] sm:$0xff] }
 0xa24   :  { %5271 = vmatprep.subr.bf16.mxu0 %v5230_v18  ;;  %v5219_v18 = vld [vmem:[#allocation3 + $0x1110] sm:$0xff] }
 0xa26   :  { %4236 = vmatpush1.bf16.msra.mxu1 %v4001_v19  ;;  %v4292_v19 = vld [vmem:[#allocation3 + $0x528] sm:$0xff] }
 0xa27   :  { %5272 = vmatpush1.bf16.msra.mxu0 %v5229_v22  ;;  %4237 = vmatprep.subr.bf16.mxu1 %v4006_v15  ;;  %v5224_v22 = vld [vmem:[#allocation3 + $0x1138] sm:$0xff]  ;;  %v4291_v15 = vld [vmem:[#allocation3 + $0x520] sm:$0xff] }
 0xa28   :  { %5273 = vmatprep.subr.bf16.mxu0 %v5234_v28  ;;  %v5223_v28 = vld [vmem:[#allocation3 + $0x1130] sm:$0xff] }
 0xa2a   :  { %4238 = vmatpush1.bf16.msra.mxu1 %v4005_v30  ;;  %v4296_v30 = vld [vmem:[#allocation3 + $0x548] sm:$0xff] }
 0xa2b   :  { %5274 = vmatpush1.bf16.msra.mxu0 %v5233_v26  ;;  %4239 = vmatprep.subr.bf16.mxu1 %v4010_v27  ;;  %v5228_v26 = vld [vmem:[#allocation3 + $0x1158] sm:$0xff]  ;;  %v4295_v27 = vld [vmem:[#allocation3 + $0x540] sm:$0xff] }
 0xa2c   :  { %5275 = vmatprep.subr.bf16.mxu0 %v5238_v33  ;;  %v5227_v33 = vld [vmem:[#allocation3 + $0x1150] sm:$0xff] }
 0xa2e   :  { %4240 = vmatpush1.bf16.msra.mxu1 %v4009_v37  ;;  %v4300_v37 = vld [vmem:[#allocation3 + $0x568] sm:$0xff] }
 0xa2f   :  { %5276 = vmatpush1.bf16.msra.mxu0 %v5237_v4  ;;  %4241 = vmatprep.subr.bf16.mxu1 %v4014_v38  ;;  %v5232_v4 = vld [vmem:[#allocation3 + $0x1178] sm:$0xff]  ;;  %v4299_v38 = vld [vmem:[#allocation3 + $0x560] sm:$0xff] }
 0xa30   :  { %5277 = vmatprep.subr.bf16.mxu0 %v5242_v40  ;;  %v5231_v40 = vld [vmem:[#allocation3 + $0x1170] sm:$0xff] }
 0xa32   :  { %4242 = vmatpush1.bf16.msra.mxu1 %v4013_v46  ;;  %v4304_v46 = vld [vmem:[#allocation3 + $0x588] sm:$0xff] }
 0xa33   :  { %5278 = vmatpush1.bf16.msra.mxu0 %v5241_v48  ;;  %4243 = vmatprep.subr.bf16.mxu1 %v4018_v24  ;;  %v5236_v48 = vld [vmem:[#allocation3 + $0x1198] sm:$0xff]  ;;  %v4303_v24 = vld [vmem:[#allocation3 + $0x580] sm:$0xff] }
 0xa34   :  { %5279 = vmatprep.subr.bf16.mxu0 %v5246_v56  ;;  %v5235_v56 = vld [vmem:[#allocation3 + $0x1190] sm:$0xff] }
 0xa36   :  { %4244 = vmatpush1.bf16.msra.mxu1 %v4017_v0  ;;  %v4308_v0 = vld [vmem:[#allocation3 + $0x5a8] sm:$0xff] }
 0xa37   :  { %5280 = vmatpush1.bf16.msra.mxu0 %v5245_v31  ;;  %4323 = vmatprep.subr.bf16.mxu1 %v4256_v34  ;;  %v5240_v31 = vld [vmem:[#allocation3 + $0x11b8] sm:$0xff]  ;;  %v4307_v34 = vld [vmem:[#allocation3 + $0x5a0] sm:$0xff] }
 0xa38   :  { %5290 = vmatprep.subr.bf16.mxu0 %v5188_v35  ;;  %v5239_v35 = vld [vmem:[#allocation3 + $0x11b0] sm:$0xff] }
 0xa39   :  { %4246 = vmatmul.mubr.bf16.vlgmr.msra.gmra.mrb[88].mxu1 %v8567_v61 }
 0xa3a   :  { %5282 = vmatmul.mubr.bf16.vlgmr.msra.gmra.mrb[32].mxu0 %v8584_v14  ;;  %4324 = vmatpush1.bf16.msra.mxu1 %v4255_v41  ;;  %v4312_v41 = vld [vmem:[#allocation3 + $0x5c8] sm:$0xff] }
 0xa3b   :  { %4355 = vmatprep.mubr.bf16.mxu1 %v4320_v21  ;;  %5291 = vmatpush1.bf16.msra.mxu0 %v5187_v23  ;;  %v5244_v23 = vld [vmem:[#allocation3 + $0x11d8] sm:$0xff] }
 0xa3c   :  { %5322 = vmatprep.mubr.bf16.mxu0 %v8586_v20  ;;  %4325 = vmatprep.subr.bf16.mxu1 %v4260_v39  ;;  %v4311_v39 = vld [vmem:[#allocation3 + $0x5c0] sm:$0xff] }
 0xa3d   :  { %5292 = vmatprep.subr.bf16.mxu0 %v5192_v42  ;;  %v5243_v42 = vld [vmem:[#allocation3 + $0x11d0] sm:$0xff] }
 0xa3e   :  { %4326 = vmatpush1.bf16.msra.mxu1 %v4259_v43  ;;  %v4316_v43 = vld [vmem:[#allocation3 + $0x5e8] sm:$0xff] }
 0xa3f   :  { %5293 = vmatpush1.bf16.msra.mxu0 %v5191_v44  ;;  %4327 = vmatprep.subr.bf16.mxu1 %v4264_v45  ;;  %v5248_v44 = vld [vmem:[#allocation3 + $0x11f8] sm:$0xff]  ;;  %v4315_v45 = vld [vmem:[#allocation3 + $0x5e0] sm:$0xff] }
 0xa40   :  { %5294 = vmatprep.subr.bf16.mxu0 %v5196_v47  ;;  %v5247_v47 = vld [vmem:[#allocation3 + $0x11f0] sm:$0xff] }
 0xa42   :  { %4328 = vmatpush1.bf16.msra.mxu1 %v4263_v49  ;;  %v4258_v49 = vld [vmem:[#allocation3 + $0x418] sm:$0xff] }
 0xa43   :  { %5295 = vmatpush1.bf16.msra.mxu0 %v5195_v54  ;;  %4329 = vmatprep.subr.bf16.mxu1 %v4268_v50  ;;  %v5337_v54 = vld [vmem:[#allocation3 + $0x1208] sm:$0xff]  ;;  %v4319_v50 = vrot.slane %v8567_v61, 2 }
 0xa44   :  { %5296 = vmatprep.subr.bf16.mxu0 %v5200_v51  ;;  %v4257_v51 = vld [vmem:[#allocation3 + $0x410] sm:$0xff] }
 0xa46   :  { %4330 = vmatpush1.bf16.msra.mxu1 %v4267_v52  ;;  %v5336_v52 = vld [vmem:[#allocation3 + $0x1200] sm:$0xff] }
 0xa47   :  { %5297 = vmatpush1.bf16.msra.mxu0 %v5199_v53  ;;  %4331 = vmatprep.subr.bf16.mxu1 %v4272_v55  ;;  %v4262_v53 = vld [vmem:[#allocation3 + $0x438] sm:$0xff]  ;;  %v5403_v55 = vrot.slane %v8586_v20, 1 }
 0xa48   :  { %5298 = vmatprep.subr.bf16.mxu0 %v5204_v13  ;;  %v5341_v13 = vld [vmem:[#allocation3 + $0x1228] sm:$0xff] }
 0xa4a   :  { %4332 = vmatpush1.bf16.msra.mxu1 %v4271_v57  ;;  %v4261_v57 = vld [vmem:[#allocation3 + $0x430] sm:$0xff] }
 0xa4b   :  { %5299 = vmatpush1.bf16.msra.mxu0 %v5203_v58  ;;  %4333 = vmatprep.subr.bf16.mxu1 %v4276_v59  ;;  %v5340_v58 = vld [vmem:[#allocation3 + $0x1220] sm:$0xff]  ;;  %v4266_v59 = vld [vmem:[#allocation3 + $0x458] sm:$0xff] }
 0xa4c   :  { %5300 = vmatprep.subr.bf16.mxu0 %v5208_v60  ;;  %v5345_v60 = vld [vmem:[#allocation3 + $0x1248] sm:$0xff] }
 0xa4e   :  { %4334 = vmatpush1.bf16.msra.mxu1 %v4275_v63  ;;  %v4265_v63 = vld [vmem:[#allocation3 + $0x450] sm:$0xff] }
 0xa4f   :  { %5301 = vmatpush1.bf16.msra.mxu0 %v5207_v2  ;;  %4335 = vmatprep.subr.bf16.mxu1 %v4280_v5  ;;  %v5344_v2 = vld [vmem:[#allocation3 + $0x1240] sm:$0xff]  ;;  %v4270_v5 = vld [vmem:[#allocation3 + $0x478] sm:$0xff] }
 0xa50   :  { %5302 = vmatprep.subr.bf16.mxu0 %v5212_v25  ;;  %v5349_v25 = vld [vmem:[#allocation3 + $0x1268] sm:$0xff] }
 0xa52   :  { %4336 = vmatpush1.bf16.msra.mxu1 %v4279_v7  ;;  %v5348_v7 = vld [vmem:[#allocation3 + $0x1260] sm:$0xff] }
 0xa53   :  { %5303 = vmatpush1.bf16.msra.mxu0 %v5211_v8  ;;  %4337 = vmatprep.subr.bf16.mxu1 %v4284_v9  ;;  %v4274_v8 = vld [vmem:[#allocation3 + $0x498] sm:$0xff]  ;;  %v5353_v9 = vld [vmem:[#allocation3 + $0x1288] sm:$0xff] }
 0xa54   :  { %5304 = vmatprep.subr.bf16.mxu0 %v5216_v10  ;;  %v4273_v10 = vld [vmem:[#allocation3 + $0x490] sm:$0xff] }
 0xa56   :  { %4338 = vmatpush1.bf16.msra.mxu1 %v4283_v11  ;;  %v5352_v11 = vld [vmem:[#allocation3 + $0x1280] sm:$0xff] }
 0xa57   :  { %5305 = vmatpush1.bf16.msra.mxu0 %v5215_v12  ;;  %4339 = vmatprep.subr.bf16.mxu1 %v4288_v16  ;;  %v4278_v12 = vld [vmem:[#allocation3 + $0x4b8] sm:$0xff]  ;;  %v5357_v16 = vld [vmem:[#allocation3 + $0x12a8] sm:$0xff] }
 0xa58   :  { %5306 = vmatprep.subr.bf16.mxu0 %v5220_v62  ;;  %v4277_v62 = vld [vmem:[#allocation3 + $0x4b0] sm:$0xff] }
 0xa5a   :  { %4340 = vmatpush1.bf16.msra.mxu1 %v4287_v17  ;;  %v5356_v17 = vld [vmem:[#allocation3 + $0x12a0] sm:$0xff] }
 0xa5b   :  { %5307 = vmatpush1.bf16.msra.mxu0 %v5219_v18  ;;  %4341 = vmatprep.subr.bf16.mxu1 %v4292_v19  ;;  %v4282_v18 = vld [vmem:[#allocation3 + $0x4d8] sm:$0xff]  ;;  %v5361_v19 = vld [vmem:[#allocation3 + $0x12c8] sm:$0xff] }
 0xa5c   :  { %5308 = vmatprep.subr.bf16.mxu0 %v5224_v22  ;;  %v4281_v22 = vld [vmem:[#allocation3 + $0x4d0] sm:$0xff] }
 0xa5e   :  { %4342 = vmatpush1.bf16.msra.mxu1 %v4291_v15  ;;  %v5360_v15 = vld [vmem:[#allocation3 + $0x12c0] sm:$0xff] }
 0xa5f   :  { %5309 = vmatpush1.bf16.msra.mxu0 %v5223_v28  ;;  %4343 = vmatprep.subr.bf16.mxu1 %v4296_v30  ;;  %v4286_v28 = vld [vmem:[#allocation3 + $0x4f8] sm:$0xff]  ;;  %v5365_v30 = vld [vmem:[#allocation3 + $0x12e8] sm:$0xff] }
 0xa60   :  { %5310 = vmatprep.subr.bf16.mxu0 %v5228_v26  ;;  %v4285_v26 = vld [vmem:[#allocation3 + $0x4f0] sm:$0xff] }
 0xa62   :  { %4344 = vmatpush1.bf16.msra.mxu1 %v4295_v27  ;;  %v5364_v27 = vld [vmem:[#allocation3 + $0x12e0] sm:$0xff] }
 0xa63   :  { %5311 = vmatpush1.bf16.msra.mxu0 %v5227_v33  ;;  %4345 = vmatprep.subr.bf16.mxu1 %v4300_v37  ;;  %v4290_v33 = vld [vmem:[#allocation3 + $0x518] sm:$0xff]  ;;  %v5369_v37 = vld [vmem:[#allocation3 + $0x1308] sm:$0xff] }
 0xa64   :  { %5312 = vmatprep.subr.bf16.mxu0 %v5232_v4  ;;  %v4289_v4 = vld [vmem:[#allocation3 + $0x510] sm:$0xff] }
 0xa66   :  { %4346 = vmatpush1.bf16.msra.mxu1 %v4299_v38  ;;  %v5368_v38 = vld [vmem:[#allocation3 + $0x1300] sm:$0xff] }
 0xa67   :  { %5313 = vmatpush1.bf16.msra.mxu0 %v5231_v40  ;;  %4347 = vmatprep.subr.bf16.mxu1 %v4304_v46  ;;  %v4294_v40 = vld [vmem:[#allocation3 + $0x538] sm:$0xff]  ;;  %v5373_v46 = vld [vmem:[#allocation3 + $0x1328] sm:$0xff] }
 0xa68   :  { %5314 = vmatprep.subr.bf16.mxu0 %v5236_v48  ;;  %v4293_v48 = vld [vmem:[#allocation3 + $0x530] sm:$0xff] }
 0xa6a   :  { %4348 = vmatpush1.bf16.msra.mxu1 %v4303_v24  ;;  %v5372_v24 = vld [vmem:[#allocation3 + $0x1320] sm:$0xff] }
 0xa6b   :  { %5315 = vmatpush1.bf16.msra.mxu0 %v5235_v56  ;;  %4349 = vmatprep.subr.bf16.mxu1 %v4308_v0  ;;  %v4298_v56 = vld [vmem:[#allocation3 + $0x558] sm:$0xff]  ;;  %v5377_v0 = vld [vmem:[#allocation3 + $0x1348] sm:$0xff] }
 0xa6c   :  { %5316 = vmatprep.subr.bf16.mxu0 %v5240_v31  ;;  %v4297_v31 = vld [vmem:[#allocation3 + $0x550] sm:$0xff] }
 0xa6e   :  { %4350 = vmatpush1.bf16.msra.mxu1 %v4307_v34  ;;  %v5376_v34 = vld [vmem:[#allocation3 + $0x1340] sm:$0xff] }
 0xa6f   :  { %5317 = vmatpush1.bf16.msra.mxu0 %v5239_v35  ;;  %4351 = vmatprep.subr.bf16.mxu1 %v4312_v41  ;;  %v4302_v35 = vld [vmem:[#allocation3 + $0x578] sm:$0xff]  ;;  %v5381_v41 = vld [vmem:[#allocation3 + $0x1368] sm:$0xff] }
 0xa70   :  { %5318 = vmatprep.subr.bf16.mxu0 %v5244_v23  ;;  %v4301_v23 = vld [vmem:[#allocation3 + $0x570] sm:$0xff] }
 0xa72   :  { %4352 = vmatpush1.bf16.msra.mxu1 %v4311_v39  ;;  %v5380_v39 = vld [vmem:[#allocation3 + $0x1360] sm:$0xff] }
 0xa73   :  { %5319 = vmatpush1.bf16.msra.mxu0 %v5243_v42  ;;  %4353 = vmatprep.subr.bf16.mxu1 %v4316_v43  ;;  %v4306_v42 = vld [vmem:[#allocation3 + $0x598] sm:$0xff]  ;;  %v5385_v43 = vld [vmem:[#allocation3 + $0x1388] sm:$0xff] }
 0xa74   :  { %5320 = vmatprep.subr.bf16.mxu0 %v5248_v44  ;;  %v4305_v44 = vld [vmem:[#allocation3 + $0x590] sm:$0xff] }
 0xa76   :  { %4354 = vmatpush1.bf16.msra.mxu1 %v4315_v45  ;;  %v5384_v45 = vld [vmem:[#allocation3 + $0x1380] sm:$0xff] }
 0xa77   :  { %5321 = vmatpush1.bf16.msra.mxu0 %v5247_v47  ;;  %4364 = vmatprep.subr.bf16.mxu1 %v4258_v49  ;;  %v4310_v47 = vld [vmem:[#allocation3 + $0x5b8] sm:$0xff]  ;;  %v5389_v49 = vld [vmem:[#allocation3 + $0x13a8] sm:$0xff] }
 0xa78   :  { %5406 = vmatprep.subr.bf16.mxu0 %v5337_v54  ;;  %v4309_v54 = vld [vmem:[#allocation3 + $0x5b0] sm:$0xff] }
 0xa79   :  { %4356 = vmatmul.mubr.bf16.vlgmr.msra.gmra.mrb[84].mxu1 %v4319_v50 }
 0xa7a   :  { %5323 = vmatmul.mubr.bf16.vlgmr.msra.gmra.mrb[28].mxu0 %v8584_v14  ;;  %4365 = vmatpush1.bf16.msra.mxu1 %v4257_v51  ;;  %v5388_v51 = vld [vmem:[#allocation3 + $0x13a0] sm:$0xff] }
 0xa7b   :  { %4396 = vmatprep.mubr.bf16.mxu1 %v4320_v21  ;;  %5407 = vmatpush1.bf16.msra.mxu0 %v5336_v52  ;;  %v4269_v21 = vld [vmem:[#allocation3 + $0x470] sm:$0xff]  ;;  %v4314_v52 = vld [vmem:[#allocation3 + $0x5d8] sm:$0xff] }
 0xa7c   :  { %5438 = vmatprep.mubr.bf16.mxu0 %v5403_v55  ;;  %4366 = vmatprep.subr.bf16.mxu1 %v4262_v53  ;;  %v5393_v53 = vld [vmem:[#allocation3 + $0x13c8] sm:$0xff] }
 0xa7d   :  { %5408 = vmatprep.subr.bf16.mxu0 %v5341_v13  ;;  %v4313_v13 = vld [vmem:[#allocation3 + $0x5d0] sm:$0xff] }
 0xa7e   :  { %4367 = vmatpush1.bf16.msra.mxu1 %v4261_v57  ;;  %v5392_v57 = vld [vmem:[#allocation3 + $0x13c0] sm:$0xff] }
 0xa7f   :  { %5409 = vmatpush1.bf16.msra.mxu0 %v5340_v58  ;;  %4368 = vmatprep.subr.bf16.mxu1 %v4266_v59  ;;  %v4318_v58 = vld [vmem:[#allocation3 + $0x5f8] sm:$0xff]  ;;  %v5397_v59 = vld [vmem:[#allocation3 + $0x13e8] sm:$0xff] }
 0xa80   :  { %5410 = vmatprep.subr.bf16.mxu0 %v5345_v60  ;;  %v4317_v60 = vld [vmem:[#allocation3 + $0x5f0] sm:$0xff] }
 0xa82   :  { %4369 = vmatpush1.bf16.msra.mxu1 %v4265_v63  ;;  %v5396_v63 = vld [vmem:[#allocation3 + $0x13e0] sm:$0xff] }
 0xa83   :  { %5411 = vmatpush1.bf16.msra.mxu0 %v5344_v2  ;;  %4370 = vmatprep.subr.bf16.mxu1 %v4270_v5  ;;  %v4411_v2 = vld [vmem:[#allocation3 + $0x608] sm:$0xff]  ;;  %v5339_v5 = vld [vmem:[#allocation3 + $0x1218] sm:$0xff] }
 0xa84   :  { %5412 = vmatprep.subr.bf16.mxu0 %v5349_v25  ;;  %v4410_v25 = vld [vmem:[#allocation3 + $0x600] sm:$0xff] }
 0xa86   :  { %4371 = vmatpush1.bf16.msra.mxu1 %v4269_v21  ;;  %v5402_v21 = vrot.slane %v8584_v14, 1 }
 0xa87   :  { %5413 = vmatpush1.bf16.msra.mxu0 %v5348_v7  ;;  %4372 = vmatprep.subr.bf16.mxu1 %v4274_v8  ;;  %v5338_v7 = vld [vmem:[#allocation3 + $0x1210] sm:$0xff]  ;;  %v4475_v8 = vrot.slane %v8569_v1, 3 }
 0xa88   :  { %5414 = vmatprep.subr.bf16.mxu0 %v5353_v9  ;;  %v4415_v9 = vld [vmem:[#allocation3 + $0x628] sm:$0xff] }
 0xa8a   :  { %4373 = vmatpush1.bf16.msra.mxu1 %v4273_v10  ;;  %v5343_v10 = vld [vmem:[#allocation3 + $0x1238] sm:$0xff] }
 0xa8b   :  { %5415 = vmatpush1.bf16.msra.mxu0 %v5352_v11  ;;  %4374 = vmatprep.subr.bf16.mxu1 %v4278_v12  ;;  %v4414_v11 = vld [vmem:[#allocation3 + $0x620] sm:$0xff]  ;;  %v5342_v12 = vld [vmem:[#allocation3 + $0x1230] sm:$0xff] }
 0xa8c   :  { %5416 = vmatprep.subr.bf16.mxu0 %v5357_v16  ;;  %v4419_v16 = vld [vmem:[#allocation3 + $0x648] sm:$0xff] }
 0xa8e   :  { %4375 = vmatpush1.bf16.msra.mxu1 %v4277_v62  ;;  %v4418_v62 = vld [vmem:[#allocation3 + $0x640] sm:$0xff] }
 0xa8f   :  { %5417 = vmatpush1.bf16.msra.mxu0 %v5356_v17  ;;  %4376 = vmatprep.subr.bf16.mxu1 %v4282_v18  ;;  %v5346_v17 = vld [vmem:[#allocation3 + $0x1250] sm:$0xff]  ;;  %v4423_v18 = vld [vmem:[#allocation3 + $0x668] sm:$0xff] }
 0xa90   :  { %5418 = vmatprep.subr.bf16.mxu0 %v5361_v19  ;;  %v5351_v19 = vld [vmem:[#allocation3 + $0x1278] sm:$0xff] }
 0xa92   :  { %4377 = vmatpush1.bf16.msra.mxu1 %v4281_v22  ;;  %v4422_v22 = vld [vmem:[#allocation3 + $0x660] sm:$0xff] }
 0xa93   :  { %5419 = vmatpush1.bf16.msra.mxu0 %v5360_v15  ;;  %4378 = vmatprep.subr.bf16.mxu1 %v4286_v28  ;;  %v5350_v15 = vld [vmem:[#allocation3 + $0x1270] sm:$0xff]  ;;  %v5355_v28 = vld [vmem:[#allocation3 + $0x1298] sm:$0xff] }
 0xa94   :  { %5420 = vmatprep.subr.bf16.mxu0 %v5365_v30  ;;  %v4426_v30 = vld [vmem:[#allocation3 + $0x680] sm:$0xff] }
 0xa96   :  { %4379 = vmatpush1.bf16.msra.mxu1 %v4285_v26  ;;  %v5354_v26 = vld [vmem:[#allocation3 + $0x1290] sm:$0xff] }
 0xa97   :  { %5421 = vmatpush1.bf16.msra.mxu0 %v5364_v27  ;;  %4380 = vmatprep.subr.bf16.mxu1 %v4290_v33  ;;  %v4431_v27 = vld [vmem:[#allocation3 + $0x6a8] sm:$0xff]  ;;  %v5359_v33 = vld [vmem:[#allocation3 + $0x12b8] sm:$0xff] }
 0xa98   :  { %5422 = vmatprep.subr.bf16.mxu0 %v5369_v37  ;;  %v4430_v37 = vld [vmem:[#allocation3 + $0x6a0] sm:$0xff] }
 0xa9a   :  { %4381 = vmatpush1.bf16.msra.mxu1 %v4289_v4  ;;  %v5358_v4 = vld [vmem:[#allocation3 + $0x12b0] sm:$0xff] }
 0xa9b   :  { %5423 = vmatpush1.bf16.msra.mxu0 %v5368_v38  ;;  %4382 = vmatprep.subr.bf16.mxu1 %v4294_v40  ;;  %v4435_v38 = vld [vmem:[#allocation3 + $0x6c8] sm:$0xff]  ;;  %v5363_v40 = vld [vmem:[#allocation3 + $0x12d8] sm:$0xff] }
 0xa9c   :  { %5424 = vmatprep.subr.bf16.mxu0 %v5373_v46  ;;  %v4434_v46 = vld [vmem:[#allocation3 + $0x6c0] sm:$0xff] }
 0xa9e   :  { %4383 = vmatpush1.bf16.msra.mxu1 %v4293_v48  ;;  %v5362_v48 = vld [vmem:[#allocation3 + $0x12d0] sm:$0xff] }
 0xa9f   :  { %5425 = vmatpush1.bf16.msra.mxu0 %v5372_v24  ;;  %4384 = vmatprep.subr.bf16.mxu1 %v4298_v56  ;;  %v4439_v24 = vld [vmem:[#allocation3 + $0x6e8] sm:$0xff]  ;;  %v5367_v56 = vld [vmem:[#allocation3 + $0x12f8] sm:$0xff] }
 0xaa0   :  { %5426 = vmatprep.subr.bf16.mxu0 %v5377_v0  ;;  %v4438_v0 = vld [vmem:[#allocation3 + $0x6e0] sm:$0xff] }
 0xaa2   :  { %4385 = vmatpush1.bf16.msra.mxu1 %v4297_v31  ;;  %v5366_v31 = vld [vmem:[#allocation3 + $0x12f0] sm:$0xff] }
 0xaa3   :  { %5427 = vmatpush1.bf16.msra.mxu0 %v5376_v34  ;;  %4386 = vmatprep.subr.bf16.mxu1 %v4302_v35  ;;  %v4443_v34 = vld [vmem:[#allocation3 + $0x708] sm:$0xff]  ;;  %v5371_v35 = vld [vmem:[#allocation3 + $0x1318] sm:$0xff] }
 0xaa4   :  { %5428 = vmatprep.subr.bf16.mxu0 %v5381_v41  ;;  %v4442_v41 = vld [vmem:[#allocation3 + $0x700] sm:$0xff] }
 0xaa6   :  { %4387 = vmatpush1.bf16.msra.mxu1 %v4301_v23  ;;  %v5370_v23 = vld [vmem:[#allocation3 + $0x1310] sm:$0xff] }
 0xaa7   :  { %5429 = vmatpush1.bf16.msra.mxu0 %v5380_v39  ;;  %4388 = vmatprep.subr.bf16.mxu1 %v4306_v42  ;;  %v4447_v39 = vld [vmem:[#allocation3 + $0x728] sm:$0xff]  ;;  %v5375_v42 = vld [vmem:[#allocation3 + $0x1338] sm:$0xff] }
 0xaa8   :  { %5430 = vmatprep.subr.bf16.mxu0 %v5385_v43  ;;  %v4446_v43 = vld [vmem:[#allocation3 + $0x720] sm:$0xff] }
 0xaaa   :  { %4389 = vmatpush1.bf16.msra.mxu1 %v4305_v44  ;;  %v5374_v44 = vld [vmem:[#allocation3 + $0x1330] sm:$0xff] }
 0xaab   :  { %5431 = vmatpush1.bf16.msra.mxu0 %v5384_v45  ;;  %4390 = vmatprep.subr.bf16.mxu1 %v4310_v47  ;;  %v4451_v45 = vld [vmem:[#allocation3 + $0x748] sm:$0xff]  ;;  %v5379_v47 = vld [vmem:[#allocation3 + $0x1358] sm:$0xff] }
 0xaac   :  { %5432 = vmatprep.subr.bf16.mxu0 %v5389_v49  ;;  %v4450_v49 = vld [vmem:[#allocation3 + $0x740] sm:$0xff] }
 0xaae   :  { %4391 = vmatpush1.bf16.msra.mxu1 %v4309_v54  ;;  %v5378_v54 = vld [vmem:[#allocation3 + $0x1350] sm:$0xff] }
 0xaaf   :  { %5433 = vmatpush1.bf16.msra.mxu0 %v5388_v51  ;;  %4392 = vmatprep.subr.bf16.mxu1 %v4314_v52  ;;  %v4455_v51 = vld [vmem:[#allocation3 + $0x768] sm:$0xff]  ;;  %v5383_v52 = vld [vmem:[#allocation3 + $0x1378] sm:$0xff] }
 0xab0   :  { %5434 = vmatprep.subr.bf16.mxu0 %v5393_v53  ;;  %v4454_v53 = vld [vmem:[#allocation3 + $0x760] sm:$0xff] }
 0xab2   :  { %4393 = vmatpush1.bf16.msra.mxu1 %v4313_v13  ;;  %v5382_v13 = vld [vmem:[#allocation3 + $0x1370] sm:$0xff] }
 0xab3   :  { %5435 = vmatpush1.bf16.msra.mxu0 %v5392_v57  ;;  %4394 = vmatprep.subr.bf16.mxu1 %v4318_v58  ;;  %v4459_v57 = vld [vmem:[#allocation3 + $0x788] sm:$0xff]  ;;  %v5387_v58 = vld [vmem:[#allocation3 + $0x1398] sm:$0xff] }
 0xab4   :  { %5436 = vmatprep.subr.bf16.mxu0 %v5397_v59  ;;  %v4458_v59 = vld [vmem:[#allocation3 + $0x780] sm:$0xff] }
 0xab6   :  { %4395 = vmatpush1.bf16.msra.mxu1 %v4317_v60  ;;  %v5386_v60 = vld [vmem:[#allocation3 + $0x1390] sm:$0xff] }
 0xab7   :  { %5437 = vmatpush1.bf16.msra.mxu0 %v5396_v63  ;;  %4478 = vmatprep.subr.bf16.mxu1 %v4411_v2  ;;  %v4463_v63 = vld [vmem:[#allocation3 + $0x7a8] sm:$0xff]  ;;  %v5391_v2 = vld [vmem:[#allocation3 + $0x13b8] sm:$0xff] }
 0xab8   :  { %5447 = vmatprep.subr.bf16.mxu0 %v5339_v5  ;;  %v4462_v5 = vld [vmem:[#allocation3 + $0x7a0] sm:$0xff] }
 0xab9   :  { %4397 = vmatmul.mubr.bf16.vlgmr.msra.gmra.mrb[88].mxu1 %v4319_v50  ;;  %v5347_v50 = vld [vmem:[#allocation3 + $0x1258] sm:$0xff] }
 0xaba   :  { %5439 = vmatmul.mubr.bf16.vlgmr.msra.gmra.mrb[32].mxu0 %v5402_v21  ;;  %4479 = vmatpush1.bf16.msra.mxu1 %v4410_v25  ;;  %v5390_v25 = vld [vmem:[#allocation3 + $0x13b0] sm:$0xff] }
 0xabb   :  { %4510 = vmatprep.mubr.bf16.mxu1 %v4475_v8  ;;  %5448 = vmatpush1.bf16.msra.mxu0 %v5338_v7  ;;  %v4467_v7 = vld [vmem:[#allocation3 + $0x7c8] sm:$0xff] }
 0xabc   :  { %5479 = vmatprep.mubr.bf16.mxu0 %v5403_v55  ;;  %4480 = vmatprep.subr.bf16.mxu1 %v4415_v9  ;;  %v4427_v55 = vld [vmem:[#allocation3 + $0x688] sm:$0xff]  ;;  %v5395_v9 = vld [vmem:[#allocation3 + $0x13d8] sm:$0xff] }
 0xabd   :  { %5449 = vmatprep.subr.bf16.mxu0 %v5343_v10  ;;  %v4466_v10 = vld [vmem:[#allocation3 + $0x7c0] sm:$0xff] }
 0xabe   :  { %4481 = vmatpush1.bf16.msra.mxu1 %v4414_v11  ;;  %v5394_v11 = vld [vmem:[#allocation3 + $0x13d0] sm:$0xff] }
 0xabf   :  { %5450 = vmatpush1.bf16.msra.mxu0 %v5342_v12  ;;  %4482 = vmatprep.subr.bf16.mxu1 %v4419_v16  ;;  %v4471_v12 = vld [vmem:[#allocation3 + $0x7e8] sm:$0xff]  ;;  %v5399_v16 = vld [vmem:[#allocation3 + $0x13f8] sm:$0xff] }
 0xac0   :  { %5451 = vmatprep.subr.bf16.mxu0 %v5347_v50  ;;  %v4470_v50 = vld [vmem:[#allocation3 + $0x7e0] sm:$0xff] }
 0xac2   :  { %4483 = vmatpush1.bf16.msra.mxu1 %v4418_v62  ;;  %v5398_v62 = vld [vmem:[#allocation3 + $0x13f0] sm:$0xff] }
 0xac3   :  { %5452 = vmatpush1.bf16.msra.mxu0 %v5346_v17  ;;  %4484 = vmatprep.subr.bf16.mxu1 %v4423_v18  ;;  %v4413_v17 = vld [vmem:[#allocation3 + $0x618] sm:$0xff]  ;;  %v5494_v18 = vld [vmem:[#allocation3 + $0x1408] sm:$0xff] }
 0xac4   :  { %5453 = vmatprep.subr.bf16.mxu0 %v5351_v19  ;;  %v4474_v19 = vrot.slane %v8567_v61, 3 }
 0xac6   :  { %4485 = vmatpush1.bf16.msra.mxu1 %v4422_v22  ;;  %v4412_v22 = vld [vmem:[#allocation3 + $0x610] sm:$0xff] }
 0xac7   :  { %5454 = vmatpush1.bf16.msra.mxu0 %v5350_v15  ;;  %4486 = vmatprep.subr.bf16.mxu1 %v4427_v55  ;;  %v5493_v15 = vld [vmem:[#allocation3 + $0x1400] sm:$0xff]  ;;  %v4417_v55 = vld [vmem:[#allocation3 + $0x638] sm:$0xff] }
 0xac8   :  { %5455 = vmatprep.subr.bf16.mxu0 %v5355_v28  ;;  %v5558_v28 = vrot.slane %v8586_v20, 2 }
 0xaca   :  { %4487 = vmatpush1.bf16.msra.mxu1 %v4426_v30  ;;  %v5498_v30 = vld [vmem:[#allocation3 + $0x1428] sm:$0xff] }
 0xacb   :  { %5456 = vmatpush1.bf16.msra.mxu0 %v5354_v26  ;;  %4488 = vmatprep.subr.bf16.mxu1 %v4431_v27  ;;  %v4416_v26 = vld [vmem:[#allocation3 + $0x630] sm:$0xff]  ;;  %v5497_v27 = vld [vmem:[#allocation3 + $0x1420] sm:$0xff] }
 0xacc   :  { %5457 = vmatprep.subr.bf16.mxu0 %v5359_v33  ;;  %v4421_v33 = vld [vmem:[#allocation3 + $0x658] sm:$0xff] }
 0xace   :  { %4489 = vmatpush1.bf16.msra.mxu1 %v4430_v37  ;;  %v5502_v37 = vld [vmem:[#allocation3 + $0x1448] sm:$0xff] }
 0xacf   :  { %5458 = vmatpush1.bf16.msra.mxu0 %v5358_v4  ;;  %4490 = vmatprep.subr.bf16.mxu1 %v4435_v38  ;;  %v5501_v4 = vld [vmem:[#allocation3 + $0x1440] sm:$0xff]  ;;  %v4425_v38 = vld [vmem:[#allocation3 + $0x678] sm:$0xff] }
 0xad0   :  { %5459 = vmatprep.subr.bf16.mxu0 %v5363_v40  ;;  %v5506_v40 = vld [vmem:[#allocation3 + $0x1468] sm:$0xff] }
 0xad2   :  { %4491 = vmatpush1.bf16.msra.mxu1 %v4434_v46  ;;  %v5505_v46 = vld [vmem:[#allocation3 + $0x1460] sm:$0xff] }
 0xad3   :  { %5460 = vmatpush1.bf16.msra.mxu0 %v5362_v48  ;;  %4492 = vmatprep.subr.bf16.mxu1 %v4439_v24  ;;  %v4429_v48 = vld [vmem:[#allocation3 + $0x698] sm:$0xff]  ;;  %v5510_v24 = vld [vmem:[#allocation3 + $0x1488] sm:$0xff] }
 0xad4   :  { %5461 = vmatprep.subr.bf16.mxu0 %v5367_v56  ;;  %v4428_v56 = vld [vmem:[#allocation3 + $0x690] sm:$0xff] }
 0xad6   :  { %4493 = vmatpush1.bf16.msra.mxu1 %v4438_v0  ;;  %v5509_v0 = vld [vmem:[#allocation3 + $0x1480] sm:$0xff] }
 0xad7   :  { %5462 = vmatpush1.bf16.msra.mxu0 %v5366_v31  ;;  %4494 = vmatprep.subr.bf16.mxu1 %v4443_v34  ;;  %v4433_v31 = vld [vmem:[#allocation3 + $0x6b8] sm:$0xff]  ;;  %v5514_v34 = vld [vmem:[#allocation3 + $0x14a8] sm:$0xff] }
 0xad8   :  { %5463 = vmatprep.subr.bf16.mxu0 %v5371_v35  ;;  %v4432_v35 = vld [vmem:[#allocation3 + $0x6b0] sm:$0xff] }
 0xada   :  { %4495 = vmatpush1.bf16.msra.mxu1 %v4442_v41  ;;  %v5513_v41 = vld [vmem:[#allocation3 + $0x14a0] sm:$0xff] }
 0xadb   :  { %5464 = vmatpush1.bf16.msra.mxu0 %v5370_v23  ;;  %4496 = vmatprep.subr.bf16.mxu1 %v4447_v39  ;;  %v4437_v23 = vld [vmem:[#allocation3 + $0x6d8] sm:$0xff]  ;;  %v5518_v39 = vld [vmem:[#allocation3 + $0x14c8] sm:$0xff] }
 0xadc   :  { %5465 = vmatprep.subr.bf16.mxu0 %v5375_v42  ;;  %v4436_v42 = vld [vmem:[#allocation3 + $0x6d0] sm:$0xff] }
 0xade   :  { %4497 = vmatpush1.bf16.msra.mxu1 %v4446_v43  ;;  %v5517_v43 = vld [vmem:[#allocation3 + $0x14c0] sm:$0xff] }
 0xadf   :  { %5466 = vmatpush1.bf16.msra.mxu0 %v5374_v44  ;;  %4498 = vmatprep.subr.bf16.mxu1 %v4451_v45  ;;  %v4441_v44 = vld [vmem:[#allocation3 + $0x6f8] sm:$0xff]  ;;  %v5522_v45 = vld [vmem:[#allocation3 + $0x14e8] sm:$0xff] }
 0xae0   :  { %5467 = vmatprep.subr.bf16.mxu0 %v5379_v47  ;;  %v4440_v47 = vld [vmem:[#allocation3 + $0x6f0] sm:$0xff] }
 0xae2   :  { %4499 = vmatpush1.bf16.msra.mxu1 %v4450_v49  ;;  %v5521_v49 = vld [vmem:[#allocation3 + $0x14e0] sm:$0xff] }
 0xae3   :  { %5468 = vmatpush1.bf16.msra.mxu0 %v5378_v54  ;;  %4500 = vmatprep.subr.bf16.mxu1 %v4455_v51  ;;  %v4445_v54 = vld [vmem:[#allocation3 + $0x718] sm:$0xff]  ;;  %v5526_v51 = vld [vmem:[#allocation3 + $0x1508] sm:$0xff] }
 0xae4   :  { %5469 = vmatprep.subr.bf16.mxu0 %v5383_v52  ;;  %v4444_v52 = vld [vmem:[#allocation3 + $0x710] sm:$0xff] }
 0xae6   :  { %4501 = vmatpush1.bf16.msra.mxu1 %v4454_v53  ;;  %v5525_v53 = vld [vmem:[#allocation3 + $0x1500] sm:$0xff] }
 0xae7   :  { %5470 = vmatpush1.bf16.msra.mxu0 %v5382_v13  ;;  %4502 = vmatprep.subr.bf16.mxu1 %v4459_v57  ;;  %v4449_v13 = vld [vmem:[#allocation3 + $0x738] sm:$0xff]  ;;  %v5530_v57 = vld [vmem:[#allocation3 + $0x1528] sm:$0xff] }
 0xae8   :  { %5471 = vmatprep.subr.bf16.mxu0 %v5387_v58  ;;  %v4448_v58 = vld [vmem:[#allocation3 + $0x730] sm:$0xff] }
 0xaea   :  { %4503 = vmatpush1.bf16.msra.mxu1 %v4458_v59  ;;  %v5529_v59 = vld [vmem:[#allocation3 + $0x1520] sm:$0xff] }
 0xaeb   :  { %5472 = vmatpush1.bf16.msra.mxu0 %v5386_v60  ;;  %4504 = vmatprep.subr.bf16.mxu1 %v4463_v63  ;;  %v4453_v60 = vld [vmem:[#allocation3 + $0x758] sm:$0xff]  ;;  %v5534_v63 = vld [vmem:[#allocation3 + $0x1548] sm:$0xff] }
 0xaec   :  { %5473 = vmatprep.subr.bf16.mxu0 %v5391_v2  ;;  %v4452_v2 = vld [vmem:[#allocation3 + $0x750] sm:$0xff] }
 0xaee   :  { %4505 = vmatpush1.bf16.msra.mxu1 %v4462_v5  ;;  %v5533_v5 = vld [vmem:[#allocation3 + $0x1540] sm:$0xff] }
 0xaef   :  { %5474 = vmatpush1.bf16.msra.mxu0 %v5390_v25  ;;  %4506 = vmatprep.subr.bf16.mxu1 %v4467_v7  ;;  %v4457_v25 = vld [vmem:[#allocation3 + $0x778] sm:$0xff]  ;;  %v5538_v7 = vld [vmem:[#allocation3 + $0x1568] sm:$0xff] }
 0xaf0   :  { %5475 = vmatprep.subr.bf16.mxu0 %v5395_v9  ;;  %v4456_v9 = vld [vmem:[#allocation3 + $0x770] sm:$0xff] }
 0xaf2   :  { %4507 = vmatpush1.bf16.msra.mxu1 %v4466_v10  ;;  %v5537_v10 = vld [vmem:[#allocation3 + $0x1560] sm:$0xff] }
 0xaf3   :  { %5476 = vmatpush1.bf16.msra.mxu0 %v5394_v11  ;;  %4508 = vmatprep.subr.bf16.mxu1 %v4471_v12  ;;  %v4461_v11 = vld [vmem:[#allocation3 + $0x798] sm:$0xff]  ;;  %v5542_v12 = vld [vmem:[#allocation3 + $0x1588] sm:$0xff] }
 0xaf4   :  { %5477 = vmatprep.subr.bf16.mxu0 %v5399_v16  ;;  %v4460_v16 = vld [vmem:[#allocation3 + $0x790] sm:$0xff] }
 0xaf6   :  { %4509 = vmatpush1.bf16.msra.mxu1 %v4470_v50  ;;  %v5541_v50 = vld [vmem:[#allocation3 + $0x1580] sm:$0xff] }
 0xaf7   :  { %5478 = vmatpush1.bf16.msra.mxu0 %v5398_v62  ;;  %4519 = vmatprep.subr.bf16.mxu1 %v4413_v17  ;;  %v4465_v62 = vld [vmem:[#allocation3 + $0x7b8] sm:$0xff]  ;;  %v5546_v17 = vld [vmem:[#allocation3 + $0x15a8] sm:$0xff] }
 0xaf8   :  { %5561 = vmatprep.subr.bf16.mxu0 %v5494_v18  ;;  %v4464_v18 = vld [vmem:[#allocation3 + $0x7b0] sm:$0xff] }
 0xaf9   :  { %4511 = vmatmul.mubr.bf16.vlgmr.msra.gmra.mrb[84].mxu1 %v4474_v19 }
 0xafa   :  { %5480 = vmatmul.mubr.bf16.vlgmr.msra.gmra.mrb[28].mxu0 %v5402_v21  ;;  %4520 = vmatpush1.bf16.msra.mxu1 %v4412_v22  ;;  %v4420_v21 = vld [vmem:[#allocation3 + $0x650] sm:$0xff]  ;;  %v5545_v22 = vld [vmem:[#allocation3 + $0x15a0] sm:$0xff] }
 0xafb   :  { %4551 = vmatprep.mubr.bf16.mxu1 %v4475_v8  ;;  %5562 = vmatpush1.bf16.msra.mxu0 %v5493_v15  ;;  %v4424_v8 = vld [vmem:[#allocation3 + $0x670] sm:$0xff]  ;;  %v4469_v15 = vld [vmem:[#allocation3 + $0x7d8] sm:$0xff] }
 0xafc   :  { %5593 = vmatprep.mubr.bf16.mxu0 %v5558_v28  ;;  %4521 = vmatprep.subr.bf16.mxu1 %v4417_v55  ;;  %v5550_v55 = vld [vmem:[#allocation3 + $0x15c8] sm:$0xff] }
 0xafd   :  { %5563 = vmatprep.subr.bf16.mxu0 %v5498_v30  ;;  %v4468_v30 = vld [vmem:[#allocation3 + $0x7d0] sm:$0xff] }
 0xafe   :  { %4522 = vmatpush1.bf16.msra.mxu1 %v4416_v26  ;;  %v5549_v26 = vld [vmem:[#allocation3 + $0x15c0] sm:$0xff] }
 0xaff   :  { %5564 = vmatpush1.bf16.msra.mxu0 %v5497_v27  ;;  %4523 = vmatprep.subr.bf16.mxu1 %v4421_v33  ;;  %v4473_v27 = vld [vmem:[#allocation3 + $0x7f8] sm:$0xff]  ;;  %v5554_v33 = vld [vmem:[#allocation3 + $0x15e8] sm:$0xff] }
 0xb00   :  { %5565 = vmatprep.subr.bf16.mxu0 %v5502_v37  ;;  %v4472_v37 = vld [vmem:[#allocation3 + $0x7f0] sm:$0xff] }
 0xb02   :  { %4524 = vmatpush1.bf16.msra.mxu1 %v4420_v21  ;;  %v5553_v21 = vld [vmem:[#allocation3 + $0x15e0] sm:$0xff] }
 0xb03   :  { %5566 = vmatpush1.bf16.msra.mxu0 %v5501_v4  ;;  %4525 = vmatprep.subr.bf16.mxu1 %v4425_v38  ;;  %v4566_v4 = vld [vmem:[#allocation3 + $0x808] sm:$0xff]  ;;  %v5496_v38 = vld [vmem:[#allocation3 + $0x1418] sm:$0xff] }
 0xb04   :  { %5567 = vmatprep.subr.bf16.mxu0 %v5506_v40  ;;  %v4565_v40 = vld [vmem:[#allocation3 + $0x800] sm:$0xff] }
 0xb06   :  { %4526 = vmatpush1.bf16.msra.mxu1 %v4424_v8  ;;  %v5557_v8 = vrot.slane %v8584_v14, 2 }
 0xb07   :  { %5568 = vmatpush1.bf16.msra.mxu0 %v5505_v46  ;;  %4527 = vmatprep.subr.bf16.mxu1 %v4429_v48  ;;  %v5495_v46 = vld [vmem:[#allocation3 + $0x1410] sm:$0xff]  ;;  %v4630_v48 = vrot.slane %v8569_v1, 4 }
 0xb08   :  { %5569 = vmatprep.subr.bf16.mxu0 %v5510_v24  ;;  %v4570_v24 = vld [vmem:[#allocation3 + $0x828] sm:$0xff] }
 0xb0a   :  { %4528 = vmatpush1.bf16.msra.mxu1 %v4428_v56  ;;  %v5500_v56 = vld [vmem:[#allocation3 + $0x1438] sm:$0xff] }
 0xb0b   :  { %5570 = vmatpush1.bf16.msra.mxu0 %v5509_v0  ;;  %4529 = vmatprep.subr.bf16.mxu1 %v4433_v31  ;;  %v4569_v0 = vld [vmem:[#allocation3 + $0x820] sm:$0xff]  ;;  %v5499_v31 = vld [vmem:[#allocation3 + $0x1430] sm:$0xff] }
 0xb0c   :  { %5571 = vmatprep.subr.bf16.mxu0 %v5514_v34  ;;  %v4574_v34 = vld [vmem:[#allocation3 + $0x848] sm:$0xff] }
 0xb0e   :  { %4530 = vmatpush1.bf16.msra.mxu1 %v4432_v35  ;;  %v4573_v35 = vld [vmem:[#allocation3 + $0x840] sm:$0xff] }
 0xb0f   :  { %5572 = vmatpush1.bf16.msra.mxu0 %v5513_v41  ;;  %4531 = vmatprep.subr.bf16.mxu1 %v4437_v23  ;;  %v5503_v41 = vld [vmem:[#allocation3 + $0x1450] sm:$0xff]  ;;  %v4578_v23 = vld [vmem:[#allocation3 + $0x868] sm:$0xff] }
 0xb10   :  { %5573 = vmatprep.subr.bf16.mxu0 %v5518_v39  ;;  %v5508_v39 = vld [vmem:[#allocation3 + $0x1478] sm:$0xff] }
 0xb12   :  { %4532 = vmatpush1.bf16.msra.mxu1 %v4436_v42  ;;  %v4577_v42 = vld [vmem:[#allocation3 + $0x860] sm:$0xff] }
 0xb13   :  { %5574 = vmatpush1.bf16.msra.mxu0 %v5517_v43  ;;  %4533 = vmatprep.subr.bf16.mxu1 %v4441_v44  ;;  %v5507_v43 = vld [vmem:[#allocation3 + $0x1470] sm:$0xff]  ;;  %v5512_v44 = vld [vmem:[#allocation3 + $0x1498] sm:$0xff] }
 0xb14   :  { %5575 = vmatprep.subr.bf16.mxu0 %v5522_v45  ;;  %v4581_v45 = vld [vmem:[#allocation3 + $0x880] sm:$0xff] }
 0xb16   :  { %4534 = vmatpush1.bf16.msra.mxu1 %v4440_v47  ;;  %v5511_v47 = vld [vmem:[#allocation3 + $0x1490] sm:$0xff] }
 0xb17   :  { %5576 = vmatpush1.bf16.msra.mxu0 %v5521_v49  ;;  %4535 = vmatprep.subr.bf16.mxu1 %v4445_v54  ;;  %v4586_v49 = vld [vmem:[#allocation3 + $0x8a8] sm:$0xff]  ;;  %v5516_v54 = vld [vmem:[#allocation3 + $0x14b8] sm:$0xff] }
 0xb18   :  { %5577 = vmatprep.subr.bf16.mxu0 %v5526_v51  ;;  %v4585_v51 = vld [vmem:[#allocation3 + $0x8a0] sm:$0xff] }
 0xb1a   :  { %4536 = vmatpush1.bf16.msra.mxu1 %v4444_v52  ;;  %v5515_v52 = vld [vmem:[#allocation3 + $0x14b0] sm:$0xff] }
 0xb1b   :  { %5578 = vmatpush1.bf16.msra.mxu0 %v5525_v53  ;;  %4537 = vmatprep.subr.bf16.mxu1 %v4449_v13  ;;  %v4590_v53 = vld [vmem:[#allocation3 + $0x8c8] sm:$0xff]  ;;  %v5520_v13 = vld [vmem:[#allocation3 + $0x14d8] sm:$0xff] }
 0xb1c   :  { %5579 = vmatprep.subr.bf16.mxu0 %v5530_v57  ;;  %v4589_v57 = vld [vmem:[#allocation3 + $0x8c0] sm:$0xff] }
 0xb1e   :  { %4538 = vmatpush1.bf16.msra.mxu1 %v4448_v58  ;;  %v5519_v58 = vld [vmem:[#allocation3 + $0x14d0] sm:$0xff] }
 0xb1f   :  { %5580 = vmatpush1.bf16.msra.mxu0 %v5529_v59  ;;  %4539 = vmatprep.subr.bf16.mxu1 %v4453_v60  ;;  %v4594_v59 = vld [vmem:[#allocation3 + $0x8e8] sm:$0xff]  ;;  %v5524_v60 = vld [vmem:[#allocation3 + $0x14f8] sm:$0xff] }
 0xb20   :  { %5581 = vmatprep.subr.bf16.mxu0 %v5534_v63  ;;  %v4593_v63 = vld [vmem:[#allocation3 + $0x8e0] sm:$0xff] }
 0xb22   :  { %4540 = vmatpush1.bf16.msra.mxu1 %v4452_v2  ;;  %v5523_v2 = vld [vmem:[#allocation3 + $0x14f0] sm:$0xff] }
 0xb23   :  { %5582 = vmatpush1.bf16.msra.mxu0 %v5533_v5  ;;  %4541 = vmatprep.subr.bf16.mxu1 %v4457_v25  ;;  %v4598_v5 = vld [vmem:[#allocation3 + $0x908] sm:$0xff]  ;;  %v5528_v25 = vld [vmem:[#allocation3 + $0x1518] sm:$0xff] }
 0xb24   :  { %5583 = vmatprep.subr.bf16.mxu0 %v5538_v7  ;;  %v4597_v7 = vld [vmem:[#allocation3 + $0x900] sm:$0xff] }
 0xb26   :  { %4542 = vmatpush1.bf16.msra.mxu1 %v4456_v9  ;;  %v5527_v9 = vld [vmem:[#allocation3 + $0x1510] sm:$0xff] }
 0xb27   :  { %5584 = vmatpush1.bf16.msra.mxu0 %v5537_v10  ;;  %4543 = vmatprep.subr.bf16.mxu1 %v4461_v11  ;;  %v4602_v10 = vld [vmem:[#allocation3 + $0x928] sm:$0xff]  ;;  %v5532_v11 = vld [vmem:[#allocation3 + $0x1538] sm:$0xff] }
 0xb28   :  { %5585 = vmatprep.subr.bf16.mxu0 %v5542_v12  ;;  %v4601_v12 = vld [vmem:[#allocation3 + $0x920] sm:$0xff] }
 0xb2a   :  { %4544 = vmatpush1.bf16.msra.mxu1 %v4460_v16  ;;  %v5531_v16 = vld [vmem:[#allocation3 + $0x1530] sm:$0xff] }
 0xb2b   :  { %5586 = vmatpush1.bf16.msra.mxu0 %v5541_v50  ;;  %4545 = vmatprep.subr.bf16.mxu1 %v4465_v62  ;;  %v4606_v50 = vld [vmem:[#allocation3 + $0x948] sm:$0xff]  ;;  %v5536_v62 = vld [vmem:[#allocation3 + $0x1558] sm:$0xff] }
 0xb2c   :  { %5587 = vmatprep.subr.bf16.mxu0 %v5546_v17  ;;  %v4605_v17 = vld [vmem:[#allocation3 + $0x940] sm:$0xff] }
 0xb2e   :  { %4546 = vmatpush1.bf16.msra.mxu1 %v4464_v18  ;;  %v5535_v18 = vld [vmem:[#allocation3 + $0x1550] sm:$0xff] }
 0xb2f   :  { %5588 = vmatpush1.bf16.msra.mxu0 %v5545_v22  ;;  %4547 = vmatprep.subr.bf16.mxu1 %v4469_v15  ;;  %v4610_v22 = vld [vmem:[#allocation3 + $0x968] sm:$0xff]  ;;  %v5540_v15 = vld [vmem:[#allocation3 + $0x1578] sm:$0xff] }
 0xb30   :  { %5589 = vmatprep.subr.bf16.mxu0 %v5550_v55  ;;  %v4609_v55 = vld [vmem:[#allocation3 + $0x960] sm:$0xff] }
 0xb32   :  { %4548 = vmatpush1.bf16.msra.mxu1 %v4468_v30  ;;  %v5539_v30 = vld [vmem:[#allocation3 + $0x1570] sm:$0xff] }
 0xb33   :  { %5590 = vmatpush1.bf16.msra.mxu0 %v5549_v26  ;;  %4549 = vmatprep.subr.bf16.mxu1 %v4473_v27  ;;  %v4614_v26 = vld [vmem:[#allocation3 + $0x988] sm:$0xff]  ;;  %v5544_v27 = vld [vmem:[#allocation3 + $0x1598] sm:$0xff] }
 0xb34   :  { %5591 = vmatprep.subr.bf16.mxu0 %v5554_v33  ;;  %v4613_v33 = vld [vmem:[#allocation3 + $0x980] sm:$0xff] }
 0xb36   :  { %4550 = vmatpush1.bf16.msra.mxu1 %v4472_v37  ;;  %v5543_v37 = vld [vmem:[#allocation3 + $0x1590] sm:$0xff] }
 0xb37   :  { %5592 = vmatpush1.bf16.msra.mxu0 %v5553_v21  ;;  %4633 = vmatprep.subr.bf16.mxu1 %v4566_v4  ;;  %v4618_v21 = vld [vmem:[#allocation3 + $0x9a8] sm:$0xff]  ;;  %v5548_v4 = vld [vmem:[#allocation3 + $0x15b8] sm:$0xff] }
 0xb38   :  { %5602 = vmatprep.subr.bf16.mxu0 %v5496_v38  ;;  %v4617_v38 = vld [vmem:[#allocation3 + $0x9a0] sm:$0xff] }
 0xb39   :  { %4552 = vmatmul.mubr.bf16.vlgmr.msra.gmra.mrb[88].mxu1 %v4474_v19  ;;  %v5504_v19 = vld [vmem:[#allocation3 + $0x1458] sm:$0xff] }
 0xb3a   :  { %5594 = vmatmul.mubr.bf16.vlgmr.msra.gmra.mrb[32].mxu0 %v5557_v8  ;;  %4634 = vmatpush1.bf16.msra.mxu1 %v4565_v40  ;;  %v5547_v40 = vld [vmem:[#allocation3 + $0x15b0] sm:$0xff] }
 0xb3b   :  { %4665 = vmatprep.mubr.bf16.mxu1 %v4630_v48  ;;  %5603 = vmatpush1.bf16.msra.mxu0 %v5495_v46  ;;  %v4622_v46 = vld [vmem:[#allocation3 + $0x9c8] sm:$0xff] }
 0xb3c   :  { %5634 = vmatprep.mubr.bf16.mxu0 %v5558_v28  ;;  %4635 = vmatprep.subr.bf16.mxu1 %v4570_v24  ;;  %v4582_v28 = vld [vmem:[#allocation3 + $0x888] sm:$0xff]  ;;  %v5552_v24 = vld [vmem:[#allocation3 + $0x15d8] sm:$0xff] }
 0xb3d   :  { %5604 = vmatprep.subr.bf16.mxu0 %v5500_v56  ;;  %v4621_v56 = vld [vmem:[#allocation3 + $0x9c0] sm:$0xff] }
 0xb3e   :  { %4636 = vmatpush1.bf16.msra.mxu1 %v4569_v0  ;;  %v5551_v0 = vld [vmem:[#allocation3 + $0x15d0] sm:$0xff] }
 0xb3f   :  { %5605 = vmatpush1.bf16.msra.mxu0 %v5499_v31  ;;  %4637 = vmatprep.subr.bf16.mxu1 %v4574_v34  ;;  %v4626_v31 = vld [vmem:[#allocation3 + $0x9e8] sm:$0xff]  ;;  %v5556_v34 = vld [vmem:[#allocation3 + $0x15f8] sm:$0xff] }
 0xb40   :  { %5606 = vmatprep.subr.bf16.mxu0 %v5504_v19  ;;  %v4625_v19 = vld [vmem:[#allocation3 + $0x9e0] sm:$0xff] }
 0xb42   :  { %4638 = vmatpush1.bf16.msra.mxu1 %v4573_v35  ;;  %v5555_v35 = vld [vmem:[#allocation3 + $0x15f0] sm:$0xff] }
 0xb43   :  { %5607 = vmatpush1.bf16.msra.mxu0 %v5503_v41  ;;  %4639 = vmatprep.subr.bf16.mxu1 %v4578_v23  ;;  %v4568_v41 = vld [vmem:[#allocation3 + $0x818] sm:$0xff]  ;;  %v5649_v23 = vld [vmem:[#allocation3 + $0x1608] sm:$0xff] }
 0xb44   :  { %5608 = vmatprep.subr.bf16.mxu0 %v5508_v39  ;;  %v4629_v39 = vrot.slane %v8567_v61, 4 }
 0xb46   :  { %4640 = vmatpush1.bf16.msra.mxu1 %v4577_v42  ;;  %v4567_v42 = vld [vmem:[#allocation3 + $0x810] sm:$0xff] }
 0xb47   :  { %5609 = vmatpush1.bf16.msra.mxu0 %v5507_v43  ;;  %4641 = vmatprep.subr.bf16.mxu1 %v4582_v28  ;;  %v5648_v43 = vld [vmem:[#allocation3 + $0x1600] sm:$0xff]  ;;  %v4572_v28 = vld [vmem:[#allocation3 + $0x838] sm:$0xff] }
 0xb48   :  { %5610 = vmatprep.subr.bf16.mxu0 %v5512_v44  ;;  %v5713_v44 = vrot.slane %v8586_v20, 3 }
 0xb4a   :  { %4642 = vmatpush1.bf16.msra.mxu1 %v4581_v45  ;;  %v5653_v45 = vld [vmem:[#allocation3 + $0x1628] sm:$0xff] }
 0xb4b   :  { %5611 = vmatpush1.bf16.msra.mxu0 %v5511_v47  ;;  %4643 = vmatprep.subr.bf16.mxu1 %v4586_v49  ;;  %v4571_v47 = vld [vmem:[#allocation3 + $0x830] sm:$0xff]  ;;  %v5652_v49 = vld [vmem:[#allocation3 + $0x1620] sm:$0xff] }
 0xb4c   :  { %5612 = vmatprep.subr.bf16.mxu0 %v5516_v54  ;;  %v4576_v54 = vld [vmem:[#allocation3 + $0x858] sm:$0xff] }
 0xb4e   :  { %4644 = vmatpush1.bf16.msra.mxu1 %v4585_v51  ;;  %v5657_v51 = vld [vmem:[#allocation3 + $0x1648] sm:$0xff] }
 0xb4f   :  { %5613 = vmatpush1.bf16.msra.mxu0 %v5515_v52  ;;  %4645 = vmatprep.subr.bf16.mxu1 %v4590_v53  ;;  %v5656_v52 = vld [vmem:[#allocation3 + $0x1640] sm:$0xff]  ;;  %v4580_v53 = vld [vmem:[#allocation3 + $0x878] sm:$0xff] }
 0xb50   :  { %5614 = vmatprep.subr.bf16.mxu0 %v5520_v13  ;;  %v5661_v13 = vld [vmem:[#allocation3 + $0x1668] sm:$0xff] }
 0xb52   :  { %4646 = vmatpush1.bf16.msra.mxu1 %v4589_v57  ;;  %v5660_v57 = vld [vmem:[#allocation3 + $0x1660] sm:$0xff] }
 0xb53   :  { %5615 = vmatpush1.bf16.msra.mxu0 %v5519_v58  ;;  %4647 = vmatprep.subr.bf16.mxu1 %v4594_v59  ;;  %v4584_v58 = vld [vmem:[#allocation3 + $0x898] sm:$0xff]  ;;  %v5665_v59 = vld [vmem:[#allocation3 + $0x1688] sm:$0xff] }
 0xb54   :  { %5616 = vmatprep.subr.bf16.mxu0 %v5524_v60  ;;  %v4583_v60 = vld [vmem:[#allocation3 + $0x890] sm:$0xff] }
 0xb56   :  { %4648 = vmatpush1.bf16.msra.mxu1 %v4593_v63  ;;  %v5664_v63 = vld [vmem:[#allocation3 + $0x1680] sm:$0xff] }
 0xb57   :  { %5617 = vmatpush1.bf16.msra.mxu0 %v5523_v2  ;;  %4649 = vmatprep.subr.bf16.mxu1 %v4598_v5  ;;  %v4588_v2 = vld [vmem:[#allocation3 + $0x8b8] sm:$0xff]  ;;  %v5669_v5 = vld [vmem:[#allocation3 + $0x16a8] sm:$0xff] }
 0xb58   :  { %5618 = vmatprep.subr.bf16.mxu0 %v5528_v25  ;;  %v4587_v25 = vld [vmem:[#allocation3 + $0x8b0] sm:$0xff] }
 0xb5a   :  { %4650 = vmatpush1.bf16.msra.mxu1 %v4597_v7  ;;  %v5668_v7 = vld [vmem:[#allocation3 + $0x16a0] sm:$0xff] }
 0xb5b   :  { %5619 = vmatpush1.bf16.msra.mxu0 %v5527_v9  ;;  %4651 = vmatprep.subr.bf16.mxu1 %v4602_v10  ;;  %v4592_v9 = vld [vmem:[#allocation3 + $0x8d8] sm:$0xff]  ;;  %v5673_v10 = vld [vmem:[#allocation3 + $0x16c8] sm:$0xff] }
 0xb5c   :  { %5620 = vmatprep.subr.bf16.mxu0 %v5532_v11  ;;  %v4591_v11 = vld [vmem:[#allocation3 + $0x8d0] sm:$0xff] }
 0xb5e   :  { %4652 = vmatpush1.bf16.msra.mxu1 %v4601_v12  ;;  %v5672_v12 = vld [vmem:[#allocation3 + $0x16c0] sm:$0xff] }
 0xb5f   :  { %5621 = vmatpush1.bf16.msra.mxu0 %v5531_v16  ;;  %4653 = vmatprep.subr.bf16.mxu1 %v4606_v50  ;;  %v4596_v16 = vld [vmem:[#allocation3 + $0x8f8] sm:$0xff]  ;;  %v5677_v50 = vld [vmem:[#allocation3 + $0x16e8] sm:$0xff] }
 0xb60   :  { %5622 = vmatprep.subr.bf16.mxu0 %v5536_v62  ;;  %v4595_v62 = vld [vmem:[#allocation3 + $0x8f0] sm:$0xff] }
 0xb62   :  { %4654 = vmatpush1.bf16.msra.mxu1 %v4605_v17  ;;  %v5676_v17 = vld [vmem:[#allocation3 + $0x16e0] sm:$0xff] }
 0xb63   :  { %5623 = vmatpush1.bf16.msra.mxu0 %v5535_v18  ;;  %4655 = vmatprep.subr.bf16.mxu1 %v4610_v22  ;;  %v4600_v18 = vld [vmem:[#allocation3 + $0x918] sm:$0xff]  ;;  %v5681_v22 = vld [vmem:[#allocation3 + $0x1708] sm:$0xff] }
 0xb64   :  { %5624 = vmatprep.subr.bf16.mxu0 %v5540_v15  ;;  %v4599_v15 = vld [vmem:[#allocation3 + $0x910] sm:$0xff] }
 0xb66   :  { %4656 = vmatpush1.bf16.msra.mxu1 %v4609_v55  ;;  %v5680_v55 = vld [vmem:[#allocation3 + $0x1700] sm:$0xff] }
 0xb67   :  { %5625 = vmatpush1.bf16.msra.mxu0 %v5539_v30  ;;  %4657 = vmatprep.subr.bf16.mxu1 %v4614_v26  ;;  %v4604_v30 = vld [vmem:[#allocation3 + $0x938] sm:$0xff]  ;;  %v5685_v26 = vld [vmem:[#allocation3 + $0x1728] sm:$0xff] }
 0xb68   :  { %5626 = vmatprep.subr.bf16.mxu0 %v5544_v27  ;;  %v4603_v27 = vld [vmem:[#allocation3 + $0x930] sm:$0xff] }
 0xb6a   :  { %4658 = vmatpush1.bf16.msra.mxu1 %v4613_v33  ;;  %v5684_v33 = vld [vmem:[#allocation3 + $0x1720] sm:$0xff] }
 0xb6b   :  { %5627 = vmatpush1.bf16.msra.mxu0 %v5543_v37  ;;  %4659 = vmatprep.subr.bf16.mxu1 %v4618_v21  ;;  %v4608_v37 = vld [vmem:[#allocation3 + $0x958] sm:$0xff]  ;;  %v5689_v21 = vld [vmem:[#allocation3 + $0x1748] sm:$0xff] }
 0xb6c   :  { %5628 = vmatprep.subr.bf16.mxu0 %v5548_v4  ;;  %v4607_v4 = vld [vmem:[#allocation3 + $0x950] sm:$0xff] }
 0xb6e   :  { %4660 = vmatpush1.bf16.msra.mxu1 %v4617_v38  ;;  %v5688_v38 = vld [vmem:[#allocation3 + $0x1740] sm:$0xff] }
 0xb6f   :  { %5629 = vmatpush1.bf16.msra.mxu0 %v5547_v40  ;;  %4661 = vmatprep.subr.bf16.mxu1 %v4622_v46  ;;  %v4612_v40 = vld [vmem:[#allocation3 + $0x978] sm:$0xff]  ;;  %v5693_v46 = vld [vmem:[#allocation3 + $0x1768] sm:$0xff] }
 0xb70   :  { %5630 = vmatprep.subr.bf16.mxu0 %v5552_v24  ;;  %v4611_v24 = vld [vmem:[#allocation3 + $0x970] sm:$0xff] }
 0xb72   :  { %4662 = vmatpush1.bf16.msra.mxu1 %v4621_v56  ;;  %v5692_v56 = vld [vmem:[#allocation3 + $0x1760] sm:$0xff] }
 0xb73   :  { %5631 = vmatpush1.bf16.msra.mxu0 %v5551_v0  ;;  %4663 = vmatprep.subr.bf16.mxu1 %v4626_v31  ;;  %v4616_v0 = vld [vmem:[#allocation3 + $0x998] sm:$0xff]  ;;  %v5697_v31 = vld [vmem:[#allocation3 + $0x1788] sm:$0xff] }
 0xb74   :  { %5632 = vmatprep.subr.bf16.mxu0 %v5556_v34  ;;  %v4615_v34 = vld [vmem:[#allocation3 + $0x990] sm:$0xff] }
 0xb76   :  { %4664 = vmatpush1.bf16.msra.mxu1 %v4625_v19  ;;  %v5696_v19 = vld [vmem:[#allocation3 + $0x1780] sm:$0xff] }
 0xb77   :  { %5633 = vmatpush1.bf16.msra.mxu0 %v5555_v35  ;;  %4674 = vmatprep.subr.bf16.mxu1 %v4568_v41  ;;  %v4620_v35 = vld [vmem:[#allocation3 + $0x9b8] sm:$0xff]  ;;  %v5701_v41 = vld [vmem:[#allocation3 + $0x17a8] sm:$0xff] }
 0xb78   :  { %5716 = vmatprep.subr.bf16.mxu0 %v5649_v23  ;;  %v4619_v23 = vld [vmem:[#allocation3 + $0x9b0] sm:$0xff] }
 0xb79   :  { %4666 = vmatmul.mubr.bf16.vlgmr.msra.gmra.mrb[84].mxu1 %v4629_v39 }
 0xb7a   :  { %5635 = vmatmul.mubr.bf16.vlgmr.msra.gmra.mrb[28].mxu0 %v5557_v8  ;;  %4675 = vmatpush1.bf16.msra.mxu1 %v4567_v42  ;;  %v4575_v8 = vld [vmem:[#allocation3 + $0x850] sm:$0xff]  ;;  %v5700_v42 = vld [vmem:[#allocation3 + $0x17a0] sm:$0xff] }
 0xb7b   :  { %4706 = vmatprep.mubr.bf16.mxu1 %v4630_v48  ;;  %5717 = vmatpush1.bf16.msra.mxu0 %v5648_v43  ;;  %v4579_v48 = vld [vmem:[#allocation3 + $0x870] sm:$0xff]  ;;  %v4624_v43 = vld [vmem:[#allocation3 + $0x9d8] sm:$0xff] }
 0xb7c   :  { %5748 = vmatprep.mubr.bf16.mxu0 %v5713_v44  ;;  %4676 = vmatprep.subr.bf16.mxu1 %v4572_v28  ;;  %v5705_v28 = vld [vmem:[#allocation3 + $0x17c8] sm:$0xff] }
 0xb7d   :  { %5718 = vmatprep.subr.bf16.mxu0 %v5653_v45  ;;  %v4623_v45 = vld [vmem:[#allocation3 + $0x9d0] sm:$0xff] }
 0xb7e   :  { %4677 = vmatpush1.bf16.msra.mxu1 %v4571_v47  ;;  %v5704_v47 = vld [vmem:[#allocation3 + $0x17c0] sm:$0xff] }
 0xb7f   :  { %5719 = vmatpush1.bf16.msra.mxu0 %v5652_v49  ;;  %4678 = vmatprep.subr.bf16.mxu1 %v4576_v54  ;;  %v4628_v49 = vld [vmem:[#allocation3 + $0x9f8] sm:$0xff]  ;;  %v5709_v54 = vld [vmem:[#allocation3 + $0x17e8] sm:$0xff] }
 0xb80   :  { %5720 = vmatprep.subr.bf16.mxu0 %v5657_v51  ;;  %v4627_v51 = vld [vmem:[#allocation3 + $0x9f0] sm:$0xff] }
 0xb82   :  { %4679 = vmatpush1.bf16.msra.mxu1 %v4575_v8  ;;  %v5708_v8 = vld [vmem:[#allocation3 + $0x17e0] sm:$0xff] }
 0xb83   :  { %5721 = vmatpush1.bf16.msra.mxu0 %v5656_v52  ;;  %4680 = vmatprep.subr.bf16.mxu1 %v4580_v53  ;;  %v4721_v52 = vld [vmem:[#allocation3 + $0xa08] sm:$0xff]  ;;  %v5651_v53 = vld [vmem:[#allocation3 + $0x1618] sm:$0xff] }
 0xb84   :  { %5722 = vmatprep.subr.bf16.mxu0 %v5661_v13  ;;  %v4720_v13 = vld [vmem:[#allocation3 + $0xa00] sm:$0xff] }
 0xb86   :  { %4681 = vmatpush1.bf16.msra.mxu1 %v4579_v48  ;;  %v5712_v48 = vrot.slane %v8584_v14, 3 }
 0xb87   :  { %5723 = vmatpush1.bf16.msra.mxu0 %v5660_v57  ;;  %4682 = vmatprep.subr.bf16.mxu1 %v4584_v58  ;;  %v5650_v57 = vld [vmem:[#allocation3 + $0x1610] sm:$0xff]  ;;  %v4785_v58 = vrot.slane %v8569_v1, 5  ;;  %v4887_v1 = vld [vmem:[#allocation3 + $0xc60] sm:$0xff] }
 0xb88   :  { %5724 = vmatprep.subr.bf16.mxu0 %v5665_v59  ;;  %v4725_v59 = vld [vmem:[#allocation3 + $0xa28] sm:$0xff] }
 0xb8a   :  { %4683 = vmatpush1.bf16.msra.mxu1 %v4583_v60  ;;  %v5655_v60 = vld [vmem:[#allocation3 + $0x1638] sm:$0xff] }
 0xb8b   :  { %5725 = vmatpush1.bf16.msra.mxu0 %v5664_v63  ;;  %4684 = vmatprep.subr.bf16.mxu1 %v4588_v2  ;;  %v4724_v63 = vld [vmem:[#allocation3 + $0xa20] sm:$0xff]  ;;  %v5654_v2 = vld [vmem:[#allocation3 + $0x1630] sm:$0xff] }
 0xb8c   :  { %5726 = vmatprep.subr.bf16.mxu0 %v5669_v5  ;;  %v4729_v5 = vld [vmem:[#allocation3 + $0xa48] sm:$0xff] }
 0xb8e   :  { %4685 = vmatpush1.bf16.msra.mxu1 %v4587_v25  ;;  %v4728_v25 = vld [vmem:[#allocation3 + $0xa40] sm:$0xff] }
 0xb8f   :  { %5727 = vmatpush1.bf16.msra.mxu0 %v5668_v7  ;;  %4686 = vmatprep.subr.bf16.mxu1 %v4592_v9  ;;  %v5658_v7 = vld [vmem:[#allocation3 + $0x1650] sm:$0xff]  ;;  %v4733_v9 = vld [vmem:[#allocation3 + $0xa68] sm:$0xff] }
 0xb90   :  { %5728 = vmatprep.subr.bf16.mxu0 %v5673_v10  ;;  %v5663_v10 = vld [vmem:[#allocation3 + $0x1678] sm:$0xff] }
 0xb92   :  { %4687 = vmatpush1.bf16.msra.mxu1 %v4591_v11  ;;  %v4732_v11 = vld [vmem:[#allocation3 + $0xa60] sm:$0xff] }
 0xb93   :  { %5729 = vmatpush1.bf16.msra.mxu0 %v5672_v12  ;;  %4688 = vmatprep.subr.bf16.mxu1 %v4596_v16  ;;  %v5662_v12 = vld [vmem:[#allocation3 + $0x1670] sm:$0xff]  ;;  %v5667_v16 = vld [vmem:[#allocation3 + $0x1698] sm:$0xff] }
 0xb94   :  { %5730 = vmatprep.subr.bf16.mxu0 %v5677_v50  ;;  %v4736_v50 = vld [vmem:[#allocation3 + $0xa80] sm:$0xff] }
 0xb96   :  { %4689 = vmatpush1.bf16.msra.mxu1 %v4595_v62  ;;  %v5666_v62 = vld [vmem:[#allocation3 + $0x1690] sm:$0xff] }
 0xb97   :  { %5731 = vmatpush1.bf16.msra.mxu0 %v5676_v17  ;;  %4690 = vmatprep.subr.bf16.mxu1 %v4600_v18  ;;  %v4741_v17 = vld [vmem:[#allocation3 + $0xaa8] sm:$0xff]  ;;  %v5671_v18 = vld [vmem:[#allocation3 + $0x16b8] sm:$0xff] }
 0xb98   :  { %5732 = vmatprep.subr.bf16.mxu0 %v5681_v22  ;;  %v4740_v22 = vld [vmem:[#allocation3 + $0xaa0] sm:$0xff] }
 0xb9a   :  { %4691 = vmatpush1.bf16.msra.mxu1 %v4599_v15  ;;  %v5670_v15 = vld [vmem:[#allocation3 + $0x16b0] sm:$0xff] }
 0xb9b   :  { %5733 = vmatpush1.bf16.msra.mxu0 %v5680_v55  ;;  %4692 = vmatprep.subr.bf16.mxu1 %v4604_v30  ;;  %v4745_v55 = vld [vmem:[#allocation3 + $0xac8] sm:$0xff]  ;;  %v5675_v30 = vld [vmem:[#allocation3 + $0x16d8] sm:$0xff] }
 0xb9c   :  { %5734 = vmatprep.subr.bf16.mxu0 %v5685_v26  ;;  %v4744_v26 = vld [vmem:[#allocation3 + $0xac0] sm:$0xff] }
 0xb9e   :  { %4693 = vmatpush1.bf16.msra.mxu1 %v4603_v27  ;;  %v5674_v27 = vld [vmem:[#allocation3 + $0x16d0] sm:$0xff] }
 0xb9f   :  { %5735 = vmatpush1.bf16.msra.mxu0 %v5684_v33  ;;  %4694 = vmatprep.subr.bf16.mxu1 %v4608_v37  ;;  %v4749_v33 = vld [vmem:[#allocation3 + $0xae8] sm:$0xff]  ;;  %v5679_v37 = vld [vmem:[#allocation3 + $0x16f8] sm:$0xff] }
 0xba0   :  { %5736 = vmatprep.subr.bf16.mxu0 %v5689_v21  ;;  %v4748_v21 = vld [vmem:[#allocation3 + $0xae0] sm:$0xff] }
 0xba2   :  { %4695 = vmatpush1.bf16.msra.mxu1 %v4607_v4  ;;  %v5678_v4 = vld [vmem:[#allocation3 + $0x16f0] sm:$0xff] }
 0xba3   :  { %5737 = vmatpush1.bf16.msra.mxu0 %v5688_v38  ;;  %4696 = vmatprep.subr.bf16.mxu1 %v4612_v40  ;;  %v4753_v38 = vld [vmem:[#allocation3 + $0xb08] sm:$0xff]  ;;  %v5683_v40 = vld [vmem:[#allocation3 + $0x1718] sm:$0xff] }
 0xba4   :  { %5738 = vmatprep.subr.bf16.mxu0 %v5693_v46  ;;  %v4752_v46 = vld [vmem:[#allocation3 + $0xb00] sm:$0xff] }
 0xba6   :  { %4697 = vmatpush1.bf16.msra.mxu1 %v4611_v24  ;;  %v5682_v24 = vld [vmem:[#allocation3 + $0x1710] sm:$0xff] }
 0xba7   :  { %5739 = vmatpush1.bf16.msra.mxu0 %v5692_v56  ;;  %4698 = vmatprep.subr.bf16.mxu1 %v4616_v0  ;;  %v4757_v56 = vld [vmem:[#allocation3 + $0xb28] sm:$0xff]  ;;  %v5687_v0 = vld [vmem:[#allocation3 + $0x1738] sm:$0xff] }
 0xba8   :  { %5740 = vmatprep.subr.bf16.mxu0 %v5697_v31  ;;  %v4756_v31 = vld [vmem:[#allocation3 + $0xb20] sm:$0xff] }
 0xbaa   :  { %4699 = vmatpush1.bf16.msra.mxu1 %v4615_v34  ;;  %v5686_v34 = vld [vmem:[#allocation3 + $0x1730] sm:$0xff] }
 0xbab   :  { %5741 = vmatpush1.bf16.msra.mxu0 %v5696_v19  ;;  %4700 = vmatprep.subr.bf16.mxu1 %v4620_v35  ;;  %v4761_v19 = vld [vmem:[#allocation3 + $0xb48] sm:$0xff]  ;;  %v5691_v35 = vld [vmem:[#allocation3 + $0x1758] sm:$0xff] }
 0xbac   :  { %5742 = vmatprep.subr.bf16.mxu0 %v5701_v41  ;;  %v4760_v41 = vld [vmem:[#allocation3 + $0xb40] sm:$0xff] }
 0xbae   :  { %4701 = vmatpush1.bf16.msra.mxu1 %v4619_v23  ;;  %v5690_v23 = vld [vmem:[#allocation3 + $0x1750] sm:$0xff] }
 0xbaf   :  { %5743 = vmatpush1.bf16.msra.mxu0 %v5700_v42  ;;  %4702 = vmatprep.subr.bf16.mxu1 %v4624_v43  ;;  %v4765_v42 = vld [vmem:[#allocation3 + $0xb68] sm:$0xff]  ;;  %v5695_v43 = vld [vmem:[#allocation3 + $0x1778] sm:$0xff] }
 0xbb0   :  { %5744 = vmatprep.subr.bf16.mxu0 %v5705_v28  ;;  %v4764_v28 = vld [vmem:[#allocation3 + $0xb60] sm:$0xff] }
 0xbb2   :  { %4703 = vmatpush1.bf16.msra.mxu1 %v4623_v45  ;;  %v5694_v45 = vld [vmem:[#allocation3 + $0x1770] sm:$0xff] }
 0xbb3   :  { %5745 = vmatpush1.bf16.msra.mxu0 %v5704_v47  ;;  %4704 = vmatprep.subr.bf16.mxu1 %v4628_v49  ;;  %v4769_v47 = vld [vmem:[#allocation3 + $0xb88] sm:$0xff]  ;;  %v5699_v49 = vld [vmem:[#allocation3 + $0x1798] sm:$0xff] }
 0xbb4   :  { %5746 = vmatprep.subr.bf16.mxu0 %v5709_v54  ;;  %v4768_v54 = vld [vmem:[#allocation3 + $0xb80] sm:$0xff] }
 0xbb6   :  { %4705 = vmatpush1.bf16.msra.mxu1 %v4627_v51  ;;  %v5698_v51 = vld [vmem:[#allocation3 + $0x1790] sm:$0xff] }
 0xbb7   :  { %5747 = vmatpush1.bf16.msra.mxu0 %v5708_v8  ;;  %4788 = vmatprep.subr.bf16.mxu1 %v4721_v52  ;;  %v4773_v8 = vld [vmem:[#allocation3 + $0xba8] sm:$0xff]  ;;  %v5703_v52 = vld [vmem:[#allocation3 + $0x17b8] sm:$0xff] }
 0xbb8   :  { %5757 = vmatprep.subr.bf16.mxu0 %v5651_v53  ;;  %v4772_v53 = vld [vmem:[#allocation3 + $0xba0] sm:$0xff] }
 0xbb9   :  { %4707 = vmatmul.mubr.bf16.vlgmr.msra.gmra.mrb[88].mxu1 %v4629_v39  ;;  %v5659_v39 = vld [vmem:[#allocation3 + $0x1658] sm:$0xff] }
 0xbba   :  { %5749 = vmatmul.mubr.bf16.vlgmr.msra.gmra.mrb[32].mxu0 %v5712_v48  ;;  %4789 = vmatpush1.bf16.msra.mxu1 %v4720_v13  ;;  %v5702_v13 = vld [vmem:[#allocation3 + $0x17b0] sm:$0xff] }
 0xbbb   :  { %4820 = vmatprep.mubr.bf16.mxu1 %v4785_v58  ;;  %5758 = vmatpush1.bf16.msra.mxu0 %v5650_v57  ;;  %v4777_v57 = vld [vmem:[#allocation3 + $0xbc8] sm:$0xff] }
 0xbbc   :  { %5789 = vmatprep.mubr.bf16.mxu0 %v5713_v44  ;;  %4790 = vmatprep.subr.bf16.mxu1 %v4725_v59  ;;  %v4737_v44 = vld [vmem:[#allocation3 + $0xa88] sm:$0xff]  ;;  %v5707_v59 = vld [vmem:[#allocation3 + $0x17d8] sm:$0xff] }
 0xbbd   :  { %5759 = vmatprep.subr.bf16.mxu0 %v5655_v60  ;;  %v4776_v60 = vld [vmem:[#allocation3 + $0xbc0] sm:$0xff] }
 0xbbe   :  { %4791 = vmatpush1.bf16.msra.mxu1 %v4724_v63  ;;  %v5706_v63 = vld [vmem:[#allocation3 + $0x17d0] sm:$0xff] }
 0xbbf   :  { %5760 = vmatpush1.bf16.msra.mxu0 %v5654_v2  ;;  %4792 = vmatprep.subr.bf16.mxu1 %v4729_v5  ;;  %v4781_v2 = vld [vmem:[#allocation3 + $0xbe8] sm:$0xff]  ;;  %v5711_v5 = vld [vmem:[#allocation3 + $0x17f8] sm:$0xff] }
 0xbc0   :  { %5761 = vmatprep.subr.bf16.mxu0 %v5659_v39  ;;  %v4780_v39 = vld [vmem:[#allocation3 + $0xbe0] sm:$0xff] }
 0xbc2   :  { %4793 = vmatpush1.bf16.msra.mxu1 %v4728_v25  ;;  %v5710_v25 = vld [vmem:[#allocation3 + $0x17f0] sm:$0xff] }
 0xbc3   :  { %5762 = vmatpush1.bf16.msra.mxu0 %v5658_v7  ;;  %4794 = vmatprep.subr.bf16.mxu1 %v4733_v9  ;;  %v4723_v7 = vld [vmem:[#allocation3 + $0xa18] sm:$0xff]  ;;  %v5804_v9 = vld [vmem:[#allocation3 + $0x1808] sm:$0xff] }
 0xbc4   :  { %5763 = vmatprep.subr.bf16.mxu0 %v5663_v10  ;;  %v4784_v10 = vrot.slane %v8567_v61, 5  ;;  %v5970_v61 = vld [vmem:[#allocation3 + $0x1a60] sm:$0xff] }
 0xbc6   :  { %4795 = vmatpush1.bf16.msra.mxu1 %v4732_v11  ;;  %v4722_v11 = vld [vmem:[#allocation3 + $0xa10] sm:$0xff] }
 0xbc7   :  { %5764 = vmatpush1.bf16.msra.mxu0 %v5662_v12  ;;  %4796 = vmatprep.subr.bf16.mxu1 %v4737_v44  ;;  %v5803_v12 = vld [vmem:[#allocation3 + $0x1800] sm:$0xff]  ;;  %v4727_v44 = vld [vmem:[#allocation3 + $0xa38] sm:$0xff] }
 0xbc8   :  { %5765 = vmatprep.subr.bf16.mxu0 %v5667_v16  ;;  %v5868_v16 = vrot.slane %v8586_v20, 4 }
 0xbca   :  { %4797 = vmatpush1.bf16.msra.mxu1 %v4736_v50  ;;  %v5808_v50 = vld [vmem:[#allocation3 + $0x1828] sm:$0xff] }
 0xbcb   :  { %5766 = vmatpush1.bf16.msra.mxu0 %v5666_v62  ;;  %4798 = vmatprep.subr.bf16.mxu1 %v4741_v17  ;;  %v4726_v62 = vld [vmem:[#allocation3 + $0xa30] sm:$0xff]  ;;  %v5807_v17 = vld [vmem:[#allocation3 + $0x1820] sm:$0xff] }
 0xbcc   :  { %5767 = vmatprep.subr.bf16.mxu0 %v5671_v18  ;;  %v4731_v18 = vld [vmem:[#allocation3 + $0xa58] sm:$0xff] }
 0xbce   :  { %4799 = vmatpush1.bf16.msra.mxu1 %v4740_v22  ;;  %v5812_v22 = vld [vmem:[#allocation3 + $0x1848] sm:$0xff] }
 0xbcf   :  { %5768 = vmatpush1.bf16.msra.mxu0 %v5670_v15  ;;  %4800 = vmatprep.subr.bf16.mxu1 %v4745_v55  ;;  %v5811_v15 = vld [vmem:[#allocation3 + $0x1840] sm:$0xff]  ;;  %v4735_v55 = vld [vmem:[#allocation3 + $0xa78] sm:$0xff] }
 0xbd0   :  { %5769 = vmatprep.subr.bf16.mxu0 %v5675_v30  ;;  %v5816_v30 = vld [vmem:[#allocation3 + $0x1868] sm:$0xff] }
 0xbd2   :  { %4801 = vmatpush1.bf16.msra.mxu1 %v4744_v26  ;;  %v5815_v26 = vld [vmem:[#allocation3 + $0x1860] sm:$0xff] }
 0xbd3   :  { %5770 = vmatpush1.bf16.msra.mxu0 %v5674_v27  ;;  %4802 = vmatprep.subr.bf16.mxu1 %v4749_v33  ;;  %v4739_v27 = vld [vmem:[#allocation3 + $0xa98] sm:$0xff]  ;;  %v5820_v33 = vld [vmem:[#allocation3 + $0x1888] sm:$0xff] }
 0xbd4   :  { %5771 = vmatprep.subr.bf16.mxu0 %v5679_v37  ;;  %v4738_v37 = vld [vmem:[#allocation3 + $0xa90] sm:$0xff] }
 0xbd6   :  { %4803 = vmatpush1.bf16.msra.mxu1 %v4748_v21  ;;  %v5819_v21 = vld [vmem:[#allocation3 + $0x1880] sm:$0xff] }
 0xbd7   :  { %5772 = vmatpush1.bf16.msra.mxu0 %v5678_v4  ;;  %4804 = vmatprep.subr.bf16.mxu1 %v4753_v38  ;;  %v4743_v4 = vld [vmem:[#allocation3 + $0xab8] sm:$0xff]  ;;  %v5824_v38 = vld [vmem:[#allocation3 + $0x18a8] sm:$0xff] }
 0xbd8   :  { %5773 = vmatprep.subr.bf16.mxu0 %v5683_v40  ;;  %v4742_v40 = vld [vmem:[#allocation3 + $0xab0] sm:$0xff] }
 0xbda   :  { %4805 = vmatpush1.bf16.msra.mxu1 %v4752_v46  ;;  %v5823_v46 = vld [vmem:[#allocation3 + $0x18a0] sm:$0xff] }
 0xbdb   :  { %5774 = vmatpush1.bf16.msra.mxu0 %v5682_v24  ;;  %4806 = vmatprep.subr.bf16.mxu1 %v4757_v56  ;;  %v4747_v24 = vld [vmem:[#allocation3 + $0xad8] sm:$0xff]  ;;  %v5828_v56 = vld [vmem:[#allocation3 + $0x18c8] sm:$0xff] }
 0xbdc   :  { %5775 = vmatprep.subr.bf16.mxu0 %v5687_v0  ;;  %v4746_v0 = vld [vmem:[#allocation3 + $0xad0] sm:$0xff] }
 0xbde   :  { %4807 = vmatpush1.bf16.msra.mxu1 %v4756_v31  ;;  %v5827_v31 = vld [vmem:[#allocation3 + $0x18c0] sm:$0xff] }
 0xbdf   :  { %5776 = vmatpush1.bf16.msra.mxu0 %v5686_v34  ;;  %4808 = vmatprep.subr.bf16.mxu1 %v4761_v19  ;;  %v4751_v34 = vld [vmem:[#allocation3 + $0xaf8] sm:$0xff]  ;;  %v5832_v19 = vld [vmem:[#allocation3 + $0x18e8] sm:$0xff] }
 0xbe0   :  { %5777 = vmatprep.subr.bf16.mxu0 %v5691_v35  ;;  %v4750_v35 = vld [vmem:[#allocation3 + $0xaf0] sm:$0xff] }
 0xbe2   :  { %4809 = vmatpush1.bf16.msra.mxu1 %v4760_v41  ;;  %v5831_v41 = vld [vmem:[#allocation3 + $0x18e0] sm:$0xff] }
 0xbe3   :  { %5778 = vmatpush1.bf16.msra.mxu0 %v5690_v23  ;;  %4810 = vmatprep.subr.bf16.mxu1 %v4765_v42  ;;  %v4755_v23 = vld [vmem:[#allocation3 + $0xb18] sm:$0xff]  ;;  %v5836_v42 = vld [vmem:[#allocation3 + $0x1908] sm:$0xff] }
 0xbe4   :  { %5779 = vmatprep.subr.bf16.mxu0 %v5695_v43  ;;  %v4754_v43 = vld [vmem:[#allocation3 + $0xb10] sm:$0xff] }
 0xbe6   :  { %4811 = vmatpush1.bf16.msra.mxu1 %v4764_v28  ;;  %v5835_v28 = vld [vmem:[#allocation3 + $0x1900] sm:$0xff] }
 0xbe7   :  { %5780 = vmatpush1.bf16.msra.mxu0 %v5694_v45  ;;  %4812 = vmatprep.subr.bf16.mxu1 %v4769_v47  ;;  %v4759_v45 = vld [vmem:[#allocation3 + $0xb38] sm:$0xff]  ;;  %v5840_v47 = vld [vmem:[#allocation3 + $0x1928] sm:$0xff] }
 0xbe8   :  { %5781 = vmatprep.subr.bf16.mxu0 %v5699_v49  ;;  %v4758_v49 = vld [vmem:[#allocation3 + $0xb30] sm:$0xff] }
 0xbea   :  { %4813 = vmatpush1.bf16.msra.mxu1 %v4768_v54  ;;  %v5839_v54 = vld [vmem:[#allocation3 + $0x1920] sm:$0xff] }
 0xbeb   :  { %5782 = vmatpush1.bf16.msra.mxu0 %v5698_v51  ;;  %4814 = vmatprep.subr.bf16.mxu1 %v4773_v8  ;;  %v4763_v51 = vld [vmem:[#allocation3 + $0xb58] sm:$0xff]  ;;  %v5844_v8 = vld [vmem:[#allocation3 + $0x1948] sm:$0xff] }
 0xbec   :  { %5783 = vmatprep.subr.bf16.mxu0 %v5703_v52  ;;  %v4762_v52 = vld [vmem:[#allocation3 + $0xb50] sm:$0xff] }
 0xbee   :  { %4815 = vmatpush1.bf16.msra.mxu1 %v4772_v53  ;;  %v5843_v53 = vld [vmem:[#allocation3 + $0x1940] sm:$0xff] }
 0xbef   :  { %5784 = vmatpush1.bf16.msra.mxu0 %v5702_v13  ;;  %4816 = vmatprep.subr.bf16.mxu1 %v4777_v57  ;;  %v4767_v13 = vld [vmem:[#allocation3 + $0xb78] sm:$0xff]  ;;  %v5848_v57 = vld [vmem:[#allocation3 + $0x1968] sm:$0xff] }
 0xbf0   :  { %5785 = vmatprep.subr.bf16.mxu0 %v5707_v59  ;;  %v4766_v59 = vld [vmem:[#allocation3 + $0xb70] sm:$0xff] }
 0xbf2   :  { %4817 = vmatpush1.bf16.msra.mxu1 %v4776_v60  ;;  %v5847_v60 = vld [vmem:[#allocation3 + $0x1960] sm:$0xff] }
 0xbf3   :  { %5786 = vmatpush1.bf16.msra.mxu0 %v5706_v63  ;;  %4818 = vmatprep.subr.bf16.mxu1 %v4781_v2  ;;  %v4771_v63 = vld [vmem:[#allocation3 + $0xb98] sm:$0xff]  ;;  %v5852_v2 = vld [vmem:[#allocation3 + $0x1988] sm:$0xff] }
 0xbf4   :  { %5787 = vmatprep.subr.bf16.mxu0 %v5711_v5  ;;  %v4770_v5 = vld [vmem:[#allocation3 + $0xb90] sm:$0xff] }
 0xbf6   :  { %4819 = vmatpush1.bf16.msra.mxu1 %v4780_v39  ;;  %v5851_v39 = vld [vmem:[#allocation3 + $0x1980] sm:$0xff] }
 0xbf7   :  { %5788 = vmatpush1.bf16.msra.mxu0 %v5710_v25  ;;  %4829 = vmatprep.subr.bf16.mxu1 %v4723_v7  ;;  %v4775_v25 = vld [vmem:[#allocation3 + $0xbb8] sm:$0xff]  ;;  %v5856_v7 = vld [vmem:[#allocation3 + $0x19a8] sm:$0xff] }
 0xbf8   :  { %5871 = vmatprep.subr.bf16.mxu0 %v5804_v9  ;;  %v4774_v9 = vld [vmem:[#allocation3 + $0xbb0] sm:$0xff] }
 0xbf9   :  { %4821 = vmatmul.mubr.bf16.vlgmr.msra.gmra.mrb[84].mxu1 %v4784_v10 }
 0xbfa   :  { %5790 = vmatmul.mubr.bf16.vlgmr.msra.gmra.mrb[28].mxu0 %v5712_v48  ;;  %4830 = vmatpush1.bf16.msra.mxu1 %v4722_v11  ;;  %v4730_v48 = vld [vmem:[#allocation3 + $0xa50] sm:$0xff]  ;;  %v5855_v11 = vld [vmem:[#allocation3 + $0x19a0] sm:$0xff] }
 0xbfb   :  { %4861 = vmatprep.mubr.bf16.mxu1 %v4785_v58  ;;  %5872 = vmatpush1.bf16.msra.mxu0 %v5803_v12  ;;  %v4734_v58 = vld [vmem:[#allocation3 + $0xa70] sm:$0xff]  ;;  %v4779_v12 = vld [vmem:[#allocation3 + $0xbd8] sm:$0xff] }
 0xbfc   :  { %5903 = vmatprep.mubr.bf16.mxu0 %v5868_v16  ;;  %4831 = vmatprep.subr.bf16.mxu1 %v4727_v44  ;;  %v5860_v44 = vld [vmem:[#allocation3 + $0x19c8] sm:$0xff] }
 0xbfd   :  { %5873 = vmatprep.subr.bf16.mxu0 %v5808_v50  ;;  %v4778_v50 = vld [vmem:[#allocation3 + $0xbd0] sm:$0xff] }
 0xbfe   :  { %4832 = vmatpush1.bf16.msra.mxu1 %v4726_v62  ;;  %v5859_v62 = vld [vmem:[#allocation3 + $0x19c0] sm:$0xff] }
 0xbff   :  { %5874 = vmatpush1.bf16.msra.mxu0 %v5807_v17  ;;  %4833 = vmatprep.subr.bf16.mxu1 %v4731_v18  ;;  %v4783_v17 = vld [vmem:[#allocation3 + $0xbf8] sm:$0xff]  ;;  %v5864_v18 = vld [vmem:[#allocation3 + $0x19e8] sm:$0xff] }
 0xc00   :  { %5875 = vmatprep.subr.bf16.mxu0 %v5812_v22  ;;  %v4782_v22 = vld [vmem:[#allocation3 + $0xbf0] sm:$0xff] }
 0xc02   :  { %4834 = vmatpush1.bf16.msra.mxu1 %v4730_v48  ;;  %v5863_v48 = vld [vmem:[#allocation3 + $0x19e0] sm:$0xff] }
 0xc03   :  { %5876 = vmatpush1.bf16.msra.mxu0 %v5811_v15  ;;  %4835 = vmatprep.subr.bf16.mxu1 %v4735_v55  ;;  %v4876_v15 = vld [vmem:[#allocation3 + $0xc08] sm:$0xff]  ;;  %v5806_v55 = vld [vmem:[#allocation3 + $0x1818] sm:$0xff] }
 0xc04   :  { %5877 = vmatprep.subr.bf16.mxu0 %v5816_v30  ;;  %v4875_v30 = vld [vmem:[#allocation3 + $0xc00] sm:$0xff] }
 0xc06   :  { %4836 = vmatpush1.bf16.msra.mxu1 %v4734_v58  ;;  %v5867_v58 = vrot.slane %v8584_v14, 4 }
 0xc07   :  { %5878 = vmatpush1.bf16.msra.mxu0 %v5815_v26  ;;  %4837 = vmatprep.subr.bf16.mxu1 %v4739_v27  ;;  %v5805_v26 = vld [vmem:[#allocation3 + $0x1810] sm:$0xff]  ;;  %v4880_v27 = vld [vmem:[#allocation3 + $0xc28] sm:$0xff] }
 0xc08   :  { %5879 = vmatprep.subr.bf16.mxu0 %v5820_v33  ;;  %v5810_v33 = vld [vmem:[#allocation3 + $0x1838] sm:$0xff] }
 0xc0a   :  { %4838 = vmatpush1.bf16.msra.mxu1 %v4738_v37  ;;  %v4879_v37 = vld [vmem:[#allocation3 + $0xc20] sm:$0xff] }
 0xc0b   :  { %5880 = vmatpush1.bf16.msra.mxu0 %v5819_v21  ;;  %4839 = vmatprep.subr.bf16.mxu1 %v4743_v4  ;;  %v5809_v21 = vld [vmem:[#allocation3 + $0x1830] sm:$0xff]  ;;  %v4884_v4 = vld [vmem:[#allocation3 + $0xc48] sm:$0xff] }
 0xc0c   :  { %5881 = vmatprep.subr.bf16.mxu0 %v5824_v38  ;;  %v5814_v38 = vld [vmem:[#allocation3 + $0x1858] sm:$0xff] }
 0xc0e   :  { %4840 = vmatpush1.bf16.msra.mxu1 %v4742_v40  ;;  %v5813_v40 = vld [vmem:[#allocation3 + $0x1850] sm:$0xff] }
 0xc0f   :  { %5882 = vmatpush1.bf16.msra.mxu0 %v5823_v46  ;;  %4841 = vmatprep.subr.bf16.mxu1 %v4747_v24  ;;  %v4888_v46 = vld [vmem:[#allocation3 + $0xc68] sm:$0xff]  ;;  %v5818_v24 = vld [vmem:[#allocation3 + $0x1878] sm:$0xff] }
 0xc10   :  { %5883 = vmatprep.subr.bf16.mxu0 %v5828_v56  ;;  %v5822_v56 = vld [vmem:[#allocation3 + $0x1898] sm:$0xff] }
 0xc12   :  { %4842 = vmatpush1.bf16.msra.mxu1 %v4746_v0  ;;  %v4891_v0 = vld [vmem:[#allocation3 + $0xc80] sm:$0xff] }
 0xc13   :  { %5884 = vmatpush1.bf16.msra.mxu0 %v5827_v31  ;;  %4843 = vmatprep.subr.bf16.mxu1 %v4751_v34  ;;  %v5821_v31 = vld [vmem:[#allocation3 + $0x1890] sm:$0xff]  ;;  %v4896_v34 = vld [vmem:[#allocation3 + $0xca8] sm:$0xff] }
 0xc14   :  { %5885 = vmatprep.subr.bf16.mxu0 %v5832_v19  ;;  %v5826_v19 = vld [vmem:[#allocation3 + $0x18b8] sm:$0xff] }
 0xc16   :  { %4844 = vmatpush1.bf16.msra.mxu1 %v4750_v35  ;;  %v4895_v35 = vld [vmem:[#allocation3 + $0xca0] sm:$0xff] }
 0xc17   :  { %5886 = vmatpush1.bf16.msra.mxu0 %v5831_v41  ;;  %4845 = vmatprep.subr.bf16.mxu1 %v4755_v23  ;;  %v5825_v41 = vld [vmem:[#allocation3 + $0x18b0] sm:$0xff]  ;;  %v4900_v23 = vld [vmem:[#allocation3 + $0xcc8] sm:$0xff] }
 0xc18   :  { %5887 = vmatprep.subr.bf16.mxu0 %v5836_v42  ;;  %v5830_v42 = vld [vmem:[#allocation3 + $0x18d8] sm:$0xff] }
 0xc1a   :  { %4846 = vmatpush1.bf16.msra.mxu1 %v4754_v43  ;;  %v4899_v43 = vld [vmem:[#allocation3 + $0xcc0] sm:$0xff] }
 0xc1b   :  { %5888 = vmatpush1.bf16.msra.mxu0 %v5835_v28  ;;  %4847 = vmatprep.subr.bf16.mxu1 %v4759_v45  ;;  %v5829_v28 = vld [vmem:[#allocation3 + $0x18d0] sm:$0xff]  ;;  %v4904_v45 = vld [vmem:[#allocation3 + $0xce8] sm:$0xff] }
 0xc1c   :  { %5889 = vmatprep.subr.bf16.mxu0 %v5840_v47  ;;  %v5834_v47 = vld [vmem:[#allocation3 + $0x18f8] sm:$0xff] }
 0xc1e   :  { %4848 = vmatpush1.bf16.msra.mxu1 %v4758_v49  ;;  %v4903_v49 = vld [vmem:[#allocation3 + $0xce0] sm:$0xff] }
 0xc1f   :  { %5890 = vmatpush1.bf16.msra.mxu0 %v5839_v54  ;;  %4849 = vmatprep.subr.bf16.mxu1 %v4763_v51  ;;  %v5833_v54 = vld [vmem:[#allocation3 + $0x18f0] sm:$0xff]  ;;  %v4908_v51 = vld [vmem:[#allocation3 + $0xd08] sm:$0xff] }
 0xc20   :  { %5891 = vmatprep.subr.bf16.mxu0 %v5844_v8  ;;  %v5838_v8 = vld [vmem:[#allocation3 + $0x1918] sm:$0xff] }
 0xc22   :  { %4850 = vmatpush1.bf16.msra.mxu1 %v4762_v52  ;;  %v4907_v52 = vld [vmem:[#allocation3 + $0xd00] sm:$0xff] }
 0xc23   :  { %5892 = vmatpush1.bf16.msra.mxu0 %v5843_v53  ;;  %4851 = vmatprep.subr.bf16.mxu1 %v4767_v13  ;;  %v5837_v53 = vld [vmem:[#allocation3 + $0x1910] sm:$0xff]  ;;  %v4912_v13 = vld [vmem:[#allocation3 + $0xd28] sm:$0xff] }
 0xc24   :  { %5893 = vmatprep.subr.bf16.mxu0 %v5848_v57  ;;  %v5842_v57 = vld [vmem:[#allocation3 + $0x1938] sm:$0xff] }
 0xc26   :  { %4852 = vmatpush1.bf16.msra.mxu1 %v4766_v59  ;;  %v4911_v59 = vld [vmem:[#allocation3 + $0xd20] sm:$0xff] }
 0xc27   :  { %5894 = vmatpush1.bf16.msra.mxu0 %v5847_v60  ;;  %4853 = vmatprep.subr.bf16.mxu1 %v4771_v63  ;;  %v5841_v60 = vld [vmem:[#allocation3 + $0x1930] sm:$0xff]  ;;  %v4916_v63 = vld [vmem:[#allocation3 + $0xd48] sm:$0xff] }
 0xc28   :  { %5895 = vmatprep.subr.bf16.mxu0 %v5852_v2  ;;  %v5846_v2 = vld [vmem:[#allocation3 + $0x1958] sm:$0xff] }
 0xc2a   :  { %4854 = vmatpush1.bf16.msra.mxu1 %v4770_v5  ;;  %v4915_v5 = vld [vmem:[#allocation3 + $0xd40] sm:$0xff] }
 0xc2b   :  { %5896 = vmatpush1.bf16.msra.mxu0 %v5851_v39  ;;  %4855 = vmatprep.subr.bf16.mxu1 %v4775_v25  ;;  %v5845_v39 = vld [vmem:[#allocation3 + $0x1950] sm:$0xff]  ;;  %v4920_v25 = vld [vmem:[#allocation3 + $0xd68] sm:$0xff] }
 0xc2c   :  { %5897 = vmatprep.subr.bf16.mxu0 %v5856_v7  ;;  %v5850_v7 = vld [vmem:[#allocation3 + $0x1978] sm:$0xff] }
 0xc2e   :  { %4856 = vmatpush1.bf16.msra.mxu1 %v4774_v9  ;;  %v4919_v9 = vld [vmem:[#allocation3 + $0xd60] sm:$0xff] }
 0xc2f   :  { %5898 = vmatpush1.bf16.msra.mxu0 %v5855_v11  ;;  %4857 = vmatprep.subr.bf16.mxu1 %v4779_v12  ;;  %v5849_v11 = vld [vmem:[#allocation3 + $0x1970] sm:$0xff]  ;;  %v4924_v12 = vld [vmem:[#allocation3 + $0xd88] sm:$0xff] }
 0xc30   :  { %5899 = vmatprep.subr.bf16.mxu0 %v5860_v44  ;;  %v5854_v44 = vld [vmem:[#allocation3 + $0x1998] sm:$0xff] }
 0xc32   :  { %4858 = vmatpush1.bf16.msra.mxu1 %v4778_v50  ;;  %v4923_v50 = vld [vmem:[#allocation3 + $0xd80] sm:$0xff] }
 0xc33   :  { %5900 = vmatpush1.bf16.msra.mxu0 %v5859_v62  ;;  %4859 = vmatprep.subr.bf16.mxu1 %v4783_v17  ;;  %v5853_v62 = vld [vmem:[#allocation3 + $0x1990] sm:$0xff]  ;;  %v4928_v17 = vld [vmem:[#allocation3 + $0xda8] sm:$0xff] }
 0xc34   :  { %5901 = vmatprep.subr.bf16.mxu0 %v5864_v18  ;;  %v5858_v18 = vld [vmem:[#allocation3 + $0x19b8] sm:$0xff] }
 0xc36   :  { %4860 = vmatpush1.bf16.msra.mxu1 %v4782_v22  ;;  %v4927_v22 = vld [vmem:[#allocation3 + $0xda0] sm:$0xff] }
 0xc37   :  { %5902 = vmatpush1.bf16.msra.mxu0 %v5863_v48  ;;  %4943 = vmatprep.subr.bf16.mxu1 %v4876_v15  ;;  %v5857_v48 = vld [vmem:[#allocation3 + $0x19b0] sm:$0xff]  ;;  %v4932_v15 = vld [vmem:[#allocation3 + $0xdc8] sm:$0xff] }
 0xc38   :  { %5912 = vmatprep.subr.bf16.mxu0 %v5806_v55  ;;  %v5862_v55 = vld [vmem:[#allocation3 + $0x19d8] sm:$0xff] }
 0xc39   :  { %4862 = vmatmul.mubr.bf16.vlgmr.msra.gmra.mrb[88].mxu1 %v4784_v10  ;;  %v4883_v10 = vld [vmem:[#allocation3 + $0xc40] sm:$0xff] }
 0xc3a   :  { %5904 = vmatmul.mubr.bf16.vlgmr.msra.gmra.mrb[32].mxu0 %v5867_v58  ;;  %4944 = vmatpush1.bf16.msra.mxu1 %v4875_v30  ;;  %v4931_v30 = vld [vmem:[#allocation3 + $0xdc0] sm:$0xff] }
 0xc3b   :  { %4975 = vmatprep.mubr.bf16.mxu1 %v4940_v3  ;;  %5913 = vmatpush1.bf16.msra.mxu0 %v5805_v26  ;;  %v5817_v3 = vld [vmem:[#allocation3 + $0x1870] sm:$0xff] }
 0xc3c   :  { %5944 = vmatprep.mubr.bf16.mxu0 %v5868_v16  ;;  %4945 = vmatprep.subr.bf16.mxu1 %v4880_v27  ;;  %v4892_v16 = vld [vmem:[#allocation3 + $0xc88] sm:$0xff]  ;;  %v5861_v26 = vld [vmem:[#allocation3 + $0x19d0] sm:$0xff] }
 0xc3d   :  { %5914 = vmatprep.subr.bf16.mxu0 %v5810_v33  ;;  %v4936_v27 = vld [vmem:[#allocation3 + $0xde8] sm:$0xff]  ;;  %v5866_v33 = vld [vmem:[#allocation3 + $0x19f8] sm:$0xff] }
 0xc3e   :  { %4946 = vmatpush1.bf16.msra.mxu1 %v4879_v37  ;;  %v4935_v37 = vld [vmem:[#allocation3 + $0xde0] sm:$0xff] }
 0xc3f   :  { %5915 = vmatpush1.bf16.msra.mxu0 %v5809_v21  ;;  %4947 = vmatprep.subr.bf16.mxu1 %v4884_v4  ;;  %v5865_v21 = vld [vmem:[#allocation3 + $0x19f0] sm:$0xff]  ;;  %v5959_v4 = vld [vmem:[#allocation3 + $0x1a08] sm:$0xff] }
 0xc40   :  { %5916 = vmatprep.subr.bf16.mxu0 %v5814_v38  ;;  %v5958_v38 = vld [vmem:[#allocation3 + $0x1a00] sm:$0xff] }
 0xc42   :  { %4948 = vmatpush1.bf16.msra.mxu1 %v4883_v10  ;;  %v6023_v10 = vrot.slane %v8586_v20, 5 }
 0xc43   :  { %5917 = vmatpush1.bf16.msra.mxu0 %v5813_v40  ;;  %4949 = vmatprep.subr.bf16.mxu1 %v4888_v46  ;;  %v5963_v40 = vld [vmem:[#allocation3 + $0x1a28] sm:$0xff]  ;;  %v5962_v46 = vld [vmem:[#allocation3 + $0x1a20] sm:$0xff] }
 0xc44   :  { %5918 = vmatprep.subr.bf16.mxu0 %v5818_v24  ;;  %v5967_v24 = vld [vmem:[#allocation3 + $0x1a48] sm:$0xff] }
 0xc46   :  { %4950 = vmatpush1.bf16.msra.mxu1 %v4887_v1  ;;  %v5966_v1 = vld [vmem:[#allocation3 + $0x1a40] sm:$0xff] }
 0xc47   :  { %5919 = vmatpush1.bf16.msra.mxu0 %v5817_v3  ;;  %4951 = vmatprep.subr.bf16.mxu1 %v4892_v16  ;;  %v5971_v3 = vld [vmem:[#allocation3 + $0x1a68] sm:$0xff]  ;;  %v5974_v16 = vld [vmem:[#allocation3 + $0x1a80] sm:$0xff] }
 0xc48   :  { %5920 = vmatprep.subr.bf16.mxu0 %v5822_v56  ;;  %v5979_v56 = vld [vmem:[#allocation3 + $0x1aa8] sm:$0xff] }
 0xc4a   :  { %4952 = vmatpush1.bf16.msra.mxu1 %v4891_v0  ;;  %v5983_v0 = vld [vmem:[#allocation3 + $0x1ac8] sm:$0xff] }
 0xc4b   :  { %5921 = vmatpush1.bf16.msra.mxu0 %v5821_v31  ;;  %4953 = vmatprep.subr.bf16.mxu1 %v4896_v34  ;;  %v5982_v31 = vld [vmem:[#allocation3 + $0x1ac0] sm:$0xff]  ;;  %v5987_v34 = vld [vmem:[#allocation3 + $0x1ae8] sm:$0xff] }
 0xc4c   :  { %5922 = vmatprep.subr.bf16.mxu0 %v5826_v19  ;;  %v5986_v19 = vld [vmem:[#allocation3 + $0x1ae0] sm:$0xff] }
 0xc4e   :  { %4954 = vmatpush1.bf16.msra.mxu1 %v4895_v35  ;;  %v5991_v35 = vld [vmem:[#allocation3 + $0x1b08] sm:$0xff] }
 0xc4f   :  { %5923 = vmatpush1.bf16.msra.mxu0 %v5825_v41  ;;  %4955 = vmatprep.subr.bf16.mxu1 %v4900_v23  ;;  %v5990_v41 = vld [vmem:[#allocation3 + $0x1b00] sm:$0xff]  ;;  %v5995_v23 = vld [vmem:[#allocation3 + $0x1b28] sm:$0xff] }
 0xc50   :  { %5924 = vmatprep.subr.bf16.mxu0 %v5830_v42  ;;  %v5994_v42 = vld [vmem:[#allocation3 + $0x1b20] sm:$0xff] }
 0xc52   :  { %4956 = vmatpush1.bf16.msra.mxu1 %v4899_v43  ;;  %v5999_v43 = vld [vmem:[#allocation3 + $0x1b48] sm:$0xff] }
 0xc53   :  { %5925 = vmatpush1.bf16.msra.mxu0 %v5829_v28  ;;  %4957 = vmatprep.subr.bf16.mxu1 %v4904_v45  ;;  %v5998_v28 = vld [vmem:[#allocation3 + $0x1b40] sm:$0xff]  ;;  %v6003_v45 = vld [vmem:[#allocation3 + $0x1b68] sm:$0xff] }
 0xc54   :  { %5926 = vmatprep.subr.bf16.mxu0 %v5834_v47  ;;  %v6002_v47 = vld [vmem:[#allocation3 + $0x1b60] sm:$0xff] }
 0xc56   :  { %4958 = vmatpush1.bf16.msra.mxu1 %v4903_v49  ;;  %v6007_v49 = vld [vmem:[#allocation3 + $0x1b88] sm:$0xff] }
 0xc57   :  { %5927 = vmatpush1.bf16.msra.mxu0 %v5833_v54  ;;  %4959 = vmatprep.subr.bf16.mxu1 %v4908_v51  ;;  %v6006_v54 = vld [vmem:[#allocation3 + $0x1b80] sm:$0xff]  ;;  %v6011_v51 = vld [vmem:[#allocation3 + $0x1ba8] sm:$0xff] }
 0xc58   :  { %5928 = vmatprep.subr.bf16.mxu0 %v5838_v8  ;;  %v6010_v8 = vld [vmem:[#allocation3 + $0x1ba0] sm:$0xff] }
 0xc5a   :  { %4960 = vmatpush1.bf16.msra.mxu1 %v4907_v52  ;;  %v6015_v52 = vld [vmem:[#allocation3 + $0x1bc8] sm:$0xff] }
 0xc5b   :  { %5929 = vmatpush1.bf16.msra.mxu0 %v5837_v53  ;;  %4961 = vmatprep.subr.bf16.mxu1 %v4912_v13  ;;  %v6014_v53 = vld [vmem:[#allocation3 + $0x1bc0] sm:$0xff]  ;;  %v6019_v13 = vld [vmem:[#allocation3 + $0x1be8] sm:$0xff] }
 0xc5c   :  { %5930 = vmatprep.subr.bf16.mxu0 %v5842_v57  ;;  %v6018_v57 = vld [vmem:[#allocation3 + $0x1be0] sm:$0xff] }
 0xc5e   :  { %4962 = vmatpush1.bf16.msra.mxu1 %v4911_v59  ;;  %v5961_v59 = vld [vmem:[#allocation3 + $0x1a18] sm:$0xff] }
 0xc5f   :  { %5931 = vmatpush1.bf16.msra.mxu0 %v5841_v60  ;;  %4963 = vmatprep.subr.bf16.mxu1 %v4916_v63  ;;  %v6022_v60 = vrot.slane %v8584_v14, 5  ;;  %v5960_v63 = vld [vmem:[#allocation3 + $0x1a10] sm:$0xff] }
 0xc60   :  { %5932 = vmatprep.subr.bf16.mxu0 %v5846_v2  ;;  %v5965_v2 = vld [vmem:[#allocation3 + $0x1a38] sm:$0xff] }
 0xc62   :  { %4964 = vmatpush1.bf16.msra.mxu1 %v4915_v5  ;;  %v5964_v5 = vld [vmem:[#allocation3 + $0x1a30] sm:$0xff] }
 0xc63   :  { %5933 = vmatpush1.bf16.msra.mxu0 %v5845_v39  ;;  %4965 = vmatprep.subr.bf16.mxu1 %v4920_v25  ;;  %v5969_v39 = vld [vmem:[#allocation3 + $0x1a58] sm:$0xff]  ;;  %v5968_v25 = vld [vmem:[#allocation3 + $0x1a50] sm:$0xff] }
 0xc64   :  { %5934 = vmatprep.subr.bf16.mxu0 %v5850_v7  ;;  %v5973_v7 = vld [vmem:[#allocation3 + $0x1a78] sm:$0xff] }
 0xc66   :  { %4966 = vmatpush1.bf16.msra.mxu1 %v4919_v9  ;;  %v5972_v9 = vld [vmem:[#allocation3 + $0x1a70] sm:$0xff] }
 0xc67   :  { %5935 = vmatpush1.bf16.msra.mxu0 %v5849_v11  ;;  %4967 = vmatprep.subr.bf16.mxu1 %v4924_v12  ;;  %v5977_v11 = vld [vmem:[#allocation3 + $0x1a98] sm:$0xff]  ;;  %v5976_v12 = vld [vmem:[#allocation3 + $0x1a90] sm:$0xff] }
 0xc68   :  { %5936 = vmatprep.subr.bf16.mxu0 %v5854_v44  ;;  %v5981_v44 = vld [vmem:[#allocation3 + $0x1ab8] sm:$0xff] }
 0xc6a   :  { %4968 = vmatpush1.bf16.msra.mxu1 %v4923_v50  ;;  %v5980_v50 = vld [vmem:[#allocation3 + $0x1ab0] sm:$0xff] }
 0xc6b   :  { %5937 = vmatpush1.bf16.msra.mxu0 %v5853_v62  ;;  %4969 = vmatprep.subr.bf16.mxu1 %v4928_v17  ;;  %v5985_v62 = vld [vmem:[#allocation3 + $0x1ad8] sm:$0xff]  ;;  %v5984_v17 = vld [vmem:[#allocation3 + $0x1ad0] sm:$0xff] }
 0xc6c   :  { %5938 = vmatprep.subr.bf16.mxu0 %v5858_v18  ;;  %v5989_v18 = vld [vmem:[#allocation3 + $0x1af8] sm:$0xff] }
 0xc6e   :  { %4970 = vmatpush1.bf16.msra.mxu1 %v4927_v22  ;;  %v5988_v22 = vld [vmem:[#allocation3 + $0x1af0] sm:$0xff] }
 0xc6f   :  { %5939 = vmatpush1.bf16.msra.mxu0 %v5857_v48  ;;  %4971 = vmatprep.subr.bf16.mxu1 %v4932_v15  ;;  %v5993_v48 = vld [vmem:[#allocation3 + $0x1b18] sm:$0xff]  ;;  %v5992_v15 = vld [vmem:[#allocation3 + $0x1b10] sm:$0xff] }
 0xc70   :  { %5940 = vmatprep.subr.bf16.mxu0 %v5862_v55  ;;  %v5997_v55 = vld [vmem:[#allocation3 + $0x1b38] sm:$0xff] }
 0xc72   :  { %4972 = vmatpush1.bf16.msra.mxu1 %v4931_v30  ;;  %v5996_v30 = vld [vmem:[#allocation3 + $0x1b30] sm:$0xff] }
 0xc73   :  { %5941 = vmatpush1.bf16.msra.mxu0 %v5861_v26  ;;  %4973 = vmatprep.subr.bf16.mxu1 %v4936_v27  ;;  %v6001_v26 = vld [vmem:[#allocation3 + $0x1b58] sm:$0xff]  ;;  %v6000_v27 = vld [vmem:[#allocation3 + $0x1b50] sm:$0xff] }
 0xc74   :  { %5942 = vmatprep.subr.bf16.mxu0 %v5866_v33  ;;  %v6005_v33 = vld [vmem:[#allocation3 + $0x1b78] sm:$0xff] }
 0xc76   :  { %4974 = vmatpush1.bf16.msra.mxu1 %v4935_v37  ;;  %v6004_v37 = vld [vmem:[#allocation3 + $0x1b70] sm:$0xff] }
 0xc77   :  { %5943 = vmatpush1.bf16.msra.mxu0 %v5865_v21  ;;  %v6009_v21 = vld [vmem:[#allocation3 + $0x1b98] sm:$0xff] }
 0xc78   :  { %6026 = vmatprep.subr.bf16.mxu0 %v5959_v4  ;;  %v6008_v4 = vld [vmem:[#allocation3 + $0x1b90] sm:$0xff] }
 0xc79   :  { %4976 = vmatmul.mubr.bf16.vlgmr.msra.gmra.mrb[84].mxu1 %v4939_v6  ;;  %v5975_v6 = vld [vmem:[#allocation3 + $0x1a88] sm:$0xff] }
 0xc7a   :  { %5945 = vmatmul.mubr.bf16.vlgmr.msra.gmra.mrb[28].mxu0 %v5867_v58  ;;  %v5978_v58 = vld [vmem:[#allocation3 + $0x1aa0] sm:$0xff] }
 0xc7b   :  { %6027 = vmatpush1.bf16.msra.mxu0 %v5958_v38  ;;  %6058 = vmatprep.mubr.bf16.mxu0 %v6023_v10  ;;  %v6013_v38 = vld [vmem:[#allocation3 + $0x1bb8] sm:$0xff] }
 0xc7c   :  { %6028 = vmatprep.subr.bf16.mxu0 %v5963_v40  ;;  %v6017_v40 = vld [vmem:[#allocation3 + $0x1bd8] sm:$0xff] }
 0xc7f   :  { %6029 = vmatpush1.bf16.msra.mxu0 %v5962_v46  ;;  %v6016_v46 = vld [vmem:[#allocation3 + $0x1bd0] sm:$0xff] }
 0xc80   :  { %6030 = vmatprep.subr.bf16.mxu0 %v5967_v24  ;;  %v6021_v24 = vld [vmem:[#allocation3 + $0x1bf8] sm:$0xff] }
 0xc83   :  { %6031 = vmatpush1.bf16.msra.mxu0 %v5966_v1  ;;  %v6020_v1 = vld [vmem:[#allocation3 + $0x1bf0] sm:$0xff] }
 0xc84   :  { %6032 = vmatprep.subr.bf16.mxu0 %v5971_v3  ;;  %v6114_v3 = vld [vmem:[#allocation3 + $0x1c08] sm:$0xff] }
 0xc87   :  { %6033 = vmatpush1.bf16.msra.mxu0 %v5970_v61  ;;  %v6113_v61 = vld [vmem:[#allocation3 + $0x1c00] sm:$0xff] }
 0xc88   :  { %6034 = vmatprep.subr.bf16.mxu0 %v5975_v6  ;;  %v6178_v6 = vrot.slane %v8586_v20, 6 }
 0xc8b   :  { %6035 = vmatpush1.bf16.msra.mxu0 %v5974_v16  ;;  %v6118_v16 = vld [vmem:[#allocation3 + $0x1c28] sm:$0xff] }
 0xc8c   :  { %6036 = vmatprep.subr.bf16.mxu0 %v5979_v56  ;;  %v6117_v56 = vld [vmem:[#allocation3 + $0x1c20] sm:$0xff] }
 0xc8f   :  { %6037 = vmatpush1.bf16.msra.mxu0 %v5978_v58  ;;  %v6122_v58 = vld [vmem:[#allocation3 + $0x1c48] sm:$0xff] }
 0xc90   :  { %6038 = vmatprep.subr.bf16.mxu0 %v5983_v0  ;;  %v6121_v0 = vld [vmem:[#allocation3 + $0x1c40] sm:$0xff] }
 0xc93   :  { %6039 = vmatpush1.bf16.msra.mxu0 %v5982_v31  ;;  %v6126_v31 = vld [vmem:[#allocation3 + $0x1c68] sm:$0xff] }
 0xc94   :  { %6040 = vmatprep.subr.bf16.mxu0 %v5987_v34  ;;  %v6125_v34 = vld [vmem:[#allocation3 + $0x1c60] sm:$0xff] }
 0xc97   :  { %6041 = vmatpush1.bf16.msra.mxu0 %v5986_v19  ;;  %v6130_v19 = vld [vmem:[#allocation3 + $0x1c88] sm:$0xff] }
 0xc98   :  { %6042 = vmatprep.subr.bf16.mxu0 %v5991_v35  ;;  %v6129_v35 = vld [vmem:[#allocation3 + $0x1c80] sm:$0xff] }
 0xc9b   :  { %6043 = vmatpush1.bf16.msra.mxu0 %v5990_v41  ;;  %v6134_v41 = vld [vmem:[#allocation3 + $0x1ca8] sm:$0xff] }
 0xc9c   :  { %6044 = vmatprep.subr.bf16.mxu0 %v5995_v23 }
 0xc9f   :  { %6045 = vmatpush1.bf16.msra.mxu0 %v5994_v42  ;;  %v6133_v42 = vld [vmem:[#allocation3 + $0x1ca0] sm:$0xff] }
 0xca0   :  { %6046 = vmatprep.subr.bf16.mxu0 %v5999_v43 }
 0xca3   :  { %6047 = vmatpush1.bf16.msra.mxu0 %v5998_v28  ;;  %v6138_v28 = vld [vmem:[#allocation3 + $0x1cc8] sm:$0xff] }
 0xca4   :  { %6048 = vmatprep.subr.bf16.mxu0 %v6003_v45 }
 0xca7   :  { %6049 = vmatpush1.bf16.msra.mxu0 %v6002_v47 }
 0xca8   :  { %6050 = vmatprep.subr.bf16.mxu0 %v6007_v49  ;;  %v6137_v49 = vld [vmem:[#allocation3 + $0x1cc0] sm:$0xff] }
 0xcab   :  { %6051 = vmatpush1.bf16.msra.mxu0 %v6006_v54  ;;  %v6142_v54 = vld [vmem:[#allocation3 + $0x1ce8] sm:$0xff] }
 0xcac   :  { %6052 = vmatprep.subr.bf16.mxu0 %v6011_v51  ;;  %v6141_v51 = vld [vmem:[#allocation3 + $0x1ce0] sm:$0xff] }
 0xcaf   :  { %6053 = vmatpush1.bf16.msra.mxu0 %v6010_v8  ;;  %v6146_v8 = vld [vmem:[#allocation3 + $0x1d08] sm:$0xff] }
 0xcb0   :  { %6054 = vmatprep.subr.bf16.mxu0 %v6015_v52  ;;  %v6145_v52 = vld [vmem:[#allocation3 + $0x1d00] sm:$0xff] }
 0xcb3   :  { %6055 = vmatpush1.bf16.msra.mxu0 %v6014_v53  ;;  %v6150_v53 = vld [vmem:[#allocation3 + $0x1d28] sm:$0xff] }
 0xcb4   :  { %6056 = vmatprep.subr.bf16.mxu0 %v6019_v13  ;;  %v6149_v13 = vld [vmem:[#allocation3 + $0x1d20] sm:$0xff] }
 0xcb7   :  { %6057 = vmatpush1.bf16.msra.mxu0 %v6018_v57  ;;  %v6154_v57 = vld [vmem:[#allocation3 + $0x1d48] sm:$0xff] }
 0xcb8   :  { %6067 = vmatprep.subr.bf16.mxu0 %v5961_v59  ;;  %v6153_v59 = vld [vmem:[#allocation3 + $0x1d40] sm:$0xff] }
 0xcba   :  { %6059 = vmatmul.mubr.bf16.vlgmr.msra.gmra.mrb[32].mxu0 %v6022_v60 }
 0xcbb   :  { %6068 = vmatpush1.bf16.msra.mxu0 %v5960_v63  ;;  %6099 = vmatprep.mubr.bf16.mxu0 %v6023_v10  ;;  %v6012_v10 = vld [vmem:[#allocation3 + $0x1bb0] sm:$0xff]  ;;  %v6157_v63 = vld [vmem:[#allocation3 + $0x1d60] sm:$0xff] }
 0xcbc   :  { %6069 = vmatprep.subr.bf16.mxu0 %v5965_v2  ;;  %v6162_v2 = vld [vmem:[#allocation3 + $0x1d88] sm:$0xff] }
 0xcbf   :  { %6070 = vmatpush1.bf16.msra.mxu0 %v5964_v5  ;;  %v6161_v5 = vld [vmem:[#allocation3 + $0x1d80] sm:$0xff] }
 0xcc0   :  { %6071 = vmatprep.subr.bf16.mxu0 %v5969_v39  ;;  %v6166_v39 = vld [vmem:[#allocation3 + $0x1da8] sm:$0xff] }
 0xcc3   :  { %6072 = vmatpush1.bf16.msra.mxu0 %v5968_v25  ;;  %v6165_v25 = vld [vmem:[#allocation3 + $0x1da0] sm:$0xff] }
 0xcc4   :  { %6073 = vmatprep.subr.bf16.mxu0 %v5973_v7  ;;  %v6170_v7 = vld [vmem:[#allocation3 + $0x1dc8] sm:$0xff] }
 0xcc7   :  { %6074 = vmatpush1.bf16.msra.mxu0 %v5972_v9  ;;  %v6169_v9 = vld [vmem:[#allocation3 + $0x1dc0] sm:$0xff] }
 0xcc8   :  { %6075 = vmatprep.subr.bf16.mxu0 %v5977_v11  ;;  %v6174_v11 = vld [vmem:[#allocation3 + $0x1de8] sm:$0xff] }
 0xccb   :  { %6076 = vmatpush1.bf16.msra.mxu0 %v5976_v12  ;;  %v6173_v12 = vld [vmem:[#allocation3 + $0x1de0] sm:$0xff] }
 0xccc   :  { %6077 = vmatprep.subr.bf16.mxu0 %v5981_v44  ;;  %v6116_v44 = vld [vmem:[#allocation3 + $0x1c18] sm:$0xff] }
 0xccf   :  { %6078 = vmatpush1.bf16.msra.mxu0 %v5980_v50  ;;  %v6177_v50 = vrot.slane %v8584_v14, 6 }
 0xcd0   :  { %6079 = vmatprep.subr.bf16.mxu0 %v5985_v62  ;;  %v6115_v62 = vld [vmem:[#allocation3 + $0x1c10] sm:$0xff] }
 0xcd3   :  { %6080 = vmatpush1.bf16.msra.mxu0 %v5984_v17  ;;  %v6120_v17 = vld [vmem:[#allocation3 + $0x1c38] sm:$0xff] }
 0xcd4   :  { %6081 = vmatprep.subr.bf16.mxu0 %v5989_v18  ;;  %v6119_v18 = vld [vmem:[#allocation3 + $0x1c30] sm:$0xff] }
 0xcd7   :  { %6082 = vmatpush1.bf16.msra.mxu0 %v5988_v22  ;;  %v6124_v22 = vld [vmem:[#allocation3 + $0x1c58] sm:$0xff] }
 0xcd8   :  { %6083 = vmatprep.subr.bf16.mxu0 %v5993_v48  ;;  %v6123_v48 = vld [vmem:[#allocation3 + $0x1c50] sm:$0xff] }
 0xcdb   :  { %6084 = vmatpush1.bf16.msra.mxu0 %v5992_v15  ;;  %v6128_v15 = vld [vmem:[#allocation3 + $0x1c78] sm:$0xff] }
 0xcdc   :  { %6085 = vmatprep.subr.bf16.mxu0 %v5997_v55  ;;  %v6127_v55 = vld [vmem:[#allocation3 + $0x1c70] sm:$0xff] }
 0xcdf   :  { %6086 = vmatpush1.bf16.msra.mxu0 %v5996_v30  ;;  %v6132_v30 = vld [vmem:[#allocation3 + $0x1c98] sm:$0xff] }
 0xce0   :  { %6087 = vmatprep.subr.bf16.mxu0 %v6001_v26  ;;  %v6131_v26 = vld [vmem:[#allocation3 + $0x1c90] sm:$0xff] }
 0xce3   :  { %6088 = vmatpush1.bf16.msra.mxu0 %v6000_v27  ;;  %v6136_v27 = vld [vmem:[#allocation3 + $0x1cb8] sm:$0xff] }
 0xce4   :  { %6089 = vmatprep.subr.bf16.mxu0 %v6005_v33 }
 0xce7   :  { %6090 = vmatpush1.bf16.msra.mxu0 %v6004_v37  ;;  %v6135_v37 = vld [vmem:[#allocation3 + $0x1cb0] sm:$0xff] }
 0xce8   :  { %6091 = vmatprep.subr.bf16.mxu0 %v6009_v21 }
 0xceb   :  { %6092 = vmatpush1.bf16.msra.mxu0 %v6008_v4  ;;  %v6140_v4 = vld [vmem:[#allocation3 + $0x1cd8] sm:$0xff] }
 0xcec   :  { %6093 = vmatprep.subr.bf16.mxu0 %v6013_v38 }
 0xcef   :  { %6094 = vmatpush1.bf16.msra.mxu0 %v6012_v10 }
 0xcf0   :  { %6095 = vmatprep.subr.bf16.mxu0 %v6017_v40  ;;  %v6139_v40 = vld [vmem:[#allocation3 + $0x1cd0] sm:$0xff] }
 0xcf3   :  { %6096 = vmatpush1.bf16.msra.mxu0 %v6016_v46  ;;  %v6144_v46 = vld [vmem:[#allocation3 + $0x1cf8] sm:$0xff] }
 0xcf4   :  { %6097 = vmatprep.subr.bf16.mxu0 %v6021_v24  ;;  %v6143_v24 = vld [vmem:[#allocation3 + $0x1cf0] sm:$0xff] }
 0xcf7   :  { %6098 = vmatpush1.bf16.msra.mxu0 %v6020_v1  ;;  %v6148_v1 = vld [vmem:[#allocation3 + $0x1d18] sm:$0xff] }
 0xcf8   :  { %6181 = vmatprep.subr.bf16.mxu0 %v6114_v3  ;;  %v6147_v3 = vld [vmem:[#allocation3 + $0x1d10] sm:$0xff] }
 0xcfa   :  { %6100 = vmatmul.mubr.bf16.vlgmr.msra.gmra.mrb[28].mxu0 %v6022_v60  ;;  %v6158_v60 = vld [vmem:[#allocation3 + $0x1d68] sm:$0xff] }
 0xcfb   :  { %6182 = vmatpush1.bf16.msra.mxu0 %v6113_v61  ;;  %6213 = vmatprep.mubr.bf16.mxu0 %v6178_v6  ;;  %v6152_v61 = vld [vmem:[#allocation3 + $0x1d38] sm:$0xff] }
 0xcfc   :  { %6183 = vmatprep.subr.bf16.mxu0 %v6118_v16  ;;  %v6156_v16 = vld [vmem:[#allocation3 + $0x1d58] sm:$0xff] }
 0xcff   :  { %6184 = vmatpush1.bf16.msra.mxu0 %v6117_v56  ;;  %v6155_v56 = vld [vmem:[#allocation3 + $0x1d50] sm:$0xff] }
 0xd00   :  { %6185 = vmatprep.subr.bf16.mxu0 %v6122_v58  ;;  %v6160_v58 = vld [vmem:[#allocation3 + $0x1d78] sm:$0xff] }
 0xd03   :  { %6186 = vmatpush1.bf16.msra.mxu0 %v6121_v0  ;;  %v6159_v0 = vld [vmem:[#allocation3 + $0x1d70] sm:$0xff] }
 0xd04   :  { %6187 = vmatprep.subr.bf16.mxu0 %v6126_v31  ;;  %v6164_v31 = vld [vmem:[#allocation3 + $0x1d98] sm:$0xff] }
 0xd07   :  { %6188 = vmatpush1.bf16.msra.mxu0 %v6125_v34  ;;  %v6163_v34 = vld [vmem:[#allocation3 + $0x1d90] sm:$0xff] }
 0xd08   :  { %6189 = vmatprep.subr.bf16.mxu0 %v6130_v19  ;;  %v6168_v19 = vld [vmem:[#allocation3 + $0x1db8] sm:$0xff] }
 0xd0b   :  { %6190 = vmatpush1.bf16.msra.mxu0 %v6129_v35  ;;  %v6167_v35 = vld [vmem:[#allocation3 + $0x1db0] sm:$0xff] }
 0xd0c   :  { %v8702_v23 = vpop.f32.mrb[88].mxu1  ;;  %6191 = vmatprep.subr.bf16.mxu0 %v6134_v41  ;;  %v6172_v41 = vld [vmem:[#allocation3 + $0x1dd8] sm:$0xff] }
 0xd0d   :  { %v8704_v43 = vpop.f32.mrb[89].mxu1 }
 0xd0e   :  { %v4867_v45 = vpop.f32.mrb[90].mxu1 }
 0xd0f   :  { %6192 = vmatpush1.bf16.msra.mxu0 %v6133_v42  ;;  %v4868_v47 = vpop.f32.mrb[91].mxu1  ;;  %v6171_v42 = vld [vmem:[#allocation3 + $0x1dd0] sm:$0xff] }
 0xd10   :  { %6193 = vmatprep.subr.bf16.mxu0 %v6138_v28  ;;  %v6176_v28 = vld [vmem:[#allocation3 + $0x1df8] sm:$0xff]  ;;  %v6175_v45 = vld [vmem:[#allocation3 + $0x1df0] sm:$0xff]  ;;  %v6269_v47 = vld [vmem:[#allocation3 + $0x1e08] sm:$0xff] }
 0xd13   :  { %6194 = vmatpush1.bf16.msra.mxu0 %v6137_v49  ;;  %v6268_v49 = vld [vmem:[#allocation3 + $0x1e00] sm:$0xff] }
 0xd14   :  { %6195 = vmatprep.subr.bf16.mxu0 %v6142_v54  ;;  %v6333_v54 = vrot.slane %v8586_v20, 7  ;;  %v6295_v20 = vld [vmem:[#allocation3 + $0x1ed8] sm:$0xff] }
 0xd17   :  { %6196 = vmatpush1.bf16.msra.mxu0 %v6141_v51  ;;  %v6273_v51 = vld [vmem:[#allocation3 + $0x1e28] sm:$0xff] }
 0xd18   :  { %6197 = vmatprep.subr.bf16.mxu0 %v6146_v8  ;;  %v6272_v8 = vld [vmem:[#allocation3 + $0x1e20] sm:$0xff] }
 0xd1b   :  { %6198 = vmatpush1.bf16.msra.mxu0 %v6145_v52  ;;  %v6277_v52 = vld [vmem:[#allocation3 + $0x1e48] sm:$0xff] }
 0xd1c   :  { %6199 = vmatprep.subr.bf16.mxu0 %v6150_v53  ;;  %v6276_v53 = vld [vmem:[#allocation3 + $0x1e40] sm:$0xff] }
 0xd1f   :  { %6200 = vmatpush1.bf16.msra.mxu0 %v6149_v13  ;;  %v6281_v13 = vld [vmem:[#allocation3 + $0x1e68] sm:$0xff] }
 0xd20   :  { %6201 = vmatprep.subr.bf16.mxu0 %v6154_v57  ;;  %v6280_v57 = vld [vmem:[#allocation3 + $0x1e60] sm:$0xff] }
 0xd23   :  { %6202 = vmatpush1.bf16.msra.mxu0 %v6153_v59  ;;  %v6285_v59 = vld [vmem:[#allocation3 + $0x1e88] sm:$0xff] }
 0xd24   :  { %6203 = vmatprep.subr.bf16.mxu0 %v6158_v60  ;;  %v6284_v60 = vld [vmem:[#allocation3 + $0x1e80] sm:$0xff] }
 0xd27   :  { %6204 = vmatpush1.bf16.msra.mxu0 %v6157_v63  ;;  %v6289_v63 = vld [vmem:[#allocation3 + $0x1ea8] sm:$0xff] }
 0xd28   :  { %6205 = vmatprep.subr.bf16.mxu0 %v6162_v2  ;;  %v6288_v2 = vld [vmem:[#allocation3 + $0x1ea0] sm:$0xff] }
 0xd2b   :  { %6206 = vmatpush1.bf16.msra.mxu0 %v6161_v5  ;;  %v6293_v5 = vld [vmem:[#allocation3 + $0x1ec8] sm:$0xff] }
 0xd2c   :  { %6207 = vmatprep.subr.bf16.mxu0 %v6166_v39  ;;  %v6292_v39 = vld [vmem:[#allocation3 + $0x1ec0] sm:$0xff] }
 0xd2f   :  { %6208 = vmatpush1.bf16.msra.mxu0 %v6165_v25  ;;  %v6297_v25 = vld [vmem:[#allocation3 + $0x1ee8] sm:$0xff] }
 0xd30   :  { %6209 = vmatprep.subr.bf16.mxu0 %v6170_v7  ;;  %v6296_v7 = vld [vmem:[#allocation3 + $0x1ee0] sm:$0xff] }
 0xd33   :  { %6210 = vmatpush1.bf16.msra.mxu0 %v6169_v9  ;;  %v6301_v9 = vld [vmem:[#allocation3 + $0x1f08] sm:$0xff] }
 0xd34   :  { %6211 = vmatprep.subr.bf16.mxu0 %v6174_v11  ;;  %v6300_v11 = vld [vmem:[#allocation3 + $0x1f00] sm:$0xff] }
 0xd37   :  { %6212 = vmatpush1.bf16.msra.mxu0 %v6173_v12  ;;  %v6305_v12 = vld [vmem:[#allocation3 + $0x1f28] sm:$0xff] }
 0xd38   :  { %6222 = vmatprep.subr.bf16.mxu0 %v6116_v44  ;;  %v6304_v44 = vld [vmem:[#allocation3 + $0x1f20] sm:$0xff] }
 0xd3a   :  { %6214 = vmatmul.mubr.bf16.vlgmr.msra.gmra.mrb[32].mxu0 %v6177_v50 }
 0xd3b   :  { %6223 = vmatpush1.bf16.msra.mxu0 %v6115_v62  ;;  %6254 = vmatprep.mubr.bf16.mxu0 %v6178_v6  ;;  %v6151_v6 = vld [vmem:[#allocation3 + $0x1d30] sm:$0xff]  ;;  %v6308_v62 = vld [vmem:[#allocation3 + $0x1f40] sm:$0xff] }
 0xd3c   :  { %6224 = vmatprep.subr.bf16.mxu0 %v6120_v17  ;;  %v6313_v17 = vld [vmem:[#allocation3 + $0x1f68] sm:$0xff] }
 0xd3f   :  { %6225 = vmatpush1.bf16.msra.mxu0 %v6119_v18  ;;  %v6312_v18 = vld [vmem:[#allocation3 + $0x1f60] sm:$0xff] }
 0xd40   :  { %6226 = vmatprep.subr.bf16.mxu0 %v6124_v22  ;;  %v6317_v22 = vld [vmem:[#allocation3 + $0x1f88] sm:$0xff] }
 0xd43   :  { %6227 = vmatpush1.bf16.msra.mxu0 %v6123_v48  ;;  %v6316_v48 = vld [vmem:[#allocation3 + $0x1f80] sm:$0xff] }
 0xd44   :  { %6228 = vmatprep.subr.bf16.mxu0 %v6128_v15  ;;  %v6321_v15 = vld [vmem:[#allocation3 + $0x1fa8] sm:$0xff] }
 0xd47   :  { %6229 = vmatpush1.bf16.msra.mxu0 %v6127_v55  ;;  %v6320_v55 = vld [vmem:[#allocation3 + $0x1fa0] sm:$0xff] }
 0xd48   :  { %6230 = vmatprep.subr.bf16.mxu0 %v6132_v30  ;;  %v6325_v30 = vld [vmem:[#allocation3 + $0x1fc8] sm:$0xff] }
 0xd4b   :  { %6231 = vmatpush1.bf16.msra.mxu0 %v6131_v26  ;;  %v6324_v26 = vld [vmem:[#allocation3 + $0x1fc0] sm:$0xff] }
 0xd4c   :  { %v8711_v33 = vpop.f32.mrb[84].mxu1  ;;  %6232 = vmatprep.subr.bf16.mxu0 %v6136_v27  ;;  %v6329_v27 = vld [vmem:[#allocation3 + $0x1fe8] sm:$0xff] }
 0xd4d   :  { %v8713_v21 = vpop.f32.mrb[85].mxu1 }
 0xd4e   :  { %v4981_v38 = vpop.f32.mrb[86].mxu1 }
 0xd4f   :  { %6233 = vmatpush1.bf16.msra.mxu0 %v6135_v37  ;;  %v4982_v10 = vpop.f32.mrb[87].mxu1  ;;  %v6328_v37 = vld [vmem:[#allocation3 + $0x1fe0] sm:$0xff]  ;;  %v6332_v38 = vrot.slane %v8584_v14, 7 }
 0xd50   :  { %6234 = vmatprep.subr.bf16.mxu0 %v6140_v4  ;;  %v6271_v4 = vld [vmem:[#allocation3 + $0x1e18] sm:$0xff]  ;;  %v6270_v10 = vld [vmem:[#allocation3 + $0x1e10] sm:$0xff] }
 0xd53   :  { %6235 = vmatpush1.bf16.msra.mxu0 %v6139_v40  ;;  %v6275_v40 = vld [vmem:[#allocation3 + $0x1e38] sm:$0xff] }
 0xd54   :  { %6236 = vmatprep.subr.bf16.mxu0 %v6144_v46  ;;  %v6274_v46 = vld [vmem:[#allocation3 + $0x1e30] sm:$0xff] }
 0xd57   :  { %6237 = vmatpush1.bf16.msra.mxu0 %v6143_v24  ;;  %v6279_v24 = vld [vmem:[#allocation3 + $0x1e58] sm:$0xff] }
 0xd58   :  { %6238 = vmatprep.subr.bf16.mxu0 %v6148_v1  ;;  %v6278_v1 = vld [vmem:[#allocation3 + $0x1e50] sm:$0xff] }
 0xd5b   :  { %6239 = vmatpush1.bf16.msra.mxu0 %v6147_v3  ;;  %v6283_v3 = vld [vmem:[#allocation3 + $0x1e78] sm:$0xff] }
 0xd5c   :  { %6240 = vmatprep.subr.bf16.mxu0 %v6152_v61  ;;  %v6282_v61 = vld [vmem:[#allocation3 + $0x1e70] sm:$0xff] }
 0xd5f   :  { %6241 = vmatpush1.bf16.msra.mxu0 %v6151_v6  ;;  %v6287_v6 = vld [vmem:[#allocation3 + $0x1e98] sm:$0xff] }
 0xd60   :  { %6242 = vmatprep.subr.bf16.mxu0 %v6156_v16  ;;  %v6286_v16 = vld [vmem:[#allocation3 + $0x1e90] sm:$0xff] }
 0xd63   :  { %6243 = vmatpush1.bf16.msra.mxu0 %v6155_v56  ;;  %v6291_v56 = vld [vmem:[#allocation3 + $0x1eb8] sm:$0xff] }
 0xd64   :  { %6244 = vmatprep.subr.bf16.mxu0 %v6160_v58  ;;  %v6290_v58 = vld [vmem:[#allocation3 + $0x1eb0] sm:$0xff] }
 0xd67   :  { %6245 = vmatpush1.bf16.msra.mxu0 %v6159_v0  ;;  %v6294_v0 = vld [vmem:[#allocation3 + $0x1ed0] sm:$0xff] }
 0xd68   :  { %6246 = vmatprep.subr.bf16.mxu0 %v6164_v31  ;;  %v6299_v31 = vld [vmem:[#allocation3 + $0x1ef8] sm:$0xff] }
 0xd6b   :  { %6247 = vmatpush1.bf16.msra.mxu0 %v6163_v34  ;;  %v6298_v34 = vld [vmem:[#allocation3 + $0x1ef0] sm:$0xff] }
 0xd6c   :  { %6248 = vmatprep.subr.bf16.mxu0 %v6168_v19  ;;  %v6303_v19 = vld [vmem:[#allocation3 + $0x1f18] sm:$0xff] }
 0xd6f   :  { %6249 = vmatpush1.bf16.msra.mxu0 %v6167_v35  ;;  %v6302_v35 = vld [vmem:[#allocation3 + $0x1f10] sm:$0xff] }
 0xd70   :  { %6250 = vmatprep.subr.bf16.mxu0 %v6172_v41  ;;  %v6307_v41 = vld [vmem:[#allocation3 + $0x1f38] sm:$0xff] }
 0xd73   :  { %6251 = vmatpush1.bf16.msra.mxu0 %v6171_v42  ;;  %v6306_v42 = vld [vmem:[#allocation3 + $0x1f30] sm:$0xff] }
 0xd74   :  { %6252 = vmatprep.subr.bf16.mxu0 %v6176_v28  ;;  %v6311_v28 = vld [vmem:[#allocation3 + $0x1f58] sm:$0xff] }
 0xd77   :  { %6253 = vmatpush1.bf16.msra.mxu0 %v6175_v45  ;;  %v6310_v45 = vld [vmem:[#allocation3 + $0x1f50] sm:$0xff] }
 0xd78   :  { %6336 = vmatprep.subr.bf16.mxu0 %v6269_v47  ;;  %v6315_v47 = vld [vmem:[#allocation3 + $0x1f78] sm:$0xff] }
 0xd7a   :  { %6255 = vmatmul.mubr.bf16.vlgmr.msra.gmra.mrb[28].mxu0 %v6177_v50  ;;  %v6309_v50 = vld [vmem:[#allocation3 + $0x1f48] sm:$0xff] }
 0xd7b   :  { %6337 = vmatpush1.bf16.msra.mxu0 %v6268_v49  ;;  %6368 = vmatprep.mubr.bf16.mxu0 %v6333_v54  ;;  %v6314_v49 = vld [vmem:[#allocation3 + $0x1f70] sm:$0xff] }
 0xd7c   :  { %6338 = vmatprep.subr.bf16.mxu0 %v6273_v51  ;;  %v6318_v51 = vld [vmem:[#allocation3 + $0x1f90] sm:$0xff] }
 0xd7f   :  { %6339 = vmatpush1.bf16.msra.mxu0 %v6272_v8  ;;  %v6323_v8 = vld [vmem:[#allocation3 + $0x1fb8] sm:$0xff] }
 0xd80   :  { %6340 = vmatprep.subr.bf16.mxu0 %v6277_v52  ;;  %v6322_v52 = vld [vmem:[#allocation3 + $0x1fb0] sm:$0xff] }
 0xd83   :  { %6341 = vmatpush1.bf16.msra.mxu0 %v6276_v53  ;;  %v6327_v53 = vld [vmem:[#allocation3 + $0x1fd8] sm:$0xff] }
 0xd84   :  { %6342 = vmatprep.subr.bf16.mxu0 %v6281_v13  ;;  %v6326_v13 = vld [vmem:[#allocation3 + $0x1fd0] sm:$0xff] }
 0xd87   :  { %6343 = vmatpush1.bf16.msra.mxu0 %v6280_v57  ;;  %v6331_v57 = vld [vmem:[#allocation3 + $0x1ff8] sm:$0xff] }
 0xd88   :  { %6344 = vmatprep.subr.bf16.mxu0 %v6285_v59  ;;  %v6330_v59 = vld [vmem:[#allocation3 + $0x1ff0] sm:$0xff] }
 0xd8b   :  { %6345 = vmatpush1.bf16.msra.mxu0 %v6284_v60 }
 0xd8c   :  { %6346 = vmatprep.subr.bf16.mxu0 %v6289_v63 }
 0xd8f   :  { %6347 = vmatpush1.bf16.msra.mxu0 %v6288_v2 }
 0xd90   :  { %6348 = vmatprep.subr.bf16.mxu0 %v6293_v5 }
 0xd93   :  { %6349 = vmatpush1.bf16.msra.mxu0 %v6292_v39 }
 0xd94   :  { %6350 = vmatprep.subr.bf16.mxu0 %v6297_v25 }
 0xd97   :  { %6351 = vmatpush1.bf16.msra.mxu0 %v6296_v7 }
 0xd98   :  { %6352 = vmatprep.subr.bf16.mxu0 %v6301_v9 }
 0xd9b   :  { %6353 = vmatpush1.bf16.msra.mxu0 %v6300_v11 }
 0xd9c   :  { %6354 = vmatprep.subr.bf16.mxu0 %v6305_v12 }
 0xd9f   :  { %6355 = vmatpush1.bf16.msra.mxu0 %v6304_v44 }
 0xda0   :  { %6356 = vmatprep.subr.bf16.mxu0 %v6309_v50 }
 0xda3   :  { %6357 = vmatpush1.bf16.msra.mxu0 %v6308_v62 }
 0xda4   :  { %6358 = vmatprep.subr.bf16.mxu0 %v6313_v17 }
 0xda7   :  { %6359 = vmatpush1.bf16.msra.mxu0 %v6312_v18 }
 0xda8   :  { %6360 = vmatprep.subr.bf16.mxu0 %v6317_v22 }
 0xdab   :  { %6361 = vmatpush1.bf16.msra.mxu0 %v6316_v48 }
 0xdac   :  { %6362 = vmatprep.subr.bf16.mxu0 %v6321_v15 }
 0xdaf   :  { %6363 = vmatpush1.bf16.msra.mxu0 %v6320_v55 }
 0xdb0   :  { %6364 = vmatprep.subr.bf16.mxu0 %v6325_v30 }
 0xdb3   :  { %6365 = vmatpush1.bf16.msra.mxu0 %v6324_v26 }
 0xdb4   :  { %6366 = vmatprep.subr.bf16.mxu0 %v6329_v27 }
 0xdb7   :  { %6367 = vmatpush1.bf16.msra.mxu0 %v6328_v37 }
 0xdb8   :  { %6377 = vmatprep.subr.bf16.mxu0 %v6271_v4 }
 0xdba   :  { %6369 = vmatmul.mubr.bf16.vlgmr.msra.gmra.mrb[32].mxu0 %v6332_v38 }
 0xdbb   :  { %6378 = vmatpush1.bf16.msra.mxu0 %v6270_v10  ;;  %6409 = vmatprep.mubr.bf16.mxu0 %v6333_v54  ;;  %v6319_v54 = vld [vmem:[#allocation3 + $0x1f98] sm:$0xff] }
 0xdbc   :  { %6379 = vmatprep.subr.bf16.mxu0 %v6275_v40 }
 0xdbf   :  { %6380 = vmatpush1.bf16.msra.mxu0 %v6274_v46 }
 0xdc0   :  { %6381 = vmatprep.subr.bf16.mxu0 %v6279_v24 }
 0xdc3   :  { %6382 = vmatpush1.bf16.msra.mxu0 %v6278_v1 }
 0xdc4   :  { %6383 = vmatprep.subr.bf16.mxu0 %v6283_v3 }
 0xdc7   :  { %6384 = vmatpush1.bf16.msra.mxu0 %v6282_v61 }
 0xdc8   :  { %6385 = vmatprep.subr.bf16.mxu0 %v6287_v6 }
 0xdcb   :  { %6386 = vmatpush1.bf16.msra.mxu0 %v6286_v16 }
 0xdcc   :  { %6387 = vmatprep.subr.bf16.mxu0 %v6291_v56 }
 0xdcf   :  { %6388 = vmatpush1.bf16.msra.mxu0 %v6290_v58 }
 0xdd0   :  { %6389 = vmatprep.subr.bf16.mxu0 %v6295_v20 }
 0xdd3   :  { %6390 = vmatpush1.bf16.msra.mxu0 %v6294_v0 }
 0xdd4   :  { %6391 = vmatprep.subr.bf16.mxu0 %v6299_v31 }
 0xdd7   :  { %6392 = vmatpush1.bf16.msra.mxu0 %v6298_v34 }
 0xdd8   :  { %6393 = vmatprep.subr.bf16.mxu0 %v6303_v19 }
 0xddb   :  { %6394 = vmatpush1.bf16.msra.mxu0 %v6302_v35  ;;  %v8733_v35 = vld [vmem:[#allocation17] sm:$0xf] }
 0xddc   :  { %6395 = vmatprep.subr.bf16.mxu0 %v6307_v41  ;;  %v8735_v41 = vld [vmem:[#allocation19] sm:$0xf] }
 0xddf   :  { %6396 = vmatpush1.bf16.msra.mxu0 %v6306_v42  ;;  %v6513_v42 = vrot.slane %v8733_v35, %v8548_v32 }
 0xde0   :  { %6397 = vmatprep.subr.bf16.mxu0 %v6311_v28 }
 0xde3   :  { %6398 = vmatpush1.bf16.msra.mxu0 %v6310_v45  ;;  %v6517_v45 = vrot.slane %v8733_v35, %v8551_v36 }
 0xde4   :  { %6399 = vmatprep.subr.bf16.mxu0 %v6315_v47 }
 0xde7   :  { %6400 = vmatpush1.bf16.msra.mxu0 %v6314_v49 }
 0xde8   :  { %6401 = vmatprep.subr.bf16.mxu0 %v6319_v54  ;;  %v6539_v54 = vrot.slane %v8735_v41, %v8548_v32 }
 0xdeb   :  { %6402 = vmatpush1.bf16.msra.mxu0 %v6318_v51 }
 0xdec   :  { %6403 = vmatprep.subr.bf16.mxu0 %v6323_v8  ;;  %v6543_v8 = vrot.slane %v8735_v41, %v8551_v36 }
 0xdef   :  { %6404 = vmatpush1.bf16.msra.mxu0 %v6322_v52 }
 0xdf0   :  { %6405 = vmatprep.subr.bf16.mxu0 %v6327_v53  ;;  %v8745_v53 = vld [vmem:[#allocation20] sm:$0xf] }
 0xdf3   :  { %6406 = vmatpush1.bf16.msra.mxu0 %v6326_v13 }
 0xdf4   :  { %6407 = vmatprep.subr.bf16.mxu0 %v6331_v57 }
 0xdf7   :  { %6408 = vmatpush1.bf16.msra.mxu0 %v6330_v59 }
 0xdfa   :  { %6410 = vmatmul.mubr.bf16.vlgmr.msra.gmra.mrb[28].mxu0 %v6332_v38 }
 0xe8d   :  { %v6370_v60 = vpop.f32.mrb[32].mxu0 }
 0xe8e   :  { %v7302_v63 = vadd.f32 %v6370_v60, %v8711_v33  ;;  %v6372_v2 = vpop.f32.mrb[33].mxu0  ;;  %v6577_v60 = vrot.slane %v8745_v53, %v8548_v32 }
 0xe8f   :  { %v7303_v5 = vadd.f32 %v6372_v2, %v8713_v21  ;;  %v6374_v39 = vpop.f32.mrb[34].mxu0  ;;  %v6581_v2 = vrot.slane %v8745_v53, %v8551_v36 }
 0xe90   :  { %v6423_v25 = vsel %vm6422_vm10, %v7302_v63, 0.0  ;;  %v6375_v7 = vpop.f32.mrb[35].mxu0 }
 0xe91   :  { %v6424_v9 = vrot.slane %v6423_v25, 4  ;;  %v6430_v11 = vsel %vm6422_vm10, %v7303_v5, 0.0 }
 0xe92   :  { %v6431_v12 = vrot.slane %v6430_v11, 4 }
 0xe93   :  { %v6425_v44 = vadd.f32 %v6424_v9, %v6423_v25 }
 0xe94   :  { %v6432_v50 = vadd.f32 %v6431_v12, %v6430_v11 }
 0xe95   :  { %v6426_v62 = vrot.slane %v6425_v44, 2 }
 0xe96   :  { %v6433_v14 = vrot.slane %v6432_v50, 2 }
 0xe97   :  { %v6427_v17 = vadd.f32 %v6426_v62, %v6425_v44 }
 0xe98   :  { %v6434_v18 = vadd.f32 %v6433_v14, %v6432_v50 }
 0xe99   :  { %v6428_v22 = vrot.slane %v6427_v17, 1 }
 0xe9a   :  { %v6435_v48 = vrot.slane %v6434_v18, 1 }
 0xe9b   :  { %v6429_v33 = vadd.f32 %v6428_v22, %v6427_v17 }
 0xe9c   :  { %v6436_v15 = vadd.f32 %v6435_v48, %v6434_v18 }
 0xe9d   :  { %v6452_v55 = vmul.f32 0.5, %v6429_v33 }
 0xe9e   :  { %v6453_v21 = vmul.f32 0.5, %v6436_v15 }
 0xe9f   :  { %v6456_v30 = vsub.f32 %v7302_v63, %v6452_v55 }
 0xea0   :  { %v6457_v26 = vsub.f32 %v7303_v5, %v6453_v21 }
 0xea1   :  { %v6460_v27 = vmul.f32 %v6456_v30, %v6456_v30 }
 0xea2   :  { %v6461_v37 = vmul.f32 %v6457_v26, %v6457_v26 }
 0xea3   :  { %v6464_v4 = vsel %vm6422_vm10, %v6460_v27, 0.0 }
 0xea4   :  { %v6465_v38 = vrot.slane %v6464_v4, 4  ;;  %v6471_v10 = vsel %vm6422_vm10, %v6461_v37, 0.0 }
 0xea5   :  { %v6472_v40 = vrot.slane %v6471_v10, 4 }
 0xea6   :  { %v6466_v46 = vadd.f32 %v6465_v38, %v6464_v4 }
 0xea7   :  { %v6473_v24 = vadd.f32 %v6472_v40, %v6471_v10 }
 0xea8   :  { %v6467_v1 = vrot.slane %v6466_v46, 2 }
 0xea9   :  { %v6474_v3 = vrot.slane %v6473_v24, 2 }
 0xeaa   :  { %v6468_v61 = vadd.f32 %v6467_v1, %v6466_v46 }
 0xeab   :  { %v6475_v6 = vadd.f32 %v6474_v3, %v6473_v24 }
 0xeac   :  { %v6469_v16 = vrot.slane %v6468_v61, 1 }
 0xead   :  { %v6476_v56 = vrot.slane %v6475_v6, 1 }
 0xeae   :  { %v6470_v58 = vadd.f32 %v6469_v16, %v6468_v61 }
 0xeaf   :  { %v6477_v20 = vadd.f32 %v6476_v56, %v6475_v6 }
 0xeb0   :  { %v6492_v0 = vmul.f32 0.5, %v6470_v58 }
 0xeb1   :  { %v6493_v31 = vmul.f32 0.5, %v6477_v20 }
 0xeb2   :  { %v6496_v34 = vadd.f32 1e-05, %v6492_v0 }
 0xeb3   :  { %v6497_v19 = vadd.f32 1e-05, %v6493_v31 }
 0xeb4   :  { %7685 = vrsqrt.f32 %v6496_v34 }
 0xeb5   :  { %7687 = vrsqrt.f32 %v6497_v19 }
 0xebe   :  { %v7686_v28 = vpop.eup %7685 }
 0xebf   :  { %v7688_v47 = vpop.eup %7687  ;;  %v6504_v49 = vmul.f32 %v7686_v28, %v6456_v30 }
 0xec0   :  { %v6505_v51 = vmul.f32 %v7688_v47, %v6457_v26 }
 0xec1   :  { %v6530_v52 = vmul.f32 %v6513_v42, %v6504_v49 }
 0xec2   :  { %v6531_v13 = vmul.f32 %v6517_v45, %v6505_v51 }
 0xec3   :  { %v6556_v57 = vadd.f32 %v6539_v54, %v6530_v52  ;;  %v6524_v52 = vsub.s32 3, %v8545_v29 }
 0xec4   :  { %v6557_v59 = vadd.f32 %v6543_v8, %v6531_v13  ;;  %v6520_v8 = vsub.s32 2, %v8545_v29 }
 0xec5   :  { %vm6560_vm11 = vcmp.gt.f32.partialorder %v6556_v57, 0.0  ;;  %v6564_v63 = vmul.f32 0.2, %v6556_v57 }
 0xec6   :  { %vm6561_vm12 = vcmp.gt.f32.partialorder %v6557_v59, 0.0  ;;  %v6565_v5 = vmul.f32 0.2, %v6557_v59  ;;  %v6521_v13 = vrot.slane %v8733_v35, %v6520_v8 }
 0xec7   :  { %v6568_v39 = vsel %vm6560_vm11, %v6556_v57, %v6564_v63 }
 0xec8   :  { %v6569_v25 = vsel %vm6561_vm12, %v6557_v59, %v6565_v5  ;;  %v6594_v7 = vmul.f32 %v6577_v60, %v6568_v39  ;;  %v6525_v59 = vrot.slane %v8733_v35, %v6524_v52  ;;  %v6551_v39 = vrot.slane %v8735_v41, %v6524_v52 }
 0xec9   :  { %v6595_v9 = vmul.f32 %v6581_v2, %v6569_v25  ;;  %v6547_v2 = vrot.slane %v8735_v41, %v6520_v8 }
 0xeca   :  { %v6598_v11 = vsel %vm6422_vm10, %v6594_v7, 0.0 }
 0xecb   :  { %v6599_v12 = vsel %vm6422_vm10, %v6595_v9, 0.0 }
 0xecc   :  { %v8753_v44 = vadd.f32 %v6599_v12, %v6598_v11  ;;  %v6585_v12 = vrot.slane %v8745_v53, %v6520_v8 }
 0xecd   :  { %v6411_v50 = vpop.f32.mrb[28].mxu0 }
 0xece   :  { %v7304_v32 = vadd.f32 %v6411_v50, %v8702_v23  ;;  %v6413_v62 = vpop.f32.mrb[29].mxu0  ;;  %v6589_v50 = vrot.slane %v8745_v53, %v6524_v52 }
 0xecf   :  { %v7305_v14 = vadd.f32 %v6413_v62, %v8704_v43  ;;  %v6415_v17 = vpop.f32.mrb[30].mxu0 }
 0xed0   :  { %v6437_v36 = vsel %vm6422_vm10, %v7304_v32, 0.0  ;;  %v6416_v18 = vpop.f32.mrb[31].mxu0 }
 0xed1   :  { %v6438_v22 = vrot.slane %v6437_v36, 4  ;;  %v6444_v48 = vsel %vm6422_vm10, %v7305_v14, 0.0 }
 0xed2   :  { %v6445_v33 = vrot.slane %v6444_v48, 4 }
 0xed3   :  { %v6439_v15 = vadd.f32 %v6438_v22, %v6437_v36 }
 0xed4   :  { %v6446_v55 = vadd.f32 %v6445_v33, %v6444_v48  ;;  %v6825_v48 = vld [vmem:[#allocation5] ss:$0 sm:$0xff] }
 0xed5   :  { %v6440_v21 = vrot.slane %v6439_v15, 2 }
 0xed6   :  { %v6447_v30 = vrot.slane %v6446_v55, 2 }
 0xed7   :  { %v6441_v26 = vadd.f32 %v6440_v21, %v6439_v15 }
 0xed8   :  { %v6448_v27 = vadd.f32 %v6447_v30, %v6446_v55 }
 0xed9   :  { %v6442_v37 = vrot.slane %v6441_v26, 1 }
 0xeda   :  { %v6449_v4 = vrot.slane %v6448_v27, 1 }
 0xedb   :  { %v6443_v23 = vadd.f32 %v6442_v37, %v6441_v26 }
 0xedc   :  { %v6450_v38 = vadd.f32 %v6449_v4, %v6448_v27 }
 0xedd   :  { %v6454_v10 = vmul.f32 0.5, %v6443_v23 }
 0xede   :  { %v6455_v43 = vmul.f32 0.5, %v6450_v38 }
 0xedf   :  { %v6458_v40 = vsub.f32 %v7304_v32, %v6454_v10 }
 0xee0   :  { %v6459_v46 = vsub.f32 %v7305_v14, %v6455_v43 }
 0xee1   :  { %v6462_v24 = vmul.f32 %v6458_v40, %v6458_v40 }
 0xee2   :  { %v6463_v1 = vmul.f32 %v6459_v46, %v6459_v46 }
 0xee3   :  { %v6478_v3 = vsel %vm6422_vm10, %v6462_v24, 0.0 }
 0xee4   :  { %v6479_v61 = vrot.slane %v6478_v3, 4  ;;  %v6485_v6 = vsel %vm6422_vm10, %v6463_v1, 0.0 }
 0xee5   :  { %v6486_v16 = vrot.slane %v6485_v6, 4 }
 0xee6   :  { %v6480_v56 = vadd.f32 %v6479_v61, %v6478_v3 }
 0xee7   :  { %v6487_v58 = vadd.f32 %v6486_v16, %v6485_v6 }
 0xee8   :  { %v6481_v20 = vrot.slane %v6480_v56, 2 }
 0xee9   :  { %v6488_v0 = vrot.slane %v6487_v58, 2 }
 0xeea   :  { %v6482_v31 = vadd.f32 %v6481_v20, %v6480_v56 }
 0xeeb   :  { %v6489_v34 = vadd.f32 %v6488_v0, %v6487_v58 }
 0xeec   :  { %v6483_v19 = vrot.slane %v6482_v31, 1 }
 0xeed   :  { %v6490_v42 = vrot.slane %v6489_v34, 1 }
 0xeee   :  { %v6484_v28 = vadd.f32 %v6483_v19, %v6482_v31 }
 0xeef   :  { %v6491_v45 = vadd.f32 %v6490_v42, %v6489_v34 }
 0xef0   :  { %v6494_v47 = vmul.f32 0.5, %v6484_v28 }
 0xef1   :  { %v6495_v49 = vmul.f32 0.5, %v6491_v45 }
 0xef2   :  { %v6498_v54 = vadd.f32 1e-05, %v6494_v47 }
 0xef3   :  { %v6499_v51 = vadd.f32 1e-05, %v6495_v49 }
 0xef4   :  { %7689 = vrsqrt.f32 %v6498_v54 }
 0xef5   :  { %7691 = vrsqrt.f32 %v6499_v51 }
 0xefe   :  { %v7690_v57 = vpop.eup %7689 }
 0xeff   :  { %v7692_v60 = vpop.eup %7691  ;;  %v6506_v63 = vmul.f32 %v7690_v57, %v6458_v40 }
 0xf00   :  { %v6507_v5 = vmul.f32 %v7692_v60, %v6459_v46 }
 0xf01   :  { %v6532_v25 = vmul.f32 %v6521_v13, %v6506_v63 }
 0xf02   :  { %v6533_v7 = vmul.f32 %v6525_v59, %v6507_v5 }
 0xf03   :  { %v6558_v9 = vadd.f32 %v6547_v2, %v6532_v25 }
 0xf04   :  { %v6559_v11 = vadd.f32 %v6551_v39, %v6533_v7 }
 0xf05   :  { %vm6562_vm13 = vcmp.gt.f32.partialorder %v6558_v9, 0.0  ;;  %v6566_v29 = vmul.f32 0.2, %v6558_v9 }
 0xf06   :  { %vm6563_vm14 = vcmp.gt.f32.partialorder %v6559_v11, 0.0  ;;  %v6567_v32 = vmul.f32 0.2, %v6559_v11 }
 0xf07   :  { %v6570_v35 = vsel %vm6562_vm13, %v6558_v9, %v6566_v29 }
 0xf08   :  { %v6571_v62 = vsel %vm6563_vm14, %v6559_v11, %v6567_v32  ;;  %v6596_v14 = vmul.f32 %v6585_v12, %v6570_v35 }
 0xf09   :  { %v6597_v17 = vmul.f32 %v6589_v50, %v6571_v62 }
 0xf0a   :  { %v6601_v36 = vsel %vm6422_vm10, %v6596_v14, 0.0 }
 0xf0b   :  { %v6602_v41 = vadd.f32 %v6601_v36, %v8753_v44  ;;  %v6603_v18 = vsel %vm6422_vm10, %v6597_v17, 0.0 }
 0xf0d   :  { %v6604_v22 = vadd.f32 %v6603_v18, %v6602_v41 }
 0xf0f   :  { %6605 = vadd.xlane.f32.xlu0 %v6604_v22 }
 0xf9c   :  { %v6606_v33 = vpop.xlane.xlu0 %6605 }
 0xf9d   :  { %v6614_v15 = vadd.f32 %v6825_v48, %v6606_v33 }
 0xf9f   :  { %v6615_v55 = vand.u32 2147483647, %v6614_v15  ;;  %vm6619_vm1 = vcmp.ge.f32.partialorder %v6614_v15, 0.0 }
 0xfa1   :  { %v6616_v21 = vsub.f32 0.0, %v6615_v55 }
 0xfa3   :  { %v6617_v53 = vmul.f32 1.442695, %v6616_v21 }
 0xfa5   :  { %7693 = vpow2.f32 %v6617_v53 }
 0xfaf   :  { %v7694_v30 = vpop.eup %7693 }
 0xfb0   :  { %v6620_v26 = vadd.f32 1.0, %v7694_v30 }
 0xfb2   :  { %7695 = vrcp.f32 %v6620_v26 }
 0xfbc   :  { %v7696_v27 = vpop.eup %7695 }
 0xfbd   :  { %v6623_v37 = vmul.f32 %v7696_v27, %v7694_v30 }
 0xfbf   :  { %v6624_v4 = vsel %vm6619_vm1, %v7696_v27, %v6623_v37 }
 0xfc0   :  { %6626 = vst.msk [vmem:[%s8791_s16] sm:$0x3] %vm6625_vm15, %v6624_v4 }
 0xfc1   :  { %6631 = vsyncpa [#allocation7], 1 }
 0xfc2   :  { %6632 = vsyncpa [#allocation9], 1 }
 0xfc3   :  { %6633 = vsyncpa [#allocation12], 1 }
 0xfc4   :  { %6634 = vsyncpa [#allocation15], 1 }
 0xfc5   :  { %6635 = vsyncpa [#allocation18], 1 }
 0xfc6   :  { %6636 = vsyncpa [#allocation21], 1 }
 0xfc7   :  { %6637 = vsyncmov [#allocation4] }
 0xfca   :  { %s6638_s23 = vpop.sfrf %6637 }
 0xfcb   :  { %p6826_p10 = scmp.ne.s32.totalorder %s6638_s23, 0 }
 0xfcd   :  { %6642 = shalt.err (%p6826_p10)  }
 0xfce   :  { %6644 = vsyncmov [#allocation4 + $0x1] }
 0xfd1   :  { %s6645_s27 = vpop.sfrf %6644 }
 0xfd2   :  { %p6827_p11 = scmp.ne.s32.totalorder %s6645_s27, 0 }
 0xfd4   :  { %6649 = shalt.err (%p6827_p11)  }

</bundles_post_ra>
